<compile_context>
chip_gen: v5e
topology: v5e:2x2
jax: 0.10.0
libtpu: 0.0.40
codegen_flags: <defaults>
</compile_context>

<pallas_src>
import jax
import jax.numpy as jnp
from jax.experimental import pallas as pl
from jax.experimental.pallas import tpu as pltpu


# ---------------------------------------------------------------------------
# helpers
# ---------------------------------------------------------------------------
def _round_up(x, m):
    return ((x + m - 1) // m) * m


def _pick_groups(total, rows_in_per_group, rows_out_per_group, max_m):
    """Largest divisor t of `total` such that the input block is <= max_m rows
    and the output block row count is sublane aligned (or the whole array)."""
    best = None
    for t in range(1, total + 1):
        if total % t:
            continue
        if t * rows_in_per_group > max_m:
            continue
        if (t * rows_out_per_group) % 8 != 0 and t != total:
            continue
        best = t
    return best if best is not None else total


# ---------------------------------------------------------------------------
# Conv + ReLU + MaxPool(2,2) kernel (batched rows, vectorized pooling)
# ---------------------------------------------------------------------------
def _conv_relu_pool_kernel(cols_ref, w_ref, b_ref, o_ref, ys, vs):
    # cols_ref : (M, KKC)    im2col patches; rows ordered (b, i2, j, p) so the
    #                        two rows (p) and then the two columns (j parity)
    #                        of every 2x2 pooling window are adjacent rows.
    # w_ref    : (KKC, Cout) flattened conv weight
    # b_ref    : (1, Cout)
    # o_ref    : (M//4, Cout) pooled output rows, ordered (b, i2, jj)
    # ys, vs   : VMEM scratch (M, Cout), (M//2, Cout)
    m = ys.shape[0]
    y = jnp.dot(cols_ref[...], w_ref[...], preferred_element_type=jnp.float32)
    ys[...] = jnp.maximum(y + b_ref[...], 0.0)
    # vertical pool: partners are adjacent rows -> one stride-2 max pass
    vs[...] = jnp.maximum(ys[pl.ds(0, m // 2, 2), :],
                          ys[pl.ds(1, m // 2, 2), :])
    # horizontal pool: partners are again adjacent rows of vs
    o_ref[...] = jnp.maximum(vs[pl.ds(0, m // 4, 2), :],
                             vs[pl.ds(1, m // 4, 2), :])


def _im2col_pool_order(x_nhwc, K, pad):
    """im2col (stride-1 KxK patches after zero padding), rows emitted in
    (b, i2, j, p) order with conv row i = 2*i2 + p, and the column axis
    zero-padded to a multiple of 8 (pad columns are dropped after the kernel)."""
    N, H, W, C = x_nhwc.shape
    xp = jnp.pad(x_nhwc, ((0, 0), (pad, pad), (pad, pad), (0, 0)))
    Ho = H + 2 * pad - K + 1
    Wo = W + 2 * pad - K + 1
    kkc = K * K * C
    patches = [xp[:, kh:kh + Ho, kw:kw + Wo, :]
               for kh in range(K) for kw in range(K)]
    cols = jnp.concatenate(patches, axis=-1)                 # (N, Ho, Wo, KKC)
    Wo_pad = _round_up(Wo, 8)
    cols = jnp.pad(cols, ((0, 0), (0, 0), (0, Wo_pad - Wo), (0, 0)))
    Hp = Ho // 2
    cols = cols.reshape(N, Hp, 2, Wo_pad, kkc)
    cols = jnp.transpose(cols, (0, 1, 3, 2, 4))              # (N, Hp, Wo_pad, 2, KKC)
    return cols.reshape(N * Hp * Wo_pad * 2, kkc), Ho, Wo, Wo_pad


def conv_relu_pool(x_nhwc, w, b, *, K, pad, max_m=2048):
    N, _, _, Cin = x_nhwc.shape
    Cout = w.shape[-1]
    kkc = K * K * Cin
    cols, Hc, Wc, Wc_pad = _im2col_pool_order(x_nhwc, K, pad)
    Hp, Wp, Wcp2 = Hc // 2, Wc // 2, Wc_pad // 2
    wf = w.reshape(kkc, Cout)

    total_groups = N * Hp                     # one group = one 2-row conv band
    T = _pick_groups(total_groups, 2 * Wc_pad, Wcp2, max_m)
    grid = (total_groups // T,)
    m_blk = T * 2 * Wc_pad                    # matmul M rows per grid step

    out = pl.pallas_call(
        _conv_relu_pool_kernel,
        out_shape=jax.ShapeDtypeStruct((total_groups * Wcp2, Cout), jnp.float32),
        grid_spec=pltpu.PrefetchScalarGridSpec(
            num_scalar_prefetch=0,
            grid=grid,
            in_specs=[
                pl.BlockSpec((m_blk, kkc), lambda g: (g, 0)),
                pl.BlockSpec((kkc, Cout), lambda g: (0, 0)),
                pl.BlockSpec((1, Cout), lambda g: (0, 0)),
            ],
            out_specs=pl.BlockSpec((T * Wcp2, Cout), lambda g: (g, 0)),
            scratch_shapes=[
                pltpu.VMEM((m_blk, Cout), jnp.float32),
                pltpu.VMEM((m_blk // 2, Cout), jnp.float32),
            ],
        ),
        compiler_params=pltpu.CompilerParams(
            dimension_semantics=("parallel",)),
    )(cols, wf, b.reshape(1, Cout))

    out = out.reshape(N, Hp, Wcp2, Cout)
    if Wcp2 != Wp:                            # drop the width-pad columns
        out = out[:, :, :Wp, :]
    return out


# ---------------------------------------------------------------------------
# layer4 (Linear 2048->625 + ReLU [+ Dropout]) and layer5 (Linear 625->10)
# ---------------------------------------------------------------------------
def _mlp_kernel(x_ref, w1_ref, b1_ref, w2_ref, b2_ref, o_ref):
    h = jnp.dot(x_ref[...], w1_ref[...], preferred_element_type=jnp.float32)
    h = jnp.maximum(h + b1_ref[...], 0.0)
    # TODO(synk): nn.Dropout(0.5) in PyTorch train mode is stochastic; applied
    # here as identity (eval semantics).
    o_ref[...] = (jnp.dot(h, w2_ref[...], preferred_element_type=jnp.float32)
                  + b2_ref[...])


def mlp(x, w1, b1, w2, b2, *, block_n=256):
    N, Kin = x.shape
    H = w1.shape[1]
    O = w2.shape[1]
    Hpad = _round_up(H, 128)                  # 625 -> 640, lane aligned
    if Hpad != H:
        w1 = jnp.pad(w1, ((0, 0), (0, Hpad - H)))
        b1 = jnp.pad(b1, (0, Hpad - H))
        w2 = jnp.pad(w2, ((0, Hpad - H), (0, 0)))
    tb = N if N <= block_n else block_n
    grid = (pl.cdiv(N, tb),)
    return pl.pallas_call(
        _mlp_kernel,
        out_shape=jax.ShapeDtypeStruct((N, O), jnp.float32),
        grid_spec=pltpu.PrefetchScalarGridSpec(
            num_scalar_prefetch=0,
            grid=grid,
            in_specs=[
                pl.BlockSpec((tb, Kin), lambda i: (i, 0)),
                pl.BlockSpec((Kin, Hpad), lambda i: (0, 0)),
                pl.BlockSpec((1, Hpad), lambda i: (0, 0)),
                pl.BlockSpec((Hpad, O), lambda i: (0, 0)),
                pl.BlockSpec((1, O), lambda i: (0, 0)),
            ],
            out_specs=pl.BlockSpec((tb, O), lambda i: (i, 0)),
        ),
        compiler_params=pltpu.CompilerParams(
            dimension_semantics=("parallel",)),
    )(x, w1, b1.reshape(1, Hpad), w2, b2.reshape(1, O))


# ---------------------------------------------------------------------------
# Full forward (mirrors CNN.forward)
# ---------------------------------------------------------------------------
def cnn_forward(x_nchw, p):
    x = jnp.transpose(x_nchw, (0, 2, 3, 1))                        # NCHW -> NHWC
    x = conv_relu_pool(x, p["w1"], p["b1"], K=3, pad=1)            # (N,14,14, 32)
    x = conv_relu_pool(x, p["w2"], p["b2"], K=3, pad=1)            # (N, 7, 7, 64)
    x = conv_relu_pool(x, p["w3"], p["b3"], K=2, pad=1)            # (N, 4, 4,128)
    # PyTorch .view(N, -1) flattens in NCHW order -> transpose back first.
    feat = jnp.transpose(x, (0, 3, 1, 2)).reshape(x.shape[0], -1)  # (N, 2048)
    return mlp(feat, p["w4"], p["b4"], p["w5"], p["b5"])           # (N, 10)


def init_params(key):
    ks = jax.random.split(key, 5)

    def conv_w(k, kh, kw, cin, cout):
        bound = (1.0 / (kh * kw * cin)) ** 0.5
        return jax.random.uniform(k, (kh, kw, cin, cout), jnp.float32,
                                  -bound, bound)

    xavier_bound = (6.0 / (625 + 10)) ** 0.5
    return {
        "w1": conv_w(ks[0], 3, 3, 1, 32),   "b1": jnp.zeros((32,), jnp.float32),
        "w2": conv_w(ks[1], 3, 3, 32, 64),  "b2": jnp.zeros((64,), jnp.float32),
        "w3": conv_w(ks[2], 2, 2, 64, 128), "b3": jnp.zeros((128,), jnp.float32),
        "w4": jax.random.uniform(ks[3], (128 * 4 * 4, 625), jnp.float32,
                                 -(1.0 / 2048) ** 0.5, (1.0 / 2048) ** 0.5),
        "b4": jnp.zeros((625,), jnp.float32),
        "w5": jax.random.uniform(ks[4], (625, 10), jnp.float32,
                                 -xavier_bound, xavier_bound),
        "b5": jnp.zeros((10,), jnp.float32),
    }


if __name__ == "__main__":
    key = jax.random.PRNGKey(0)
    k_x, k_p = jax.random.split(key)
    # PyTorch conv input layout NCHW; 28x28 single-channel (implied by 128*4*4).
    x = jax.random.normal(k_x, (2, 1, 28, 28), dtype=jnp.float32)
    params = init_params(k_p)

    out = jax.jit(cnn_forward)(x, params)
    out = jax.block_until_ready(out)

    assert out.shape == (2, 10), out.shape
    assert out.dtype == jnp.float32
    assert bool(jnp.all(jnp.isfinite(out)))
    print("KERNEL_OK")
</pallas_src>

<mosaic_0001>
module attributes {stable_mosaic.version = 11 : i64} {
  func.func @_conv_relu_pool_kernel(%arg0: i32, %arg1: memref<1792x9xf32, #tpu.memory_space<vmem>>, %arg2: memref<9x32xf32, #tpu.memory_space<vmem>>, %arg3: memref<1x32xf32, #tpu.memory_space<vmem>>, %arg4: memref<448x32xf32, #tpu.memory_space<vmem>>, %arg5: memref<1792x32xf32, #tpu.memory_space<vmem>>, %arg6: memref<896x32xf32, #tpu.memory_space<vmem>>) attributes {dimension_semantics = [#tpu.dimension_semantics<parallel>], iteration_bounds = array<i64: 1>, scalar_prefetch = 0 : i64, scratch_operands = 2 : i64, tpu.core_type = #tpu.core_type<tc>, window_params = [{transform_indices = @transform_0, window_bounds = array<i64: 1792, 9>}, {pipeline_mode = #tpu.pipeline_mode<synchronous>, transform_indices = @transform_1, window_bounds = array<i64: 9, 32>}, {pipeline_mode = #tpu.pipeline_mode<synchronous>, transform_indices = @transform_2, window_bounds = array<i64: 1, 32>}, {transform_indices = @transform_3, window_bounds = array<i64: 448, 32>}]} {
    %c0 = arith.constant 0 : index
    %c0_0 = arith.constant 0 : index
    %0 = vector.load %arg1[%c0, %c0_0] : memref<1792x9xf32, #tpu.memory_space<vmem>>, vector<1792x9xf32>
    %c0_1 = arith.constant 0 : index
    %c0_2 = arith.constant 0 : index
    %1 = vector.load %arg2[%c0_1, %c0_2] : memref<9x32xf32, #tpu.memory_space<vmem>>, vector<9x32xf32>
    %cst = arith.constant dense<0.000000e+00> : vector<1792x32xf32>
    %2 = tpu.matmul %0, %1, %cst {dimension_numbers = #tpu.dot_dimension_numbers<[1], [0], [0], [1], [0, 0, 1, 1], [], []>} : vector<1792x9xf32>, vector<9x32xf32>, vector<1792x32xf32> -> vector<1792x32xf32>
    %c0_3 = arith.constant 0 : index
    %c0_4 = arith.constant 0 : index
    %3 = vector.load %arg3[%c0_3, %c0_4] : memref<1x32xf32, #tpu.memory_space<vmem>>, vector<1x32xf32>
    %4 = vector.broadcast %3 : vector<1x32xf32> to vector<1792x32xf32>
    %5 = arith.addf %2, %4 : vector<1792x32xf32>
    %cst_5 = arith.constant 0.000000e+00 : f32
    %6 = vector.broadcast %cst_5 : f32 to vector<1792x32xf32>
    %7 = arith.maximumf %5, %6 : vector<1792x32xf32>
    %c0_6 = arith.constant 0 : index
    %c0_7 = arith.constant 0 : index
    %8 = vector.load %arg5[%c0_6, %c0_7] : memref<1792x32xf32, #tpu.memory_space<vmem>>, vector<1792x32xf32>
    tpu.vector_store %arg5[%c0_6, %c0_7], %7 {strides = array<i32>} : memref<1792x32xf32, #tpu.memory_space<vmem>>, vector<1792x32xf32>,
    %c0_8 = arith.constant 0 : index
    %c0_9 = arith.constant 0 : index
    %9 = tpu.strided_load %arg5[%c0_8, %c0_9] {strides = array<i32: 2, 1>} : memref<1792x32xf32, #tpu.memory_space<vmem>>, vector<896x32xf32>
    %c1 = arith.constant 1 : index
    %c0_10 = arith.constant 0 : index
    %10 = tpu.strided_load %arg5[%c1, %c0_10] {strides = array<i32: 2, 1>} : memref<1792x32xf32, #tpu.memory_space<vmem>>, vector<896x32xf32>
    %11 = arith.maximumf %9, %10 : vector<896x32xf32>
    %c0_11 = arith.constant 0 : index
    %c0_12 = arith.constant 0 : index
    %12 = vector.load %arg6[%c0_11, %c0_12] : memref<896x32xf32, #tpu.memory_space<vmem>>, vector<896x32xf32>
    tpu.vector_store %arg6[%c0_11, %c0_12], %11 {strides = array<i32>} : memref<896x32xf32, #tpu.memory_space<vmem>>, vector<896x32xf32>,
    %c0_13 = arith.constant 0 : index
    %c0_14 = arith.constant 0 : index
    %13 = tpu.strided_load %arg6[%c0_13, %c0_14] {strides = array<i32: 2, 1>} : memref<896x32xf32, #tpu.memory_space<vmem>>, vector<448x32xf32>
    %c1_15 = arith.constant 1 : index
    %c0_16 = arith.constant 0 : index
    %14 = tpu.strided_load %arg6[%c1_15, %c0_16] {strides = array<i32: 2, 1>} : memref<896x32xf32, #tpu.memory_space<vmem>>, vector<448x32xf32>
    %15 = arith.maximumf %13, %14 : vector<448x32xf32>
    %c0_17 = arith.constant 0 : index
    %c0_18 = arith.constant 0 : index
    %16 = vector.load %arg4[%c0_17, %c0_18] : memref<448x32xf32, #tpu.memory_space<vmem>>, vector<448x32xf32>
    tpu.vector_store %arg4[%c0_17, %c0_18], %15 {strides = array<i32>} : memref<448x32xf32, #tpu.memory_space<vmem>>, vector<448x32xf32>,
    return
  }
  func.func @transform_0(%arg0: i32) -> (i32, i32) {
    %c0_i32 = arith.constant 0 : i32
    %c0_i32_0 = arith.constant 0 : i32
    return %arg0, %c0_i32 : i32, i32
  }
  func.func @transform_1(%arg0: i32) -> (i32, i32) {
    %c0_i32 = arith.constant 0 : i32
    %c0_i32_0 = arith.constant 0 : i32
    %c0_i32_1 = arith.constant 0 : i32
    return %c0_i32, %c0_i32_0 : i32, i32
  }
  func.func @transform_2(%arg0: i32) -> (i32, i32) {
    %c0_i32 = arith.constant 0 : i32
    %c0_i32_0 = arith.constant 0 : i32
    %c0_i32_1 = arith.constant 0 : i32
    return %c0_i32, %c0_i32_0 : i32, i32
  }
  func.func @transform_3(%arg0: i32) -> (i32, i32) {
    %c0_i32 = arith.constant 0 : i32
    %c0_i32_0 = arith.constant 0 : i32
    return %arg0, %c0_i32 : i32, i32
  }
}

module attributes {stable_mosaic.version = 11 : i64} {
  func.func @_conv_relu_pool_kernel(%arg0: i32, %arg1: memref<448x288xf32, #tpu.memory_space<vmem>>, %arg2: memref<288x64xf32, #tpu.memory_space<vmem>>, %arg3: memref<1x64xf32, #tpu.memory_space<vmem>>, %arg4: memref<112x64xf32, #tpu.memory_space<vmem>>, %arg5: memref<448x64xf32, #tpu.memory_space<vmem>>, %arg6: memref<224x64xf32, #tpu.memory_space<vmem>>) attributes {dimension_semantics = [#tpu.dimension_semantics<parallel>], iteration_bounds = array<i64: 1>, scalar_prefetch = 0 : i64, scratch_operands = 2 : i64, tpu.core_type = #tpu.core_type<tc>, window_params = [{transform_indices = @transform_0, window_bounds = array<i64: 448, 288>}, {pipeline_mode = #tpu.pipeline_mode<synchronous>, transform_indices = @transform_1, window_bounds = array<i64: 288, 64>}, {pipeline_mode = #tpu.pipeline_mode<synchronous>, transform_indices = @transform_2, window_bounds = array<i64: 1, 64>}, {transform_indices = @transform_3, window_bounds = array<i64: 112, 64>}]} {
    %c0 = arith.constant 0 : index
    %c0_0 = arith.constant 0 : index
    %0 = vector.load %arg1[%c0, %c0_0] : memref<448x288xf32, #tpu.memory_space<vmem>>, vector<448x288xf32>
    %c0_1 = arith.constant 0 : index
    %c0_2 = arith.constant 0 : index
    %1 = vector.load %arg2[%c0_1, %c0_2] : memref<288x64xf32, #tpu.memory_space<vmem>>, vector<288x64xf32>
    %cst = arith.constant dense<0.000000e+00> : vector<448x64xf32>
    %2 = tpu.matmul %0, %1, %cst {dimension_numbers = #tpu.dot_dimension_numbers<[1], [0], [0], [1], [0, 0, 1, 1], [], []>} : vector<448x288xf32>, vector<288x64xf32>, vector<448x64xf32> -> vector<448x64xf32>
    %c0_3 = arith.constant 0 : index
    %c0_4 = arith.constant 0 : index
    %3 = vector.load %arg3[%c0_3, %c0_4] : memref<1x64xf32, #tpu.memory_space<vmem>>, vector<1x64xf32>
    %4 = vector.broadcast %3 : vector<1x64xf32> to vector<448x64xf32>
    %5 = arith.addf %2, %4 : vector<448x64xf32>
    %cst_5 = arith.constant 0.000000e+00 : f32
    %6 = vector.broadcast %cst_5 : f32 to vector<448x64xf32>
    %7 = arith.maximumf %5, %6 : vector<448x64xf32>
    %c0_6 = arith.constant 0 : index
    %c0_7 = arith.constant 0 : index
    %8 = vector.load %arg5[%c0_6, %c0_7] : memref<448x64xf32, #tpu.memory_space<vmem>>, vector<448x64xf32>
    tpu.vector_store %arg5[%c0_6, %c0_7], %7 {strides = array<i32>} : memref<448x64xf32, #tpu.memory_space<vmem>>, vector<448x64xf32>,
    %c0_8 = arith.constant 0 : index
    %c0_9 = arith.constant 0 : index
    %9 = tpu.strided_load %arg5[%c0_8, %c0_9] {strides = array<i32: 2, 1>} : memref<448x64xf32, #tpu.memory_space<vmem>>, vector<224x64xf32>
    %c1 = arith.constant 1 : index
    %c0_10 = arith.constant 0 : index
    %10 = tpu.strided_load %arg5[%c1, %c0_10] {strides = array<i32: 2, 1>} : memref<448x64xf32, #tpu.memory_space<vmem>>, vector<224x64xf32>
    %11 = arith.maximumf %9, %10 : vector<224x64xf32>
    %c0_11 = arith.constant 0 : index
    %c0_12 = arith.constant 0 : index
    %12 = vector.load %arg6[%c0_11, %c0_12] : memref<224x64xf32, #tpu.memory_space<vmem>>, vector<224x64xf32>
    tpu.vector_store %arg6[%c0_11, %c0_12], %11 {strides = array<i32>} : memref<224x64xf32, #tpu.memory_space<vmem>>, vector<224x64xf32>,
    %c0_13 = arith.constant 0 : index
    %c0_14 = arith.constant 0 : index
    %13 = tpu.strided_load %arg6[%c0_13, %c0_14] {strides = array<i32: 2, 1>} : memref<224x64xf32, #tpu.memory_space<vmem>>, vector<112x64xf32>
    %c1_15 = arith.constant 1 : index
    %c0_16 = arith.constant 0 : index
    %14 = tpu.strided_load %arg6[%c1_15, %c0_16] {strides = array<i32: 2, 1>} : memref<224x64xf32, #tpu.memory_space<vmem>>, vector<112x64xf32>
    %15 = arith.maximumf %13, %14 : vector<112x64xf32>
    %c0_17 = arith.constant 0 : index
    %c0_18 = arith.constant 0 : index
    %16 = vector.load %arg4[%c0_17, %c0_18] : memref<112x64xf32, #tpu.memory_space<vmem>>, vector<112x64xf32>
    tpu.vector_store %arg4[%c0_17, %c0_18], %15 {strides = array<i32>} : memref<112x64xf32, #tpu.memory_space<vmem>>, vector<112x64xf32>,
    return
  }
  func.func @transform_0(%arg0: i32) -> (i32, i32) {
    %c0_i32 = arith.constant 0 : i32
    %c0_i32_0 = arith.constant 0 : i32
    return %arg0, %c0_i32 : i32, i32
  }
  func.func @transform_1(%arg0: i32) -> (i32, i32) {
    %c0_i32 = arith.constant 0 : i32
    %c0_i32_0 = arith.constant 0 : i32
    %c0_i32_1 = arith.constant 0 : i32
    return %c0_i32, %c0_i32_0 : i32, i32
  }
  func.func @transform_2(%arg0: i32) -> (i32, i32) {
    %c0_i32 = arith.constant 0 : i32
    %c0_i32_0 = arith.constant 0 : i32
    %c0_i32_1 = arith.constant 0 : i32
    return %c0_i32, %c0_i32_0 : i32, i32
  }
  func.func @transform_3(%arg0: i32) -> (i32, i32) {
    %c0_i32 = arith.constant 0 : i32
    %c0_i32_0 = arith.constant 0 : i32
    return %arg0, %c0_i32 : i32, i32
  }
}

module attributes {stable_mosaic.version = 11 : i64} {
  func.func @_conv_relu_pool_kernel(%arg0: i32, %arg1: memref<128x256xf32, #tpu.memory_space<vmem>>, %arg2: memref<256x128xf32, #tpu.memory_space<vmem>>, %arg3: memref<1x128xf32, #tpu.memory_space<vmem>>, %arg4: memref<32x128xf32, #tpu.memory_space<vmem>>, %arg5: memref<128x128xf32, #tpu.memory_space<vmem>>, %arg6: memref<64x128xf32, #tpu.memory_space<vmem>>) attributes {dimension_semantics = [#tpu.dimension_semantics<parallel>], iteration_bounds = array<i64: 1>, scalar_prefetch = 0 : i64, scratch_operands = 2 : i64, tpu.core_type = #tpu.core_type<tc>, window_params = [{transform_indices = @transform_0, window_bounds = array<i64: 128, 256>}, {pipeline_mode = #tpu.pipeline_mode<synchronous>, transform_indices = @transform_1, window_bounds = array<i64: 256, 128>}, {pipeline_mode = #tpu.pipeline_mode<synchronous>, transform_indices = @transform_2, window_bounds = array<i64: 1, 128>}, {transform_indices = @transform_3, window_bounds = array<i64: 32, 128>}]} {
    %c0 = arith.constant 0 : index
    %c0_0 = arith.constant 0 : index
    %0 = vector.load %arg1[%c0, %c0_0] : memref<128x256xf32, #tpu.memory_space<vmem>>, vector<128x256xf32>
    %c0_1 = arith.constant 0 : index
    %c0_2 = arith.constant 0 : index
    %1 = vector.load %arg2[%c0_1, %c0_2] : memref<256x128xf32, #tpu.memory_space<vmem>>, vector<256x128xf32>
    %cst = arith.constant dense<0.000000e+00> : vector<128x128xf32>
    %2 = tpu.matmul %0, %1, %cst {dimension_numbers = #tpu.dot_dimension_numbers<[1], [0], [0], [1], [0, 0, 1, 1], [], []>} : vector<128x256xf32>, vector<256x128xf32>, vector<128x128xf32> -> vector<128x128xf32>
    %c0_3 = arith.constant 0 : index
    %c0_4 = arith.constant 0 : index
    %3 = vector.load %arg3[%c0_3, %c0_4] : memref<1x128xf32, #tpu.memory_space<vmem>>, vector<1x128xf32>
    %4 = vector.broadcast %3 : vector<1x128xf32> to vector<128x128xf32>
    %5 = arith.addf %2, %4 : vector<128x128xf32>
    %cst_5 = arith.constant 0.000000e+00 : f32
    %6 = vector.broadcast %cst_5 : f32 to vector<128x128xf32>
    %7 = arith.maximumf %5, %6 : vector<128x128xf32>
    %c0_6 = arith.constant 0 : index
    %c0_7 = arith.constant 0 : index
    %8 = vector.load %arg5[%c0_6, %c0_7] : memref<128x128xf32, #tpu.memory_space<vmem>>, vector<128x128xf32>
    tpu.vector_store %arg5[%c0_6, %c0_7], %7 {strides = array<i32>} : memref<128x128xf32, #tpu.memory_space<vmem>>, vector<128x128xf32>,
    %c0_8 = arith.constant 0 : index
    %c0_9 = arith.constant 0 : index
    %9 = tpu.strided_load %arg5[%c0_8, %c0_9] {strides = array<i32: 2, 1>} : memref<128x128xf32, #tpu.memory_space<vmem>>, vector<64x128xf32>
    %c1 = arith.constant 1 : index
    %c0_10 = arith.constant 0 : index
    %10 = tpu.strided_load %arg5[%c1, %c0_10] {strides = array<i32: 2, 1>} : memref<128x128xf32, #tpu.memory_space<vmem>>, vector<64x128xf32>
    %11 = arith.maximumf %9, %10 : vector<64x128xf32>
    %c0_11 = arith.constant 0 : index
    %c0_12 = arith.constant 0 : index
    %12 = vector.load %arg6[%c0_11, %c0_12] : memref<64x128xf32, #tpu.memory_space<vmem>>, vector<64x128xf32>
    tpu.vector_store %arg6[%c0_11, %c0_12], %11 {strides = array<i32>} : memref<64x128xf32, #tpu.memory_space<vmem>>, vector<64x128xf32>,
    %c0_13 = arith.constant 0 : index
    %c0_14 = arith.constant 0 : index
    %13 = tpu.strided_load %arg6[%c0_13, %c0_14] {strides = array<i32: 2, 1>} : memref<64x128xf32, #tpu.memory_space<vmem>>, vector<32x128xf32>
    %c1_15 = arith.constant 1 : index
    %c0_16 = arith.constant 0 : index
    %14 = tpu.strided_load %arg6[%c1_15, %c0_16] {strides = array<i32: 2, 1>} : memref<64x128xf32, #tpu.memory_space<vmem>>, vector<32x128xf32>
    %15 = arith.maximumf %13, %14 : vector<32x128xf32>
    %c0_17 = arith.constant 0 : index
    %c0_18 = arith.constant 0 : index
    %16 = vector.load %arg4[%c0_17, %c0_18] : memref<32x128xf32, #tpu.memory_space<vmem>>, vector<32x128xf32>
    tpu.vector_store %arg4[%c0_17, %c0_18], %15 {strides = array<i32>} : memref<32x128xf32, #tpu.memory_space<vmem>>, vector<32x128xf32>,
    return
  }
  func.func @transform_0(%arg0: i32) -> (i32, i32) {
    %c0_i32 = arith.constant 0 : i32
    %c0_i32_0 = arith.constant 0 : i32
    return %arg0, %c0_i32 : i32, i32
  }
  func.func @transform_1(%arg0: i32) -> (i32, i32) {
    %c0_i32 = arith.constant 0 : i32
    %c0_i32_0 = arith.constant 0 : i32
    %c0_i32_1 = arith.constant 0 : i32
    return %c0_i32, %c0_i32_0 : i32, i32
  }
  func.func @transform_2(%arg0: i32) -> (i32, i32) {
    %c0_i32 = arith.constant 0 : i32
    %c0_i32_0 = arith.constant 0 : i32
    %c0_i32_1 = arith.constant 0 : i32
    return %c0_i32, %c0_i32_0 : i32, i32
  }
  func.func @transform_3(%arg0: i32) -> (i32, i32) {
    %c0_i32 = arith.constant 0 : i32
    %c0_i32_0 = arith.constant 0 : i32
    return %arg0, %c0_i32 : i32, i32
  }
}

module attributes {stable_mosaic.version = 11 : i64} {
  func.func @_mlp_kernel(%arg0: i32, %arg1: memref<2x2048xf32, #tpu.memory_space<vmem>>, %arg2: memref<2048x640xf32, #tpu.memory_space<vmem>>, %arg3: memref<1x640xf32, #tpu.memory_space<vmem>>, %arg4: memref<640x10xf32, #tpu.memory_space<vmem>>, %arg5: memref<1x10xf32, #tpu.memory_space<vmem>>, %arg6: memref<2x10xf32, #tpu.memory_space<vmem>>) attributes {dimension_semantics = [#tpu.dimension_semantics<parallel>], iteration_bounds = array<i64: 1>, scalar_prefetch = 0 : i64, scratch_operands = 0 : i64, tpu.core_type = #tpu.core_type<tc>, window_params = [{transform_indices = @transform_0, window_bounds = array<i64: 2, 2048>}, {pipeline_mode = #tpu.pipeline_mode<synchronous>, transform_indices = @transform_1, window_bounds = array<i64: 2048, 640>}, {pipeline_mode = #tpu.pipeline_mode<synchronous>, transform_indices = @transform_2, window_bounds = array<i64: 1, 640>}, {pipeline_mode = #tpu.pipeline_mode<synchronous>, transform_indices = @transform_3, window_bounds = array<i64: 640, 10>}, {pipeline_mode = #tpu.pipeline_mode<synchronous>, transform_indices = @transform_4, window_bounds = array<i64: 1, 10>}, {transform_indices = @transform_5, window_bounds = array<i64: 2, 10>}]} {
    %c0 = arith.constant 0 : index
    %c0_0 = arith.constant 0 : index
    %0 = vector.load %arg1[%c0, %c0_0] : memref<2x2048xf32, #tpu.memory_space<vmem>>, vector<2x2048xf32>
    %c0_1 = arith.constant 0 : index
    %c0_2 = arith.constant 0 : index
    %1 = vector.load %arg2[%c0_1, %c0_2] : memref<2048x640xf32, #tpu.memory_space<vmem>>, vector<2048x640xf32>
    %cst = arith.constant dense<0.000000e+00> : vector<2x640xf32>
    %2 = tpu.matmul %0, %1, %cst {dimension_numbers = #tpu.dot_dimension_numbers<[1], [0], [0], [1], [0, 0, 1, 1], [], []>} : vector<2x2048xf32>, vector<2048x640xf32>, vector<2x640xf32> -> vector<2x640xf32>
    %c0_3 = arith.constant 0 : index
    %c0_4 = arith.constant 0 : index
    %3 = vector.load %arg3[%c0_3, %c0_4] : memref<1x640xf32, #tpu.memory_space<vmem>>, vector<1x640xf32>
    %4 = vector.broadcast %3 : vector<1x640xf32> to vector<2x640xf32>
    %5 = arith.addf %2, %4 : vector<2x640xf32>
    %cst_5 = arith.constant 0.000000e+00 : f32
    %6 = vector.broadcast %cst_5 : f32 to vector<2x640xf32>
    %7 = arith.maximumf %5, %6 : vector<2x640xf32>
    %c0_6 = arith.constant 0 : index
    %c0_7 = arith.constant 0 : index
    %8 = vector.load %arg4[%c0_6, %c0_7] : memref<640x10xf32, #tpu.memory_space<vmem>>, vector<640x10xf32>
    %cst_8 = arith.constant dense<0.000000e+00> : vector<2x10xf32>
    %9 = tpu.matmul %7, %8, %cst_8 {dimension_numbers = #tpu.dot_dimension_numbers<[1], [0], [0], [1], [0, 0, 1, 1], [], []>} : vector<2x640xf32>, vector<640x10xf32>, vector<2x10xf32> -> vector<2x10xf32>
    %c0_9 = arith.constant 0 : index
    %c0_10 = arith.constant 0 : index
    %10 = vector.load %arg5[%c0_9, %c0_10] : memref<1x10xf32, #tpu.memory_space<vmem>>, vector<1x10xf32>
    %11 = vector.broadcast %10 : vector<1x10xf32> to vector<2x10xf32>
    %12 = arith.addf %9, %11 : vector<2x10xf32>
    %c0_11 = arith.constant 0 : index
    %c0_12 = arith.constant 0 : index
    %13 = vector.load %arg6[%c0_11, %c0_12] : memref<2x10xf32, #tpu.memory_space<vmem>>, vector<2x10xf32>
    tpu.vector_store %arg6[%c0_11, %c0_12], %12 {strides = array<i32>} : memref<2x10xf32, #tpu.memory_space<vmem>>, vector<2x10xf32>,
    return
  }
  func.func @transform_0(%arg0: i32) -> (i32, i32) {
    %c0_i32 = arith.constant 0 : i32
    %c0_i32_0 = arith.constant 0 : i32
    return %arg0, %c0_i32 : i32, i32
  }
  func.func @transform_1(%arg0: i32) -> (i32, i32) {
    %c0_i32 = arith.constant 0 : i32
    %c0_i32_0 = arith.constant 0 : i32
    %c0_i32_1 = arith.constant 0 : i32
    return %c0_i32, %c0_i32_0 : i32, i32
  }
  func.func @transform_2(%arg0: i32) -> (i32, i32) {
    %c0_i32 = arith.constant 0 : i32
    %c0_i32_0 = arith.constant 0 : i32
    %c0_i32_1 = arith.constant 0 : i32
    return %c0_i32, %c0_i32_0 : i32, i32
  }
  func.func @transform_3(%arg0: i32) -> (i32, i32) {
    %c0_i32 = arith.constant 0 : i32
    %c0_i32_0 = arith.constant 0 : i32
    %c0_i32_1 = arith.constant 0 : i32
    return %c0_i32, %c0_i32_0 : i32, i32
  }
  func.func @transform_4(%arg0: i32) -> (i32, i32) {
    %c0_i32 = arith.constant 0 : i32
    %c0_i32_0 = arith.constant 0 : i32
    %c0_i32_1 = arith.constant 0 : i32
    return %c0_i32, %c0_i32_0 : i32, i32
  }
  func.func @transform_5(%arg0: i32) -> (i32, i32) {
    %c0_i32 = arith.constant 0 : i32
    %c0_i32_0 = arith.constant 0 : i32
    return %arg0, %c0_i32 : i32, i32
  }
}

</mosaic_0001>

<bundles_post_ra>
// kernel: cnn_forward.4
= control target key start
LH: loop header
LB: loop body
LE: loop exit
PB: predicated region body
PF: predicated region fallthrough
CT: control target
= control target key end

     0   :  { %8 = vsyncpa [#allocation5], 0  ;;  %s3346_s15 = smov [#allocation4]   ;;  %s5064_s0 = inlined_call_operand.vmem [shape: f32[1792,9], index: 0, kind: input, shape index: {}]   ;;  %s5065_s1 = inlined_call_operand.vmem [shape: f32[9,32], index: 1, kind: input, shape index: {}]   ;;  %s5066_s2 = inlined_call_operand.hbm [shape: f32[1,32], index: 2, kind: input, shape index: {}]   ;;  %s5067_s3 = inlined_call_operand.vmem [shape: f32[448,32], index: 3, kind: output, shape index: {}]  }
   0x1   :  { %s18_s14 = sshll.u32 %s5066_s2, 4  ;;  %s20_s16 = sshll.u32 %s3346_s15, 4  ;;  %s19_s14 = int_to_ptr.hbm [resolvable:$true] %s18_s14  ;;  %s21_s16 = int_to_ptr.vmem [resolvable:$true] %s20_s16 }
   0x2   :  { %23 = dma.hbm_to_vmem [thread:$0]  %s19_s14, 16, %s21_s16, [#allocation5]  }
   0x3   :  { %3344 = dma.done.wait [#allocation5], 16  }
   0x4   :  { %3345 = vsyncadd [#allocation5], 4294967280  ;;  %vm931_vm0 = vcmask 1040384   ;;  %v253_v0 = vld [vmem:[%s5065_s1 + $0x8] sm:$0x1]  ;;  %v252_v1 = vld [vmem:[%s5065_s1] sm:$0xff] }
   0x5   :  { %3084 = vmatpush.msk.msra.mxu0 %vm931_vm0, %v253_v0  ;;  %3309 = vmatpush.msk.msra.mxu1 %vm931_vm0, %v253_v0  ;;  %v28_v2 = vld [vmem:[%s5064_s0] sm:$0xff]  ;;  %vm258_vm1 = vcmask 72704   ;;  %v29_v6 = vld [vmem:[%s5064_s0 + $0x8] sm:$0xff]  ;;  %v30_v10 = vld [vmem:[%s5064_s0 + $0x10] sm:$0xff]  ;;  %vm1848_vm2 = vcmask 261120  }
   0x6   :  { %3310 = vmatpush.msk.msra.mxu2 %vm931_vm0, %v253_v0  ;;  %3311 = vmatpush.msk.msra.mxu3 %vm931_vm0, %v253_v0  ;;  %v84_v3 = vld [vmem:[%s5064_s0 + $0x1c0] sm:$0xff]  ;;  %v85_v7 = vld [vmem:[%s5064_s0 + $0x1c8] sm:$0xff]  ;;  %v86_v11 = vld [vmem:[%s5064_s0 + $0x1d0] sm:$0xff] }
   0x7   :  { %950 = vmatpush.msra.mxu0 %v252_v1  ;;  %3312 = vmatpush.msra.mxu1 %v252_v1  ;;  %v140_v4 = vld [vmem:[%s5064_s0 + $0x380] sm:$0xff]  ;;  %v141_v8 = vld [vmem:[%s5064_s0 + $0x388] sm:$0xff]  ;;  %v142_v12 = vld [vmem:[%s5064_s0 + $0x390] sm:$0xff] }
   0x8   :  { %v196_v5 = vld [vmem:[%s5064_s0 + $0x540] sm:$0xff]  ;;  %3313 = vmatpush.msra.mxu2 %v252_v1  ;;  %3314 = vmatpush.msra.mxu3 %v252_v1  ;;  %v197_v9 = vld [vmem:[%s5064_s0 + $0x548] sm:$0xff]  ;;  %v198_v13 = vld [vmem:[%s5064_s0 + $0x550] sm:$0xff] }
   0x9   :  { %3085 = vmatmul.msk.f32.vlgmr.msra.gmra.mxu0 %vm258_vm1, %v28_v2  ;;  %3141 = vmatmul.msk.f32.vlgmr.msra.gmra.mxu1 %vm258_vm1, %v84_v3  ;;  %v31_v14 = vld [vmem:[%s5064_s0 + $0x18] sm:$0xff]  ;;  %v32_v18 = vld [vmem:[%s5064_s0 + $0x20] sm:$0xff]  ;;  %v33_v22 = vld [vmem:[%s5064_s0 + $0x28] sm:$0xff] }
   0xa   :  { %3197 = vmatmul.msk.f32.vlgmr.msra.gmra.mxu2 %vm258_vm1, %v140_v4  ;;  %3253 = vmatmul.msk.f32.vlgmr.msra.gmra.mxu3 %vm258_vm1, %v196_v5  ;;  %v87_v15 = vld [vmem:[%s5064_s0 + $0x1d8] sm:$0xff]  ;;  %v88_v19 = vld [vmem:[%s5064_s0 + $0x1e0] sm:$0xff]  ;;  %v89_v23 = vld [vmem:[%s5064_s0 + $0x1e8] sm:$0xff] }
   0xb   :  { %v143_v16 = vld [vmem:[%s5064_s0 + $0x398] sm:$0xff]  ;;  %v144_v20 = vld [vmem:[%s5064_s0 + $0x3a0] sm:$0xff]  ;;  %v145_v24 = vld [vmem:[%s5064_s0 + $0x3a8] sm:$0xff] }
   0xc   :  { %v199_v17 = vld [vmem:[%s5064_s0 + $0x558] sm:$0xff]  ;;  %v200_v21 = vld [vmem:[%s5064_s0 + $0x560] sm:$0xff]  ;;  %v201_v25 = vld [vmem:[%s5064_s0 + $0x568] sm:$0xff] }
   0xd   :  { %v34_v26 = vld [vmem:[%s5064_s0 + $0x30] sm:$0xff]  ;;  %v35_v30 = vld [vmem:[%s5064_s0 + $0x38] sm:$0xff]  ;;  %v36_v34 = vld [vmem:[%s5064_s0 + $0x40] sm:$0xff] }
   0xe   :  { %v90_v27 = vld [vmem:[%s5064_s0 + $0x1f0] sm:$0xff]  ;;  %v91_v31 = vld [vmem:[%s5064_s0 + $0x1f8] sm:$0xff]  ;;  %v92_v35 = vld [vmem:[%s5064_s0 + $0x200] sm:$0xff] }
   0xf   :  { %v146_v28 = vld [vmem:[%s5064_s0 + $0x3b0] sm:$0xff]  ;;  %v147_v32 = vld [vmem:[%s5064_s0 + $0x3b8] sm:$0xff]  ;;  %v148_v36 = vld [vmem:[%s5064_s0 + $0x3c0] sm:$0xff] }
  0x10   :  { %v202_v29 = vld [vmem:[%s5064_s0 + $0x570] sm:$0xff]  ;;  %v203_v33 = vld [vmem:[%s5064_s0 + $0x578] sm:$0xff]  ;;  %v204_v37 = vld [vmem:[%s5064_s0 + $0x580] sm:$0xff] }
  0x11   :  { %3086 = vmatmul.msk.f32.gmra.mxu0 %vm258_vm1, %v29_v6  ;;  %3142 = vmatmul.msk.f32.gmra.mxu1 %vm258_vm1, %v85_v7  ;;  %v37_v38 = vld [vmem:[%s5064_s0 + $0x48] sm:$0xff]  ;;  %v38_v42 = vld [vmem:[%s5064_s0 + $0x50] sm:$0xff]  ;;  %v39_v46 = vld [vmem:[%s5064_s0 + $0x58] sm:$0xff] }
  0x12   :  { %3198 = vmatmul.msk.f32.gmra.mxu2 %vm258_vm1, %v141_v8  ;;  %3254 = vmatmul.msk.f32.gmra.mxu3 %vm258_vm1, %v197_v9  ;;  %v93_v39 = vld [vmem:[%s5064_s0 + $0x208] sm:$0xff]  ;;  %v94_v43 = vld [vmem:[%s5064_s0 + $0x210] sm:$0xff]  ;;  %v95_v47 = vld [vmem:[%s5064_s0 + $0x218] sm:$0xff] }
  0x13   :  { %v149_v40 = vld [vmem:[%s5064_s0 + $0x3c8] sm:$0xff]  ;;  %v150_v44 = vld [vmem:[%s5064_s0 + $0x3d0] sm:$0xff]  ;;  %v151_v48 = vld [vmem:[%s5064_s0 + $0x3d8] sm:$0xff] }
  0x14   :  { %v205_v41 = vld [vmem:[%s5064_s0 + $0x588] sm:$0xff]  ;;  %v206_v45 = vld [vmem:[%s5064_s0 + $0x590] sm:$0xff]  ;;  %v207_v49 = vld [vmem:[%s5064_s0 + $0x598] sm:$0xff] }
  0x15   :  { %v40_v50 = vld [vmem:[%s5064_s0 + $0x60] sm:$0xff]  ;;  %v41_v54 = vld [vmem:[%s5064_s0 + $0x68] sm:$0xff]  ;;  %v42_v58 = vld [vmem:[%s5064_s0 + $0x70] sm:$0xff] }
  0x16   :  { %v96_v51 = vld [vmem:[%s5064_s0 + $0x220] sm:$0xff]  ;;  %v97_v55 = vld [vmem:[%s5064_s0 + $0x228] sm:$0xff]  ;;  %v98_v59 = vld [vmem:[%s5064_s0 + $0x230] sm:$0xff] }
  0x17   :  { %v152_v52 = vld [vmem:[%s5064_s0 + $0x3e0] sm:$0xff]  ;;  %v153_v56 = vld [vmem:[%s5064_s0 + $0x3e8] sm:$0xff]  ;;  %v154_v60 = vld [vmem:[%s5064_s0 + $0x3f0] sm:$0xff] }
  0x18   :  { %v208_v53 = vld [vmem:[%s5064_s0 + $0x5a0] sm:$0xff]  ;;  %v209_v57 = vld [vmem:[%s5064_s0 + $0x5a8] sm:$0xff]  ;;  %v210_v61 = vld [vmem:[%s5064_s0 + $0x5b0] sm:$0xff] }
  0x19   :  { %3087 = vmatmul.msk.f32.gmra.mxu0 %vm258_vm1, %v30_v10  ;;  %3143 = vmatmul.msk.f32.gmra.mxu1 %vm258_vm1, %v86_v11  ;;  %v43_v62 = vld [vmem:[%s5064_s0 + $0x78] sm:$0xff]  ;;  %v3632_v2 = vld [vmem:[#allocation4] ss:$0 sm:$0xff] }
  0x1a   :  { %3199 = vmatmul.msk.f32.gmra.mxu2 %vm258_vm1, %v142_v12  ;;  %3255 = vmatmul.msk.f32.gmra.mxu3 %vm258_vm1, %v198_v13  ;;  %v99_v63 = vld [vmem:[%s5064_s0 + $0x238] sm:$0xff]  ;;  %v44_v5 = vld [vmem:[%s5064_s0 + $0x80] sm:$0xff] }
  0x1b   :  { %v155_v0 = vld [vmem:[%s5064_s0 + $0x3f8] sm:$0xff]  ;;  %v100_v6 = vld [vmem:[%s5064_s0 + $0x240] sm:$0xff] }
  0x1c   :  { %v211_v1 = vld [vmem:[%s5064_s0 + $0x5b8] sm:$0xff]  ;;  %v156_v9 = vld [vmem:[%s5064_s0 + $0x400] sm:$0xff] }
  0x1d   :  { %v212_v10 = vld [vmem:[%s5064_s0 + $0x5c0] sm:$0xff] }
  0x21   :  { %3088 = vmatmul.msk.f32.gmra.mxu0 %vm258_vm1, %v31_v14  ;;  %3144 = vmatmul.msk.f32.gmra.mxu1 %vm258_vm1, %v87_v15 }
  0x22   :  { %3200 = vmatmul.msk.f32.gmra.mxu2 %vm258_vm1, %v143_v16  ;;  %3256 = vmatmul.msk.f32.gmra.mxu3 %vm258_vm1, %v199_v17 }
  0x29   :  { %3089 = vmatmul.msk.f32.gmra.mxu0 %vm258_vm1, %v32_v18  ;;  %3145 = vmatmul.msk.f32.gmra.mxu1 %vm258_vm1, %v88_v19  ;;  %v45_v19 = vld [vmem:[%s5064_s0 + $0x88] sm:$0xff] }
  0x2a   :  { %3201 = vmatmul.msk.f32.gmra.mxu2 %vm258_vm1, %v144_v20  ;;  %3257 = vmatmul.msk.f32.gmra.mxu3 %vm258_vm1, %v200_v21  ;;  %v101_v20 = vld [vmem:[%s5064_s0 + $0x248] sm:$0xff] }
  0x31   :  { %3090 = vmatmul.msk.f32.gmra.mxu0 %vm258_vm1, %v33_v22  ;;  %3146 = vmatmul.msk.f32.gmra.mxu1 %vm258_vm1, %v89_v23  ;;  %v157_v23 = vld [vmem:[%s5064_s0 + $0x408] sm:$0xff] }
  0x32   :  { %3202 = vmatmul.msk.f32.gmra.mxu2 %vm258_vm1, %v145_v24  ;;  %3258 = vmatmul.msk.f32.gmra.mxu3 %vm258_vm1, %v201_v25  ;;  %v213_v24 = vld [vmem:[%s5064_s0 + $0x5c8] sm:$0xff] }
  0x39   :  { %3091 = vmatmul.msk.f32.gmra.mxu0 %vm258_vm1, %v34_v26  ;;  %3147 = vmatmul.msk.f32.gmra.mxu1 %vm258_vm1, %v90_v27 }
  0x3a   :  { %3203 = vmatmul.msk.f32.gmra.mxu2 %vm258_vm1, %v146_v28  ;;  %3259 = vmatmul.msk.f32.gmra.mxu3 %vm258_vm1, %v202_v29 }
  0x41   :  { %3092 = vmatmul.msk.f32.gmra.mxu0 %vm258_vm1, %v35_v30  ;;  %3148 = vmatmul.msk.f32.gmra.mxu1 %vm258_vm1, %v91_v31 }
  0x42   :  { %3204 = vmatmul.msk.f32.gmra.mxu2 %vm258_vm1, %v147_v32  ;;  %3260 = vmatmul.msk.f32.gmra.mxu3 %vm258_vm1, %v203_v33 }
  0x49   :  { %3093 = vmatmul.msk.f32.gmra.mxu0 %vm258_vm1, %v36_v34  ;;  %3149 = vmatmul.msk.f32.gmra.mxu1 %vm258_vm1, %v92_v35  ;;  %v46_v35 = vld [vmem:[%s5064_s0 + $0x90] sm:$0xff] }
  0x4a   :  { %3205 = vmatmul.msk.f32.gmra.mxu2 %vm258_vm1, %v148_v36  ;;  %3261 = vmatmul.msk.f32.gmra.mxu3 %vm258_vm1, %v204_v37  ;;  %v102_v36 = vld [vmem:[%s5064_s0 + $0x250] sm:$0xff] }
  0x51   :  { %3094 = vmatmul.msk.f32.gmra.mxu0 %vm258_vm1, %v37_v38  ;;  %3150 = vmatmul.msk.f32.gmra.mxu1 %vm258_vm1, %v93_v39  ;;  %v158_v39 = vld [vmem:[%s5064_s0 + $0x410] sm:$0xff] }
  0x52   :  { %3206 = vmatmul.msk.f32.gmra.mxu2 %vm258_vm1, %v149_v40  ;;  %3262 = vmatmul.msk.f32.gmra.mxu3 %vm258_vm1, %v205_v41  ;;  %v214_v40 = vld [vmem:[%s5064_s0 + $0x5d0] sm:$0xff] }
  0x59   :  { %3095 = vmatmul.msk.f32.gmra.mxu0 %vm258_vm1, %v38_v42  ;;  %3151 = vmatmul.msk.f32.gmra.mxu1 %vm258_vm1, %v94_v43 }
  0x5a   :  { %3207 = vmatmul.msk.f32.gmra.mxu2 %vm258_vm1, %v150_v44  ;;  %3263 = vmatmul.msk.f32.gmra.mxu3 %vm258_vm1, %v206_v45 }
  0x61   :  { %3096 = vmatmul.msk.f32.gmra.mxu0 %vm258_vm1, %v39_v46  ;;  %3152 = vmatmul.msk.f32.gmra.mxu1 %vm258_vm1, %v95_v47 }
  0x62   :  { %3208 = vmatmul.msk.f32.gmra.mxu2 %vm258_vm1, %v151_v48  ;;  %3264 = vmatmul.msk.f32.gmra.mxu3 %vm258_vm1, %v207_v49 }
  0x69   :  { %3097 = vmatmul.msk.f32.gmra.mxu0 %vm258_vm1, %v40_v50  ;;  %3153 = vmatmul.msk.f32.gmra.mxu1 %vm258_vm1, %v96_v51 }
  0x6a   :  { %3209 = vmatmul.msk.f32.gmra.mxu2 %vm258_vm1, %v152_v52  ;;  %3265 = vmatmul.msk.f32.gmra.mxu3 %vm258_vm1, %v208_v53 }
  0x71   :  { %3098 = vmatmul.msk.f32.gmra.mxu0 %vm258_vm1, %v41_v54  ;;  %3154 = vmatmul.msk.f32.gmra.mxu1 %vm258_vm1, %v97_v55 }
  0x72   :  { %3210 = vmatmul.msk.f32.gmra.mxu2 %vm258_vm1, %v153_v56  ;;  %3266 = vmatmul.msk.f32.gmra.mxu3 %vm258_vm1, %v209_v57  ;;  %v47_v57 = vld [vmem:[%s5064_s0 + $0x98] sm:$0xff] }
  0x79   :  { %3099 = vmatmul.msk.f32.gmra.mxu0 %vm258_vm1, %v42_v58  ;;  %3155 = vmatmul.msk.f32.gmra.mxu1 %vm258_vm1, %v98_v59  ;;  %v103_v58 = vld [vmem:[%s5064_s0 + $0x258] sm:$0xff] }
  0x7a   :  { %3211 = vmatmul.msk.f32.gmra.mxu2 %vm258_vm1, %v154_v60  ;;  %3267 = vmatmul.msk.f32.gmra.mxu3 %vm258_vm1, %v210_v61  ;;  %v159_v61 = vld [vmem:[%s5064_s0 + $0x418] sm:$0xff] }
  0x81   :  { %3100 = vmatmul.msk.f32.gmra.mxu0 %vm258_vm1, %v43_v62  ;;  %3156 = vmatmul.msk.f32.gmra.mxu1 %vm258_vm1, %v99_v63  ;;  %v215_v62 = vld [vmem:[%s5064_s0 + $0x5d8] sm:$0xff] }
  0x82   :  { %3212 = vmatmul.msk.f32.gmra.mxu2 %vm258_vm1, %v155_v0  ;;  %3268 = vmatmul.msk.f32.gmra.mxu3 %vm258_vm1, %v211_v1 }
  0x86   :  { %v952_v3 = vpop.f32.mrf.mxu0  ;;  %v1120_v4 = vpop.f32.mrf.mxu1 }
  0x87   :  { %v953_v7 = vadd.f32 %v3632_v2, %v952_v3  ;;  %v1121_v8 = vadd.f32 %v3632_v2, %v1120_v4 }
  0x89   :  { %v1624_v11 = vmax.f32 %v953_v7, 0.0  ;;  %v1680_v12 = vmax.f32 %v1121_v8, 0.0  ;;  %3101 = vmatmul.msk.f32.gmra.mxu0 %vm258_vm1, %v44_v5  ;;  %3157 = vmatmul.msk.f32.gmra.mxu1 %vm258_vm1, %v100_v6 }
  0x8a   :  { %3213 = vmatmul.msk.f32.gmra.mxu2 %vm258_vm1, %v156_v9  ;;  %3269 = vmatmul.msk.f32.gmra.mxu3 %vm258_vm1, %v212_v10 }
  0x8b   :  { %1849 = vst.msk [vmem:[#allocation2] sm:$0xff] %vm1848_vm2, %v1624_v11 }
  0x8c   :  { %1905 = vst.msk [vmem:[#allocation2 + $0x1c0] sm:$0xff] %vm1848_vm2, %v1680_v12 }
  0x8d   :  { %v1288_v13 = vpop.f32.mrf.mxu2  ;;  %v1456_v14 = vpop.f32.mrf.mxu3 }
  0x8e   :  { %v1289_v15 = vadd.f32 %v3632_v2, %v1288_v13  ;;  %v1457_v16 = vadd.f32 %v3632_v2, %v1456_v14  ;;  %v955_v17 = vpop.f32.mrf.mxu0  ;;  %v1123_v18 = vpop.f32.mrf.mxu1 }
  0x8f   :  { %v956_v21 = vadd.f32 %v3632_v2, %v955_v17  ;;  %v1124_v22 = vadd.f32 %v3632_v2, %v1123_v18  ;;  %v104_v17 = vld [vmem:[%s5064_s0 + $0x260] sm:$0xff] }
  0x90   :  { %v1736_v25 = vmax.f32 %v1289_v15, 0.0  ;;  %v1792_v26 = vmax.f32 %v1457_v16, 0.0  ;;  %v48_v16 = vld [vmem:[%s5064_s0 + $0xa0] sm:$0xff] }
  0x91   :  { %v1625_v27 = vmax.f32 %v956_v21, 0.0  ;;  %v1681_v28 = vmax.f32 %v1124_v22, 0.0  ;;  %3102 = vmatmul.msk.f32.gmra.mxu0 %vm258_vm1, %v45_v19  ;;  %3158 = vmatmul.msk.f32.gmra.mxu1 %vm258_vm1, %v101_v20  ;;  %v160_v20 = vld [vmem:[%s5064_s0 + $0x420] sm:$0xff] }
  0x92   :  { %1961 = vst.msk [vmem:[#allocation2 + $0x380] sm:$0xff] %vm1848_vm2, %v1736_v25  ;;  %3214 = vmatmul.msk.f32.gmra.mxu2 %vm258_vm1, %v157_v23  ;;  %3270 = vmatmul.msk.f32.gmra.mxu3 %vm258_vm1, %v213_v24  ;;  %v216_v21 = vld [vmem:[%s5064_s0 + $0x5e0] sm:$0xff] }
  0x93   :  { %2017 = vst.msk [vmem:[#allocation2 + $0x540] sm:$0xff] %vm1848_vm2, %v1792_v26 }
  0x94   :  { %1850 = vst.msk [vmem:[#allocation2 + $0x8] sm:$0xff] %vm1848_vm2, %v1625_v27 }
  0x95   :  { %1906 = vst.msk [vmem:[#allocation2 + $0x1c8] sm:$0xff] %vm1848_vm2, %v1681_v28  ;;  %v1291_v29 = vpop.f32.mrf.mxu2  ;;  %v1459_v30 = vpop.f32.mrf.mxu3 }
  0x96   :  { %v1292_v31 = vadd.f32 %v3632_v2, %v1291_v29  ;;  %v1460_v32 = vadd.f32 %v3632_v2, %v1459_v30  ;;  %v958_v33 = vpop.f32.mrf.mxu0  ;;  %v1126_v34 = vpop.f32.mrf.mxu1  ;;  %v49_v30 = vld [vmem:[%s5064_s0 + $0xa8] sm:$0xff] }
  0x97   :  { %v959_v37 = vadd.f32 %v3632_v2, %v958_v33  ;;  %v1127_v38 = vadd.f32 %v3632_v2, %v1126_v34 }
  0x98   :  { %v1737_v41 = vmax.f32 %v1292_v31, 0.0  ;;  %v1793_v42 = vmax.f32 %v1460_v32, 0.0 }
  0x99   :  { %v1626_v43 = vmax.f32 %v959_v37, 0.0  ;;  %v1682_v44 = vmax.f32 %v1127_v38, 0.0  ;;  %3103 = vmatmul.msk.f32.gmra.mxu0 %vm258_vm1, %v46_v35  ;;  %3159 = vmatmul.msk.f32.gmra.mxu1 %vm258_vm1, %v102_v36  ;;  %v105_v38 = vld [vmem:[%s5064_s0 + $0x268] sm:$0xff] }
  0x9a   :  { %1962 = vst.msk [vmem:[#allocation2 + $0x388] sm:$0xff] %vm1848_vm2, %v1737_v41  ;;  %3215 = vmatmul.msk.f32.gmra.mxu2 %vm258_vm1, %v158_v39  ;;  %3271 = vmatmul.msk.f32.gmra.mxu3 %vm258_vm1, %v214_v40 }
  0x9b   :  { %v2073_v45 = vld [vmem:[#allocation2] ss:$2 sm:$0xff]  ;;  %v2297_v46 = vld [vmem:[#allocation2 + $0x1] ss:$2 sm:$0xff]  ;;  %2018 = vst.msk [vmem:[#allocation2 + $0x548] sm:$0xff] %vm1848_vm2, %v1793_v42 }
  0x9c   :  { %v2520_v47 = vmax.f32 %v2073_v45, %v2297_v46  ;;  %v2129_v48 = vld [vmem:[#allocation2 + $0x1c0] ss:$2 sm:$0xff]  ;;  %v2353_v49 = vld [vmem:[#allocation2 + $0x1c1] ss:$2 sm:$0xff]  ;;  %1851 = vst.msk [vmem:[#allocation2 + $0x10] sm:$0xff] %vm1848_vm2, %v1626_v43 }
  0x9d   :  { %v2548_v50 = vmax.f32 %v2129_v48, %v2353_v49  ;;  %1907 = vst.msk [vmem:[#allocation2 + $0x1d0] sm:$0xff] %vm1848_vm2, %v1682_v44  ;;  %v1294_v51 = vpop.f32.mrf.mxu2  ;;  %v1462_v52 = vpop.f32.mrf.mxu3  ;;  %v161_v42 = vld [vmem:[%s5064_s0 + $0x428] sm:$0xff] }
  0x9e   :  { %2632 = vst.msk [vmem:[#allocation3] sm:$0xff] %vm1848_vm2, %v2520_v47  ;;  %v1295_v53 = vadd.f32 %v3632_v2, %v1294_v51  ;;  %v1463_v54 = vadd.f32 %v3632_v2, %v1462_v52  ;;  %v961_v55 = vpop.f32.mrf.mxu0  ;;  %v1129_v56 = vpop.f32.mrf.mxu1  ;;  %v217_v43 = vld [vmem:[%s5064_s0 + $0x5e8] sm:$0xff] }
  0x9f   :  { %2660 = vst.msk [vmem:[#allocation3 + $0xe0] sm:$0xff] %vm1848_vm2, %v2548_v50  ;;  %v962_v59 = vadd.f32 %v3632_v2, %v961_v55  ;;  %v1130_v60 = vadd.f32 %v3632_v2, %v1129_v56 }
  0xa0   :  { %v1738_v63 = vmax.f32 %v1295_v53, 0.0  ;;  %v1794_v0 = vmax.f32 %v1463_v54, 0.0 }
  0xa1   :  { %v2185_v1 = vld [vmem:[#allocation2 + $0x380] ss:$2 sm:$0xff]  ;;  %v2409_v3 = vld [vmem:[#allocation2 + $0x381] ss:$2 sm:$0xff]  ;;  %3104 = vmatmul.msk.f32.gmra.mxu0 %vm258_vm1, %v47_v57  ;;  %3160 = vmatmul.msk.f32.gmra.mxu1 %vm258_vm1, %v103_v58  ;;  %v1627_v7 = vmax.f32 %v962_v59, 0.0  ;;  %v1683_v9 = vmax.f32 %v1130_v60, 0.0 }
  0xa2   :  { %v2576_v4 = vmax.f32 %v2185_v1, %v2409_v3  ;;  %v2241_v5 = vld [vmem:[#allocation2 + $0x540] ss:$2 sm:$0xff]  ;;  %v2465_v6 = vld [vmem:[#allocation2 + $0x541] ss:$2 sm:$0xff]  ;;  %1963 = vst.msk [vmem:[#allocation2 + $0x390] sm:$0xff] %vm1848_vm2, %v1738_v63  ;;  %3216 = vmatmul.msk.f32.gmra.mxu2 %vm258_vm1, %v159_v61  ;;  %3272 = vmatmul.msk.f32.gmra.mxu3 %vm258_vm1, %v215_v62  ;;  %v50_v60 = vld [vmem:[%s5064_s0 + $0xb0] sm:$0xff] }
  0xa3   :  { %v2604_v8 = vmax.f32 %v2241_v5, %v2465_v6  ;;  %2019 = vst.msk [vmem:[#allocation2 + $0x550] sm:$0xff] %vm1848_vm2, %v1794_v0  ;;  %v106_v61 = vld [vmem:[%s5064_s0 + $0x270] sm:$0xff] }
  0xa4   :  { %2688 = vst.msk [vmem:[#allocation3 + $0x1c0] sm:$0xff] %vm1848_vm2, %v2576_v4  ;;  %v162_v62 = vld [vmem:[%s5064_s0 + $0x430] sm:$0xff] }
  0xa5   :  { %2716 = vst.msk [vmem:[#allocation3 + $0x2a0] sm:$0xff] %vm1848_vm2, %v2604_v8  ;;  %v1297_v10 = vpop.f32.mrf.mxu2  ;;  %v1465_v11 = vpop.f32.mrf.mxu3  ;;  %v218_v1 = vld [vmem:[%s5064_s0 + $0x5f0] sm:$0xff] }
  0xa6   :  { %1852 = vst.msk [vmem:[#allocation2 + $0x18] sm:$0xff] %vm1848_vm2, %v1627_v7  ;;  %v1298_v12 = vadd.f32 %v3632_v2, %v1297_v10  ;;  %v1466_v13 = vadd.f32 %v3632_v2, %v1465_v11  ;;  %v964_v14 = vpop.f32.mrf.mxu0  ;;  %v1132_v15 = vpop.f32.mrf.mxu1 }
  0xa7   :  { %1908 = vst.msk [vmem:[#allocation2 + $0x1d8] sm:$0xff] %vm1848_vm2, %v1683_v9  ;;  %v965_v18 = vadd.f32 %v3632_v2, %v964_v14  ;;  %v1133_v19 = vadd.f32 %v3632_v2, %v1132_v15 }
  0xa8   :  { %v1739_v22 = vmax.f32 %v1298_v12, 0.0  ;;  %v1795_v23 = vmax.f32 %v1466_v13, 0.0 }
  0xa9   :  { %v1628_v24 = vmax.f32 %v965_v18, 0.0  ;;  %v1684_v25 = vmax.f32 %v1133_v19, 0.0  ;;  %3105 = vmatmul.msk.f32.gmra.mxu0 %vm258_vm1, %v48_v16  ;;  %3161 = vmatmul.msk.f32.gmra.mxu1 %vm258_vm1, %v104_v17  ;;  %v51_v16 = vld [vmem:[%s5064_s0 + $0xb8] sm:$0xff] }
  0xaa   :  { %1964 = vst.msk [vmem:[#allocation2 + $0x398] sm:$0xff] %vm1848_vm2, %v1739_v22  ;;  %3217 = vmatmul.msk.f32.gmra.mxu2 %vm258_vm1, %v160_v20  ;;  %3273 = vmatmul.msk.f32.gmra.mxu3 %vm258_vm1, %v216_v21  ;;  %v107_v22 = vld [vmem:[%s5064_s0 + $0x278] sm:$0xff] }
  0xab   :  { %2020 = vst.msk [vmem:[#allocation2 + $0x558] sm:$0xff] %vm1848_vm2, %v1795_v23 }
  0xac   :  { %1853 = vst.msk [vmem:[#allocation2 + $0x20] sm:$0xff] %vm1848_vm2, %v1628_v24 }
  0xad   :  { %v2075_v26 = vld [vmem:[#allocation2 + $0x10] ss:$2 sm:$0xff]  ;;  %v2299_v27 = vld [vmem:[#allocation2 + $0x11] ss:$2 sm:$0xff]  ;;  %1909 = vst.msk [vmem:[#allocation2 + $0x1e0] sm:$0xff] %vm1848_vm2, %v1684_v25  ;;  %v1300_v28 = vpop.f32.mrf.mxu2  ;;  %v1468_v29 = vpop.f32.mrf.mxu3 }
  0xae   :  { %v2521_v31 = vmax.f32 %v2075_v26, %v2299_v27  ;;  %v2131_v32 = vld [vmem:[#allocation2 + $0x1d0] ss:$2 sm:$0xff]  ;;  %v2355_v33 = vld [vmem:[#allocation2 + $0x1d1] ss:$2 sm:$0xff]  ;;  %v1301_v34 = vadd.f32 %v3632_v2, %v1300_v28  ;;  %v1469_v35 = vadd.f32 %v3632_v2, %v1468_v29  ;;  %v967_v36 = vpop.f32.mrf.mxu0  ;;  %v1135_v37 = vpop.f32.mrf.mxu1 }
  0xaf   :  { %v2549_v39 = vmax.f32 %v2131_v32, %v2355_v33  ;;  %v968_v40 = vadd.f32 %v3632_v2, %v967_v36  ;;  %v1136_v41 = vadd.f32 %v3632_v2, %v1135_v37  ;;  %v163_v33 = vld [vmem:[%s5064_s0 + $0x438] sm:$0xff] }
  0xb0   :  { %2633 = vst.msk [vmem:[#allocation3 + $0x8] sm:$0xff] %vm1848_vm2, %v2521_v31  ;;  %v1740_v44 = vmax.f32 %v1301_v34, 0.0  ;;  %v1796_v45 = vmax.f32 %v1469_v35, 0.0  ;;  %v219_v34 = vld [vmem:[%s5064_s0 + $0x5f8] sm:$0xff] }
  0xb1   :  { %2661 = vst.msk [vmem:[#allocation3 + $0xe8] sm:$0xff] %vm1848_vm2, %v2549_v39  ;;  %v2187_v46 = vld [vmem:[#allocation2 + $0x390] ss:$2 sm:$0xff]  ;;  %v2411_v47 = vld [vmem:[#allocation2 + $0x391] ss:$2 sm:$0xff]  ;;  %3106 = vmatmul.msk.f32.gmra.mxu0 %vm258_vm1, %v49_v30  ;;  %3162 = vmatmul.msk.f32.gmra.mxu1 %vm258_vm1, %v105_v38  ;;  %v1629_v51 = vmax.f32 %v968_v40, 0.0 }
  0xb2   :  { %v2577_v48 = vmax.f32 %v2187_v46, %v2411_v47  ;;  %v2243_v49 = vld [vmem:[#allocation2 + $0x550] ss:$2 sm:$0xff]  ;;  %v2467_v50 = vld [vmem:[#allocation2 + $0x551] ss:$2 sm:$0xff]  ;;  %1965 = vst.msk [vmem:[#allocation2 + $0x3a0] sm:$0xff] %vm1848_vm2, %v1740_v44  ;;  %3218 = vmatmul.msk.f32.gmra.mxu2 %vm258_vm1, %v161_v42  ;;  %3274 = vmatmul.msk.f32.gmra.mxu3 %vm258_vm1, %v217_v43  ;;  %v1685_v53 = vmax.f32 %v1136_v41, 0.0 }
  0xb3   :  { %v2605_v52 = vmax.f32 %v2243_v49, %v2467_v50  ;;  %2021 = vst.msk [vmem:[#allocation2 + $0x560] sm:$0xff] %vm1848_vm2, %v1796_v45 }
  0xb4   :  { %2689 = vst.msk [vmem:[#allocation3 + $0x1c8] sm:$0xff] %vm1848_vm2, %v2577_v48 }
  0xb5   :  { %2717 = vst.msk [vmem:[#allocation3 + $0x2a8] sm:$0xff] %vm1848_vm2, %v2605_v52  ;;  %v1303_v54 = vpop.f32.mrf.mxu2  ;;  %v1471_v55 = vpop.f32.mrf.mxu3 }
  0xb6   :  { %1854 = vst.msk [vmem:[#allocation2 + $0x28] sm:$0xff] %vm1848_vm2, %v1629_v51  ;;  %v1304_v56 = vadd.f32 %v3632_v2, %v1303_v54  ;;  %v1472_v57 = vadd.f32 %v3632_v2, %v1471_v55  ;;  %v970_v58 = vpop.f32.mrf.mxu0  ;;  %v1138_v59 = vpop.f32.mrf.mxu1  ;;  %v108_v54 = vld [vmem:[%s5064_s0 + $0x280] sm:$0xff] }
  0xb7   :  { %v2744_v63 = vld [vmem:[#allocation3] ss:$2 sm:$0xff]  ;;  %v2856_v0 = vld [vmem:[#allocation3 + $0x1] ss:$2 sm:$0xff]  ;;  %1910 = vst.msk [vmem:[#allocation2 + $0x1e8] sm:$0xff] %vm1848_vm2, %v1685_v53  ;;  %v971_v9 = vadd.f32 %v3632_v2, %v970_v58  ;;  %v1139_v12 = vadd.f32 %v3632_v2, %v1138_v59 }
  0xb8   :  { %v2967_v3 = vmax.f32 %v2744_v63, %v2856_v0  ;;  %v2772_v4 = vld [vmem:[#allocation3 + $0xe0] ss:$2 sm:$0xff]  ;;  %v2884_v5 = vld [vmem:[#allocation3 + $0xe1] ss:$2 sm:$0xff]  ;;  %v1741_v6 = vmax.f32 %v1304_v56, 0.0  ;;  %v1797_v8 = vmax.f32 %v1472_v57, 0.0 }
  0xb9   :  { %v2981_v7 = vmax.f32 %v2772_v4, %v2884_v5  ;;  %3107 = vmatmul.msk.f32.gmra.mxu0 %vm258_vm1, %v50_v60  ;;  %3163 = vmatmul.msk.f32.gmra.mxu1 %vm258_vm1, %v106_v61  ;;  %v1630_v26 = vmax.f32 %v971_v9, 0.0  ;;  %v1686_v32 = vmax.f32 %v1139_v12, 0.0  ;;  %v52_v53 = vld [vmem:[%s5064_s0 + $0xc0] sm:$0xff]  ;;  %v53_v5 = vld [vmem:[%s5064_s0 + $0xc8] sm:$0xff] }
  0xba   :  { %3023 = vst.msk [vmem:[%s5067_s3] sm:$0xff] %vm1848_vm2, %v2967_v3  ;;  %3219 = vmatmul.msk.f32.gmra.mxu2 %vm258_vm1, %v162_v62  ;;  %3275 = vmatmul.msk.f32.gmra.mxu3 %vm258_vm1, %v218_v1  ;;  %v164_v57 = vld [vmem:[%s5064_s0 + $0x440] sm:$0xff] }
  0xbb   :  { %3037 = vst.msk [vmem:[%s5067_s3 + $0x70] sm:$0xff] %vm1848_vm2, %v2981_v7  ;;  %v2800_v10 = vld [vmem:[#allocation3 + $0x1c0] ss:$2 sm:$0xff]  ;;  %v2912_v11 = vld [vmem:[#allocation3 + $0x1c1] ss:$2 sm:$0xff] }
  0xbc   :  { %v2995_v13 = vmax.f32 %v2800_v10, %v2912_v11  ;;  %v2828_v14 = vld [vmem:[#allocation3 + $0x2a0] ss:$2 sm:$0xff]  ;;  %v2940_v15 = vld [vmem:[#allocation3 + $0x2a1] ss:$2 sm:$0xff]  ;;  %1966 = vst.msk [vmem:[#allocation2 + $0x3a8] sm:$0xff] %vm1848_vm2, %v1741_v6 }
  0xbd   :  { %v3009_v17 = vmax.f32 %v2828_v14, %v2940_v15  ;;  %v2077_v18 = vld [vmem:[#allocation2 + $0x20] ss:$2 sm:$0xff]  ;;  %v2301_v19 = vld [vmem:[#allocation2 + $0x21] ss:$2 sm:$0xff]  ;;  %2022 = vst.msk [vmem:[#allocation2 + $0x568] sm:$0xff] %vm1848_vm2, %v1797_v8  ;;  %v1306_v20 = vpop.f32.mrf.mxu2  ;;  %v1474_v21 = vpop.f32.mrf.mxu3 }
  0xbe   :  { %3051 = vst.msk [vmem:[%s5067_s3 + $0xe0] sm:$0xff] %vm1848_vm2, %v2995_v13  ;;  %v2522_v23 = vmax.f32 %v2077_v18, %v2301_v19  ;;  %v2133_v24 = vld [vmem:[#allocation2 + $0x1e0] ss:$2 sm:$0xff]  ;;  %v2357_v25 = vld [vmem:[#allocation2 + $0x1e1] ss:$2 sm:$0xff]  ;;  %v1307_v27 = vadd.f32 %v3632_v2, %v1306_v20  ;;  %v1475_v28 = vadd.f32 %v3632_v2, %v1474_v21  ;;  %v973_v29 = vpop.f32.mrf.mxu0  ;;  %v1141_v30 = vpop.f32.mrf.mxu1 }
  0xbf   :  { %3065 = vst.msk [vmem:[%s5067_s3 + $0x150] sm:$0xff] %vm1848_vm2, %v3009_v17  ;;  %v2550_v31 = vmax.f32 %v2133_v24, %v2357_v25  ;;  %v974_v36 = vadd.f32 %v3632_v2, %v973_v29  ;;  %v1142_v38 = vadd.f32 %v3632_v2, %v1141_v30  ;;  %v220_v58 = vld [vmem:[%s5064_s0 + $0x600] sm:$0xff]  ;;  %v109_v6 = vld [vmem:[%s5064_s0 + $0x288] sm:$0xff] }
  0xc0   :  { %2634 = vst.msk [vmem:[#allocation3 + $0x10] sm:$0xff] %vm1848_vm2, %v2522_v23  ;;  %v1742_v35 = vmax.f32 %v1307_v27, 0.0  ;;  %v1798_v37 = vmax.f32 %v1475_v28, 0.0  ;;  %v165_v7 = vld [vmem:[%s5064_s0 + $0x448] sm:$0xff] }
  0xc1   :  { %2662 = vst.msk [vmem:[#allocation3 + $0xf0] sm:$0xff] %vm1848_vm2, %v2550_v31  ;;  %3108 = vmatmul.msk.f32.gmra.mxu0 %vm258_vm1, %v51_v16  ;;  %3164 = vmatmul.msk.f32.gmra.mxu1 %vm258_vm1, %v107_v22  ;;  %v1631_v44 = vmax.f32 %v974_v36, 0.0  ;;  %v1687_v46 = vmax.f32 %v1142_v38, 0.0  ;;  %v221_v11 = vld [vmem:[%s5064_s0 + $0x608] sm:$0xff]  ;;  %v166_v36 = vld [vmem:[%s5064_s0 + $0x450] sm:$0xff] }
  0xc2   :  { %1855 = vst.msk [vmem:[#allocation2 + $0x30] sm:$0xff] %vm1848_vm2, %v1630_v26  ;;  %3220 = vmatmul.msk.f32.gmra.mxu2 %vm258_vm1, %v163_v33  ;;  %3276 = vmatmul.msk.f32.gmra.mxu3 %vm258_vm1, %v219_v34  ;;  %v54_v34 = vld [vmem:[%s5064_s0 + $0xd0] sm:$0xff] }
  0xc3   :  { %v2189_v39 = vld [vmem:[#allocation2 + $0x3a0] ss:$2 sm:$0xff]  ;;  %v2413_v40 = vld [vmem:[#allocation2 + $0x3a1] ss:$2 sm:$0xff]  ;;  %1911 = vst.msk [vmem:[#allocation2 + $0x1f0] sm:$0xff] %vm1848_vm2, %v1686_v32 }
  0xc4   :  { %v2578_v41 = vmax.f32 %v2189_v39, %v2413_v40  ;;  %v2245_v42 = vld [vmem:[#allocation2 + $0x560] ss:$2 sm:$0xff]  ;;  %v2469_v43 = vld [vmem:[#allocation2 + $0x561] ss:$2 sm:$0xff]  ;;  %1967 = vst.msk [vmem:[#allocation2 + $0x3b0] sm:$0xff] %vm1848_vm2, %v1742_v35  ;;  %v110_v35 = vld [vmem:[%s5064_s0 + $0x290] sm:$0xff] }
  0xc5   :  { %v2606_v45 = vmax.f32 %v2245_v42, %v2469_v43  ;;  %2023 = vst.msk [vmem:[#allocation2 + $0x570] sm:$0xff] %vm1848_vm2, %v1798_v37  ;;  %v1309_v47 = vpop.f32.mrf.mxu2  ;;  %v1477_v48 = vpop.f32.mrf.mxu3  ;;  %v222_v37 = vld [vmem:[%s5064_s0 + $0x610] sm:$0xff] }
  0xc6   :  { %2690 = vst.msk [vmem:[#allocation3 + $0x1d0] sm:$0xff] %vm1848_vm2, %v2578_v41  ;;  %v1310_v49 = vadd.f32 %v3632_v2, %v1309_v47  ;;  %v1478_v50 = vadd.f32 %v3632_v2, %v1477_v48  ;;  %v976_v51 = vpop.f32.mrf.mxu0  ;;  %v1144_v52 = vpop.f32.mrf.mxu1 }
  0xc7   :  { %2718 = vst.msk [vmem:[#allocation3 + $0x2b0] sm:$0xff] %vm1848_vm2, %v2606_v45  ;;  %v977_v55 = vadd.f32 %v3632_v2, %v976_v51  ;;  %v1145_v56 = vadd.f32 %v3632_v2, %v1144_v52 }
  0xc8   :  { %1856 = vst.msk [vmem:[#allocation2 + $0x38] sm:$0xff] %vm1848_vm2, %v1631_v44  ;;  %v1743_v59 = vmax.f32 %v1310_v49, 0.0  ;;  %v1799_v60 = vmax.f32 %v1478_v50, 0.0 }
  0xc9   :  { %1912 = vst.msk [vmem:[#allocation2 + $0x1f8] sm:$0xff] %vm1848_vm2, %v1687_v46  ;;  %v1632_v61 = vmax.f32 %v977_v55, 0.0  ;;  %v1688_v62 = vmax.f32 %v1145_v56, 0.0  ;;  %3109 = vmatmul.msk.f32.gmra.mxu0 %vm258_vm1, %v52_v53  ;;  %3165 = vmatmul.msk.f32.gmra.mxu1 %vm258_vm1, %v108_v54 }
  0xca   :  { %1968 = vst.msk [vmem:[#allocation2 + $0x3b8] sm:$0xff] %vm1848_vm2, %v1743_v59  ;;  %3221 = vmatmul.msk.f32.gmra.mxu2 %vm258_vm1, %v164_v57  ;;  %3277 = vmatmul.msk.f32.gmra.mxu3 %vm258_vm1, %v220_v58 }
  0xcb   :  { %2024 = vst.msk [vmem:[#allocation2 + $0x578] sm:$0xff] %vm1848_vm2, %v1799_v60 }
  0xcc   :  { %1857 = vst.msk [vmem:[#allocation2 + $0x40] sm:$0xff] %vm1848_vm2, %v1632_v61  ;;  %v55_v61 = vld [vmem:[%s5064_s0 + $0xd8] sm:$0xff] }
  0xcd   :  { %1913 = vst.msk [vmem:[#allocation2 + $0x200] sm:$0xff] %vm1848_vm2, %v1688_v62  ;;  %v1312_v63 = vpop.f32.mrf.mxu2  ;;  %v1480_v0 = vpop.f32.mrf.mxu3  ;;  %v111_v62 = vld [vmem:[%s5064_s0 + $0x298] sm:$0xff] }
  0xce   :  { %v1313_v1 = vadd.f32 %v3632_v2, %v1312_v63  ;;  %v979_v3 = vpop.f32.mrf.mxu0  ;;  %v1147_v4 = vpop.f32.mrf.mxu1  ;;  %v1481_v10 = vadd.f32 %v3632_v2, %v1480_v0  ;;  %v167_v63 = vld [vmem:[%s5064_s0 + $0x458] sm:$0xff] }
  0xcf   :  { %v2079_v8 = vld [vmem:[#allocation2 + $0x30] ss:$2 sm:$0xff]  ;;  %v2303_v9 = vld [vmem:[#allocation2 + $0x31] ss:$2 sm:$0xff]  ;;  %v980_v15 = vadd.f32 %v3632_v2, %v979_v3  ;;  %v1148_v19 = vadd.f32 %v3632_v2, %v1147_v4 }
  0xd0   :  { %v2523_v12 = vmax.f32 %v2079_v8, %v2303_v9  ;;  %v2135_v13 = vld [vmem:[#allocation2 + $0x1f0] ss:$2 sm:$0xff]  ;;  %v2359_v14 = vld [vmem:[#allocation2 + $0x1f1] ss:$2 sm:$0xff]  ;;  %v1744_v23 = vmax.f32 %v1313_v1, 0.0  ;;  %v1800_v25 = vmax.f32 %v1481_v10, 0.0 }
  0xd1   :  { %v2551_v16 = vmax.f32 %v2135_v13, %v2359_v14  ;;  %v2191_v17 = vld [vmem:[#allocation2 + $0x3b0] ss:$2 sm:$0xff]  ;;  %v2415_v18 = vld [vmem:[#allocation2 + $0x3b1] ss:$2 sm:$0xff]  ;;  %3110 = vmatmul.msk.f32.gmra.mxu0 %vm258_vm1, %v53_v5  ;;  %3166 = vmatmul.msk.f32.gmra.mxu1 %vm258_vm1, %v109_v6  ;;  %v1633_v26 = vmax.f32 %v980_v15, 0.0  ;;  %v1689_v27 = vmax.f32 %v1148_v19, 0.0 }
  0xd2   :  { %2635 = vst.msk [vmem:[#allocation3 + $0x18] sm:$0xff] %vm1848_vm2, %v2523_v12  ;;  %v2579_v20 = vmax.f32 %v2191_v17, %v2415_v18  ;;  %v2247_v21 = vld [vmem:[#allocation2 + $0x570] ss:$2 sm:$0xff]  ;;  %v2471_v22 = vld [vmem:[#allocation2 + $0x571] ss:$2 sm:$0xff]  ;;  %3222 = vmatmul.msk.f32.gmra.mxu2 %vm258_vm1, %v165_v7  ;;  %3278 = vmatmul.msk.f32.gmra.mxu3 %vm258_vm1, %v221_v11 }
  0xd3   :  { %2663 = vst.msk [vmem:[#allocation3 + $0xf8] sm:$0xff] %vm1848_vm2, %v2551_v16  ;;  %v2607_v24 = vmax.f32 %v2247_v21, %v2471_v22  ;;  %v223_v4 = vld [vmem:[%s5064_s0 + $0x618] sm:$0xff] }
  0xd4   :  { %2691 = vst.msk [vmem:[#allocation3 + $0x1d8] sm:$0xff] %vm1848_vm2, %v2579_v20 }
  0xd5   :  { %2719 = vst.msk [vmem:[#allocation3 + $0x2b8] sm:$0xff] %vm1848_vm2, %v2607_v24  ;;  %v1315_v28 = vpop.f32.mrf.mxu2  ;;  %v1483_v29 = vpop.f32.mrf.mxu3 }
  0xd6   :  { %1969 = vst.msk [vmem:[#allocation2 + $0x3c0] sm:$0xff] %vm1848_vm2, %v1744_v23  ;;  %v1316_v30 = vadd.f32 %v3632_v2, %v1315_v28  ;;  %v1484_v31 = vadd.f32 %v3632_v2, %v1483_v29  ;;  %v982_v32 = vpop.f32.mrf.mxu0  ;;  %v1150_v33 = vpop.f32.mrf.mxu1  ;;  %v112_v28 = vld [vmem:[%s5064_s0 + $0x2a0] sm:$0xff] }
  0xd7   :  { %2025 = vst.msk [vmem:[#allocation2 + $0x580] sm:$0xff] %vm1848_vm2, %v1800_v25  ;;  %v983_v40 = vadd.f32 %v3632_v2, %v982_v32  ;;  %v1151_v43 = vadd.f32 %v3632_v2, %v1150_v33  ;;  %v224_v32 = vld [vmem:[%s5064_s0 + $0x620] sm:$0xff] }
  0xd8   :  { %1858 = vst.msk [vmem:[#allocation2 + $0x48] sm:$0xff] %vm1848_vm2, %v1633_v26  ;;  %v1745_v38 = vmax.f32 %v1316_v30, 0.0  ;;  %v1801_v39 = vmax.f32 %v1484_v31, 0.0  ;;  %v168_v31 = vld [vmem:[%s5064_s0 + $0x460] sm:$0xff] }
  0xd9   :  { %v2746_v41 = vld [vmem:[#allocation3 + $0x10] ss:$2 sm:$0xff]  ;;  %v2858_v42 = vld [vmem:[#allocation3 + $0x11] ss:$2 sm:$0xff]  ;;  %1914 = vst.msk [vmem:[#allocation2 + $0x208] sm:$0xff] %vm1848_vm2, %v1689_v27  ;;  %3111 = vmatmul.msk.f32.gmra.mxu0 %vm258_vm1, %v54_v34  ;;  %3167 = vmatmul.msk.f32.gmra.mxu1 %vm258_vm1, %v110_v35  ;;  %v1634_v53 = vmax.f32 %v983_v40, 0.0 }
  0xda   :  { %v2968_v44 = vmax.f32 %v2746_v41, %v2858_v42  ;;  %v2774_v45 = vld [vmem:[#allocation3 + $0xf0] ss:$2 sm:$0xff]  ;;  %v2886_v46 = vld [vmem:[#allocation3 + $0xf1] ss:$2 sm:$0xff]  ;;  %1970 = vst.msk [vmem:[#allocation2 + $0x3c8] sm:$0xff] %vm1848_vm2, %v1745_v38  ;;  %3223 = vmatmul.msk.f32.gmra.mxu2 %vm258_vm1, %v166_v36  ;;  %3279 = vmatmul.msk.f32.gmra.mxu3 %vm258_vm1, %v222_v37  ;;  %v1690_v55 = vmax.f32 %v1151_v43, 0.0 }
  0xdb   :  { %v2982_v47 = vmax.f32 %v2774_v45, %v2886_v46  ;;  %v2802_v48 = vld [vmem:[#allocation3 + $0x1d0] ss:$2 sm:$0xff]  ;;  %v2914_v49 = vld [vmem:[#allocation3 + $0x1d1] ss:$2 sm:$0xff]  ;;  %2026 = vst.msk [vmem:[#allocation2 + $0x588] sm:$0xff] %vm1848_vm2, %v1801_v39  ;;  %v56_v27 = vld [vmem:[%s5064_s0 + $0xe0] sm:$0xff] }
  0xdc   :  { %3024 = vst.msk [vmem:[%s5067_s3 + $0x8] sm:$0xff] %vm1848_vm2, %v2968_v44  ;;  %v2996_v50 = vmax.f32 %v2802_v48, %v2914_v49  ;;  %v2830_v51 = vld [vmem:[#allocation3 + $0x2b0] ss:$2 sm:$0xff]  ;;  %v2942_v52 = vld [vmem:[#allocation3 + $0x2b1] ss:$2 sm:$0xff]  ;;  %v57_v42 = vld [vmem:[%s5064_s0 + $0xe8] sm:$0xff] }
  0xdd   :  { %3038 = vst.msk [vmem:[%s5067_s3 + $0x78] sm:$0xff] %vm1848_vm2, %v2982_v47  ;;  %v3010_v54 = vmax.f32 %v2830_v51, %v2942_v52  ;;  %v1318_v56 = vpop.f32.mrf.mxu2  ;;  %v1486_v57 = vpop.f32.mrf.mxu3  ;;  %v113_v43 = vld [vmem:[%s5064_s0 + $0x2a8] sm:$0xff] }
  0xde   :  { %3052 = vst.msk [vmem:[%s5067_s3 + $0xe8] sm:$0xff] %vm1848_vm2, %v2996_v50  ;;  %v1319_v58 = vadd.f32 %v3632_v2, %v1318_v56  ;;  %v985_v59 = vpop.f32.mrf.mxu0  ;;  %v1153_v60 = vpop.f32.mrf.mxu1  ;;  %v1487_v3 = vadd.f32 %v3632_v2, %v1486_v57  ;;  %v169_v44 = vld [vmem:[%s5064_s0 + $0x468] sm:$0xff] }
  0xdf   :  { %3066 = vst.msk [vmem:[%s5067_s3 + $0x158] sm:$0xff] %vm1848_vm2, %v3010_v54  ;;  %v2081_v0 = vld [vmem:[#allocation2 + $0x40] ss:$2 sm:$0xff]  ;;  %v2305_v1 = vld [vmem:[#allocation2 + $0x41] ss:$2 sm:$0xff]  ;;  %v986_v8 = vadd.f32 %v3632_v2, %v985_v59  ;;  %v1154_v12 = vadd.f32 %v3632_v2, %v1153_v60 }
  0xe0   :  { %v2524_v5 = vmax.f32 %v2081_v0, %v2305_v1  ;;  %v2137_v6 = vld [vmem:[#allocation2 + $0x200] ss:$2 sm:$0xff]  ;;  %v2361_v7 = vld [vmem:[#allocation2 + $0x201] ss:$2 sm:$0xff]  ;;  %1859 = vst.msk [vmem:[#allocation2 + $0x50] sm:$0xff] %vm1848_vm2, %v1634_v53  ;;  %v1746_v16 = vmax.f32 %v1319_v58, 0.0 }
  0xe1   :  { %v2552_v9 = vmax.f32 %v2137_v6, %v2361_v7  ;;  %v2193_v10 = vld [vmem:[#allocation2 + $0x3c0] ss:$2 sm:$0xff]  ;;  %v2417_v11 = vld [vmem:[#allocation2 + $0x3c1] ss:$2 sm:$0xff]  ;;  %1915 = vst.msk [vmem:[#allocation2 + $0x210] sm:$0xff] %vm1848_vm2, %v1690_v55  ;;  %3112 = vmatmul.msk.f32.gmra.mxu0 %vm258_vm1, %v55_v61  ;;  %3168 = vmatmul.msk.f32.gmra.mxu1 %vm258_vm1, %v111_v62  ;;  %v1802_v18 = vmax.f32 %v1487_v3, 0.0 }
  0xe2   :  { %2636 = vst.msk [vmem:[#allocation3 + $0x20] sm:$0xff] %vm1848_vm2, %v2524_v5  ;;  %v2580_v13 = vmax.f32 %v2193_v10, %v2417_v11  ;;  %v2249_v14 = vld [vmem:[#allocation2 + $0x580] ss:$2 sm:$0xff]  ;;  %v2473_v15 = vld [vmem:[#allocation2 + $0x581] ss:$2 sm:$0xff]  ;;  %3224 = vmatmul.msk.f32.gmra.mxu2 %vm258_vm1, %v167_v63  ;;  %3280 = vmatmul.msk.f32.gmra.mxu3 %vm258_vm1, %v223_v4  ;;  %v1635_v19 = vmax.f32 %v986_v8, 0.0 }
  0xe3   :  { %2664 = vst.msk [vmem:[#allocation3 + $0x100] sm:$0xff] %vm1848_vm2, %v2552_v9  ;;  %v2608_v17 = vmax.f32 %v2249_v14, %v2473_v15  ;;  %v1691_v20 = vmax.f32 %v1154_v12, 0.0  ;;  %v225_v48 = vld [vmem:[%s5064_s0 + $0x628] sm:$0xff]  ;;  %v58_v8 = vld [vmem:[%s5064_s0 + $0xf0] sm:$0xff] }
  0xe4   :  { %2692 = vst.msk [vmem:[#allocation3 + $0x1e0] sm:$0xff] %vm1848_vm2, %v2580_v13  ;;  %v114_v9 = vld [vmem:[%s5064_s0 + $0x2b0] sm:$0xff] }
  0xe5   :  { %2720 = vst.msk [vmem:[#allocation3 + $0x2c0] sm:$0xff] %vm1848_vm2, %v2608_v17  ;;  %v1321_v21 = vpop.f32.mrf.mxu2  ;;  %v1489_v22 = vpop.f32.mrf.mxu3  ;;  %v170_v10 = vld [vmem:[%s5064_s0 + $0x470] sm:$0xff] }
  0xe6   :  { %1971 = vst.msk [vmem:[#allocation2 + $0x3d0] sm:$0xff] %vm1848_vm2, %v1746_v16  ;;  %v1322_v23 = vadd.f32 %v3632_v2, %v1321_v21  ;;  %v1490_v24 = vadd.f32 %v3632_v2, %v1489_v22  ;;  %v988_v25 = vpop.f32.mrf.mxu0  ;;  %v1156_v26 = vpop.f32.mrf.mxu1  ;;  %v226_v11 = vld [vmem:[%s5064_s0 + $0x630] sm:$0xff] }
  0xe7   :  { %2027 = vst.msk [vmem:[#allocation2 + $0x590] sm:$0xff] %vm1848_vm2, %v1802_v18  ;;  %v989_v29 = vadd.f32 %v3632_v2, %v988_v25  ;;  %v1157_v30 = vadd.f32 %v3632_v2, %v1156_v26 }
  0xe8   :  { %1860 = vst.msk [vmem:[#allocation2 + $0x58] sm:$0xff] %vm1848_vm2, %v1635_v19  ;;  %v1747_v33 = vmax.f32 %v1322_v23, 0.0  ;;  %v1803_v34 = vmax.f32 %v1490_v24, 0.0 }
  0xe9   :  { %1916 = vst.msk [vmem:[#allocation2 + $0x218] sm:$0xff] %vm1848_vm2, %v1691_v20  ;;  %v1636_v35 = vmax.f32 %v989_v29, 0.0  ;;  %v1692_v36 = vmax.f32 %v1157_v30, 0.0  ;;  %3113 = vmatmul.msk.f32.gmra.mxu0 %vm258_vm1, %v56_v27  ;;  %3169 = vmatmul.msk.f32.gmra.mxu1 %vm258_vm1, %v112_v28 }
  0xea   :  { %1972 = vst.msk [vmem:[#allocation2 + $0x3d8] sm:$0xff] %vm1848_vm2, %v1747_v33  ;;  %3225 = vmatmul.msk.f32.gmra.mxu2 %vm258_vm1, %v168_v31  ;;  %3281 = vmatmul.msk.f32.gmra.mxu3 %vm258_vm1, %v224_v32 }
  0xeb   :  { %2028 = vst.msk [vmem:[#allocation2 + $0x598] sm:$0xff] %vm1848_vm2, %v1803_v34 }
  0xec   :  { %1861 = vst.msk [vmem:[#allocation2 + $0x60] sm:$0xff] %vm1848_vm2, %v1636_v35  ;;  %v59_v35 = vld [vmem:[%s5064_s0 + $0xf8] sm:$0xff] }
  0xed   :  { %1917 = vst.msk [vmem:[#allocation2 + $0x220] sm:$0xff] %vm1848_vm2, %v1692_v36  ;;  %v1324_v37 = vpop.f32.mrf.mxu2  ;;  %v1492_v38 = vpop.f32.mrf.mxu3  ;;  %v115_v36 = vld [vmem:[%s5064_s0 + $0x2b8] sm:$0xff] }
  0xee   :  { %v1325_v39 = vadd.f32 %v3632_v2, %v1324_v37  ;;  %v991_v40 = vpop.f32.mrf.mxu0  ;;  %v1159_v41 = vpop.f32.mrf.mxu1  ;;  %v1493_v47 = vadd.f32 %v3632_v2, %v1492_v38  ;;  %v171_v37 = vld [vmem:[%s5064_s0 + $0x478] sm:$0xff] }
  0xef   :  { %v2083_v45 = vld [vmem:[#allocation2 + $0x50] ss:$2 sm:$0xff]  ;;  %v2307_v46 = vld [vmem:[#allocation2 + $0x51] ss:$2 sm:$0xff]  ;;  %v992_v52 = vadd.f32 %v3632_v2, %v991_v40  ;;  %v1160_v56 = vadd.f32 %v3632_v2, %v1159_v41 }
  0xf0   :  { %v2525_v49 = vmax.f32 %v2083_v45, %v2307_v46  ;;  %v2139_v50 = vld [vmem:[#allocation2 + $0x210] ss:$2 sm:$0xff]  ;;  %v2363_v51 = vld [vmem:[#allocation2 + $0x211] ss:$2 sm:$0xff]  ;;  %v1748_v60 = vmax.f32 %v1325_v39, 0.0  ;;  %v1804_v62 = vmax.f32 %v1493_v47, 0.0 }
  0xf1   :  { %v2553_v53 = vmax.f32 %v2139_v50, %v2363_v51  ;;  %v2195_v54 = vld [vmem:[#allocation2 + $0x3d0] ss:$2 sm:$0xff]  ;;  %v2419_v55 = vld [vmem:[#allocation2 + $0x3d1] ss:$2 sm:$0xff]  ;;  %3114 = vmatmul.msk.f32.gmra.mxu0 %vm258_vm1, %v57_v42  ;;  %3170 = vmatmul.msk.f32.gmra.mxu1 %vm258_vm1, %v113_v43  ;;  %v1637_v63 = vmax.f32 %v992_v52, 0.0  ;;  %v1693_v0 = vmax.f32 %v1160_v56, 0.0 }
  0xf2   :  { %2637 = vst.msk [vmem:[#allocation3 + $0x28] sm:$0xff] %vm1848_vm2, %v2525_v49  ;;  %v2581_v57 = vmax.f32 %v2195_v54, %v2419_v55  ;;  %v2251_v58 = vld [vmem:[#allocation2 + $0x590] ss:$2 sm:$0xff]  ;;  %v2475_v59 = vld [vmem:[#allocation2 + $0x591] ss:$2 sm:$0xff]  ;;  %3226 = vmatmul.msk.f32.gmra.mxu2 %vm258_vm1, %v169_v44  ;;  %3282 = vmatmul.msk.f32.gmra.mxu3 %vm258_vm1, %v225_v48 }
  0xf3   :  { %2665 = vst.msk [vmem:[#allocation3 + $0x108] sm:$0xff] %vm1848_vm2, %v2553_v53  ;;  %v2609_v61 = vmax.f32 %v2251_v58, %v2475_v59  ;;  %v227_v41 = vld [vmem:[%s5064_s0 + $0x638] sm:$0xff]  ;;  %v4075_v45 = vld [vmem:[#allocation4] ss:$0 sm:$0xff] }
  0xf4   :  { %2693 = vst.msk [vmem:[#allocation3 + $0x1e8] sm:$0xff] %vm1848_vm2, %v2581_v57 }
  0xf5   :  { %2721 = vst.msk [vmem:[#allocation3 + $0x2c8] sm:$0xff] %vm1848_vm2, %v2609_v61  ;;  %v1327_v1 = vpop.f32.mrf.mxu2  ;;  %v1495_v3 = vpop.f32.mrf.mxu3 }
  0xf6   :  { %1973 = vst.msk [vmem:[#allocation2 + $0x3e0] sm:$0xff] %vm1848_vm2, %v1748_v60  ;;  %v1328_v4 = vadd.f32 %v3632_v2, %v1327_v1  ;;  %v1496_v5 = vadd.f32 %v3632_v2, %v1495_v3  ;;  %v994_v6 = vpop.f32.mrf.mxu0  ;;  %v1162_v7 = vpop.f32.mrf.mxu1  ;;  %v116_v1 = vld [vmem:[%s5064_s0 + $0x2c0] sm:$0xff] }
  0xf7   :  { %2029 = vst.msk [vmem:[#allocation2 + $0x5a0] sm:$0xff] %vm1848_vm2, %v1804_v62  ;;  %v995_v14 = vadd.f32 %v3632_v2, %v994_v6  ;;  %v1163_v17 = vadd.f32 %v3632_v2, %v1162_v7  ;;  %v228_v6 = vld [vmem:[%s5064_s0 + $0x640] sm:$0xff] }
  0xf8   :  { %1862 = vst.msk [vmem:[#allocation2 + $0x68] sm:$0xff] %vm1848_vm2, %v1637_v63  ;;  %v1749_v12 = vmax.f32 %v1328_v4, 0.0  ;;  %v1805_v13 = vmax.f32 %v1496_v5, 0.0  ;;  %v172_v5 = vld [vmem:[%s5064_s0 + $0x480] sm:$0xff] }
  0xf9   :  { %v2748_v15 = vld [vmem:[#allocation3 + $0x20] ss:$2 sm:$0xff]  ;;  %v2860_v16 = vld [vmem:[#allocation3 + $0x21] ss:$2 sm:$0xff]  ;;  %1918 = vst.msk [vmem:[#allocation2 + $0x228] sm:$0xff] %vm1848_vm2, %v1693_v0  ;;  %3115 = vmatmul.msk.f32.gmra.mxu0 %vm258_vm1, %v58_v8  ;;  %3171 = vmatmul.msk.f32.gmra.mxu1 %vm258_vm1, %v114_v9  ;;  %v1638_v27 = vmax.f32 %v995_v14, 0.0 }
  0xfa   :  { %v2969_v18 = vmax.f32 %v2748_v15, %v2860_v16  ;;  %v2776_v19 = vld [vmem:[#allocation3 + $0x100] ss:$2 sm:$0xff]  ;;  %v2888_v20 = vld [vmem:[#allocation3 + $0x101] ss:$2 sm:$0xff]  ;;  %1974 = vst.msk [vmem:[#allocation2 + $0x3e8] sm:$0xff] %vm1848_vm2, %v1749_v12  ;;  %3227 = vmatmul.msk.f32.gmra.mxu2 %vm258_vm1, %v170_v10  ;;  %3283 = vmatmul.msk.f32.gmra.mxu3 %vm258_vm1, %v226_v11  ;;  %v1694_v29 = vmax.f32 %v1163_v17, 0.0 }
  0xfb   :  { %v2983_v21 = vmax.f32 %v2776_v19, %v2888_v20  ;;  %v2804_v22 = vld [vmem:[#allocation3 + $0x1e0] ss:$2 sm:$0xff]  ;;  %v2916_v23 = vld [vmem:[#allocation3 + $0x1e1] ss:$2 sm:$0xff]  ;;  %2030 = vst.msk [vmem:[#allocation2 + $0x5a8] sm:$0xff] %vm1848_vm2, %v1805_v13 }
  0xfc   :  { %3025 = vst.msk [vmem:[%s5067_s3 + $0x10] sm:$0xff] %vm1848_vm2, %v2969_v18  ;;  %v2997_v24 = vmax.f32 %v2804_v22, %v2916_v23  ;;  %v2832_v25 = vld [vmem:[#allocation3 + $0x2c0] ss:$2 sm:$0xff]  ;;  %v2944_v26 = vld [vmem:[#allocation3 + $0x2c1] ss:$2 sm:$0xff] }
  0xfd   :  { %3039 = vst.msk [vmem:[%s5067_s3 + $0x80] sm:$0xff] %vm1848_vm2, %v2983_v21  ;;  %v3011_v28 = vmax.f32 %v2832_v25, %v2944_v26  ;;  %v1330_v30 = vpop.f32.mrf.mxu2  ;;  %v1498_v31 = vpop.f32.mrf.mxu3  ;;  %v60_v0 = vld [vmem:[%s5064_s0 + $0x100] sm:$0xff]  ;;  %v61_v16 = vld [vmem:[%s5064_s0 + $0x108] sm:$0xff] }
  0xfe   :  { %3053 = vst.msk [vmem:[%s5067_s3 + $0xf0] sm:$0xff] %vm1848_vm2, %v2997_v24  ;;  %v1331_v32 = vadd.f32 %v3632_v2, %v1330_v30  ;;  %v997_v33 = vpop.f32.mrf.mxu0  ;;  %v1165_v34 = vpop.f32.mrf.mxu1  ;;  %v1499_v40 = vadd.f32 %v3632_v2, %v1498_v31  ;;  %v117_v17 = vld [vmem:[%s5064_s0 + $0x2c8] sm:$0xff] }
  0xff   :  { %3067 = vst.msk [vmem:[%s5067_s3 + $0x160] sm:$0xff] %vm1848_vm2, %v3011_v28  ;;  %v2085_v38 = vld [vmem:[#allocation2 + $0x60] ss:$2 sm:$0xff]  ;;  %v2309_v39 = vld [vmem:[#allocation2 + $0x61] ss:$2 sm:$0xff]  ;;  %v998_v46 = vadd.f32 %v4075_v45, %v997_v33  ;;  %v1166_v2 = vadd.f32 %v4075_v45, %v1165_v34 }
 0x100   :  { %v2526_v42 = vmax.f32 %v2085_v38, %v2309_v39  ;;  %v2141_v43 = vld [vmem:[#allocation2 + $0x220] ss:$2 sm:$0xff]  ;;  %v2365_v44 = vld [vmem:[#allocation2 + $0x221] ss:$2 sm:$0xff]  ;;  %1863 = vst.msk [vmem:[#allocation2 + $0x70] sm:$0xff] %vm1848_vm2, %v1638_v27  ;;  %v1750_v53 = vmax.f32 %v1331_v32, 0.0 }
 0x101   :  { %v2554_v47 = vmax.f32 %v2141_v43, %v2365_v44  ;;  %v2197_v48 = vld [vmem:[#allocation2 + $0x3e0] ss:$2 sm:$0xff]  ;;  %v2421_v49 = vld [vmem:[#allocation2 + $0x3e1] ss:$2 sm:$0xff]  ;;  %1919 = vst.msk [vmem:[#allocation2 + $0x230] sm:$0xff] %vm1848_vm2, %v1694_v29  ;;  %3116 = vmatmul.msk.f32.gmra.mxu0 %vm258_vm1, %v59_v35  ;;  %3172 = vmatmul.msk.f32.gmra.mxu1 %vm258_vm1, %v115_v36  ;;  %v1806_v55 = vmax.f32 %v1499_v40, 0.0 }
 0x102   :  { %2638 = vst.msk [vmem:[#allocation3 + $0x30] sm:$0xff] %vm1848_vm2, %v2526_v42  ;;  %v2582_v50 = vmax.f32 %v2197_v48, %v2421_v49  ;;  %v2253_v51 = vld [vmem:[#allocation2 + $0x5a0] ss:$2 sm:$0xff]  ;;  %v2477_v52 = vld [vmem:[#allocation2 + $0x5a1] ss:$2 sm:$0xff]  ;;  %3228 = vmatmul.msk.f32.gmra.mxu2 %vm258_vm1, %v171_v37  ;;  %3284 = vmatmul.msk.f32.gmra.mxu3 %vm258_vm1, %v227_v41  ;;  %v1639_v56 = vmax.f32 %v998_v46, 0.0 }
 0x103   :  { %2666 = vst.msk [vmem:[#allocation3 + $0x110] sm:$0xff] %vm1848_vm2, %v2554_v47  ;;  %v2610_v54 = vmax.f32 %v2253_v51, %v2477_v52  ;;  %v1695_v57 = vmax.f32 %v1166_v2, 0.0  ;;  %v173_v18 = vld [vmem:[%s5064_s0 + $0x488] sm:$0xff]  ;;  %v62_v46 = vld [vmem:[%s5064_s0 + $0x110] sm:$0xff] }
 0x104   :  { %2694 = vst.msk [vmem:[#allocation3 + $0x1f0] sm:$0xff] %vm1848_vm2, %v2582_v50  ;;  %v229_v22 = vld [vmem:[%s5064_s0 + $0x648] sm:$0xff]  ;;  %v118_v47 = vld [vmem:[%s5064_s0 + $0x2d0] sm:$0xff] }
 0x105   :  { %2722 = vst.msk [vmem:[#allocation3 + $0x2d0] sm:$0xff] %vm1848_vm2, %v2610_v54  ;;  %v1333_v58 = vpop.f32.mrf.mxu2  ;;  %v1501_v59 = vpop.f32.mrf.mxu3  ;;  %v174_v48 = vld [vmem:[%s5064_s0 + $0x490] sm:$0xff] }
 0x106   :  { %1975 = vst.msk [vmem:[#allocation2 + $0x3f0] sm:$0xff] %vm1848_vm2, %v1750_v53  ;;  %v1334_v60 = vadd.f32 %v4075_v45, %v1333_v58  ;;  %v1502_v61 = vadd.f32 %v4075_v45, %v1501_v59  ;;  %v1000_v62 = vpop.f32.mrf.mxu0  ;;  %v1168_v63 = vpop.f32.mrf.mxu1  ;;  %v230_v49 = vld [vmem:[%s5064_s0 + $0x650] sm:$0xff] }
 0x107   :  { %2031 = vst.msk [vmem:[#allocation2 + $0x5b0] sm:$0xff] %vm1848_vm2, %v1806_v55  ;;  %v1001_v3 = vadd.f32 %v4075_v45, %v1000_v62  ;;  %v1169_v4 = vadd.f32 %v4075_v45, %v1168_v63 }
 0x108   :  { %1864 = vst.msk [vmem:[#allocation2 + $0x78] sm:$0xff] %vm1848_vm2, %v1639_v56  ;;  %v1751_v7 = vmax.f32 %v1334_v60, 0.0  ;;  %v1807_v8 = vmax.f32 %v1502_v61, 0.0 }
 0x109   :  { %1920 = vst.msk [vmem:[#allocation2 + $0x238] sm:$0xff] %vm1848_vm2, %v1695_v57  ;;  %v1640_v9 = vmax.f32 %v1001_v3, 0.0  ;;  %v1696_v10 = vmax.f32 %v1169_v4, 0.0  ;;  %3117 = vmatmul.msk.f32.gmra.mxu0 %vm258_vm1, %v60_v0  ;;  %3173 = vmatmul.msk.f32.gmra.mxu1 %vm258_vm1, %v116_v1 }
 0x10a   :  { %1976 = vst.msk [vmem:[#allocation2 + $0x3f8] sm:$0xff] %vm1848_vm2, %v1751_v7  ;;  %3229 = vmatmul.msk.f32.gmra.mxu2 %vm258_vm1, %v172_v5  ;;  %3285 = vmatmul.msk.f32.gmra.mxu3 %vm258_vm1, %v228_v6 }
 0x10b   :  { %2032 = vst.msk [vmem:[#allocation2 + $0x5b8] sm:$0xff] %vm1848_vm2, %v1807_v8 }
 0x10c   :  { %1865 = vst.msk [vmem:[#allocation2 + $0x80] sm:$0xff] %vm1848_vm2, %v1640_v9  ;;  %v63_v9 = vld [vmem:[%s5064_s0 + $0x118] sm:$0xff] }
 0x10d   :  { %1921 = vst.msk [vmem:[#allocation2 + $0x240] sm:$0xff] %vm1848_vm2, %v1696_v10  ;;  %v1336_v11 = vpop.f32.mrf.mxu2  ;;  %v1504_v12 = vpop.f32.mrf.mxu3  ;;  %v119_v10 = vld [vmem:[%s5064_s0 + $0x2d8] sm:$0xff] }
 0x10e   :  { %v1337_v13 = vadd.f32 %v4075_v45, %v1336_v11  ;;  %v1003_v14 = vpop.f32.mrf.mxu0  ;;  %v1171_v15 = vpop.f32.mrf.mxu1  ;;  %v1505_v21 = vadd.f32 %v4075_v45, %v1504_v12  ;;  %v175_v11 = vld [vmem:[%s5064_s0 + $0x498] sm:$0xff] }
 0x10f   :  { %v2087_v19 = vld [vmem:[#allocation2 + $0x70] ss:$2 sm:$0xff]  ;;  %v2311_v20 = vld [vmem:[#allocation2 + $0x71] ss:$2 sm:$0xff]  ;;  %v1004_v26 = vadd.f32 %v4075_v45, %v1003_v14  ;;  %v1172_v30 = vadd.f32 %v4075_v45, %v1171_v15 }
 0x110   :  { %v2527_v23 = vmax.f32 %v2087_v19, %v2311_v20  ;;  %v2143_v24 = vld [vmem:[#allocation2 + $0x230] ss:$2 sm:$0xff]  ;;  %v2367_v25 = vld [vmem:[#allocation2 + $0x231] ss:$2 sm:$0xff]  ;;  %v1752_v34 = vmax.f32 %v1337_v13, 0.0  ;;  %v1808_v36 = vmax.f32 %v1505_v21, 0.0 }
 0x111   :  { %v2555_v27 = vmax.f32 %v2143_v24, %v2367_v25  ;;  %v2199_v28 = vld [vmem:[#allocation2 + $0x3f0] ss:$2 sm:$0xff]  ;;  %v2423_v29 = vld [vmem:[#allocation2 + $0x3f1] ss:$2 sm:$0xff]  ;;  %3118 = vmatmul.msk.f32.gmra.mxu0 %vm258_vm1, %v61_v16  ;;  %3174 = vmatmul.msk.f32.gmra.mxu1 %vm258_vm1, %v117_v17  ;;  %v1641_v37 = vmax.f32 %v1004_v26, 0.0  ;;  %v1697_v38 = vmax.f32 %v1172_v30, 0.0 }
 0x112   :  { %2639 = vst.msk [vmem:[#allocation3 + $0x38] sm:$0xff] %vm1848_vm2, %v2527_v23  ;;  %v2583_v31 = vmax.f32 %v2199_v28, %v2423_v29  ;;  %v2255_v32 = vld [vmem:[#allocation2 + $0x5b0] ss:$2 sm:$0xff]  ;;  %v2479_v33 = vld [vmem:[#allocation2 + $0x5b1] ss:$2 sm:$0xff]  ;;  %3230 = vmatmul.msk.f32.gmra.mxu2 %vm258_vm1, %v173_v18  ;;  %3286 = vmatmul.msk.f32.gmra.mxu3 %vm258_vm1, %v229_v22 }
 0x113   :  { %2667 = vst.msk [vmem:[#allocation3 + $0x118] sm:$0xff] %vm1848_vm2, %v2555_v27  ;;  %v2611_v35 = vmax.f32 %v2255_v32, %v2479_v33  ;;  %v231_v15 = vld [vmem:[%s5064_s0 + $0x658] sm:$0xff] }
 0x114   :  { %2695 = vst.msk [vmem:[#allocation3 + $0x1f8] sm:$0xff] %vm1848_vm2, %v2583_v31 }
 0x115   :  { %2723 = vst.msk [vmem:[#allocation3 + $0x2d8] sm:$0xff] %vm1848_vm2, %v2611_v35  ;;  %v1339_v39 = vpop.f32.mrf.mxu2  ;;  %v1507_v40 = vpop.f32.mrf.mxu3 }
 0x116   :  { %1977 = vst.msk [vmem:[#allocation2 + $0x400] sm:$0xff] %vm1848_vm2, %v1752_v34  ;;  %v1340_v41 = vadd.f32 %v4075_v45, %v1339_v39  ;;  %v1508_v42 = vadd.f32 %v4075_v45, %v1507_v40  ;;  %v1006_v43 = vpop.f32.mrf.mxu0  ;;  %v1174_v44 = vpop.f32.mrf.mxu1  ;;  %v120_v39 = vld [vmem:[%s5064_s0 + $0x2e0] sm:$0xff] }
 0x117   :  { %2033 = vst.msk [vmem:[#allocation2 + $0x5c0] sm:$0xff] %vm1848_vm2, %v1808_v36  ;;  %v1007_v51 = vadd.f32 %v4075_v45, %v1006_v43  ;;  %v1175_v54 = vadd.f32 %v4075_v45, %v1174_v44  ;;  %v232_v43 = vld [vmem:[%s5064_s0 + $0x660] sm:$0xff] }
 0x118   :  { %1866 = vst.msk [vmem:[#allocation2 + $0x88] sm:$0xff] %vm1848_vm2, %v1641_v37  ;;  %v1753_v2 = vmax.f32 %v1340_v41, 0.0  ;;  %v1809_v50 = vmax.f32 %v1508_v42, 0.0  ;;  %v176_v42 = vld [vmem:[%s5064_s0 + $0x4a0] sm:$0xff] }
 0x119   :  { %v2750_v52 = vld [vmem:[#allocation3 + $0x30] ss:$2 sm:$0xff]  ;;  %v2862_v53 = vld [vmem:[#allocation3 + $0x31] ss:$2 sm:$0xff]  ;;  %1922 = vst.msk [vmem:[#allocation2 + $0x248] sm:$0xff] %vm1848_vm2, %v1697_v38  ;;  %3119 = vmatmul.msk.f32.gmra.mxu0 %vm258_vm1, %v62_v46  ;;  %3175 = vmatmul.msk.f32.gmra.mxu1 %vm258_vm1, %v118_v47  ;;  %v1642_v0 = vmax.f32 %v1007_v51, 0.0 }
 0x11a   :  { %v2970_v55 = vmax.f32 %v2750_v52, %v2862_v53  ;;  %v2778_v56 = vld [vmem:[#allocation3 + $0x110] ss:$2 sm:$0xff]  ;;  %v2890_v57 = vld [vmem:[#allocation3 + $0x111] ss:$2 sm:$0xff]  ;;  %1978 = vst.msk [vmem:[#allocation2 + $0x408] sm:$0xff] %vm1848_vm2, %v1753_v2  ;;  %3231 = vmatmul.msk.f32.gmra.mxu2 %vm258_vm1, %v174_v48  ;;  %3287 = vmatmul.msk.f32.gmra.mxu3 %vm258_vm1, %v230_v49  ;;  %v1698_v3 = vmax.f32 %v1175_v54, 0.0 }
 0x11b   :  { %v2984_v58 = vmax.f32 %v2778_v56, %v2890_v57  ;;  %v2806_v59 = vld [vmem:[#allocation3 + $0x1f0] ss:$2 sm:$0xff]  ;;  %v2918_v60 = vld [vmem:[#allocation3 + $0x1f1] ss:$2 sm:$0xff]  ;;  %2034 = vst.msk [vmem:[#allocation2 + $0x5c8] sm:$0xff] %vm1848_vm2, %v1809_v50  ;;  %v64_v38 = vld [vmem:[%s5064_s0 + $0x120] sm:$0xff] }
 0x11c   :  { %3026 = vst.msk [vmem:[%s5067_s3 + $0x18] sm:$0xff] %vm1848_vm2, %v2970_v55  ;;  %v2998_v61 = vmax.f32 %v2806_v59, %v2918_v60  ;;  %v2834_v62 = vld [vmem:[#allocation3 + $0x2d0] ss:$2 sm:$0xff]  ;;  %v2946_v63 = vld [vmem:[#allocation3 + $0x2d1] ss:$2 sm:$0xff]  ;;  %v65_v53 = vld [vmem:[%s5064_s0 + $0x128] sm:$0xff] }
 0x11d   :  { %3040 = vst.msk [vmem:[%s5067_s3 + $0x88] sm:$0xff] %vm1848_vm2, %v2984_v58  ;;  %v3012_v1 = vmax.f32 %v2834_v62, %v2946_v63  ;;  %v1342_v4 = vpop.f32.mrf.mxu2  ;;  %v1510_v5 = vpop.f32.mrf.mxu3  ;;  %v121_v54 = vld [vmem:[%s5064_s0 + $0x2e8] sm:$0xff] }
 0x11e   :  { %3054 = vst.msk [vmem:[%s5067_s3 + $0xf8] sm:$0xff] %vm1848_vm2, %v2998_v61  ;;  %v1343_v6 = vadd.f32 %v4075_v45, %v1342_v4  ;;  %v1009_v7 = vpop.f32.mrf.mxu0  ;;  %v1177_v8 = vpop.f32.mrf.mxu1  ;;  %v1511_v14 = vadd.f32 %v4075_v45, %v1510_v5  ;;  %v177_v55 = vld [vmem:[%s5064_s0 + $0x4a8] sm:$0xff] }
 0x11f   :  { %3068 = vst.msk [vmem:[%s5067_s3 + $0x168] sm:$0xff] %vm1848_vm2, %v3012_v1  ;;  %v2089_v12 = vld [vmem:[#allocation2 + $0x80] ss:$2 sm:$0xff]  ;;  %v2313_v13 = vld [vmem:[#allocation2 + $0x81] ss:$2 sm:$0xff]  ;;  %v1010_v19 = vadd.f32 %v4075_v45, %v1009_v7  ;;  %v1178_v23 = vadd.f32 %v4075_v45, %v1177_v8 }
 0x120   :  { %v2528_v16 = vmax.f32 %v2089_v12, %v2313_v13  ;;  %v2145_v17 = vld [vmem:[#allocation2 + $0x240] ss:$2 sm:$0xff]  ;;  %v2369_v18 = vld [vmem:[#allocation2 + $0x241] ss:$2 sm:$0xff]  ;;  %1867 = vst.msk [vmem:[#allocation2 + $0x90] sm:$0xff] %vm1848_vm2, %v1642_v0  ;;  %v1754_v27 = vmax.f32 %v1343_v6, 0.0 }
 0x121   :  { %v2556_v20 = vmax.f32 %v2145_v17, %v2369_v18  ;;  %v2201_v21 = vld [vmem:[#allocation2 + $0x400] ss:$2 sm:$0xff]  ;;  %v2425_v22 = vld [vmem:[#allocation2 + $0x401] ss:$2 sm:$0xff]  ;;  %1923 = vst.msk [vmem:[#allocation2 + $0x250] sm:$0xff] %vm1848_vm2, %v1698_v3  ;;  %3120 = vmatmul.msk.f32.gmra.mxu0 %vm258_vm1, %v63_v9  ;;  %3176 = vmatmul.msk.f32.gmra.mxu1 %vm258_vm1, %v119_v10  ;;  %v1810_v29 = vmax.f32 %v1511_v14, 0.0 }
 0x122   :  { %2640 = vst.msk [vmem:[#allocation3 + $0x40] sm:$0xff] %vm1848_vm2, %v2528_v16  ;;  %v2584_v24 = vmax.f32 %v2201_v21, %v2425_v22  ;;  %v2257_v25 = vld [vmem:[#allocation2 + $0x5c0] ss:$2 sm:$0xff]  ;;  %v2481_v26 = vld [vmem:[#allocation2 + $0x5c1] ss:$2 sm:$0xff]  ;;  %3232 = vmatmul.msk.f32.gmra.mxu2 %vm258_vm1, %v175_v11  ;;  %3288 = vmatmul.msk.f32.gmra.mxu3 %vm258_vm1, %v231_v15  ;;  %v1643_v30 = vmax.f32 %v1010_v19, 0.0 }
 0x123   :  { %2668 = vst.msk [vmem:[#allocation3 + $0x120] sm:$0xff] %vm1848_vm2, %v2556_v20  ;;  %v2612_v28 = vmax.f32 %v2257_v25, %v2481_v26  ;;  %v1699_v31 = vmax.f32 %v1178_v23, 0.0  ;;  %v233_v59 = vld [vmem:[%s5064_s0 + $0x668] sm:$0xff]  ;;  %v66_v19 = vld [vmem:[%s5064_s0 + $0x130] sm:$0xff] }
 0x124   :  { %2696 = vst.msk [vmem:[#allocation3 + $0x200] sm:$0xff] %vm1848_vm2, %v2584_v24  ;;  %v122_v20 = vld [vmem:[%s5064_s0 + $0x2f0] sm:$0xff] }
 0x125   :  { %2724 = vst.msk [vmem:[#allocation3 + $0x2e0] sm:$0xff] %vm1848_vm2, %v2612_v28  ;;  %v1345_v32 = vpop.f32.mrf.mxu2  ;;  %v1513_v33 = vpop.f32.mrf.mxu3  ;;  %v178_v21 = vld [vmem:[%s5064_s0 + $0x4b0] sm:$0xff] }
 0x126   :  { %1979 = vst.msk [vmem:[#allocation2 + $0x410] sm:$0xff] %vm1848_vm2, %v1754_v27  ;;  %v1346_v34 = vadd.f32 %v4075_v45, %v1345_v32  ;;  %v1514_v35 = vadd.f32 %v4075_v45, %v1513_v33  ;;  %v1012_v36 = vpop.f32.mrf.mxu0  ;;  %v1180_v37 = vpop.f32.mrf.mxu1  ;;  %v234_v22 = vld [vmem:[%s5064_s0 + $0x670] sm:$0xff] }
 0x127   :  { %2035 = vst.msk [vmem:[#allocation2 + $0x5d0] sm:$0xff] %vm1848_vm2, %v1810_v29  ;;  %v1013_v40 = vadd.f32 %v4075_v45, %v1012_v36  ;;  %v1181_v41 = vadd.f32 %v4075_v45, %v1180_v37 }
 0x128   :  { %1868 = vst.msk [vmem:[#allocation2 + $0x98] sm:$0xff] %vm1848_vm2, %v1643_v30  ;;  %v1755_v44 = vmax.f32 %v1346_v34, 0.0  ;;  %v1811_v46 = vmax.f32 %v1514_v35, 0.0 }
 0x129   :  { %1924 = vst.msk [vmem:[#allocation2 + $0x258] sm:$0xff] %vm1848_vm2, %v1699_v31  ;;  %v1644_v47 = vmax.f32 %v1013_v40, 0.0  ;;  %v1700_v48 = vmax.f32 %v1181_v41, 0.0  ;;  %3121 = vmatmul.msk.f32.gmra.mxu0 %vm258_vm1, %v64_v38  ;;  %3177 = vmatmul.msk.f32.gmra.mxu1 %vm258_vm1, %v120_v39 }
 0x12a   :  { %1980 = vst.msk [vmem:[#allocation2 + $0x418] sm:$0xff] %vm1848_vm2, %v1755_v44  ;;  %3233 = vmatmul.msk.f32.gmra.mxu2 %vm258_vm1, %v176_v42  ;;  %3289 = vmatmul.msk.f32.gmra.mxu3 %vm258_vm1, %v232_v43 }
 0x12b   :  { %2036 = vst.msk [vmem:[#allocation2 + $0x5d8] sm:$0xff] %vm1848_vm2, %v1811_v46 }
 0x12c   :  { %1869 = vst.msk [vmem:[#allocation2 + $0xa0] sm:$0xff] %vm1848_vm2, %v1644_v47  ;;  %v67_v47 = vld [vmem:[%s5064_s0 + $0x138] sm:$0xff] }
 0x12d   :  { %1925 = vst.msk [vmem:[#allocation2 + $0x260] sm:$0xff] %vm1848_vm2, %v1700_v48  ;;  %v1348_v49 = vpop.f32.mrf.mxu2  ;;  %v1516_v2 = vpop.f32.mrf.mxu3  ;;  %v123_v48 = vld [vmem:[%s5064_s0 + $0x2f8] sm:$0xff] }
 0x12e   :  { %v1349_v50 = vadd.f32 %v4075_v45, %v1348_v49  ;;  %v1015_v51 = vpop.f32.mrf.mxu0  ;;  %v1183_v52 = vpop.f32.mrf.mxu1  ;;  %v1517_v58 = vadd.f32 %v4075_v45, %v1516_v2  ;;  %v179_v49 = vld [vmem:[%s5064_s0 + $0x4b8] sm:$0xff] }
 0x12f   :  { %v2091_v56 = vld [vmem:[#allocation2 + $0x90] ss:$2 sm:$0xff]  ;;  %v2315_v57 = vld [vmem:[#allocation2 + $0x91] ss:$2 sm:$0xff]  ;;  %v1016_v63 = vadd.f32 %v4075_v45, %v1015_v51  ;;  %v1184_v4 = vadd.f32 %v4075_v45, %v1183_v52 }
 0x130   :  { %v2529_v60 = vmax.f32 %v2091_v56, %v2315_v57  ;;  %v2147_v61 = vld [vmem:[#allocation2 + $0x250] ss:$2 sm:$0xff]  ;;  %v2371_v62 = vld [vmem:[#allocation2 + $0x251] ss:$2 sm:$0xff]  ;;  %v1756_v8 = vmax.f32 %v1349_v50, 0.0  ;;  %v1812_v10 = vmax.f32 %v1517_v58, 0.0 }
 0x131   :  { %v2557_v0 = vmax.f32 %v2147_v61, %v2371_v62  ;;  %v2203_v1 = vld [vmem:[#allocation2 + $0x410] ss:$2 sm:$0xff]  ;;  %v2427_v3 = vld [vmem:[#allocation2 + $0x411] ss:$2 sm:$0xff]  ;;  %3122 = vmatmul.msk.f32.gmra.mxu0 %vm258_vm1, %v65_v53  ;;  %3178 = vmatmul.msk.f32.gmra.mxu1 %vm258_vm1, %v121_v54  ;;  %v1645_v11 = vmax.f32 %v1016_v63, 0.0  ;;  %v1701_v12 = vmax.f32 %v1184_v4, 0.0 }
 0x132   :  { %2641 = vst.msk [vmem:[#allocation3 + $0x48] sm:$0xff] %vm1848_vm2, %v2529_v60  ;;  %v2585_v5 = vmax.f32 %v2203_v1, %v2427_v3  ;;  %v2259_v6 = vld [vmem:[#allocation2 + $0x5d0] ss:$2 sm:$0xff]  ;;  %v2483_v7 = vld [vmem:[#allocation2 + $0x5d1] ss:$2 sm:$0xff]  ;;  %3234 = vmatmul.msk.f32.gmra.mxu2 %vm258_vm1, %v177_v55  ;;  %3290 = vmatmul.msk.f32.gmra.mxu3 %vm258_vm1, %v233_v59 }
 0x133   :  { %2669 = vst.msk [vmem:[#allocation3 + $0x128] sm:$0xff] %vm1848_vm2, %v2557_v0  ;;  %v2613_v9 = vmax.f32 %v2259_v6, %v2483_v7  ;;  %v235_v52 = vld [vmem:[%s5064_s0 + $0x678] sm:$0xff] }
 0x134   :  { %2697 = vst.msk [vmem:[#allocation3 + $0x208] sm:$0xff] %vm1848_vm2, %v2585_v5 }
 0x135   :  { %2725 = vst.msk [vmem:[#allocation3 + $0x2e8] sm:$0xff] %vm1848_vm2, %v2613_v9  ;;  %v1351_v13 = vpop.f32.mrf.mxu2  ;;  %v1519_v14 = vpop.f32.mrf.mxu3 }
 0x136   :  { %1981 = vst.msk [vmem:[#allocation2 + $0x420] sm:$0xff] %vm1848_vm2, %v1756_v8  ;;  %v1352_v15 = vadd.f32 %v4075_v45, %v1351_v13  ;;  %v1520_v16 = vadd.f32 %v4075_v45, %v1519_v14  ;;  %v1018_v17 = vpop.f32.mrf.mxu0  ;;  %v1186_v18 = vpop.f32.mrf.mxu1  ;;  %v124_v13 = vld [vmem:[%s5064_s0 + $0x300] sm:$0xff] }
 0x137   :  { %2037 = vst.msk [vmem:[#allocation2 + $0x5e0] sm:$0xff] %vm1848_vm2, %v1812_v10  ;;  %v1019_v25 = vadd.f32 %v4075_v45, %v1018_v17  ;;  %v1187_v28 = vadd.f32 %v4075_v45, %v1186_v18  ;;  %v236_v17 = vld [vmem:[%s5064_s0 + $0x680] sm:$0xff] }
 0x138   :  { %1870 = vst.msk [vmem:[#allocation2 + $0xa8] sm:$0xff] %vm1848_vm2, %v1645_v11  ;;  %v1757_v23 = vmax.f32 %v1352_v15, 0.0  ;;  %v1813_v24 = vmax.f32 %v1520_v16, 0.0  ;;  %v180_v16 = vld [vmem:[%s5064_s0 + $0x4c0] sm:$0xff] }
 0x139   :  { %v2752_v26 = vld [vmem:[#allocation3 + $0x40] ss:$2 sm:$0xff]  ;;  %v2864_v27 = vld [vmem:[#allocation3 + $0x41] ss:$2 sm:$0xff]  ;;  %1926 = vst.msk [vmem:[#allocation2 + $0x268] sm:$0xff] %vm1848_vm2, %v1701_v12  ;;  %3123 = vmatmul.msk.f32.gmra.mxu0 %vm258_vm1, %v66_v19  ;;  %3179 = vmatmul.msk.f32.gmra.mxu1 %vm258_vm1, %v122_v20  ;;  %v1646_v38 = vmax.f32 %v1019_v25, 0.0 }
 0x13a   :  { %v2971_v29 = vmax.f32 %v2752_v26, %v2864_v27  ;;  %v2780_v30 = vld [vmem:[#allocation3 + $0x120] ss:$2 sm:$0xff]  ;;  %v2892_v31 = vld [vmem:[#allocation3 + $0x121] ss:$2 sm:$0xff]  ;;  %1982 = vst.msk [vmem:[#allocation2 + $0x428] sm:$0xff] %vm1848_vm2, %v1757_v23  ;;  %3235 = vmatmul.msk.f32.gmra.mxu2 %vm258_vm1, %v178_v21  ;;  %3291 = vmatmul.msk.f32.gmra.mxu3 %vm258_vm1, %v234_v22  ;;  %v1702_v40 = vmax.f32 %v1187_v28, 0.0 }
 0x13b   :  { %v2985_v32 = vmax.f32 %v2780_v30, %v2892_v31  ;;  %v2808_v33 = vld [vmem:[#allocation3 + $0x200] ss:$2 sm:$0xff]  ;;  %v2920_v34 = vld [vmem:[#allocation3 + $0x201] ss:$2 sm:$0xff]  ;;  %2038 = vst.msk [vmem:[#allocation2 + $0x5e8] sm:$0xff] %vm1848_vm2, %v1813_v24 }
 0x13c   :  { %3027 = vst.msk [vmem:[%s5067_s3 + $0x20] sm:$0xff] %vm1848_vm2, %v2971_v29  ;;  %v2999_v35 = vmax.f32 %v2808_v33, %v2920_v34  ;;  %v2836_v36 = vld [vmem:[#allocation3 + $0x2e0] ss:$2 sm:$0xff]  ;;  %v2948_v37 = vld [vmem:[#allocation3 + $0x2e1] ss:$2 sm:$0xff] }
 0x13d   :  { %3041 = vst.msk [vmem:[%s5067_s3 + $0x90] sm:$0xff] %vm1848_vm2, %v2985_v32  ;;  %v3013_v39 = vmax.f32 %v2836_v36, %v2948_v37  ;;  %v1354_v41 = vpop.f32.mrf.mxu2  ;;  %v1522_v42 = vpop.f32.mrf.mxu3  ;;  %v68_v12 = vld [vmem:[%s5064_s0 + $0x140] sm:$0xff]  ;;  %v69_v27 = vld [vmem:[%s5064_s0 + $0x148] sm:$0xff] }
 0x13e   :  { %3055 = vst.msk [vmem:[%s5067_s3 + $0x100] sm:$0xff] %vm1848_vm2, %v2999_v35  ;;  %v1355_v43 = vadd.f32 %v4075_v45, %v1354_v41  ;;  %v1021_v44 = vpop.f32.mrf.mxu0  ;;  %v1189_v46 = vpop.f32.mrf.mxu1  ;;  %v1523_v51 = vadd.f32 %v4075_v45, %v1522_v42  ;;  %v125_v28 = vld [vmem:[%s5064_s0 + $0x308] sm:$0xff] }
 0x13f   :  { %3069 = vst.msk [vmem:[%s5067_s3 + $0x170] sm:$0xff] %vm1848_vm2, %v3013_v39  ;;  %v2093_v2 = vld [vmem:[#allocation2 + $0xa0] ss:$2 sm:$0xff]  ;;  %v2317_v50 = vld [vmem:[#allocation2 + $0xa1] ss:$2 sm:$0xff]  ;;  %v1022_v56 = vadd.f32 %v4075_v45, %v1021_v44  ;;  %v1190_v60 = vadd.f32 %v4075_v45, %v1189_v46 }
 0x140   :  { %v2530_v53 = vmax.f32 %v2093_v2, %v2317_v50  ;;  %v2149_v54 = vld [vmem:[#allocation2 + $0x260] ss:$2 sm:$0xff]  ;;  %v2373_v55 = vld [vmem:[#allocation2 + $0x261] ss:$2 sm:$0xff]  ;;  %1871 = vst.msk [vmem:[#allocation2 + $0xb0] sm:$0xff] %vm1848_vm2, %v1646_v38  ;;  %v1758_v0 = vmax.f32 %v1355_v43, 0.0 }
 0x141   :  { %v2558_v57 = vmax.f32 %v2149_v54, %v2373_v55  ;;  %v2205_v58 = vld [vmem:[#allocation2 + $0x420] ss:$2 sm:$0xff]  ;;  %v2429_v59 = vld [vmem:[#allocation2 + $0x421] ss:$2 sm:$0xff]  ;;  %1927 = vst.msk [vmem:[#allocation2 + $0x270] sm:$0xff] %vm1848_vm2, %v1702_v40  ;;  %3124 = vmatmul.msk.f32.gmra.mxu0 %vm258_vm1, %v67_v47  ;;  %3180 = vmatmul.msk.f32.gmra.mxu1 %vm258_vm1, %v123_v48  ;;  %v1814_v3 = vmax.f32 %v1523_v51, 0.0 }
 0x142   :  { %2642 = vst.msk [vmem:[#allocation3 + $0x50] sm:$0xff] %vm1848_vm2, %v2530_v53  ;;  %v2586_v61 = vmax.f32 %v2205_v58, %v2429_v59  ;;  %v2261_v62 = vld [vmem:[#allocation2 + $0x5e0] ss:$2 sm:$0xff]  ;;  %v2485_v63 = vld [vmem:[#allocation2 + $0x5e1] ss:$2 sm:$0xff]  ;;  %3236 = vmatmul.msk.f32.gmra.mxu2 %vm258_vm1, %v179_v49  ;;  %3292 = vmatmul.msk.f32.gmra.mxu3 %vm258_vm1, %v235_v52  ;;  %v1647_v4 = vmax.f32 %v1022_v56, 0.0 }
 0x143   :  { %2670 = vst.msk [vmem:[#allocation3 + $0x130] sm:$0xff] %vm1848_vm2, %v2558_v57  ;;  %v2614_v1 = vmax.f32 %v2261_v62, %v2485_v63  ;;  %v1703_v5 = vmax.f32 %v1190_v60, 0.0  ;;  %v181_v29 = vld [vmem:[%s5064_s0 + $0x4c8] sm:$0xff]  ;;  %v70_v56 = vld [vmem:[%s5064_s0 + $0x150] sm:$0xff] }
 0x144   :  { %2698 = vst.msk [vmem:[#allocation3 + $0x210] sm:$0xff] %vm1848_vm2, %v2586_v61  ;;  %v237_v33 = vld [vmem:[%s5064_s0 + $0x688] sm:$0xff]  ;;  %v126_v57 = vld [vmem:[%s5064_s0 + $0x310] sm:$0xff] }
 0x145   :  { %2726 = vst.msk [vmem:[#allocation3 + $0x2f0] sm:$0xff] %vm1848_vm2, %v2614_v1  ;;  %v1357_v6 = vpop.f32.mrf.mxu2  ;;  %v1525_v7 = vpop.f32.mrf.mxu3  ;;  %v182_v58 = vld [vmem:[%s5064_s0 + $0x4d0] sm:$0xff] }
 0x146   :  { %1983 = vst.msk [vmem:[#allocation2 + $0x430] sm:$0xff] %vm1848_vm2, %v1758_v0  ;;  %v1358_v8 = vadd.f32 %v4075_v45, %v1357_v6  ;;  %v1526_v9 = vadd.f32 %v4075_v45, %v1525_v7  ;;  %v1024_v10 = vpop.f32.mrf.mxu0  ;;  %v1192_v11 = vpop.f32.mrf.mxu1  ;;  %v238_v59 = vld [vmem:[%s5064_s0 + $0x690] sm:$0xff] }
 0x147   :  { %2039 = vst.msk [vmem:[#allocation2 + $0x5f0] sm:$0xff] %vm1848_vm2, %v1814_v3  ;;  %v1025_v14 = vadd.f32 %v4075_v45, %v1024_v10  ;;  %v1193_v15 = vadd.f32 %v4075_v45, %v1192_v11 }
 0x148   :  { %1872 = vst.msk [vmem:[#allocation2 + $0xb8] sm:$0xff] %vm1848_vm2, %v1647_v4  ;;  %v1759_v18 = vmax.f32 %v1358_v8, 0.0  ;;  %v1815_v19 = vmax.f32 %v1526_v9, 0.0 }
 0x149   :  { %1928 = vst.msk [vmem:[#allocation2 + $0x278] sm:$0xff] %vm1848_vm2, %v1703_v5  ;;  %v1648_v20 = vmax.f32 %v1025_v14, 0.0  ;;  %v1704_v21 = vmax.f32 %v1193_v15, 0.0  ;;  %3125 = vmatmul.msk.f32.gmra.mxu0 %vm258_vm1, %v68_v12  ;;  %3181 = vmatmul.msk.f32.gmra.mxu1 %vm258_vm1, %v124_v13 }
 0x14a   :  { %1984 = vst.msk [vmem:[#allocation2 + $0x438] sm:$0xff] %vm1848_vm2, %v1759_v18  ;;  %3237 = vmatmul.msk.f32.gmra.mxu2 %vm258_vm1, %v180_v16  ;;  %3293 = vmatmul.msk.f32.gmra.mxu3 %vm258_vm1, %v236_v17 }
 0x14b   :  { %2040 = vst.msk [vmem:[#allocation2 + $0x5f8] sm:$0xff] %vm1848_vm2, %v1815_v19 }
 0x14c   :  { %1873 = vst.msk [vmem:[#allocation2 + $0xc0] sm:$0xff] %vm1848_vm2, %v1648_v20  ;;  %v71_v20 = vld [vmem:[%s5064_s0 + $0x158] sm:$0xff] }
 0x14d   :  { %1929 = vst.msk [vmem:[#allocation2 + $0x280] sm:$0xff] %vm1848_vm2, %v1704_v21  ;;  %v1360_v22 = vpop.f32.mrf.mxu2  ;;  %v1528_v23 = vpop.f32.mrf.mxu3  ;;  %v127_v21 = vld [vmem:[%s5064_s0 + $0x318] sm:$0xff] }
 0x14e   :  { %v1361_v24 = vadd.f32 %v4075_v45, %v1360_v22  ;;  %v1027_v25 = vpop.f32.mrf.mxu0  ;;  %v1195_v26 = vpop.f32.mrf.mxu1  ;;  %v1529_v32 = vadd.f32 %v4075_v45, %v1528_v23  ;;  %v183_v22 = vld [vmem:[%s5064_s0 + $0x4d8] sm:$0xff] }
 0x14f   :  { %v2095_v30 = vld [vmem:[#allocation2 + $0xb0] ss:$2 sm:$0xff]  ;;  %v2319_v31 = vld [vmem:[#allocation2 + $0xb1] ss:$2 sm:$0xff]  ;;  %v1028_v37 = vadd.f32 %v4075_v45, %v1027_v25  ;;  %v1196_v41 = vadd.f32 %v4075_v45, %v1195_v26 }
 0x150   :  { %v2531_v34 = vmax.f32 %v2095_v30, %v2319_v31  ;;  %v2151_v35 = vld [vmem:[#allocation2 + $0x270] ss:$2 sm:$0xff]  ;;  %v2375_v36 = vld [vmem:[#allocation2 + $0x271] ss:$2 sm:$0xff]  ;;  %v1760_v46 = vmax.f32 %v1361_v24, 0.0  ;;  %v1816_v48 = vmax.f32 %v1529_v32, 0.0 }
 0x151   :  { %v2559_v38 = vmax.f32 %v2151_v35, %v2375_v36  ;;  %v2207_v39 = vld [vmem:[#allocation2 + $0x430] ss:$2 sm:$0xff]  ;;  %v2431_v40 = vld [vmem:[#allocation2 + $0x431] ss:$2 sm:$0xff]  ;;  %3126 = vmatmul.msk.f32.gmra.mxu0 %vm258_vm1, %v69_v27  ;;  %3182 = vmatmul.msk.f32.gmra.mxu1 %vm258_vm1, %v125_v28  ;;  %v1649_v49 = vmax.f32 %v1028_v37, 0.0  ;;  %v1705_v2 = vmax.f32 %v1196_v41, 0.0 }
 0x152   :  { %2643 = vst.msk [vmem:[#allocation3 + $0x58] sm:$0xff] %vm1848_vm2, %v2531_v34  ;;  %v2587_v42 = vmax.f32 %v2207_v39, %v2431_v40  ;;  %v2263_v43 = vld [vmem:[#allocation2 + $0x5f0] ss:$2 sm:$0xff]  ;;  %v2487_v44 = vld [vmem:[#allocation2 + $0x5f1] ss:$2 sm:$0xff]  ;;  %3238 = vmatmul.msk.f32.gmra.mxu2 %vm258_vm1, %v181_v29  ;;  %3294 = vmatmul.msk.f32.gmra.mxu3 %vm258_vm1, %v237_v33 }
 0x153   :  { %2671 = vst.msk [vmem:[#allocation3 + $0x138] sm:$0xff] %vm1848_vm2, %v2559_v38  ;;  %v2615_v47 = vmax.f32 %v2263_v43, %v2487_v44  ;;  %v239_v26 = vld [vmem:[%s5064_s0 + $0x698] sm:$0xff] }
 0x154   :  { %2699 = vst.msk [vmem:[#allocation3 + $0x218] sm:$0xff] %vm1848_vm2, %v2587_v42 }
 0x155   :  { %2727 = vst.msk [vmem:[#allocation3 + $0x2f8] sm:$0xff] %vm1848_vm2, %v2615_v47  ;;  %v1363_v50 = vpop.f32.mrf.mxu2  ;;  %v1531_v51 = vpop.f32.mrf.mxu3 }
 0x156   :  { %1985 = vst.msk [vmem:[#allocation2 + $0x440] sm:$0xff] %vm1848_vm2, %v1760_v46  ;;  %v1364_v52 = vadd.f32 %v4075_v45, %v1363_v50  ;;  %v1532_v53 = vadd.f32 %v4075_v45, %v1531_v51  ;;  %v1030_v54 = vpop.f32.mrf.mxu0  ;;  %v1198_v55 = vpop.f32.mrf.mxu1  ;;  %v128_v50 = vld [vmem:[%s5064_s0 + $0x320] sm:$0xff] }
 0x157   :  { %2041 = vst.msk [vmem:[#allocation2 + $0x600] sm:$0xff] %vm1848_vm2, %v1816_v48  ;;  %v1031_v62 = vadd.f32 %v4075_v45, %v1030_v54  ;;  %v1199_v1 = vadd.f32 %v4075_v45, %v1198_v55  ;;  %v240_v54 = vld [vmem:[%s5064_s0 + $0x6a0] sm:$0xff] }
 0x158   :  { %1874 = vst.msk [vmem:[#allocation2 + $0xc8] sm:$0xff] %vm1848_vm2, %v1649_v49  ;;  %v1761_v60 = vmax.f32 %v1364_v52, 0.0  ;;  %v1817_v61 = vmax.f32 %v1532_v53, 0.0  ;;  %v184_v53 = vld [vmem:[%s5064_s0 + $0x4e0] sm:$0xff] }
 0x159   :  { %v2754_v63 = vld [vmem:[#allocation3 + $0x50] ss:$2 sm:$0xff]  ;;  %v2866_v0 = vld [vmem:[#allocation3 + $0x51] ss:$2 sm:$0xff]  ;;  %1930 = vst.msk [vmem:[#allocation2 + $0x288] sm:$0xff] %vm1848_vm2, %v1705_v2  ;;  %3127 = vmatmul.msk.f32.gmra.mxu0 %vm258_vm1, %v70_v56  ;;  %3183 = vmatmul.msk.f32.gmra.mxu1 %vm258_vm1, %v126_v57  ;;  %v1650_v12 = vmax.f32 %v1031_v62, 0.0 }
 0x15a   :  { %v2972_v3 = vmax.f32 %v2754_v63, %v2866_v0  ;;  %v2782_v4 = vld [vmem:[#allocation3 + $0x130] ss:$2 sm:$0xff]  ;;  %v2894_v5 = vld [vmem:[#allocation3 + $0x131] ss:$2 sm:$0xff]  ;;  %1986 = vst.msk [vmem:[#allocation2 + $0x448] sm:$0xff] %vm1848_vm2, %v1761_v60  ;;  %3239 = vmatmul.msk.f32.gmra.mxu2 %vm258_vm1, %v182_v58  ;;  %3295 = vmatmul.msk.f32.gmra.mxu3 %vm258_vm1, %v238_v59  ;;  %v1706_v14 = vmax.f32 %v1199_v1, 0.0 }
 0x15b   :  { %v2986_v6 = vmax.f32 %v2782_v4, %v2894_v5  ;;  %v2810_v7 = vld [vmem:[#allocation3 + $0x210] ss:$2 sm:$0xff]  ;;  %v2922_v8 = vld [vmem:[#allocation3 + $0x211] ss:$2 sm:$0xff]  ;;  %2042 = vst.msk [vmem:[#allocation2 + $0x608] sm:$0xff] %vm1848_vm2, %v1817_v61  ;;  %v72_v2 = vld [vmem:[%s5064_s0 + $0x160] sm:$0xff] }
 0x15c   :  { %3028 = vst.msk [vmem:[%s5067_s3 + $0x28] sm:$0xff] %vm1848_vm2, %v2972_v3  ;;  %v3000_v9 = vmax.f32 %v2810_v7, %v2922_v8  ;;  %v2838_v10 = vld [vmem:[#allocation3 + $0x2f0] ss:$2 sm:$0xff]  ;;  %v2950_v11 = vld [vmem:[#allocation3 + $0x2f1] ss:$2 sm:$0xff]  ;;  %v73_v0 = vld [vmem:[%s5064_s0 + $0x168] sm:$0xff] }
 0x15d   :  { %3042 = vst.msk [vmem:[%s5067_s3 + $0x98] sm:$0xff] %vm1848_vm2, %v2986_v6  ;;  %v3014_v13 = vmax.f32 %v2838_v10, %v2950_v11  ;;  %v1366_v15 = vpop.f32.mrf.mxu2  ;;  %v1534_v16 = vpop.f32.mrf.mxu3  ;;  %v129_v1 = vld [vmem:[%s5064_s0 + $0x328] sm:$0xff] }
 0x15e   :  { %3056 = vst.msk [vmem:[%s5067_s3 + $0x108] sm:$0xff] %vm1848_vm2, %v3000_v9  ;;  %v1367_v17 = vadd.f32 %v4075_v45, %v1366_v15  ;;  %v1033_v18 = vpop.f32.mrf.mxu0  ;;  %v1201_v19 = vpop.f32.mrf.mxu1  ;;  %v1535_v25 = vadd.f32 %v4075_v45, %v1534_v16  ;;  %v185_v3 = vld [vmem:[%s5064_s0 + $0x4e8] sm:$0xff] }
 0x15f   :  { %3070 = vst.msk [vmem:[%s5067_s3 + $0x178] sm:$0xff] %vm1848_vm2, %v3014_v13  ;;  %v2097_v23 = vld [vmem:[#allocation2 + $0xc0] ss:$2 sm:$0xff]  ;;  %v2321_v24 = vld [vmem:[#allocation2 + $0xc1] ss:$2 sm:$0xff]  ;;  %v1034_v30 = vadd.f32 %v4075_v45, %v1033_v18  ;;  %v1202_v34 = vadd.f32 %v4075_v45, %v1201_v19 }
 0x160   :  { %v2532_v27 = vmax.f32 %v2097_v23, %v2321_v24  ;;  %v2153_v28 = vld [vmem:[#allocation2 + $0x280] ss:$2 sm:$0xff]  ;;  %v2377_v29 = vld [vmem:[#allocation2 + $0x281] ss:$2 sm:$0xff]  ;;  %1875 = vst.msk [vmem:[#allocation2 + $0xd0] sm:$0xff] %vm1848_vm2, %v1650_v12  ;;  %v1762_v38 = vmax.f32 %v1367_v17, 0.0 }
 0x161   :  { %v2560_v31 = vmax.f32 %v2153_v28, %v2377_v29  ;;  %v2209_v32 = vld [vmem:[#allocation2 + $0x440] ss:$2 sm:$0xff]  ;;  %v2433_v33 = vld [vmem:[#allocation2 + $0x441] ss:$2 sm:$0xff]  ;;  %1931 = vst.msk [vmem:[#allocation2 + $0x290] sm:$0xff] %vm1848_vm2, %v1706_v14  ;;  %3128 = vmatmul.msk.f32.gmra.mxu0 %vm258_vm1, %v71_v20  ;;  %3184 = vmatmul.msk.f32.gmra.mxu1 %vm258_vm1, %v127_v21  ;;  %v1818_v40 = vmax.f32 %v1535_v25, 0.0 }
 0x162   :  { %2644 = vst.msk [vmem:[#allocation3 + $0x60] sm:$0xff] %vm1848_vm2, %v2532_v27  ;;  %v2588_v35 = vmax.f32 %v2209_v32, %v2433_v33  ;;  %v2265_v36 = vld [vmem:[#allocation2 + $0x600] ss:$2 sm:$0xff]  ;;  %v2489_v37 = vld [vmem:[#allocation2 + $0x601] ss:$2 sm:$0xff]  ;;  %3240 = vmatmul.msk.f32.gmra.mxu2 %vm258_vm1, %v183_v22  ;;  %3296 = vmatmul.msk.f32.gmra.mxu3 %vm258_vm1, %v239_v26  ;;  %v1651_v41 = vmax.f32 %v1034_v30, 0.0 }
 0x163   :  { %2672 = vst.msk [vmem:[#allocation3 + $0x140] sm:$0xff] %vm1848_vm2, %v2560_v31  ;;  %v2616_v39 = vmax.f32 %v2265_v36, %v2489_v37  ;;  %v1707_v42 = vmax.f32 %v1202_v34, 0.0  ;;  %v241_v7 = vld [vmem:[%s5064_s0 + $0x6a8] sm:$0xff]  ;;  %v4501_v25 = vld [vmem:[#allocation4] ss:$0 sm:$0xff]  ;;  %v74_v30 = vld [vmem:[%s5064_s0 + $0x170] sm:$0xff] }
 0x164   :  { %2700 = vst.msk [vmem:[#allocation3 + $0x220] sm:$0xff] %vm1848_vm2, %v2588_v35  ;;  %v130_v31 = vld [vmem:[%s5064_s0 + $0x330] sm:$0xff] }
 0x165   :  { %2728 = vst.msk [vmem:[#allocation3 + $0x300] sm:$0xff] %vm1848_vm2, %v2616_v39  ;;  %v1369_v43 = vpop.f32.mrf.mxu2  ;;  %v1537_v44 = vpop.f32.mrf.mxu3  ;;  %v186_v32 = vld [vmem:[%s5064_s0 + $0x4f0] sm:$0xff] }
 0x166   :  { %1987 = vst.msk [vmem:[#allocation2 + $0x450] sm:$0xff] %vm1848_vm2, %v1762_v38  ;;  %v1370_v46 = vadd.f32 %v4075_v45, %v1369_v43  ;;  %v1538_v47 = vadd.f32 %v4075_v45, %v1537_v44  ;;  %v1036_v48 = vpop.f32.mrf.mxu0  ;;  %v1204_v49 = vpop.f32.mrf.mxu1  ;;  %v242_v33 = vld [vmem:[%s5064_s0 + $0x6b0] sm:$0xff] }
 0x167   :  { %2043 = vst.msk [vmem:[#allocation2 + $0x610] sm:$0xff] %vm1848_vm2, %v1818_v40  ;;  %v1037_v51 = vadd.f32 %v4075_v45, %v1036_v48  ;;  %v1205_v52 = vadd.f32 %v4075_v45, %v1204_v49 }
 0x168   :  { %1876 = vst.msk [vmem:[#allocation2 + $0xd8] sm:$0xff] %vm1848_vm2, %v1651_v41  ;;  %v1763_v55 = vmax.f32 %v1370_v46, 0.0  ;;  %v1819_v56 = vmax.f32 %v1538_v47, 0.0 }
 0x169   :  { %1932 = vst.msk [vmem:[#allocation2 + $0x298] sm:$0xff] %vm1848_vm2, %v1707_v42  ;;  %v1652_v57 = vmax.f32 %v1037_v51, 0.0  ;;  %v1708_v58 = vmax.f32 %v1205_v52, 0.0  ;;  %3129 = vmatmul.msk.f32.gmra.mxu0 %vm258_vm1, %v72_v2  ;;  %3185 = vmatmul.msk.f32.gmra.mxu1 %vm258_vm1, %v128_v50 }
 0x16a   :  { %1988 = vst.msk [vmem:[#allocation2 + $0x458] sm:$0xff] %vm1848_vm2, %v1763_v55  ;;  %3241 = vmatmul.msk.f32.gmra.mxu2 %vm258_vm1, %v184_v53  ;;  %3297 = vmatmul.msk.f32.gmra.mxu3 %vm258_vm1, %v240_v54 }
 0x16b   :  { %2044 = vst.msk [vmem:[#allocation2 + $0x618] sm:$0xff] %vm1848_vm2, %v1819_v56 }
 0x16c   :  { %1877 = vst.msk [vmem:[#allocation2 + $0xe0] sm:$0xff] %vm1848_vm2, %v1652_v57  ;;  %v75_v57 = vld [vmem:[%s5064_s0 + $0x178] sm:$0xff] }
 0x16d   :  { %1933 = vst.msk [vmem:[#allocation2 + $0x2a0] sm:$0xff] %vm1848_vm2, %v1708_v58  ;;  %v1372_v59 = vpop.f32.mrf.mxu2  ;;  %v1540_v60 = vpop.f32.mrf.mxu3  ;;  %v131_v58 = vld [vmem:[%s5064_s0 + $0x338] sm:$0xff] }
 0x16e   :  { %v1373_v61 = vadd.f32 %v4075_v45, %v1372_v59  ;;  %v1039_v62 = vpop.f32.mrf.mxu0  ;;  %v1207_v63 = vpop.f32.mrf.mxu1  ;;  %v1541_v6 = vadd.f32 %v4075_v45, %v1540_v60  ;;  %v187_v59 = vld [vmem:[%s5064_s0 + $0x4f8] sm:$0xff] }
 0x16f   :  { %v2099_v4 = vld [vmem:[#allocation2 + $0xd0] ss:$2 sm:$0xff]  ;;  %v2323_v5 = vld [vmem:[#allocation2 + $0xd1] ss:$2 sm:$0xff]  ;;  %v1040_v11 = vadd.f32 %v4075_v45, %v1039_v62  ;;  %v1208_v15 = vadd.f32 %v4075_v45, %v1207_v63 }
 0x170   :  { %v2533_v8 = vmax.f32 %v2099_v4, %v2323_v5  ;;  %v2155_v9 = vld [vmem:[#allocation2 + $0x290] ss:$2 sm:$0xff]  ;;  %v2379_v10 = vld [vmem:[#allocation2 + $0x291] ss:$2 sm:$0xff]  ;;  %v1764_v19 = vmax.f32 %v1373_v61, 0.0  ;;  %v1820_v21 = vmax.f32 %v1541_v6, 0.0 }
 0x171   :  { %v2561_v12 = vmax.f32 %v2155_v9, %v2379_v10  ;;  %v2211_v13 = vld [vmem:[#allocation2 + $0x450] ss:$2 sm:$0xff]  ;;  %v2435_v14 = vld [vmem:[#allocation2 + $0x451] ss:$2 sm:$0xff]  ;;  %3130 = vmatmul.msk.f32.gmra.mxu0 %vm258_vm1, %v73_v0  ;;  %3186 = vmatmul.msk.f32.gmra.mxu1 %vm258_vm1, %v129_v1  ;;  %v1653_v45 = vmax.f32 %v1040_v11, 0.0  ;;  %v1709_v22 = vmax.f32 %v1208_v15, 0.0 }
 0x172   :  { %2645 = vst.msk [vmem:[#allocation3 + $0x68] sm:$0xff] %vm1848_vm2, %v2533_v8  ;;  %v2589_v16 = vmax.f32 %v2211_v13, %v2435_v14  ;;  %v2267_v17 = vld [vmem:[#allocation2 + $0x610] ss:$2 sm:$0xff]  ;;  %v2491_v18 = vld [vmem:[#allocation2 + $0x611] ss:$2 sm:$0xff]  ;;  %3242 = vmatmul.msk.f32.gmra.mxu2 %vm258_vm1, %v185_v3  ;;  %3298 = vmatmul.msk.f32.gmra.mxu3 %vm258_vm1, %v241_v7 }
 0x173   :  { %2673 = vst.msk [vmem:[#allocation3 + $0x148] sm:$0xff] %vm1848_vm2, %v2561_v12  ;;  %v2617_v20 = vmax.f32 %v2267_v17, %v2491_v18  ;;  %v243_v63 = vld [vmem:[%s5064_s0 + $0x6b8] sm:$0xff] }
 0x174   :  { %2701 = vst.msk [vmem:[#allocation3 + $0x228] sm:$0xff] %vm1848_vm2, %v2589_v16 }
 0x175   :  { %2729 = vst.msk [vmem:[#allocation3 + $0x308] sm:$0xff] %vm1848_vm2, %v2617_v20  ;;  %v1375_v23 = vpop.f32.mrf.mxu2  ;;  %v1543_v24 = vpop.f32.mrf.mxu3 }
 0x176   :  { %1989 = vst.msk [vmem:[#allocation2 + $0x460] sm:$0xff] %vm1848_vm2, %v1764_v19  ;;  %v1376_v26 = vadd.f32 %v4501_v25, %v1375_v23  ;;  %v1544_v27 = vadd.f32 %v4501_v25, %v1543_v24  ;;  %v1042_v28 = vpop.f32.mrf.mxu0  ;;  %v1210_v29 = vpop.f32.mrf.mxu1  ;;  %v132_v23 = vld [vmem:[%s5064_s0 + $0x340] sm:$0xff] }
 0x177   :  { %2045 = vst.msk [vmem:[#allocation2 + $0x620] sm:$0xff] %vm1848_vm2, %v1820_v21  ;;  %v1043_v36 = vadd.f32 %v4501_v25, %v1042_v28  ;;  %v1211_v39 = vadd.f32 %v4501_v25, %v1210_v29  ;;  %v244_v28 = vld [vmem:[%s5064_s0 + $0x6c0] sm:$0xff] }
 0x178   :  { %1878 = vst.msk [vmem:[#allocation2 + $0xe8] sm:$0xff] %vm1848_vm2, %v1653_v45  ;;  %v1765_v34 = vmax.f32 %v1376_v26, 0.0  ;;  %v1821_v35 = vmax.f32 %v1544_v27, 0.0  ;;  %v188_v27 = vld [vmem:[%s5064_s0 + $0x500] sm:$0xff] }
 0x179   :  { %v2756_v37 = vld [vmem:[#allocation3 + $0x60] ss:$2 sm:$0xff]  ;;  %v2868_v38 = vld [vmem:[#allocation3 + $0x61] ss:$2 sm:$0xff]  ;;  %1934 = vst.msk [vmem:[#allocation2 + $0x2a8] sm:$0xff] %vm1848_vm2, %v1709_v22  ;;  %3131 = vmatmul.msk.f32.gmra.mxu0 %vm258_vm1, %v74_v30  ;;  %3187 = vmatmul.msk.f32.gmra.mxu1 %vm258_vm1, %v130_v31  ;;  %v1654_v2 = vmax.f32 %v1043_v36, 0.0 }
 0x17a   :  { %v2973_v40 = vmax.f32 %v2756_v37, %v2868_v38  ;;  %v2784_v41 = vld [vmem:[#allocation3 + $0x140] ss:$2 sm:$0xff]  ;;  %v2896_v42 = vld [vmem:[#allocation3 + $0x141] ss:$2 sm:$0xff]  ;;  %1990 = vst.msk [vmem:[#allocation2 + $0x468] sm:$0xff] %vm1848_vm2, %v1765_v34  ;;  %3243 = vmatmul.msk.f32.gmra.mxu2 %vm258_vm1, %v186_v32  ;;  %3299 = vmatmul.msk.f32.gmra.mxu3 %vm258_vm1, %v242_v33  ;;  %v1710_v51 = vmax.f32 %v1211_v39, 0.0 }
 0x17b   :  { %v2987_v43 = vmax.f32 %v2784_v41, %v2896_v42  ;;  %v2812_v44 = vld [vmem:[#allocation3 + $0x220] ss:$2 sm:$0xff]  ;;  %v2924_v46 = vld [vmem:[#allocation3 + $0x221] ss:$2 sm:$0xff]  ;;  %2046 = vst.msk [vmem:[#allocation2 + $0x628] sm:$0xff] %vm1848_vm2, %v1821_v35 }
 0x17c   :  { %3029 = vst.msk [vmem:[%s5067_s3 + $0x30] sm:$0xff] %vm1848_vm2, %v2973_v40  ;;  %v3001_v47 = vmax.f32 %v2812_v44, %v2924_v46  ;;  %v2840_v48 = vld [vmem:[#allocation3 + $0x300] ss:$2 sm:$0xff]  ;;  %v2952_v49 = vld [vmem:[#allocation3 + $0x301] ss:$2 sm:$0xff] }
 0x17d   :  { %3043 = vst.msk [vmem:[%s5067_s3 + $0xa0] sm:$0xff] %vm1848_vm2, %v2987_v43  ;;  %v3015_v50 = vmax.f32 %v2840_v48, %v2952_v49  ;;  %v1378_v52 = vpop.f32.mrf.mxu2  ;;  %v1546_v53 = vpop.f32.mrf.mxu3  ;;  %v76_v22 = vld [vmem:[%s5064_s0 + $0x180] sm:$0xff]  ;;  %v77_v38 = vld [vmem:[%s5064_s0 + $0x188] sm:$0xff] }
 0x17e   :  { %3057 = vst.msk [vmem:[%s5067_s3 + $0x110] sm:$0xff] %vm1848_vm2, %v3001_v47  ;;  %v1379_v54 = vadd.f32 %v4501_v25, %v1378_v52  ;;  %v1045_v55 = vpop.f32.mrf.mxu0  ;;  %v1213_v56 = vpop.f32.mrf.mxu1  ;;  %v1547_v62 = vadd.f32 %v4501_v25, %v1546_v53  ;;  %v133_v39 = vld [vmem:[%s5064_s0 + $0x348] sm:$0xff] }
 0x17f   :  { %3071 = vst.msk [vmem:[%s5067_s3 + $0x180] sm:$0xff] %vm1848_vm2, %v3015_v50  ;;  %v2101_v60 = vld [vmem:[#allocation2 + $0xe0] ss:$2 sm:$0xff]  ;;  %v2325_v61 = vld [vmem:[#allocation2 + $0xe1] ss:$2 sm:$0xff]  ;;  %v1046_v4 = vadd.f32 %v4501_v25, %v1045_v55  ;;  %v1214_v8 = vadd.f32 %v4501_v25, %v1213_v56 }
 0x180   :  { %v2534_v0 = vmax.f32 %v2101_v60, %v2325_v61  ;;  %v2157_v1 = vld [vmem:[#allocation2 + $0x2a0] ss:$2 sm:$0xff]  ;;  %v2381_v3 = vld [vmem:[#allocation2 + $0x2a1] ss:$2 sm:$0xff]  ;;  %1879 = vst.msk [vmem:[#allocation2 + $0xf0] sm:$0xff] %vm1848_vm2, %v1654_v2  ;;  %v1766_v12 = vmax.f32 %v1379_v54, 0.0 }
 0x181   :  { %v2562_v5 = vmax.f32 %v2157_v1, %v2381_v3  ;;  %v2213_v6 = vld [vmem:[#allocation2 + $0x460] ss:$2 sm:$0xff]  ;;  %v2437_v7 = vld [vmem:[#allocation2 + $0x461] ss:$2 sm:$0xff]  ;;  %1935 = vst.msk [vmem:[#allocation2 + $0x2b0] sm:$0xff] %vm1848_vm2, %v1710_v51  ;;  %3132 = vmatmul.msk.f32.gmra.mxu0 %vm258_vm1, %v75_v57  ;;  %3188 = vmatmul.msk.f32.gmra.mxu1 %vm258_vm1, %v131_v58  ;;  %v1822_v14 = vmax.f32 %v1547_v62, 0.0 }
 0x182   :  { %2646 = vst.msk [vmem:[#allocation3 + $0x70] sm:$0xff] %vm1848_vm2, %v2534_v0  ;;  %v2590_v9 = vmax.f32 %v2213_v6, %v2437_v7  ;;  %v2269_v10 = vld [vmem:[#allocation2 + $0x620] ss:$2 sm:$0xff]  ;;  %v2493_v11 = vld [vmem:[#allocation2 + $0x621] ss:$2 sm:$0xff]  ;;  %3244 = vmatmul.msk.f32.gmra.mxu2 %vm258_vm1, %v187_v59  ;;  %3300 = vmatmul.msk.f32.gmra.mxu3 %vm258_vm1, %v243_v63  ;;  %v1655_v15 = vmax.f32 %v1046_v4, 0.0 }
 0x183   :  { %2674 = vst.msk [vmem:[#allocation3 + $0x150] sm:$0xff] %vm1848_vm2, %v2562_v5  ;;  %v2618_v13 = vmax.f32 %v2269_v10, %v2493_v11  ;;  %v1711_v16 = vmax.f32 %v1214_v8, 0.0  ;;  %v189_v40 = vld [vmem:[%s5064_s0 + $0x508] sm:$0xff]  ;;  %v78_v4 = vld [vmem:[%s5064_s0 + $0x190] sm:$0xff] }
 0x184   :  { %2702 = vst.msk [vmem:[#allocation3 + $0x230] sm:$0xff] %vm1848_vm2, %v2590_v9  ;;  %v245_v44 = vld [vmem:[%s5064_s0 + $0x6c8] sm:$0xff]  ;;  %v134_v5 = vld [vmem:[%s5064_s0 + $0x350] sm:$0xff] }
 0x185   :  { %2730 = vst.msk [vmem:[#allocation3 + $0x310] sm:$0xff] %vm1848_vm2, %v2618_v13  ;;  %v1381_v17 = vpop.f32.mrf.mxu2  ;;  %v1549_v18 = vpop.f32.mrf.mxu3  ;;  %v190_v6 = vld [vmem:[%s5064_s0 + $0x510] sm:$0xff] }
 0x186   :  { %1991 = vst.msk [vmem:[#allocation2 + $0x470] sm:$0xff] %vm1848_vm2, %v1766_v12  ;;  %v1382_v19 = vadd.f32 %v4501_v25, %v1381_v17  ;;  %v1550_v20 = vadd.f32 %v4501_v25, %v1549_v18  ;;  %v1048_v21 = vpop.f32.mrf.mxu0  ;;  %v1216_v45 = vpop.f32.mrf.mxu1  ;;  %v246_v7 = vld [vmem:[%s5064_s0 + $0x6d0] sm:$0xff] }
 0x187   :  { %2047 = vst.msk [vmem:[#allocation2 + $0x630] sm:$0xff] %vm1848_vm2, %v1822_v14  ;;  %v1049_v24 = vadd.f32 %v4501_v25, %v1048_v21  ;;  %v1217_v26 = vadd.f32 %v4501_v25, %v1216_v45 }
 0x188   :  { %1880 = vst.msk [vmem:[#allocation2 + $0xf8] sm:$0xff] %vm1848_vm2, %v1655_v15  ;;  %v1767_v29 = vmax.f32 %v1382_v19, 0.0  ;;  %v1823_v30 = vmax.f32 %v1550_v20, 0.0 }
 0x189   :  { %1936 = vst.msk [vmem:[#allocation2 + $0x2b8] sm:$0xff] %vm1848_vm2, %v1711_v16  ;;  %v1656_v31 = vmax.f32 %v1049_v24, 0.0  ;;  %v1712_v32 = vmax.f32 %v1217_v26, 0.0  ;;  %3133 = vmatmul.msk.f32.gmra.mxu0 %vm258_vm1, %v76_v22  ;;  %3189 = vmatmul.msk.f32.gmra.mxu1 %vm258_vm1, %v132_v23 }
 0x18a   :  { %1992 = vst.msk [vmem:[#allocation2 + $0x478] sm:$0xff] %vm1848_vm2, %v1767_v29  ;;  %3245 = vmatmul.msk.f32.gmra.mxu2 %vm258_vm1, %v188_v27  ;;  %3301 = vmatmul.msk.f32.gmra.mxu3 %vm258_vm1, %v244_v28 }
 0x18b   :  { %2048 = vst.msk [vmem:[#allocation2 + $0x638] sm:$0xff] %vm1848_vm2, %v1823_v30 }
 0x18c   :  { %1881 = vst.msk [vmem:[#allocation2 + $0x100] sm:$0xff] %vm1848_vm2, %v1656_v31  ;;  %v79_v31 = vld [vmem:[%s5064_s0 + $0x198] sm:$0xff] }
 0x18d   :  { %1937 = vst.msk [vmem:[#allocation2 + $0x2c0] sm:$0xff] %vm1848_vm2, %v1712_v32  ;;  %v1384_v33 = vpop.f32.mrf.mxu2  ;;  %v1552_v34 = vpop.f32.mrf.mxu3  ;;  %v135_v32 = vld [vmem:[%s5064_s0 + $0x358] sm:$0xff] }
 0x18e   :  { %v1385_v35 = vadd.f32 %v4501_v25, %v1384_v33  ;;  %v1051_v36 = vpop.f32.mrf.mxu0  ;;  %v1219_v37 = vpop.f32.mrf.mxu1  ;;  %v1553_v43 = vadd.f32 %v4501_v25, %v1552_v34  ;;  %v191_v33 = vld [vmem:[%s5064_s0 + $0x518] sm:$0xff] }
 0x18f   :  { %v2103_v41 = vld [vmem:[#allocation2 + $0xf0] ss:$2 sm:$0xff]  ;;  %v2327_v42 = vld [vmem:[#allocation2 + $0xf1] ss:$2 sm:$0xff]  ;;  %v1052_v49 = vadd.f32 %v4501_v25, %v1051_v36  ;;  %v1220_v52 = vadd.f32 %v4501_v25, %v1219_v37 }
 0x190   :  { %v2535_v46 = vmax.f32 %v2103_v41, %v2327_v42  ;;  %v2159_v47 = vld [vmem:[#allocation2 + $0x2b0] ss:$2 sm:$0xff]  ;;  %v2383_v48 = vld [vmem:[#allocation2 + $0x2b1] ss:$2 sm:$0xff]  ;;  %v1768_v56 = vmax.f32 %v1385_v35, 0.0  ;;  %v1824_v58 = vmax.f32 %v1553_v43, 0.0 }
 0x191   :  { %v2563_v2 = vmax.f32 %v2159_v47, %v2383_v48  ;;  %v2215_v50 = vld [vmem:[#allocation2 + $0x470] ss:$2 sm:$0xff]  ;;  %v2439_v51 = vld [vmem:[#allocation2 + $0x471] ss:$2 sm:$0xff]  ;;  %3134 = vmatmul.msk.f32.gmra.mxu0 %vm258_vm1, %v77_v38  ;;  %3190 = vmatmul.msk.f32.gmra.mxu1 %vm258_vm1, %v133_v39  ;;  %v1657_v59 = vmax.f32 %v1052_v49, 0.0  ;;  %v1713_v60 = vmax.f32 %v1220_v52, 0.0 }
 0x192   :  { %2647 = vst.msk [vmem:[#allocation3 + $0x78] sm:$0xff] %vm1848_vm2, %v2535_v46  ;;  %v2591_v53 = vmax.f32 %v2215_v50, %v2439_v51  ;;  %v2271_v54 = vld [vmem:[#allocation2 + $0x630] ss:$2 sm:$0xff]  ;;  %v2495_v55 = vld [vmem:[#allocation2 + $0x631] ss:$2 sm:$0xff]  ;;  %3246 = vmatmul.msk.f32.gmra.mxu2 %vm258_vm1, %v189_v40  ;;  %3302 = vmatmul.msk.f32.gmra.mxu3 %vm258_vm1, %v245_v44 }
 0x193   :  { %2675 = vst.msk [vmem:[#allocation3 + $0x158] sm:$0xff] %vm1848_vm2, %v2563_v2  ;;  %v2619_v57 = vmax.f32 %v2271_v54, %v2495_v55  ;;  %v247_v37 = vld [vmem:[%s5064_s0 + $0x6d8] sm:$0xff] }
 0x194   :  { %2703 = vst.msk [vmem:[#allocation3 + $0x238] sm:$0xff] %vm1848_vm2, %v2591_v53 }
 0x195   :  { %2731 = vst.msk [vmem:[#allocation3 + $0x318] sm:$0xff] %vm1848_vm2, %v2619_v57  ;;  %v1387_v61 = vpop.f32.mrf.mxu2  ;;  %v1555_v62 = vpop.f32.mrf.mxu3 }
 0x196   :  { %1993 = vst.msk [vmem:[#allocation2 + $0x480] sm:$0xff] %vm1848_vm2, %v1768_v56  ;;  %v1388_v63 = vadd.f32 %v4501_v25, %v1387_v61  ;;  %v1556_v0 = vadd.f32 %v4501_v25, %v1555_v62  ;;  %v1054_v1 = vpop.f32.mrf.mxu0  ;;  %v1222_v3 = vpop.f32.mrf.mxu1  ;;  %v136_v61 = vld [vmem:[%s5064_s0 + $0x360] sm:$0xff] }
 0x197   :  { %2049 = vst.msk [vmem:[#allocation2 + $0x640] sm:$0xff] %vm1848_vm2, %v1824_v58  ;;  %v1055_v10 = vadd.f32 %v4501_v25, %v1054_v1  ;;  %v1223_v13 = vadd.f32 %v4501_v25, %v1222_v3  ;;  %v248_v1 = vld [vmem:[%s5064_s0 + $0x6e0] sm:$0xff] }
 0x198   :  { %1882 = vst.msk [vmem:[#allocation2 + $0x108] sm:$0xff] %vm1848_vm2, %v1657_v59  ;;  %v1769_v8 = vmax.f32 %v1388_v63, 0.0  ;;  %v1825_v9 = vmax.f32 %v1556_v0, 0.0  ;;  %v192_v0 = vld [vmem:[%s5064_s0 + $0x520] sm:$0xff] }
 0x199   :  { %v2758_v11 = vld [vmem:[#allocation3 + $0x70] ss:$2 sm:$0xff]  ;;  %v2870_v12 = vld [vmem:[#allocation3 + $0x71] ss:$2 sm:$0xff]  ;;  %1938 = vst.msk [vmem:[#allocation2 + $0x2c8] sm:$0xff] %vm1848_vm2, %v1713_v60  ;;  %3135 = vmatmul.msk.f32.gmra.mxu0 %vm258_vm1, %v78_v4  ;;  %3191 = vmatmul.msk.f32.gmra.mxu1 %vm258_vm1, %v134_v5  ;;  %v1658_v22 = vmax.f32 %v1055_v10, 0.0 }
 0x19a   :  { %v2974_v14 = vmax.f32 %v2758_v11, %v2870_v12  ;;  %v2786_v15 = vld [vmem:[#allocation3 + $0x150] ss:$2 sm:$0xff]  ;;  %v2898_v16 = vld [vmem:[#allocation3 + $0x151] ss:$2 sm:$0xff]  ;;  %1994 = vst.msk [vmem:[#allocation2 + $0x488] sm:$0xff] %vm1848_vm2, %v1769_v8  ;;  %3247 = vmatmul.msk.f32.gmra.mxu2 %vm258_vm1, %v190_v6  ;;  %3303 = vmatmul.msk.f32.gmra.mxu3 %vm258_vm1, %v246_v7  ;;  %v1714_v24 = vmax.f32 %v1223_v13, 0.0 }
 0x19b   :  { %v2988_v17 = vmax.f32 %v2786_v15, %v2898_v16  ;;  %v2814_v18 = vld [vmem:[#allocation3 + $0x230] ss:$2 sm:$0xff]  ;;  %v2926_v19 = vld [vmem:[#allocation3 + $0x231] ss:$2 sm:$0xff]  ;;  %2050 = vst.msk [vmem:[#allocation2 + $0x648] sm:$0xff] %vm1848_vm2, %v1825_v9  ;;  %v80_v60 = vld [vmem:[%s5064_s0 + $0x1a0] sm:$0xff] }
 0x19c   :  { %3030 = vst.msk [vmem:[%s5067_s3 + $0x38] sm:$0xff] %vm1848_vm2, %v2974_v14  ;;  %v3002_v20 = vmax.f32 %v2814_v18, %v2926_v19  ;;  %v2842_v21 = vld [vmem:[#allocation3 + $0x310] ss:$2 sm:$0xff]  ;;  %v2954_v45 = vld [vmem:[#allocation3 + $0x311] ss:$2 sm:$0xff]  ;;  %v81_v12 = vld [vmem:[%s5064_s0 + $0x1a8] sm:$0xff] }
 0x19d   :  { %3044 = vst.msk [vmem:[%s5067_s3 + $0xa8] sm:$0xff] %vm1848_vm2, %v2988_v17  ;;  %v3016_v23 = vmax.f32 %v2842_v21, %v2954_v45  ;;  %v1390_v26 = vpop.f32.mrf.mxu2  ;;  %v1558_v27 = vpop.f32.mrf.mxu3  ;;  %v137_v13 = vld [vmem:[%s5064_s0 + $0x368] sm:$0xff] }
 0x19e   :  { %3058 = vst.msk [vmem:[%s5067_s3 + $0x118] sm:$0xff] %vm1848_vm2, %v3002_v20  ;;  %v1391_v28 = vadd.f32 %v4501_v25, %v1390_v26  ;;  %v1057_v29 = vpop.f32.mrf.mxu0  ;;  %v1225_v30 = vpop.f32.mrf.mxu1  ;;  %v1559_v36 = vadd.f32 %v4501_v25, %v1558_v27  ;;  %v193_v14 = vld [vmem:[%s5064_s0 + $0x528] sm:$0xff] }
 0x19f   :  { %3072 = vst.msk [vmem:[%s5067_s3 + $0x188] sm:$0xff] %vm1848_vm2, %v3016_v23  ;;  %v2105_v34 = vld [vmem:[#allocation2 + $0x100] ss:$2 sm:$0xff]  ;;  %v2329_v35 = vld [vmem:[#allocation2 + $0x101] ss:$2 sm:$0xff]  ;;  %v1058_v41 = vadd.f32 %v4501_v25, %v1057_v29  ;;  %v1226_v46 = vadd.f32 %v4501_v25, %v1225_v30 }
 0x1a0   :  { %v2536_v38 = vmax.f32 %v2105_v34, %v2329_v35  ;;  %v2161_v39 = vld [vmem:[#allocation2 + $0x2c0] ss:$2 sm:$0xff]  ;;  %v2385_v40 = vld [vmem:[#allocation2 + $0x2c1] ss:$2 sm:$0xff]  ;;  %1883 = vst.msk [vmem:[#allocation2 + $0x110] sm:$0xff] %vm1848_vm2, %v1658_v22  ;;  %v1770_v2 = vmax.f32 %v1391_v28, 0.0 }
 0x1a1   :  { %v2564_v42 = vmax.f32 %v2161_v39, %v2385_v40  ;;  %v2217_v43 = vld [vmem:[#allocation2 + $0x480] ss:$2 sm:$0xff]  ;;  %v2441_v44 = vld [vmem:[#allocation2 + $0x481] ss:$2 sm:$0xff]  ;;  %1939 = vst.msk [vmem:[#allocation2 + $0x2d0] sm:$0xff] %vm1848_vm2, %v1714_v24  ;;  %3136 = vmatmul.msk.f32.gmra.mxu0 %vm258_vm1, %v79_v31  ;;  %3192 = vmatmul.msk.f32.gmra.mxu1 %vm258_vm1, %v135_v32  ;;  %v1826_v51 = vmax.f32 %v1559_v36, 0.0 }
 0x1a2   :  { %2648 = vst.msk [vmem:[#allocation3 + $0x80] sm:$0xff] %vm1848_vm2, %v2536_v38  ;;  %v2592_v47 = vmax.f32 %v2217_v43, %v2441_v44  ;;  %v2273_v48 = vld [vmem:[#allocation2 + $0x640] ss:$2 sm:$0xff]  ;;  %v2497_v49 = vld [vmem:[#allocation2 + $0x641] ss:$2 sm:$0xff]  ;;  %3248 = vmatmul.msk.f32.gmra.mxu2 %vm258_vm1, %v191_v33  ;;  %3304 = vmatmul.msk.f32.gmra.mxu3 %vm258_vm1, %v247_v37  ;;  %v1659_v52 = vmax.f32 %v1058_v41, 0.0 }
 0x1a3   :  { %2676 = vst.msk [vmem:[#allocation3 + $0x160] sm:$0xff] %vm1848_vm2, %v2564_v42  ;;  %v2620_v50 = vmax.f32 %v2273_v48, %v2497_v49  ;;  %v1715_v53 = vmax.f32 %v1226_v46, 0.0  ;;  %v249_v18 = vld [vmem:[%s5064_s0 + $0x6e8] sm:$0xff]  ;;  %v82_v41 = vld [vmem:[%s5064_s0 + $0x1b0] sm:$0xff] }
 0x1a4   :  { %2704 = vst.msk [vmem:[#allocation3 + $0x240] sm:$0xff] %vm1848_vm2, %v2592_v47  ;;  %v138_v42 = vld [vmem:[%s5064_s0 + $0x370] sm:$0xff] }
 0x1a5   :  { %2732 = vst.msk [vmem:[#allocation3 + $0x320] sm:$0xff] %vm1848_vm2, %v2620_v50  ;;  %v1393_v54 = vpop.f32.mrf.mxu2  ;;  %v1561_v55 = vpop.f32.mrf.mxu3  ;;  %v194_v43 = vld [vmem:[%s5064_s0 + $0x530] sm:$0xff] }
 0x1a6   :  { %1995 = vst.msk [vmem:[#allocation2 + $0x490] sm:$0xff] %vm1848_vm2, %v1770_v2  ;;  %v1394_v56 = vadd.f32 %v4501_v25, %v1393_v54  ;;  %v1562_v57 = vadd.f32 %v4501_v25, %v1561_v55  ;;  %v1060_v58 = vpop.f32.mrf.mxu0  ;;  %v1228_v59 = vpop.f32.mrf.mxu1  ;;  %v250_v44 = vld [vmem:[%s5064_s0 + $0x6f0] sm:$0xff] }
 0x1a7   :  { %2051 = vst.msk [vmem:[#allocation2 + $0x650] sm:$0xff] %vm1848_vm2, %v1826_v51  ;;  %v1061_v62 = vadd.f32 %v4501_v25, %v1060_v58  ;;  %v1229_v63 = vadd.f32 %v4501_v25, %v1228_v59 }
 0x1a8   :  { %1884 = vst.msk [vmem:[#allocation2 + $0x118] sm:$0xff] %vm1848_vm2, %v1659_v52  ;;  %v1771_v3 = vmax.f32 %v1394_v56, 0.0  ;;  %v1827_v4 = vmax.f32 %v1562_v57, 0.0 }
 0x1a9   :  { %1940 = vst.msk [vmem:[#allocation2 + $0x2d8] sm:$0xff] %vm1848_vm2, %v1715_v53  ;;  %v1660_v5 = vmax.f32 %v1061_v62, 0.0  ;;  %v1716_v6 = vmax.f32 %v1229_v63, 0.0  ;;  %3137 = vmatmul.msk.f32.gmra.mxu0 %vm258_vm1, %v80_v60  ;;  %3193 = vmatmul.msk.f32.gmra.mxu1 %vm258_vm1, %v136_v61 }
 0x1aa   :  { %1996 = vst.msk [vmem:[#allocation2 + $0x498] sm:$0xff] %vm1848_vm2, %v1771_v3  ;;  %3249 = vmatmul.msk.f32.gmra.mxu2 %vm258_vm1, %v192_v0  ;;  %3305 = vmatmul.msk.f32.gmra.mxu3 %vm258_vm1, %v248_v1 }
 0x1ab   :  { %2052 = vst.msk [vmem:[#allocation2 + $0x658] sm:$0xff] %vm1848_vm2, %v1827_v4 }
 0x1ac   :  { %1885 = vst.msk [vmem:[#allocation2 + $0x120] sm:$0xff] %vm1848_vm2, %v1660_v5  ;;  %v83_v5 = vld [vmem:[%s5064_s0 + $0x1b8] sm:$0xff] }
 0x1ad   :  { %1941 = vst.msk [vmem:[#allocation2 + $0x2e0] sm:$0xff] %vm1848_vm2, %v1716_v6  ;;  %v1396_v7 = vpop.f32.mrf.mxu2  ;;  %v1564_v8 = vpop.f32.mrf.mxu3  ;;  %v139_v6 = vld [vmem:[%s5064_s0 + $0x378] sm:$0xff] }
 0x1ae   :  { %v1397_v9 = vadd.f32 %v4501_v25, %v1396_v7  ;;  %v1063_v10 = vpop.f32.mrf.mxu0  ;;  %v1231_v11 = vpop.f32.mrf.mxu1  ;;  %v1565_v17 = vadd.f32 %v4501_v25, %v1564_v8  ;;  %v195_v7 = vld [vmem:[%s5064_s0 + $0x538] sm:$0xff] }
 0x1af   :  { %v2107_v15 = vld [vmem:[#allocation2 + $0x110] ss:$2 sm:$0xff]  ;;  %v2331_v16 = vld [vmem:[#allocation2 + $0x111] ss:$2 sm:$0xff]  ;;  %v1064_v45 = vadd.f32 %v4501_v25, %v1063_v10  ;;  %v1232_v26 = vadd.f32 %v4501_v25, %v1231_v11 }
 0x1b0   :  { %v2537_v19 = vmax.f32 %v2107_v15, %v2331_v16  ;;  %v2163_v20 = vld [vmem:[#allocation2 + $0x2d0] ss:$2 sm:$0xff]  ;;  %v2387_v21 = vld [vmem:[#allocation2 + $0x2d1] ss:$2 sm:$0xff]  ;;  %v1772_v30 = vmax.f32 %v1397_v9, 0.0  ;;  %v1828_v32 = vmax.f32 %v1565_v17, 0.0 }
 0x1b1   :  { %v2565_v22 = vmax.f32 %v2163_v20, %v2387_v21  ;;  %v2219_v23 = vld [vmem:[#allocation2 + $0x490] ss:$2 sm:$0xff]  ;;  %v2443_v24 = vld [vmem:[#allocation2 + $0x491] ss:$2 sm:$0xff]  ;;  %3138 = vmatmul.msk.f32.gmra.mxu0 %vm258_vm1, %v81_v12  ;;  %3194 = vmatmul.msk.f32.gmra.mxu1 %vm258_vm1, %v137_v13  ;;  %v1661_v33 = vmax.f32 %v1064_v45, 0.0  ;;  %v1717_v34 = vmax.f32 %v1232_v26, 0.0 }
 0x1b2   :  { %2649 = vst.msk [vmem:[#allocation3 + $0x88] sm:$0xff] %vm1848_vm2, %v2537_v19  ;;  %v2593_v27 = vmax.f32 %v2219_v23, %v2443_v24  ;;  %v2275_v28 = vld [vmem:[#allocation2 + $0x650] ss:$2 sm:$0xff]  ;;  %v2499_v29 = vld [vmem:[#allocation2 + $0x651] ss:$2 sm:$0xff]  ;;  %3250 = vmatmul.msk.f32.gmra.mxu2 %vm258_vm1, %v193_v14  ;;  %3306 = vmatmul.msk.f32.gmra.mxu3 %vm258_vm1, %v249_v18 }
 0x1b3   :  { %2677 = vst.msk [vmem:[#allocation3 + $0x168] sm:$0xff] %vm1848_vm2, %v2565_v22  ;;  %v2621_v31 = vmax.f32 %v2275_v28, %v2499_v29  ;;  %v251_v11 = vld [vmem:[%s5064_s0 + $0x6f8] sm:$0xff] }
 0x1b4   :  { %2705 = vst.msk [vmem:[#allocation3 + $0x248] sm:$0xff] %vm1848_vm2, %v2593_v27 }
 0x1b5   :  { %2733 = vst.msk [vmem:[#allocation3 + $0x328] sm:$0xff] %vm1848_vm2, %v2621_v31  ;;  %v1399_v35 = vpop.f32.mrf.mxu2  ;;  %v1567_v36 = vpop.f32.mrf.mxu3 }
 0x1b6   :  { %1997 = vst.msk [vmem:[#allocation2 + $0x4a0] sm:$0xff] %vm1848_vm2, %v1772_v30  ;;  %v1400_v37 = vadd.f32 %v4501_v25, %v1399_v35  ;;  %v1568_v38 = vadd.f32 %v4501_v25, %v1567_v36  ;;  %v1066_v39 = vpop.f32.mrf.mxu0  ;;  %v1234_v40 = vpop.f32.mrf.mxu1 }
 0x1b7   :  { %2053 = vst.msk [vmem:[#allocation2 + $0x660] sm:$0xff] %vm1848_vm2, %v1828_v32  ;;  %v1067_v48 = vadd.f32 %v4501_v25, %v1066_v39  ;;  %v1235_v50 = vadd.f32 %v4501_v25, %v1234_v40 }
 0x1b8   :  { %1886 = vst.msk [vmem:[#allocation2 + $0x128] sm:$0xff] %vm1848_vm2, %v1661_v33  ;;  %v1773_v46 = vmax.f32 %v1400_v37, 0.0  ;;  %v1829_v47 = vmax.f32 %v1568_v38, 0.0 }
 0x1b9   :  { %v2760_v49 = vld [vmem:[#allocation3 + $0x80] ss:$2 sm:$0xff]  ;;  %v2872_v2 = vld [vmem:[#allocation3 + $0x81] ss:$2 sm:$0xff]  ;;  %1942 = vst.msk [vmem:[#allocation2 + $0x2e8] sm:$0xff] %vm1848_vm2, %v1717_v34  ;;  %3139 = vmatmul.msk.f32.gmra.mxu0 %vm258_vm1, %v82_v41  ;;  %3195 = vmatmul.msk.f32.gmra.mxu1 %vm258_vm1, %v138_v42  ;;  %v1662_v60 = vmax.f32 %v1067_v48, 0.0 }
 0x1ba   :  { %v2975_v51 = vmax.f32 %v2760_v49, %v2872_v2  ;;  %v2788_v52 = vld [vmem:[#allocation3 + $0x160] ss:$2 sm:$0xff]  ;;  %v2900_v53 = vld [vmem:[#allocation3 + $0x161] ss:$2 sm:$0xff]  ;;  %1998 = vst.msk [vmem:[#allocation2 + $0x4a8] sm:$0xff] %vm1848_vm2, %v1773_v46  ;;  %3251 = vmatmul.msk.f32.gmra.mxu2 %vm258_vm1, %v194_v43  ;;  %3307 = vmatmul.msk.f32.gmra.mxu3 %vm258_vm1, %v250_v44  ;;  %v1718_v62 = vmax.f32 %v1235_v50, 0.0 }
 0x1bb   :  { %v2989_v54 = vmax.f32 %v2788_v52, %v2900_v53  ;;  %v2816_v55 = vld [vmem:[#allocation3 + $0x240] ss:$2 sm:$0xff]  ;;  %v2928_v56 = vld [vmem:[#allocation3 + $0x241] ss:$2 sm:$0xff]  ;;  %2054 = vst.msk [vmem:[#allocation2 + $0x668] sm:$0xff] %vm1848_vm2, %v1829_v47 }
 0x1bc   :  { %3031 = vst.msk [vmem:[%s5067_s3 + $0x40] sm:$0xff] %vm1848_vm2, %v2975_v51  ;;  %v3003_v57 = vmax.f32 %v2816_v55, %v2928_v56  ;;  %v2844_v58 = vld [vmem:[#allocation3 + $0x320] ss:$2 sm:$0xff]  ;;  %v2956_v59 = vld [vmem:[#allocation3 + $0x321] ss:$2 sm:$0xff] }
 0x1bd   :  { %3045 = vst.msk [vmem:[%s5067_s3 + $0xb0] sm:$0xff] %vm1848_vm2, %v2989_v54  ;;  %v3017_v61 = vmax.f32 %v2844_v58, %v2956_v59  ;;  %v1402_v63 = vpop.f32.mrf.mxu2  ;;  %v1570_v0 = vpop.f32.mrf.mxu3 }
 0x1be   :  { %3059 = vst.msk [vmem:[%s5067_s3 + $0x120] sm:$0xff] %vm1848_vm2, %v3003_v57  ;;  %v1403_v1 = vadd.f32 %v4501_v25, %v1402_v63  ;;  %v1069_v3 = vpop.f32.mrf.mxu0  ;;  %v1237_v4 = vpop.f32.mrf.mxu1  ;;  %v1571_v10 = vadd.f32 %v4501_v25, %v1570_v0 }
 0x1bf   :  { %3073 = vst.msk [vmem:[%s5067_s3 + $0x190] sm:$0xff] %vm1848_vm2, %v3017_v61  ;;  %v2109_v8 = vld [vmem:[#allocation2 + $0x120] ss:$2 sm:$0xff]  ;;  %v2333_v9 = vld [vmem:[#allocation2 + $0x121] ss:$2 sm:$0xff]  ;;  %v1070_v15 = vadd.f32 %v4501_v25, %v1069_v3  ;;  %v1238_v19 = vadd.f32 %v4501_v25, %v1237_v4 }
 0x1c0   :  { %v2538_v12 = vmax.f32 %v2109_v8, %v2333_v9  ;;  %v2165_v13 = vld [vmem:[#allocation2 + $0x2e0] ss:$2 sm:$0xff]  ;;  %v2389_v14 = vld [vmem:[#allocation2 + $0x2e1] ss:$2 sm:$0xff]  ;;  %1887 = vst.msk [vmem:[#allocation2 + $0x130] sm:$0xff] %vm1848_vm2, %v1662_v60  ;;  %v1774_v22 = vmax.f32 %v1403_v1, 0.0 }
 0x1c1   :  { %v2566_v16 = vmax.f32 %v2165_v13, %v2389_v14  ;;  %v2221_v17 = vld [vmem:[#allocation2 + $0x4a0] ss:$2 sm:$0xff]  ;;  %v2445_v18 = vld [vmem:[#allocation2 + $0x4a1] ss:$2 sm:$0xff]  ;;  %1943 = vst.msk [vmem:[#allocation2 + $0x2f0] sm:$0xff] %vm1848_vm2, %v1718_v62  ;;  %3140 = vmatmul.msk.f32.gmra.mxu0 %vm258_vm1, %v83_v5  ;;  %3196 = vmatmul.msk.f32.gmra.mxu1 %vm258_vm1, %v139_v6  ;;  %v1830_v24 = vmax.f32 %v1571_v10, 0.0 }
 0x1c2   :  { %2650 = vst.msk [vmem:[#allocation3 + $0x90] sm:$0xff] %vm1848_vm2, %v2538_v12  ;;  %v2594_v20 = vmax.f32 %v2221_v17, %v2445_v18  ;;  %v2277_v21 = vld [vmem:[#allocation2 + $0x660] ss:$2 sm:$0xff]  ;;  %v2501_v45 = vld [vmem:[#allocation2 + $0x661] ss:$2 sm:$0xff]  ;;  %3252 = vmatmul.msk.f32.gmra.mxu2 %vm258_vm1, %v195_v7  ;;  %3308 = vmatmul.msk.f32.gmra.mxu3 %vm258_vm1, %v251_v11  ;;  %v1663_v26 = vmax.f32 %v1070_v15, 0.0 }
 0x1c3   :  { %2678 = vst.msk [vmem:[#allocation3 + $0x170] sm:$0xff] %vm1848_vm2, %v2566_v16  ;;  %v2622_v23 = vmax.f32 %v2277_v21, %v2501_v45  ;;  %v1719_v27 = vmax.f32 %v1238_v19, 0.0 }
 0x1c4   :  { %2706 = vst.msk [vmem:[#allocation3 + $0x250] sm:$0xff] %vm1848_vm2, %v2594_v20 }
 0x1c5   :  { %2734 = vst.msk [vmem:[#allocation3 + $0x330] sm:$0xff] %vm1848_vm2, %v2622_v23  ;;  %v1405_v28 = vpop.f32.mrf.mxu2  ;;  %v1573_v29 = vpop.f32.mrf.mxu3 }
 0x1c6   :  { %1999 = vst.msk [vmem:[#allocation2 + $0x4b0] sm:$0xff] %vm1848_vm2, %v1774_v22  ;;  %v1406_v30 = vadd.f32 %v4501_v25, %v1405_v28  ;;  %v1574_v31 = vadd.f32 %v4501_v25, %v1573_v29  ;;  %v1072_v32 = vpop.f32.mrf.mxu0  ;;  %v1240_v33 = vpop.f32.mrf.mxu1 }
 0x1c7   :  { %2055 = vst.msk [vmem:[#allocation2 + $0x670] sm:$0xff] %vm1848_vm2, %v1830_v24  ;;  %v1073_v34 = vadd.f32 %v4501_v25, %v1072_v32  ;;  %v1241_v35 = vadd.f32 %v4501_v25, %v1240_v33 }
 0x1c8   :  { %1888 = vst.msk [vmem:[#allocation2 + $0x138] sm:$0xff] %vm1848_vm2, %v1663_v26  ;;  %v1775_v36 = vmax.f32 %v1406_v30, 0.0  ;;  %v1831_v37 = vmax.f32 %v1574_v31, 0.0 }
 0x1c9   :  { %1944 = vst.msk [vmem:[#allocation2 + $0x2f8] sm:$0xff] %vm1848_vm2, %v1719_v27  ;;  %v1664_v38 = vmax.f32 %v1073_v34, 0.0  ;;  %v1720_v39 = vmax.f32 %v1241_v35, 0.0 }
 0x1ca   :  { %2000 = vst.msk [vmem:[#allocation2 + $0x4b8] sm:$0xff] %vm1848_vm2, %v1775_v36 }
 0x1cb   :  { %2056 = vst.msk [vmem:[#allocation2 + $0x678] sm:$0xff] %vm1848_vm2, %v1831_v37 }
 0x1cc   :  { %1889 = vst.msk [vmem:[#allocation2 + $0x140] sm:$0xff] %vm1848_vm2, %v1664_v38 }
 0x1cd   :  { %1945 = vst.msk [vmem:[#allocation2 + $0x300] sm:$0xff] %vm1848_vm2, %v1720_v39  ;;  %v1408_v40 = vpop.f32.mrf.mxu2  ;;  %v1576_v41 = vpop.f32.mrf.mxu3 }
 0x1ce   :  { %v1409_v42 = vadd.f32 %v4501_v25, %v1408_v40  ;;  %v1075_v43 = vpop.f32.mrf.mxu0  ;;  %v1243_v44 = vpop.f32.mrf.mxu1  ;;  %v1577_v48 = vadd.f32 %v4501_v25, %v1576_v41 }
 0x1cf   :  { %v2111_v46 = vld [vmem:[#allocation2 + $0x130] ss:$2 sm:$0xff]  ;;  %v2335_v47 = vld [vmem:[#allocation2 + $0x131] ss:$2 sm:$0xff]  ;;  %v1076_v51 = vadd.f32 %v4501_v25, %v1075_v43  ;;  %v1244_v55 = vadd.f32 %v4501_v25, %v1243_v44 }
 0x1d0   :  { %v2539_v49 = vmax.f32 %v2111_v46, %v2335_v47  ;;  %v2167_v2 = vld [vmem:[#allocation2 + $0x2f0] ss:$2 sm:$0xff]  ;;  %v2391_v50 = vld [vmem:[#allocation2 + $0x2f1] ss:$2 sm:$0xff]  ;;  %v1776_v59 = vmax.f32 %v1409_v42, 0.0  ;;  %v1832_v61 = vmax.f32 %v1577_v48, 0.0 }
 0x1d1   :  { %v2567_v52 = vmax.f32 %v2167_v2, %v2391_v50  ;;  %v2223_v53 = vld [vmem:[#allocation2 + $0x4b0] ss:$2 sm:$0xff]  ;;  %v2447_v54 = vld [vmem:[#allocation2 + $0x4b1] ss:$2 sm:$0xff]  ;;  %v1665_v62 = vmax.f32 %v1076_v51, 0.0  ;;  %v1721_v63 = vmax.f32 %v1244_v55, 0.0 }
 0x1d2   :  { %2651 = vst.msk [vmem:[#allocation3 + $0x98] sm:$0xff] %vm1848_vm2, %v2539_v49  ;;  %v2595_v56 = vmax.f32 %v2223_v53, %v2447_v54  ;;  %v2279_v57 = vld [vmem:[#allocation2 + $0x670] ss:$2 sm:$0xff]  ;;  %v2503_v58 = vld [vmem:[#allocation2 + $0x671] ss:$2 sm:$0xff] }
 0x1d3   :  { %2679 = vst.msk [vmem:[#allocation3 + $0x178] sm:$0xff] %vm1848_vm2, %v2567_v52  ;;  %v2623_v60 = vmax.f32 %v2279_v57, %v2503_v58 }
 0x1d4   :  { %2707 = vst.msk [vmem:[#allocation3 + $0x258] sm:$0xff] %vm1848_vm2, %v2595_v56 }
 0x1d5   :  { %2735 = vst.msk [vmem:[#allocation3 + $0x338] sm:$0xff] %vm1848_vm2, %v2623_v60  ;;  %v1411_v0 = vpop.f32.mrf.mxu2  ;;  %v1579_v1 = vpop.f32.mrf.mxu3 }
 0x1d6   :  { %2001 = vst.msk [vmem:[#allocation2 + $0x4c0] sm:$0xff] %vm1848_vm2, %v1776_v59  ;;  %v1412_v3 = vadd.f32 %v4501_v25, %v1411_v0  ;;  %v1580_v4 = vadd.f32 %v4501_v25, %v1579_v1  ;;  %v1078_v5 = vpop.f32.mrf.mxu0  ;;  %v1246_v6 = vpop.f32.mrf.mxu1 }
 0x1d7   :  { %2057 = vst.msk [vmem:[#allocation2 + $0x680] sm:$0xff] %vm1848_vm2, %v1832_v61  ;;  %v1079_v9 = vadd.f32 %v4501_v25, %v1078_v5  ;;  %v1247_v12 = vadd.f32 %v4501_v25, %v1246_v6 }
 0x1d8   :  { %1890 = vst.msk [vmem:[#allocation2 + $0x148] sm:$0xff] %vm1848_vm2, %v1665_v62  ;;  %v1777_v7 = vmax.f32 %v1412_v3, 0.0  ;;  %v1833_v8 = vmax.f32 %v1580_v4, 0.0 }
 0x1d9   :  { %v2762_v10 = vld [vmem:[#allocation3 + $0x90] ss:$2 sm:$0xff]  ;;  %v2874_v11 = vld [vmem:[#allocation3 + $0x91] ss:$2 sm:$0xff]  ;;  %1946 = vst.msk [vmem:[#allocation2 + $0x308] sm:$0xff] %vm1848_vm2, %v1721_v63  ;;  %v1666_v45 = vmax.f32 %v1079_v9, 0.0 }
 0x1da   :  { %v2976_v13 = vmax.f32 %v2762_v10, %v2874_v11  ;;  %v2790_v14 = vld [vmem:[#allocation3 + $0x170] ss:$2 sm:$0xff]  ;;  %v2902_v15 = vld [vmem:[#allocation3 + $0x171] ss:$2 sm:$0xff]  ;;  %2002 = vst.msk [vmem:[#allocation2 + $0x4c8] sm:$0xff] %vm1848_vm2, %v1777_v7  ;;  %v1722_v23 = vmax.f32 %v1247_v12, 0.0 }
 0x1db   :  { %v2990_v16 = vmax.f32 %v2790_v14, %v2902_v15  ;;  %v2818_v17 = vld [vmem:[#allocation3 + $0x250] ss:$2 sm:$0xff]  ;;  %v2930_v18 = vld [vmem:[#allocation3 + $0x251] ss:$2 sm:$0xff]  ;;  %2058 = vst.msk [vmem:[#allocation2 + $0x688] sm:$0xff] %vm1848_vm2, %v1833_v8 }
 0x1dc   :  { %3032 = vst.msk [vmem:[%s5067_s3 + $0x48] sm:$0xff] %vm1848_vm2, %v2976_v13  ;;  %v3004_v19 = vmax.f32 %v2818_v17, %v2930_v18  ;;  %v2846_v20 = vld [vmem:[#allocation3 + $0x330] ss:$2 sm:$0xff]  ;;  %v2958_v21 = vld [vmem:[#allocation3 + $0x331] ss:$2 sm:$0xff] }
 0x1dd   :  { %3046 = vst.msk [vmem:[%s5067_s3 + $0xb8] sm:$0xff] %vm1848_vm2, %v2990_v16  ;;  %v3018_v22 = vmax.f32 %v2846_v20, %v2958_v21  ;;  %v1414_v24 = vpop.f32.mrf.mxu2  ;;  %v1582_v26 = vpop.f32.mrf.mxu3  ;;  %v4881_v13 = vld [vmem:[#allocation4] ss:$0 sm:$0xff] }
 0x1de   :  { %3060 = vst.msk [vmem:[%s5067_s3 + $0x128] sm:$0xff] %vm1848_vm2, %v3004_v19  ;;  %v1415_v27 = vadd.f32 %v4501_v25, %v1414_v24  ;;  %v1081_v28 = vpop.f32.mrf.mxu0  ;;  %v1249_v29 = vpop.f32.mrf.mxu1  ;;  %v1583_v32 = vadd.f32 %v4501_v25, %v1582_v26 }
 0x1df   :  { %3074 = vst.msk [vmem:[%s5067_s3 + $0x198] sm:$0xff] %vm1848_vm2, %v3018_v22  ;;  %v2113_v30 = vld [vmem:[#allocation2 + $0x140] ss:$2 sm:$0xff]  ;;  %v2337_v31 = vld [vmem:[#allocation2 + $0x141] ss:$2 sm:$0xff]  ;;  %v1082_v36 = vadd.f32 %v4501_v25, %v1081_v28  ;;  %v1250_v40 = vadd.f32 %v4501_v25, %v1249_v29 }
 0x1e0   :  { %v2540_v33 = vmax.f32 %v2113_v30, %v2337_v31  ;;  %v2169_v34 = vld [vmem:[#allocation2 + $0x300] ss:$2 sm:$0xff]  ;;  %v2393_v35 = vld [vmem:[#allocation2 + $0x301] ss:$2 sm:$0xff]  ;;  %1891 = vst.msk [vmem:[#allocation2 + $0x150] sm:$0xff] %vm1848_vm2, %v1666_v45  ;;  %v1778_v44 = vmax.f32 %v1415_v27, 0.0 }
 0x1e1   :  { %v2568_v37 = vmax.f32 %v2169_v34, %v2393_v35  ;;  %v2225_v38 = vld [vmem:[#allocation2 + $0x4c0] ss:$2 sm:$0xff]  ;;  %v2449_v39 = vld [vmem:[#allocation2 + $0x4c1] ss:$2 sm:$0xff]  ;;  %1947 = vst.msk [vmem:[#allocation2 + $0x310] sm:$0xff] %vm1848_vm2, %v1722_v23  ;;  %v1834_v47 = vmax.f32 %v1583_v32, 0.0 }
 0x1e2   :  { %2652 = vst.msk [vmem:[#allocation3 + $0xa0] sm:$0xff] %vm1848_vm2, %v2540_v33  ;;  %v2596_v41 = vmax.f32 %v2225_v38, %v2449_v39  ;;  %v2281_v42 = vld [vmem:[#allocation2 + $0x680] ss:$2 sm:$0xff]  ;;  %v2505_v43 = vld [vmem:[#allocation2 + $0x681] ss:$2 sm:$0xff]  ;;  %v1667_v48 = vmax.f32 %v1082_v36, 0.0 }
 0x1e3   :  { %2680 = vst.msk [vmem:[#allocation3 + $0x180] sm:$0xff] %vm1848_vm2, %v2568_v37  ;;  %v2624_v46 = vmax.f32 %v2281_v42, %v2505_v43  ;;  %v1723_v49 = vmax.f32 %v1250_v40, 0.0 }
 0x1e4   :  { %2708 = vst.msk [vmem:[#allocation3 + $0x260] sm:$0xff] %vm1848_vm2, %v2596_v41 }
 0x1e5   :  { %2736 = vst.msk [vmem:[#allocation3 + $0x340] sm:$0xff] %vm1848_vm2, %v2624_v46  ;;  %v1417_v2 = vpop.f32.mrf.mxu2  ;;  %v1585_v50 = vpop.f32.mrf.mxu3 }
 0x1e6   :  { %2003 = vst.msk [vmem:[#allocation2 + $0x4d0] sm:$0xff] %vm1848_vm2, %v1778_v44  ;;  %v1418_v51 = vadd.f32 %v4501_v25, %v1417_v2  ;;  %v1586_v52 = vadd.f32 %v4501_v25, %v1585_v50  ;;  %v1084_v53 = vpop.f32.mrf.mxu0  ;;  %v1252_v54 = vpop.f32.mrf.mxu1 }
 0x1e7   :  { %2059 = vst.msk [vmem:[#allocation2 + $0x690] sm:$0xff] %vm1848_vm2, %v1834_v47  ;;  %v1085_v55 = vadd.f32 %v4501_v25, %v1084_v53  ;;  %v1253_v56 = vadd.f32 %v4501_v25, %v1252_v54 }
 0x1e8   :  { %1892 = vst.msk [vmem:[#allocation2 + $0x158] sm:$0xff] %vm1848_vm2, %v1667_v48  ;;  %v1779_v57 = vmax.f32 %v1418_v51, 0.0  ;;  %v1835_v58 = vmax.f32 %v1586_v52, 0.0 }
 0x1e9   :  { %1948 = vst.msk [vmem:[#allocation2 + $0x318] sm:$0xff] %vm1848_vm2, %v1723_v49  ;;  %v1668_v59 = vmax.f32 %v1085_v55, 0.0  ;;  %v1724_v60 = vmax.f32 %v1253_v56, 0.0 }
 0x1ea   :  { %2004 = vst.msk [vmem:[#allocation2 + $0x4d8] sm:$0xff] %vm1848_vm2, %v1779_v57 }
 0x1eb   :  { %2060 = vst.msk [vmem:[#allocation2 + $0x698] sm:$0xff] %vm1848_vm2, %v1835_v58 }
 0x1ec   :  { %1893 = vst.msk [vmem:[#allocation2 + $0x160] sm:$0xff] %vm1848_vm2, %v1668_v59 }
 0x1ed   :  { %1949 = vst.msk [vmem:[#allocation2 + $0x320] sm:$0xff] %vm1848_vm2, %v1724_v60  ;;  %v1420_v61 = vpop.f32.mrf.mxu2  ;;  %v1588_v62 = vpop.f32.mrf.mxu3 }
 0x1ee   :  { %v1421_v63 = vadd.f32 %v4501_v25, %v1420_v61  ;;  %v1087_v0 = vpop.f32.mrf.mxu0  ;;  %v1255_v1 = vpop.f32.mrf.mxu1  ;;  %v1589_v5 = vadd.f32 %v4501_v25, %v1588_v62 }
 0x1ef   :  { %v2115_v3 = vld [vmem:[#allocation2 + $0x150] ss:$2 sm:$0xff]  ;;  %v2339_v4 = vld [vmem:[#allocation2 + $0x151] ss:$2 sm:$0xff]  ;;  %v1088_v9 = vadd.f32 %v4501_v25, %v1087_v0  ;;  %v1256_v14 = vadd.f32 %v4881_v13, %v1255_v1 }
 0x1f0   :  { %v2541_v6 = vmax.f32 %v2115_v3, %v2339_v4  ;;  %v2171_v7 = vld [vmem:[#allocation2 + $0x310] ss:$2 sm:$0xff]  ;;  %v2395_v8 = vld [vmem:[#allocation2 + $0x311] ss:$2 sm:$0xff]  ;;  %v1780_v18 = vmax.f32 %v1421_v63, 0.0  ;;  %v1836_v20 = vmax.f32 %v1589_v5, 0.0 }
 0x1f1   :  { %v2569_v10 = vmax.f32 %v2171_v7, %v2395_v8  ;;  %v2227_v11 = vld [vmem:[#allocation2 + $0x4d0] ss:$2 sm:$0xff]  ;;  %v2451_v12 = vld [vmem:[#allocation2 + $0x4d1] ss:$2 sm:$0xff]  ;;  %v1669_v25 = vmax.f32 %v1088_v9, 0.0  ;;  %v1725_v21 = vmax.f32 %v1256_v14, 0.0 }
 0x1f2   :  { %2653 = vst.msk [vmem:[#allocation3 + $0xa8] sm:$0xff] %vm1848_vm2, %v2541_v6  ;;  %v2597_v15 = vmax.f32 %v2227_v11, %v2451_v12  ;;  %v2283_v16 = vld [vmem:[#allocation2 + $0x690] ss:$2 sm:$0xff]  ;;  %v2507_v17 = vld [vmem:[#allocation2 + $0x691] ss:$2 sm:$0xff] }
 0x1f3   :  { %2681 = vst.msk [vmem:[#allocation3 + $0x188] sm:$0xff] %vm1848_vm2, %v2569_v10  ;;  %v2625_v19 = vmax.f32 %v2283_v16, %v2507_v17 }
 0x1f4   :  { %2709 = vst.msk [vmem:[#allocation3 + $0x268] sm:$0xff] %vm1848_vm2, %v2597_v15 }
 0x1f5   :  { %2737 = vst.msk [vmem:[#allocation3 + $0x348] sm:$0xff] %vm1848_vm2, %v2625_v19  ;;  %v1423_v45 = vpop.f32.mrf.mxu2  ;;  %v1591_v22 = vpop.f32.mrf.mxu3 }
 0x1f6   :  { %2005 = vst.msk [vmem:[#allocation2 + $0x4e0] sm:$0xff] %vm1848_vm2, %v1780_v18  ;;  %v1424_v23 = vadd.f32 %v4881_v13, %v1423_v45  ;;  %v1592_v24 = vadd.f32 %v4881_v13, %v1591_v22  ;;  %v1090_v26 = vpop.f32.mrf.mxu0  ;;  %v1258_v27 = vpop.f32.mrf.mxu1 }
 0x1f7   :  { %2061 = vst.msk [vmem:[#allocation2 + $0x6a0] sm:$0xff] %vm1848_vm2, %v1836_v20  ;;  %v1091_v30 = vadd.f32 %v4881_v13, %v1090_v26  ;;  %v1259_v33 = vadd.f32 %v4881_v13, %v1258_v27 }
 0x1f8   :  { %1894 = vst.msk [vmem:[#allocation2 + $0x168] sm:$0xff] %vm1848_vm2, %v1669_v25  ;;  %v1781_v28 = vmax.f32 %v1424_v23, 0.0  ;;  %v1837_v29 = vmax.f32 %v1592_v24, 0.0 }
 0x1f9   :  { %v2764_v31 = vld [vmem:[#allocation3 + $0xa0] ss:$2 sm:$0xff]  ;;  %v2876_v32 = vld [vmem:[#allocation3 + $0xa1] ss:$2 sm:$0xff]  ;;  %1950 = vst.msk [vmem:[#allocation2 + $0x328] sm:$0xff] %vm1848_vm2, %v1725_v21  ;;  %v1670_v43 = vmax.f32 %v1091_v30, 0.0 }
 0x1fa   :  { %v2977_v34 = vmax.f32 %v2764_v31, %v2876_v32  ;;  %v2792_v35 = vld [vmem:[#allocation3 + $0x180] ss:$2 sm:$0xff]  ;;  %v2904_v36 = vld [vmem:[#allocation3 + $0x181] ss:$2 sm:$0xff]  ;;  %2006 = vst.msk [vmem:[#allocation2 + $0x4e8] sm:$0xff] %vm1848_vm2, %v1781_v28  ;;  %v1726_v46 = vmax.f32 %v1259_v33, 0.0 }
 0x1fb   :  { %v2991_v37 = vmax.f32 %v2792_v35, %v2904_v36  ;;  %v2820_v38 = vld [vmem:[#allocation3 + $0x260] ss:$2 sm:$0xff]  ;;  %v2932_v39 = vld [vmem:[#allocation3 + $0x261] ss:$2 sm:$0xff]  ;;  %2062 = vst.msk [vmem:[#allocation2 + $0x6a8] sm:$0xff] %vm1848_vm2, %v1837_v29 }
 0x1fc   :  { %3033 = vst.msk [vmem:[%s5067_s3 + $0x50] sm:$0xff] %vm1848_vm2, %v2977_v34  ;;  %v3005_v40 = vmax.f32 %v2820_v38, %v2932_v39  ;;  %v2848_v41 = vld [vmem:[#allocation3 + $0x340] ss:$2 sm:$0xff]  ;;  %v2960_v42 = vld [vmem:[#allocation3 + $0x341] ss:$2 sm:$0xff] }
 0x1fd   :  { %3047 = vst.msk [vmem:[%s5067_s3 + $0xc0] sm:$0xff] %vm1848_vm2, %v2991_v37  ;;  %v3019_v44 = vmax.f32 %v2848_v41, %v2960_v42  ;;  %v1426_v47 = vpop.f32.mrf.mxu2  ;;  %v1594_v48 = vpop.f32.mrf.mxu3 }
 0x1fe   :  { %3061 = vst.msk [vmem:[%s5067_s3 + $0x130] sm:$0xff] %vm1848_vm2, %v3005_v40  ;;  %v1427_v49 = vadd.f32 %v4881_v13, %v1426_v47  ;;  %v1093_v2 = vpop.f32.mrf.mxu0  ;;  %v1261_v50 = vpop.f32.mrf.mxu1  ;;  %v1595_v53 = vadd.f32 %v4881_v13, %v1594_v48 }
 0x1ff   :  { %3075 = vst.msk [vmem:[%s5067_s3 + $0x1a0] sm:$0xff] %vm1848_vm2, %v3019_v44  ;;  %v2117_v51 = vld [vmem:[#allocation2 + $0x160] ss:$2 sm:$0xff]  ;;  %v2341_v52 = vld [vmem:[#allocation2 + $0x161] ss:$2 sm:$0xff]  ;;  %v1094_v57 = vadd.f32 %v4881_v13, %v1093_v2  ;;  %v1262_v61 = vadd.f32 %v4881_v13, %v1261_v50 }
 0x200   :  { %v2542_v54 = vmax.f32 %v2117_v51, %v2341_v52  ;;  %v2173_v55 = vld [vmem:[#allocation2 + $0x320] ss:$2 sm:$0xff]  ;;  %v2397_v56 = vld [vmem:[#allocation2 + $0x321] ss:$2 sm:$0xff]  ;;  %1895 = vst.msk [vmem:[#allocation2 + $0x170] sm:$0xff] %vm1848_vm2, %v1670_v43  ;;  %v1782_v1 = vmax.f32 %v1427_v49, 0.0 }
 0x201   :  { %v2570_v58 = vmax.f32 %v2173_v55, %v2397_v56  ;;  %v2229_v59 = vld [vmem:[#allocation2 + $0x4e0] ss:$2 sm:$0xff]  ;;  %v2453_v60 = vld [vmem:[#allocation2 + $0x4e1] ss:$2 sm:$0xff]  ;;  %1951 = vst.msk [vmem:[#allocation2 + $0x330] sm:$0xff] %vm1848_vm2, %v1726_v46  ;;  %v1838_v4 = vmax.f32 %v1595_v53, 0.0 }
 0x202   :  { %2654 = vst.msk [vmem:[#allocation3 + $0xb0] sm:$0xff] %vm1848_vm2, %v2542_v54  ;;  %v2598_v62 = vmax.f32 %v2229_v59, %v2453_v60  ;;  %v2285_v63 = vld [vmem:[#allocation2 + $0x6a0] ss:$2 sm:$0xff]  ;;  %v2509_v0 = vld [vmem:[#allocation2 + $0x6a1] ss:$2 sm:$0xff]  ;;  %v1671_v5 = vmax.f32 %v1094_v57, 0.0 }
 0x203   :  { %2682 = vst.msk [vmem:[#allocation3 + $0x190] sm:$0xff] %vm1848_vm2, %v2570_v58  ;;  %v2626_v3 = vmax.f32 %v2285_v63, %v2509_v0  ;;  %v1727_v6 = vmax.f32 %v1262_v61, 0.0 }
 0x204   :  { %2710 = vst.msk [vmem:[#allocation3 + $0x270] sm:$0xff] %vm1848_vm2, %v2598_v62 }
 0x205   :  { %2738 = vst.msk [vmem:[#allocation3 + $0x350] sm:$0xff] %vm1848_vm2, %v2626_v3  ;;  %v1429_v7 = vpop.f32.mrf.mxu2  ;;  %v1597_v8 = vpop.f32.mrf.mxu3 }
 0x206   :  { %2007 = vst.msk [vmem:[#allocation2 + $0x4f0] sm:$0xff] %vm1848_vm2, %v1782_v1  ;;  %v1430_v9 = vadd.f32 %v4881_v13, %v1429_v7  ;;  %v1598_v10 = vadd.f32 %v4881_v13, %v1597_v8  ;;  %v1096_v11 = vpop.f32.mrf.mxu0  ;;  %v1264_v12 = vpop.f32.mrf.mxu1 }
 0x207   :  { %2063 = vst.msk [vmem:[#allocation2 + $0x6b0] sm:$0xff] %vm1848_vm2, %v1838_v4  ;;  %v1097_v14 = vadd.f32 %v4881_v13, %v1096_v11  ;;  %v1265_v15 = vadd.f32 %v4881_v13, %v1264_v12 }
 0x208   :  { %1896 = vst.msk [vmem:[#allocation2 + $0x178] sm:$0xff] %vm1848_vm2, %v1671_v5  ;;  %v1783_v16 = vmax.f32 %v1430_v9, 0.0  ;;  %v1839_v17 = vmax.f32 %v1598_v10, 0.0 }
 0x209   :  { %1952 = vst.msk [vmem:[#allocation2 + $0x338] sm:$0xff] %vm1848_vm2, %v1727_v6  ;;  %v1672_v18 = vmax.f32 %v1097_v14, 0.0  ;;  %v1728_v19 = vmax.f32 %v1265_v15, 0.0 }
 0x20a   :  { %2008 = vst.msk [vmem:[#allocation2 + $0x4f8] sm:$0xff] %vm1848_vm2, %v1783_v16 }
 0x20b   :  { %2064 = vst.msk [vmem:[#allocation2 + $0x6b8] sm:$0xff] %vm1848_vm2, %v1839_v17 }
 0x20c   :  { %1897 = vst.msk [vmem:[#allocation2 + $0x180] sm:$0xff] %vm1848_vm2, %v1672_v18 }
 0x20d   :  { %1953 = vst.msk [vmem:[#allocation2 + $0x340] sm:$0xff] %vm1848_vm2, %v1728_v19  ;;  %v1432_v20 = vpop.f32.mrf.mxu2  ;;  %v1600_v25 = vpop.f32.mrf.mxu3 }
 0x20e   :  { %v1433_v21 = vadd.f32 %v4881_v13, %v1432_v20  ;;  %v1099_v45 = vpop.f32.mrf.mxu0  ;;  %v1267_v22 = vpop.f32.mrf.mxu1  ;;  %v1601_v26 = vadd.f32 %v4881_v13, %v1600_v25 }
 0x20f   :  { %v2119_v23 = vld [vmem:[#allocation2 + $0x170] ss:$2 sm:$0xff]  ;;  %v2343_v24 = vld [vmem:[#allocation2 + $0x171] ss:$2 sm:$0xff]  ;;  %v1100_v30 = vadd.f32 %v4881_v13, %v1099_v45  ;;  %v1268_v34 = vadd.f32 %v4881_v13, %v1267_v22 }
 0x210   :  { %v2543_v27 = vmax.f32 %v2119_v23, %v2343_v24  ;;  %v2175_v28 = vld [vmem:[#allocation2 + $0x330] ss:$2 sm:$0xff]  ;;  %v2399_v29 = vld [vmem:[#allocation2 + $0x331] ss:$2 sm:$0xff]  ;;  %v1784_v38 = vmax.f32 %v1433_v21, 0.0  ;;  %v1840_v40 = vmax.f32 %v1601_v26, 0.0 }
 0x211   :  { %v2571_v31 = vmax.f32 %v2175_v28, %v2399_v29  ;;  %v2231_v32 = vld [vmem:[#allocation2 + $0x4f0] ss:$2 sm:$0xff]  ;;  %v2455_v33 = vld [vmem:[#allocation2 + $0x4f1] ss:$2 sm:$0xff]  ;;  %v1673_v41 = vmax.f32 %v1100_v30, 0.0  ;;  %v1729_v42 = vmax.f32 %v1268_v34, 0.0 }
 0x212   :  { %2655 = vst.msk [vmem:[#allocation3 + $0xb8] sm:$0xff] %vm1848_vm2, %v2543_v27  ;;  %v2599_v35 = vmax.f32 %v2231_v32, %v2455_v33  ;;  %v2287_v36 = vld [vmem:[#allocation2 + $0x6b0] ss:$2 sm:$0xff]  ;;  %v2511_v37 = vld [vmem:[#allocation2 + $0x6b1] ss:$2 sm:$0xff] }
 0x213   :  { %2683 = vst.msk [vmem:[#allocation3 + $0x198] sm:$0xff] %vm1848_vm2, %v2571_v31  ;;  %v2627_v39 = vmax.f32 %v2287_v36, %v2511_v37 }
 0x214   :  { %2711 = vst.msk [vmem:[#allocation3 + $0x278] sm:$0xff] %vm1848_vm2, %v2599_v35 }
 0x215   :  { %2739 = vst.msk [vmem:[#allocation3 + $0x358] sm:$0xff] %vm1848_vm2, %v2627_v39  ;;  %v1435_v43 = vpop.f32.mrf.mxu2  ;;  %v1603_v44 = vpop.f32.mrf.mxu3 }
 0x216   :  { %2009 = vst.msk [vmem:[#allocation2 + $0x500] sm:$0xff] %vm1848_vm2, %v1784_v38  ;;  %v1436_v46 = vadd.f32 %v4881_v13, %v1435_v43  ;;  %v1604_v47 = vadd.f32 %v4881_v13, %v1603_v44  ;;  %v1102_v48 = vpop.f32.mrf.mxu0  ;;  %v1270_v49 = vpop.f32.mrf.mxu1 }
 0x217   :  { %2065 = vst.msk [vmem:[#allocation2 + $0x6c0] sm:$0xff] %vm1848_vm2, %v1840_v40  ;;  %v1103_v51 = vadd.f32 %v4881_v13, %v1102_v48  ;;  %v1271_v54 = vadd.f32 %v4881_v13, %v1270_v49 }
 0x218   :  { %1898 = vst.msk [vmem:[#allocation2 + $0x188] sm:$0xff] %vm1848_vm2, %v1673_v41  ;;  %v1785_v2 = vmax.f32 %v1436_v46, 0.0  ;;  %v1841_v50 = vmax.f32 %v1604_v47, 0.0 }
 0x219   :  { %v2766_v52 = vld [vmem:[#allocation3 + $0xb0] ss:$2 sm:$0xff]  ;;  %v2878_v53 = vld [vmem:[#allocation3 + $0xb1] ss:$2 sm:$0xff]  ;;  %1954 = vst.msk [vmem:[#allocation2 + $0x348] sm:$0xff] %vm1848_vm2, %v1729_v42  ;;  %v1674_v0 = vmax.f32 %v1103_v51, 0.0 }
 0x21a   :  { %v2978_v55 = vmax.f32 %v2766_v52, %v2878_v53  ;;  %v2794_v56 = vld [vmem:[#allocation3 + $0x190] ss:$2 sm:$0xff]  ;;  %v2906_v57 = vld [vmem:[#allocation3 + $0x191] ss:$2 sm:$0xff]  ;;  %2010 = vst.msk [vmem:[#allocation2 + $0x508] sm:$0xff] %vm1848_vm2, %v1785_v2  ;;  %v1730_v3 = vmax.f32 %v1271_v54, 0.0 }
 0x21b   :  { %v2992_v58 = vmax.f32 %v2794_v56, %v2906_v57  ;;  %v2822_v59 = vld [vmem:[#allocation3 + $0x270] ss:$2 sm:$0xff]  ;;  %v2934_v60 = vld [vmem:[#allocation3 + $0x271] ss:$2 sm:$0xff]  ;;  %2066 = vst.msk [vmem:[#allocation2 + $0x6c8] sm:$0xff] %vm1848_vm2, %v1841_v50 }
 0x21c   :  { %3034 = vst.msk [vmem:[%s5067_s3 + $0x58] sm:$0xff] %vm1848_vm2, %v2978_v55  ;;  %v3006_v61 = vmax.f32 %v2822_v59, %v2934_v60  ;;  %v2850_v62 = vld [vmem:[#allocation3 + $0x350] ss:$2 sm:$0xff]  ;;  %v2962_v63 = vld [vmem:[#allocation3 + $0x351] ss:$2 sm:$0xff] }
 0x21d   :  { %3048 = vst.msk [vmem:[%s5067_s3 + $0xc8] sm:$0xff] %vm1848_vm2, %v2992_v58  ;;  %v3020_v1 = vmax.f32 %v2850_v62, %v2962_v63  ;;  %v1438_v4 = vpop.f32.mrf.mxu2  ;;  %v1606_v5 = vpop.f32.mrf.mxu3 }
 0x21e   :  { %3062 = vst.msk [vmem:[%s5067_s3 + $0x138] sm:$0xff] %vm1848_vm2, %v3006_v61  ;;  %v1439_v6 = vadd.f32 %v4881_v13, %v1438_v4  ;;  %v1105_v7 = vpop.f32.mrf.mxu0  ;;  %v1273_v8 = vpop.f32.mrf.mxu1  ;;  %v1607_v11 = vadd.f32 %v4881_v13, %v1606_v5 }
 0x21f   :  { %3076 = vst.msk [vmem:[%s5067_s3 + $0x1a8] sm:$0xff] %vm1848_vm2, %v3020_v1  ;;  %v2121_v9 = vld [vmem:[#allocation2 + $0x180] ss:$2 sm:$0xff]  ;;  %v2345_v10 = vld [vmem:[#allocation2 + $0x181] ss:$2 sm:$0xff]  ;;  %v1106_v16 = vadd.f32 %v4881_v13, %v1105_v7  ;;  %v1274_v20 = vadd.f32 %v4881_v13, %v1273_v8 }
 0x220   :  { %v2544_v12 = vmax.f32 %v2121_v9, %v2345_v10  ;;  %v2177_v14 = vld [vmem:[#allocation2 + $0x340] ss:$2 sm:$0xff]  ;;  %v2401_v15 = vld [vmem:[#allocation2 + $0x341] ss:$2 sm:$0xff]  ;;  %1899 = vst.msk [vmem:[#allocation2 + $0x190] sm:$0xff] %vm1848_vm2, %v1674_v0  ;;  %v1786_v22 = vmax.f32 %v1439_v6, 0.0 }
 0x221   :  { %v2572_v17 = vmax.f32 %v2177_v14, %v2401_v15  ;;  %v2233_v18 = vld [vmem:[#allocation2 + $0x500] ss:$2 sm:$0xff]  ;;  %v2457_v19 = vld [vmem:[#allocation2 + $0x501] ss:$2 sm:$0xff]  ;;  %1955 = vst.msk [vmem:[#allocation2 + $0x350] sm:$0xff] %vm1848_vm2, %v1730_v3  ;;  %v1842_v24 = vmax.f32 %v1607_v11, 0.0 }
 0x222   :  { %2656 = vst.msk [vmem:[#allocation3 + $0xc0] sm:$0xff] %vm1848_vm2, %v2544_v12  ;;  %v2600_v25 = vmax.f32 %v2233_v18, %v2457_v19  ;;  %v2289_v21 = vld [vmem:[#allocation2 + $0x6c0] ss:$2 sm:$0xff]  ;;  %v2513_v45 = vld [vmem:[#allocation2 + $0x6c1] ss:$2 sm:$0xff]  ;;  %v1675_v26 = vmax.f32 %v1106_v16, 0.0 }
 0x223   :  { %2684 = vst.msk [vmem:[#allocation3 + $0x1a0] sm:$0xff] %vm1848_vm2, %v2572_v17  ;;  %v2628_v23 = vmax.f32 %v2289_v21, %v2513_v45  ;;  %v1731_v27 = vmax.f32 %v1274_v20, 0.0 }
 0x224   :  { %2712 = vst.msk [vmem:[#allocation3 + $0x280] sm:$0xff] %vm1848_vm2, %v2600_v25 }
 0x225   :  { %2740 = vst.msk [vmem:[#allocation3 + $0x360] sm:$0xff] %vm1848_vm2, %v2628_v23  ;;  %v1441_v28 = vpop.f32.mrf.mxu2  ;;  %v1609_v29 = vpop.f32.mrf.mxu3 }
 0x226   :  { %2011 = vst.msk [vmem:[#allocation2 + $0x510] sm:$0xff] %vm1848_vm2, %v1786_v22  ;;  %v1442_v30 = vadd.f32 %v4881_v13, %v1441_v28  ;;  %v1610_v31 = vadd.f32 %v4881_v13, %v1609_v29  ;;  %v1108_v32 = vpop.f32.mrf.mxu0  ;;  %v1276_v33 = vpop.f32.mrf.mxu1 }
 0x227   :  { %2067 = vst.msk [vmem:[#allocation2 + $0x6d0] sm:$0xff] %vm1848_vm2, %v1842_v24  ;;  %v1109_v34 = vadd.f32 %v4881_v13, %v1108_v32  ;;  %v1277_v35 = vadd.f32 %v4881_v13, %v1276_v33 }
 0x228   :  { %1900 = vst.msk [vmem:[#allocation2 + $0x198] sm:$0xff] %vm1848_vm2, %v1675_v26  ;;  %v1787_v36 = vmax.f32 %v1442_v30, 0.0  ;;  %v1843_v37 = vmax.f32 %v1610_v31, 0.0 }
 0x229   :  { %1956 = vst.msk [vmem:[#allocation2 + $0x358] sm:$0xff] %vm1848_vm2, %v1731_v27  ;;  %v1676_v38 = vmax.f32 %v1109_v34, 0.0  ;;  %v1732_v39 = vmax.f32 %v1277_v35, 0.0 }
 0x22a   :  { %2012 = vst.msk [vmem:[#allocation2 + $0x518] sm:$0xff] %vm1848_vm2, %v1787_v36 }
 0x22b   :  { %2068 = vst.msk [vmem:[#allocation2 + $0x6d8] sm:$0xff] %vm1848_vm2, %v1843_v37 }
 0x22c   :  { %1901 = vst.msk [vmem:[#allocation2 + $0x1a0] sm:$0xff] %vm1848_vm2, %v1676_v38 }
 0x22d   :  { %1957 = vst.msk [vmem:[#allocation2 + $0x360] sm:$0xff] %vm1848_vm2, %v1732_v39  ;;  %v1444_v40 = vpop.f32.mrf.mxu2  ;;  %v1612_v41 = vpop.f32.mrf.mxu3 }
 0x22e   :  { %v1445_v42 = vadd.f32 %v4881_v13, %v1444_v40  ;;  %v1111_v43 = vpop.f32.mrf.mxu0  ;;  %v1279_v44 = vpop.f32.mrf.mxu1  ;;  %v1613_v48 = vadd.f32 %v4881_v13, %v1612_v41 }
 0x22f   :  { %v2123_v46 = vld [vmem:[#allocation2 + $0x190] ss:$2 sm:$0xff]  ;;  %v2347_v47 = vld [vmem:[#allocation2 + $0x191] ss:$2 sm:$0xff]  ;;  %v1112_v51 = vadd.f32 %v4881_v13, %v1111_v43  ;;  %v1280_v55 = vadd.f32 %v4881_v13, %v1279_v44 }
 0x230   :  { %v2545_v49 = vmax.f32 %v2123_v46, %v2347_v47  ;;  %v2179_v2 = vld [vmem:[#allocation2 + $0x350] ss:$2 sm:$0xff]  ;;  %v2403_v50 = vld [vmem:[#allocation2 + $0x351] ss:$2 sm:$0xff]  ;;  %v1788_v59 = vmax.f32 %v1445_v42, 0.0  ;;  %v1844_v61 = vmax.f32 %v1613_v48, 0.0 }
 0x231   :  { %v2573_v52 = vmax.f32 %v2179_v2, %v2403_v50  ;;  %v2235_v53 = vld [vmem:[#allocation2 + $0x510] ss:$2 sm:$0xff]  ;;  %v2459_v54 = vld [vmem:[#allocation2 + $0x511] ss:$2 sm:$0xff]  ;;  %v1677_v62 = vmax.f32 %v1112_v51, 0.0  ;;  %v1733_v63 = vmax.f32 %v1280_v55, 0.0 }
 0x232   :  { %2657 = vst.msk [vmem:[#allocation3 + $0xc8] sm:$0xff] %vm1848_vm2, %v2545_v49  ;;  %v2601_v56 = vmax.f32 %v2235_v53, %v2459_v54  ;;  %v2291_v57 = vld [vmem:[#allocation2 + $0x6d0] ss:$2 sm:$0xff]  ;;  %v2515_v58 = vld [vmem:[#allocation2 + $0x6d1] ss:$2 sm:$0xff] }
 0x233   :  { %2685 = vst.msk [vmem:[#allocation3 + $0x1a8] sm:$0xff] %vm1848_vm2, %v2573_v52  ;;  %v2629_v60 = vmax.f32 %v2291_v57, %v2515_v58 }
 0x234   :  { %2713 = vst.msk [vmem:[#allocation3 + $0x288] sm:$0xff] %vm1848_vm2, %v2601_v56 }
 0x235   :  { %2741 = vst.msk [vmem:[#allocation3 + $0x368] sm:$0xff] %vm1848_vm2, %v2629_v60  ;;  %v1447_v0 = vpop.f32.mrf.mxu2  ;;  %v1615_v1 = vpop.f32.mrf.mxu3 }
 0x236   :  { %2013 = vst.msk [vmem:[#allocation2 + $0x520] sm:$0xff] %vm1848_vm2, %v1788_v59  ;;  %v1448_v3 = vadd.f32 %v4881_v13, %v1447_v0  ;;  %v1616_v4 = vadd.f32 %v4881_v13, %v1615_v1  ;;  %v1114_v5 = vpop.f32.mrf.mxu0  ;;  %v1282_v6 = vpop.f32.mrf.mxu1 }
 0x237   :  { %2069 = vst.msk [vmem:[#allocation2 + $0x6e0] sm:$0xff] %vm1848_vm2, %v1844_v61  ;;  %v1115_v9 = vadd.f32 %v4881_v13, %v1114_v5  ;;  %v1283_v12 = vadd.f32 %v4881_v13, %v1282_v6 }
 0x238   :  { %1902 = vst.msk [vmem:[#allocation2 + $0x1a8] sm:$0xff] %vm1848_vm2, %v1677_v62  ;;  %v1789_v7 = vmax.f32 %v1448_v3, 0.0  ;;  %v1845_v8 = vmax.f32 %v1616_v4, 0.0 }
 0x239   :  { %v2768_v10 = vld [vmem:[#allocation3 + $0xc0] ss:$2 sm:$0xff]  ;;  %v2880_v11 = vld [vmem:[#allocation3 + $0xc1] ss:$2 sm:$0xff]  ;;  %1958 = vst.msk [vmem:[#allocation2 + $0x368] sm:$0xff] %vm1848_vm2, %v1733_v63  ;;  %v1678_v45 = vmax.f32 %v1115_v9, 0.0 }
 0x23a   :  { %v2979_v14 = vmax.f32 %v2768_v10, %v2880_v11  ;;  %v2796_v15 = vld [vmem:[#allocation3 + $0x1a0] ss:$2 sm:$0xff]  ;;  %v2908_v16 = vld [vmem:[#allocation3 + $0x1a1] ss:$2 sm:$0xff]  ;;  %2014 = vst.msk [vmem:[#allocation2 + $0x528] sm:$0xff] %vm1848_vm2, %v1789_v7  ;;  %v1734_v23 = vmax.f32 %v1283_v12, 0.0 }
 0x23b   :  { %v2993_v17 = vmax.f32 %v2796_v15, %v2908_v16  ;;  %v2824_v18 = vld [vmem:[#allocation3 + $0x280] ss:$2 sm:$0xff]  ;;  %v2936_v19 = vld [vmem:[#allocation3 + $0x281] ss:$2 sm:$0xff]  ;;  %2070 = vst.msk [vmem:[#allocation2 + $0x6e8] sm:$0xff] %vm1848_vm2, %v1845_v8 }
 0x23c   :  { %3035 = vst.msk [vmem:[%s5067_s3 + $0x60] sm:$0xff] %vm1848_vm2, %v2979_v14  ;;  %v3007_v20 = vmax.f32 %v2824_v18, %v2936_v19  ;;  %v2852_v25 = vld [vmem:[#allocation3 + $0x360] ss:$2 sm:$0xff]  ;;  %v2964_v21 = vld [vmem:[#allocation3 + $0x361] ss:$2 sm:$0xff] }
 0x23d   :  { %3049 = vst.msk [vmem:[%s5067_s3 + $0xd0] sm:$0xff] %vm1848_vm2, %v2993_v17  ;;  %v3021_v22 = vmax.f32 %v2852_v25, %v2964_v21  ;;  %v1450_v24 = vpop.f32.mrf.mxu2  ;;  %v1618_v26 = vpop.f32.mrf.mxu3 }
 0x23e   :  { %3063 = vst.msk [vmem:[%s5067_s3 + $0x140] sm:$0xff] %vm1848_vm2, %v3007_v20  ;;  %v1451_v27 = vadd.f32 %v4881_v13, %v1450_v24  ;;  %v1117_v28 = vpop.f32.mrf.mxu0  ;;  %v1285_v29 = vpop.f32.mrf.mxu1  ;;  %v1619_v32 = vadd.f32 %v4881_v13, %v1618_v26 }
 0x23f   :  { %3077 = vst.msk [vmem:[%s5067_s3 + $0x1b0] sm:$0xff] %vm1848_vm2, %v3021_v22  ;;  %v2125_v30 = vld [vmem:[#allocation2 + $0x1a0] ss:$2 sm:$0xff]  ;;  %v2349_v31 = vld [vmem:[#allocation2 + $0x1a1] ss:$2 sm:$0xff]  ;;  %v1118_v36 = vadd.f32 %v4881_v13, %v1117_v28  ;;  %v1286_v40 = vadd.f32 %v4881_v13, %v1285_v29 }
 0x240   :  { %v2546_v33 = vmax.f32 %v2125_v30, %v2349_v31  ;;  %v2181_v34 = vld [vmem:[#allocation2 + $0x360] ss:$2 sm:$0xff]  ;;  %v2405_v35 = vld [vmem:[#allocation2 + $0x361] ss:$2 sm:$0xff]  ;;  %1903 = vst.msk [vmem:[#allocation2 + $0x1b0] sm:$0xff] %vm1848_vm2, %v1678_v45  ;;  %v1790_v44 = vmax.f32 %v1451_v27, 0.0 }
 0x241   :  { %v2574_v37 = vmax.f32 %v2181_v34, %v2405_v35  ;;  %v2237_v38 = vld [vmem:[#allocation2 + $0x520] ss:$2 sm:$0xff]  ;;  %v2461_v39 = vld [vmem:[#allocation2 + $0x521] ss:$2 sm:$0xff]  ;;  %1959 = vst.msk [vmem:[#allocation2 + $0x370] sm:$0xff] %vm1848_vm2, %v1734_v23  ;;  %v1846_v47 = vmax.f32 %v1619_v32, 0.0 }
 0x242   :  { %2658 = vst.msk [vmem:[#allocation3 + $0xd0] sm:$0xff] %vm1848_vm2, %v2546_v33  ;;  %v2602_v41 = vmax.f32 %v2237_v38, %v2461_v39  ;;  %v2293_v42 = vld [vmem:[#allocation2 + $0x6e0] ss:$2 sm:$0xff]  ;;  %v2517_v43 = vld [vmem:[#allocation2 + $0x6e1] ss:$2 sm:$0xff]  ;;  %v1679_v48 = vmax.f32 %v1118_v36, 0.0 }
 0x243   :  { %2686 = vst.msk [vmem:[#allocation3 + $0x1b0] sm:$0xff] %vm1848_vm2, %v2574_v37  ;;  %v2630_v46 = vmax.f32 %v2293_v42, %v2517_v43  ;;  %v1735_v49 = vmax.f32 %v1286_v40, 0.0 }
 0x244   :  { %2714 = vst.msk [vmem:[#allocation3 + $0x290] sm:$0xff] %vm1848_vm2, %v2602_v41 }
 0x245   :  { %2742 = vst.msk [vmem:[#allocation3 + $0x370] sm:$0xff] %vm1848_vm2, %v2630_v46  ;;  %v1453_v2 = vpop.f32.mrf.mxu2  ;;  %v1621_v50 = vpop.f32.mrf.mxu3 }
 0x246   :  { %2015 = vst.msk [vmem:[#allocation2 + $0x530] sm:$0xff] %vm1848_vm2, %v1790_v44  ;;  %v1454_v51 = vadd.f32 %v4881_v13, %v1453_v2  ;;  %v1622_v52 = vadd.f32 %v4881_v13, %v1621_v50 }
 0x247   :  { %2071 = vst.msk [vmem:[#allocation2 + $0x6f0] sm:$0xff] %vm1848_vm2, %v1846_v47 }
 0x248   :  { %1904 = vst.msk [vmem:[#allocation2 + $0x1b8] sm:$0xff] %vm1848_vm2, %v1679_v48  ;;  %v1791_v53 = vmax.f32 %v1454_v51, 0.0  ;;  %v1847_v54 = vmax.f32 %v1622_v52, 0.0 }
 0x249   :  { %1960 = vst.msk [vmem:[#allocation2 + $0x378] sm:$0xff] %vm1848_vm2, %v1735_v49 }
 0x24a   :  { %2016 = vst.msk [vmem:[#allocation2 + $0x538] sm:$0xff] %vm1848_vm2, %v1791_v53 }
 0x24b   :  { %2072 = vst.msk [vmem:[#allocation2 + $0x6f8] sm:$0xff] %vm1848_vm2, %v1847_v54 }
 0x24f   :  { %v2127_v55 = vld [vmem:[#allocation2 + $0x1b0] ss:$2 sm:$0xff]  ;;  %v2351_v56 = vld [vmem:[#allocation2 + $0x1b1] ss:$2 sm:$0xff] }
 0x250   :  { %v2547_v57 = vmax.f32 %v2127_v55, %v2351_v56  ;;  %v2183_v58 = vld [vmem:[#allocation2 + $0x370] ss:$2 sm:$0xff]  ;;  %v2407_v59 = vld [vmem:[#allocation2 + $0x371] ss:$2 sm:$0xff] }
 0x251   :  { %v2575_v60 = vmax.f32 %v2183_v58, %v2407_v59  ;;  %v2239_v61 = vld [vmem:[#allocation2 + $0x530] ss:$2 sm:$0xff]  ;;  %v2463_v13 = vld [vmem:[#allocation2 + $0x531] ss:$2 sm:$0xff] }
 0x252   :  { %2659 = vst.msk [vmem:[#allocation3 + $0xd8] sm:$0xff] %vm1848_vm2, %v2547_v57  ;;  %v2603_v62 = vmax.f32 %v2239_v61, %v2463_v13  ;;  %v2295_v63 = vld [vmem:[#allocation2 + $0x6f0] ss:$2 sm:$0xff]  ;;  %v2519_v0 = vld [vmem:[#allocation2 + $0x6f1] ss:$2 sm:$0xff] }
 0x253   :  { %2687 = vst.msk [vmem:[#allocation3 + $0x1b8] sm:$0xff] %vm1848_vm2, %v2575_v60  ;;  %v2631_v1 = vmax.f32 %v2295_v63, %v2519_v0 }
 0x254   :  { %2715 = vst.msk [vmem:[#allocation3 + $0x298] sm:$0xff] %vm1848_vm2, %v2603_v62 }
 0x255   :  { %2743 = vst.msk [vmem:[#allocation3 + $0x378] sm:$0xff] %vm1848_vm2, %v2631_v1 }
 0x259   :  { %v2770_v3 = vld [vmem:[#allocation3 + $0xd0] ss:$2 sm:$0xff]  ;;  %v2882_v4 = vld [vmem:[#allocation3 + $0xd1] ss:$2 sm:$0xff] }
 0x25a   :  { %v2980_v5 = vmax.f32 %v2770_v3, %v2882_v4  ;;  %v2798_v6 = vld [vmem:[#allocation3 + $0x1b0] ss:$2 sm:$0xff]  ;;  %v2910_v7 = vld [vmem:[#allocation3 + $0x1b1] ss:$2 sm:$0xff] }
 0x25b   :  { %v2994_v8 = vmax.f32 %v2798_v6, %v2910_v7  ;;  %v2826_v9 = vld [vmem:[#allocation3 + $0x290] ss:$2 sm:$0xff]  ;;  %v2938_v10 = vld [vmem:[#allocation3 + $0x291] ss:$2 sm:$0xff] }
 0x25c   :  { %3036 = vst.msk [vmem:[%s5067_s3 + $0x68] sm:$0xff] %vm1848_vm2, %v2980_v5  ;;  %v3008_v11 = vmax.f32 %v2826_v9, %v2938_v10  ;;  %v2854_v12 = vld [vmem:[#allocation3 + $0x370] ss:$2 sm:$0xff]  ;;  %v2966_v14 = vld [vmem:[#allocation3 + $0x371] ss:$2 sm:$0xff] }
 0x25d   :  { %3050 = vst.msk [vmem:[%s5067_s3 + $0xd8] sm:$0xff] %vm1848_vm2, %v2994_v8  ;;  %v3022_v15 = vmax.f32 %v2854_v12, %v2966_v14 }
 0x25e   :  { %3064 = vst.msk [vmem:[%s5067_s3 + $0x148] sm:$0xff] %vm1848_vm2, %v3008_v11 }
 0x25f   :  { %3078 = vst.msk [vmem:[%s5067_s3 + $0x1b8] sm:$0xff] %vm1848_vm2, %v3022_v15 }
 0x260   :  { %3083 = vsyncpa [#allocation5], 1 }

// kernel: cnn_forward.5
= control target key start
LH: loop header
LB: loop body
LE: loop exit
PB: predicated region body
PF: predicated region fallthrough
CT: control target
= control target key end

     0   :  { %vm222_vm0 = vcmask 261120   ;;  %vm1002_vm1 = vcmask 523264   ;;  %s2462_s1 = inlined_call_operand.vmem [shape: f32[288,64], index: 1, kind: input, shape index: {}]   ;;  %s2463_s0 = inlined_call_operand.vmem [shape: f32[448,288], index: 0, kind: input, shape index: {}]   ;;  %s2464_s2 = inlined_call_operand.vmem [shape: f32[1,64], index: 2, kind: input, shape index: {}]   ;;  %s2465_s3 = inlined_call_operand.vmem [shape: f32[112,64], index: 3, kind: output, shape index: {}]  }
   0x1   :  { %v197_v0 = vld [vmem:[%s2462_s1 + $0x78] sm:$0xff]  ;;  %v196_v2 = vld [vmem:[%s2462_s1 + $0x70] sm:$0xff]  ;;  %v195_v5 = vld [vmem:[%s2462_s1 + $0x68] sm:$0xff] }
   0x2   :  { %v1433_v1 = vld [vmem:[%s2462_s1 + $0x118] sm:$0xff]  ;;  %391 = vmatpush.msra.mxu0 %v197_v0  ;;  %1369 = vmatpush.msra.mxu3 %v197_v0  ;;  %v1446_v4 = vld [vmem:[%s2462_s1 + $0x110] sm:$0xff]  ;;  %v1461_v7 = vld [vmem:[%s2462_s1 + $0x108] sm:$0xff] }
   0x3   :  { %v1441_v3 = vld [vmem:[%s2462_s1 + $0xf8] sm:$0xff]  ;;  %773 = vmatpush.msra.mxu2 %v1433_v1  ;;  %v1456_v6 = vld [vmem:[%s2462_s1 + $0xf0] sm:$0xff]  ;;  %v1466_v8 = vld [vmem:[%s2462_s1 + $0xe8] sm:$0xff] }
   0x4   :  { %576 = vmatpush.msra.mxu1 %v1441_v3  ;;  %392 = vmatpush.msra.mxu0 %v196_v2  ;;  %v194_v9 = vld [vmem:[%s2462_s1 + $0x60] sm:$0xff]  ;;  %v16_v12 = vld [vmem:[%s2463_s0 + $0x10] sm:$0xff]  ;;  %v193_v13 = vld [vmem:[%s2462_s1 + $0x58] sm:$0xff] }
   0x5   :  { %1370 = vmatpush.msra.mxu3 %v196_v2  ;;  %774 = vmatpush.msra.mxu2 %v1446_v4  ;;  %v1476_v10 = vld [vmem:[%s2462_s1 + $0x100] sm:$0xff]  ;;  %v1494_v14 = vld [vmem:[%s2462_s1 + $0xd8] sm:$0xff]  ;;  %v192_v15 = vld [vmem:[%s2462_s1 + $0x50] sm:$0xff] }
   0x6   :  { %577 = vmatpush.msra.mxu1 %v1456_v6  ;;  %393 = vmatpush.msra.mxu0 %v195_v5  ;;  %v1481_v11 = vld [vmem:[%s2462_s1 + $0xe0] sm:$0xff]  ;;  %v1505_v16 = vld [vmem:[%s2462_s1 + $0xd0] sm:$0xff]  ;;  %v191_v17 = vld [vmem:[%s2462_s1 + $0x48] sm:$0xff] }
   0x7   :  { %1371 = vmatpush.msra.mxu3 %v195_v5  ;;  %775 = vmatpush.msra.mxu2 %v1461_v7  ;;  %v1514_v18 = vld [vmem:[%s2462_s1 + $0xc8] sm:$0xff]  ;;  %v190_v19 = vld [vmem:[%s2462_s1 + $0x40] sm:$0xff]  ;;  %v189_v22 = vld [vmem:[%s2462_s1 + $0x38] sm:$0xff] }
   0x8   :  { %578 = vmatpush.msra.mxu1 %v1466_v8  ;;  %394 = vmatpush.msra.mxu0 %v194_v9  ;;  %v1523_v20 = vld [vmem:[%s2462_s1 + $0xc0] sm:$0xff]  ;;  %v19_v21 = vld [vmem:[%s2463_s0 + $0x28] sm:$0xff]  ;;  %v1535_v23 = vld [vmem:[%s2462_s1 + $0xb8] sm:$0xff] }
   0x9   :  { %1372 = vmatpush.msra.mxu3 %v194_v9  ;;  %776 = vmatpush.msra.mxu2 %v1476_v10  ;;  %v188_v24 = vld [vmem:[%s2462_s1 + $0x30] sm:$0xff]  ;;  %v187_v26 = vld [vmem:[%s2462_s1 + $0x28] sm:$0xff]  ;;  %v186_v28 = vld [vmem:[%s2462_s1 + $0x20] sm:$0xff] }
   0xa   :  { %579 = vmatpush.msra.mxu1 %v1481_v11  ;;  %1313 = vmatmul.msk.f32.vlgmr.msra.gmra.mxu2 %vm222_vm0, %v16_v12  ;;  %v1545_v25 = vld [vmem:[%s2462_s1 + $0xb0] sm:$0xff]  ;;  %v1554_v27 = vld [vmem:[%s2462_s1 + $0xa8] sm:$0xff]  ;;  %v1563_v29 = vld [vmem:[%s2462_s1 + $0xa0] sm:$0xff] }
   0xb   :  { %395 = vmatpush.msra.mxu0 %v193_v13  ;;  %1373 = vmatpush.msra.mxu3 %v193_v13  ;;  %v22_v30 = vld [vmem:[%s2463_s0 + $0x40] sm:$0xff]  ;;  %v185_v31 = vld [vmem:[%s2462_s1 + $0x18] sm:$0xff]  ;;  %v184_v33 = vld [vmem:[%s2462_s1 + $0x10] sm:$0xff] }
   0xc   :  { %580 = vmatpush.msra.mxu1 %v1494_v14  ;;  %v1575_v32 = vld [vmem:[%s2462_s1 + $0x98] sm:$0xff]  ;;  %v200_v34 = vld [vmem:[%s2462_s1 + $0x90] sm:$0xff]  ;;  %v183_v35 = vld [vmem:[%s2462_s1 + $0x8] sm:$0xff] }
   0xd   :  { %396 = vmatpush.msra.mxu0 %v192_v15  ;;  %1374 = vmatpush.msra.mxu3 %v192_v15  ;;  %v199_v36 = vld [vmem:[%s2462_s1 + $0x88] sm:$0xff]  ;;  %v182_v37 = vld [vmem:[%s2462_s1] sm:$0xff]  ;;  %v140_v39 = vld [vmem:[%s2463_s0 + $0x3f0] sm:$0xff] }
   0xe   :  { %581 = vmatpush.msra.mxu1 %v1505_v16  ;;  %v14_v38 = vld [vmem:[%s2463_s0] sm:$0xff]  ;;  %v25_v40 = vld [vmem:[%s2463_s0 + $0x58] sm:$0xff]  ;;  %v15_v42 = vld [vmem:[%s2463_s0 + $0x8] sm:$0xff] }
   0xf   :  { %397 = vmatpush.msra.mxu0 %v191_v17  ;;  %1375 = vmatpush.msra.mxu3 %v191_v17  ;;  %v198_v41 = vld [vmem:[%s2462_s1 + $0x80] sm:$0xff]  ;;  %v17_v43 = vld [vmem:[%s2463_s0 + $0x18] sm:$0xff]  ;;  %v143_v44 = vld [vmem:[%s2463_s0 + $0x408] sm:$0xff] }
  0x10   :  { %582 = vmatpush.msra.mxu1 %v1514_v18  ;;  %v28_v45 = vld [vmem:[%s2463_s0 + $0x70] sm:$0xff]  ;;  %v18_v46 = vld [vmem:[%s2463_s0 + $0x20] sm:$0xff]  ;;  %v31_v49 = vld [vmem:[%s2463_s0 + $0x88] sm:$0xff] }
  0x11   :  { %398 = vmatpush.msra.mxu0 %v190_v19  ;;  %1376 = vmatpush.msra.mxu3 %v190_v19  ;;  %v20_v47 = vld [vmem:[%s2463_s0 + $0x30] sm:$0xff]  ;;  %v146_v48 = vld [vmem:[%s2463_s0 + $0x420] sm:$0xff]  ;;  %v21_v50 = vld [vmem:[%s2463_s0 + $0x38] sm:$0xff] }
  0x12   :  { %583 = vmatpush.msra.mxu1 %v1523_v20  ;;  %1314 = vmatmul.msk.f32.gmra.mxu2 %vm222_vm0, %v19_v21  ;;  %v23_v51 = vld [vmem:[%s2463_s0 + $0x48] sm:$0xff]  ;;  %v149_v52 = vld [vmem:[%s2463_s0 + $0x438] sm:$0xff]  ;;  %v34_v53 = vld [vmem:[%s2463_s0 + $0xa0] sm:$0xff] }
  0x13   :  { %399 = vmatpush.msra.mxu0 %v189_v22  ;;  %1377 = vmatpush.msra.mxu3 %v189_v22  ;;  %v24_v54 = vld [vmem:[%s2463_s0 + $0x50] sm:$0xff]  ;;  %v26_v55 = vld [vmem:[%s2463_s0 + $0x60] sm:$0xff]  ;;  %v37_v57 = vld [vmem:[%s2463_s0 + $0xb8] sm:$0xff] }
  0x14   :  { %584 = vmatpush.msra.mxu1 %v1535_v23  ;;  %v152_v56 = vld [vmem:[%s2463_s0 + $0x450] sm:$0xff]  ;;  %v27_v58 = vld [vmem:[%s2463_s0 + $0x68] sm:$0xff]  ;;  %v29_v59 = vld [vmem:[%s2463_s0 + $0x78] sm:$0xff] }
  0x15   :  { %400 = vmatpush.msra.mxu0 %v188_v24  ;;  %1378 = vmatpush.msra.mxu3 %v188_v24  ;;  %v155_v60 = vld [vmem:[%s2463_s0 + $0x468] sm:$0xff]  ;;  %v40_v61 = vld [vmem:[%s2463_s0 + $0xd0] sm:$0xff]  ;;  %v30_v62 = vld [vmem:[%s2463_s0 + $0x80] sm:$0xff] }
  0x16   :  { %585 = vmatpush.msra.mxu1 %v1545_v25  ;;  %v32_v63 = vld [vmem:[%s2463_s0 + $0x90] sm:$0xff]  ;;  %v158_v0 = vld [vmem:[%s2463_s0 + $0x480] sm:$0xff]  ;;  %v33_v2 = vld [vmem:[%s2463_s0 + $0x98] sm:$0xff] }
  0x17   :  { %401 = vmatpush.msra.mxu0 %v187_v26  ;;  %1379 = vmatpush.msra.mxu3 %v187_v26  ;;  %v46_v5 = vld [vmem:[%s2463_s0 + $0x100] sm:$0xff]  ;;  %v49_v9 = vld [vmem:[%s2463_s0 + $0x118] sm:$0xff]  ;;  %v167_v12 = vld [vmem:[%s2463_s0 + $0x4c8] sm:$0xff] }
  0x18   :  { %586 = vmatpush.msra.mxu1 %v1554_v27  ;;  %v52_v13 = vld [vmem:[%s2463_s0 + $0x130] sm:$0xff]  ;;  %v55_v17 = vld [vmem:[%s2463_s0 + $0x148] sm:$0xff]  ;;  %v58_v21 = vld [vmem:[%s2463_s0 + $0x160] sm:$0xff] }
  0x19   :  { %402 = vmatpush.msra.mxu0 %v186_v28  ;;  %1380 = vmatpush.msra.mxu3 %v186_v28  ;;  %v44_v15 = vld [vmem:[%s2463_s0 + $0xf0] sm:$0xff]  ;;  %v47_v19 = vld [vmem:[%s2463_s0 + $0x108] sm:$0xff] }
  0x1a   :  { %587 = vmatpush.msra.mxu1 %v1563_v29  ;;  %1315 = vmatmul.msk.f32.gmra.mxu2 %vm222_vm0, %v22_v30  ;;  %v48_v22 = vld [vmem:[%s2463_s0 + $0x110] sm:$0xff]  ;;  %v51_v26 = vld [vmem:[%s2463_s0 + $0x128] sm:$0xff]  ;;  %v54_v30 = vld [vmem:[%s2463_s0 + $0x140] sm:$0xff] }
  0x1b   :  { %403 = vmatpush.msra.mxu0 %v185_v31  ;;  %1381 = vmatpush.msra.mxu3 %v185_v31  ;;  %v176_v24 = vld [vmem:[%s2463_s0 + $0x510] sm:$0xff]  ;;  %v179_v28 = vld [vmem:[%s2463_s0 + $0x528] sm:$0xff] }
  0x1c   :  { %588 = vmatpush.msra.mxu1 %v1575_v32 }
  0x1d   :  { %404 = vmatpush.msra.mxu0 %v184_v33  ;;  %1382 = vmatpush.msra.mxu3 %v184_v33  ;;  %v141_v33 = vld [vmem:[%s2463_s0 + $0x3f8] sm:$0xff] }
  0x1e   :  { %589 = vmatpush.msra.mxu1 %v200_v34 }
  0x1f   :  { %405 = vmatpush.msra.mxu0 %v183_v35  ;;  %1383 = vmatpush.msra.mxu3 %v183_v35  ;;  %v57_v35 = vld [vmem:[%s2463_s0 + $0x158] sm:$0xff] }
  0x20   :  { %590 = vmatpush.msra.mxu1 %v199_v36 }
  0x21   :  { %406 = vmatpush.msra.mxu0 %v182_v37  ;;  %1384 = vmatpush.msra.mxu3 %v182_v37  ;;  %v59_v37 = vld [vmem:[%s2463_s0 + $0x168] sm:$0xff] }
  0x22   :  { %407 = vmatmul.f32.vlgmr.msra.gmra.mxu0 %v14_v38  ;;  %533 = vmatmul.f32.vlgmr.msra.gmra.mxu3 %v140_v39  ;;  %v144_v38 = vld [vmem:[%s2463_s0 + $0x410] sm:$0xff]  ;;  %v70_v39 = vld [vmem:[%s2463_s0 + $0x1c0] sm:$0xff] }
  0x23   :  { %1316 = vmatmul.msk.f32.gmra.mxu2 %vm222_vm0, %v25_v40  ;;  %591 = vmatpush.msra.mxu1 %v198_v41  ;;  %v60_v40 = vld [vmem:[%s2463_s0 + $0x170] sm:$0xff] }
  0x24   :  { %1385 = vmatpush.msrb.mxu3 %v1441_v3  ;;  %592 = vmatmul.f32.vlgmr.msra.gmra.mxu1 %v15_v42  ;;  %v35_v3 = vld [vmem:[%s2463_s0 + $0xa8] sm:$0xff] }
  0x26   :  { %1386 = vmatpush.msrb.mxu3 %v1456_v6  ;;  %v36_v6 = vld [vmem:[%s2463_s0 + $0xb0] sm:$0xff] }
  0x28   :  { %1387 = vmatpush.msrb.mxu3 %v1466_v8  ;;  %v164_v8 = vld [vmem:[%s2463_s0 + $0x4b0] sm:$0xff] }
  0x2a   :  { %410 = vmatmul.f32.gmra.mxu0 %v17_v43  ;;  %1388 = vmatpush.msrb.mxu3 %v1481_v11  ;;  %v41_v11 = vld [vmem:[%s2463_s0 + $0xd8] sm:$0xff] }
  0x2b   :  { %536 = vmatmul.f32.gmra.mxu3 %v143_v44  ;;  %1317 = vmatmul.msk.f32.gmra.mxu2 %vm222_vm0, %v28_v45  ;;  %v62_v44 = vld [vmem:[%s2463_s0 + $0x180] sm:$0xff] }
  0x2c   :  { %1389 = vmatpush.msrb.mxu3 %v1494_v14  ;;  %595 = vmatmul.f32.gmra.mxu1 %v18_v46  ;;  %v42_v14 = vld [vmem:[%s2463_s0 + $0xe0] sm:$0xff]  ;;  %v147_v46 = vld [vmem:[%s2463_s0 + $0x428] sm:$0xff] }
  0x2e   :  { %1390 = vmatpush.msrb.mxu3 %v1505_v16  ;;  %v170_v16 = vld [vmem:[%s2463_s0 + $0x4e0] sm:$0xff] }
  0x30   :  { %1391 = vmatpush.msrb.mxu3 %v1514_v18  ;;  %v45_v18 = vld [vmem:[%s2463_s0 + $0xf8] sm:$0xff] }
  0x32   :  { %413 = vmatmul.f32.gmra.mxu0 %v20_v47  ;;  %1392 = vmatpush.msrb.mxu3 %v1523_v20  ;;  %v173_v20 = vld [vmem:[%s2463_s0 + $0x4f8] sm:$0xff] }
  0x33   :  { %539 = vmatmul.f32.gmra.mxu3 %v146_v48  ;;  %1318 = vmatmul.msk.f32.gmra.mxu2 %vm222_vm0, %v31_v49  ;;  %v73_v47 = vld [vmem:[%s2463_s0 + $0x1d8] sm:$0xff]  ;;  %v63_v49 = vld [vmem:[%s2463_s0 + $0x188] sm:$0xff] }
  0x34   :  { %1393 = vmatpush.msrb.mxu3 %v1535_v23  ;;  %598 = vmatmul.f32.gmra.mxu1 %v21_v50  ;;  %v50_v23 = vld [vmem:[%s2463_s0 + $0x120] sm:$0xff] }
  0x36   :  { %1394 = vmatpush.msrb.mxu3 %v1545_v25  ;;  %v61_v25 = vld [vmem:[%s2463_s0 + $0x178] sm:$0xff] }
  0x38   :  { %1395 = vmatpush.msrb.mxu3 %v1554_v27  ;;  %v53_v27 = vld [vmem:[%s2463_s0 + $0x138] sm:$0xff] }
  0x3a   :  { %416 = vmatmul.f32.gmra.mxu0 %v23_v51  ;;  %1396 = vmatpush.msrb.mxu3 %v1563_v29  ;;  %v64_v29 = vld [vmem:[%s2463_s0 + $0x190] sm:$0xff] }
  0x3b   :  { %542 = vmatmul.f32.gmra.mxu3 %v149_v52  ;;  %1319 = vmatmul.msk.f32.gmra.mxu2 %vm222_vm0, %v34_v53 }
  0x3c   :  { %1397 = vmatpush.msrb.mxu3 %v1575_v32  ;;  %601 = vmatmul.f32.gmra.mxu1 %v24_v54  ;;  %v56_v32 = vld [vmem:[%s2463_s0 + $0x150] sm:$0xff] }
  0x3e   :  { %1398 = vmatpush.msrb.mxu3 %v200_v34  ;;  %v67_v34 = vld [vmem:[%s2463_s0 + $0x1a8] sm:$0xff] }
  0x40   :  { %1399 = vmatpush.msrb.mxu3 %v199_v36 }
  0x42   :  { %419 = vmatmul.f32.gmra.mxu0 %v26_v55  ;;  %1400 = vmatpush.msrb.mxu3 %v198_v41  ;;  %v1826_v41 = vld [vmem:[%s2464_s2] ss:$0 sm:$0xff] }
  0x43   :  { %545 = vmatmul.f32.gmra.mxu3 %v152_v56  ;;  %1320 = vmatmul.msk.f32.gmra.mxu2 %vm222_vm0, %v37_v57  ;;  %v65_v56 = vld [vmem:[%s2463_s0 + $0x198] sm:$0xff] }
  0x44   :  { %1401 = vmatpush.msra.mxu3 %v1433_v1  ;;  %604 = vmatmul.f32.gmra.mxu1 %v27_v58  ;;  %v43_v1 = vld [vmem:[%s2463_s0 + $0xe8] sm:$0xff]  ;;  %v150_v58 = vld [vmem:[%s2463_s0 + $0x440] sm:$0xff] }
  0x46   :  { %1402 = vmatpush.msra.mxu3 %v1446_v4  ;;  %v161_v4 = vld [vmem:[%s2463_s0 + $0x498] sm:$0xff] }
  0x48   :  { %1403 = vmatpush.msra.mxu3 %v1461_v7  ;;  %v38_v7 = vld [vmem:[%s2463_s0 + $0xc0] sm:$0xff] }
  0x4a   :  { %422 = vmatmul.f32.gmra.mxu0 %v29_v59  ;;  %1404 = vmatpush.msra.mxu3 %v1476_v10  ;;  %v39_v10 = vld [vmem:[%s2463_s0 + $0xc8] sm:$0xff]  ;;  %v76_v59 = vld [vmem:[%s2463_s0 + $0x1f0] sm:$0xff] }
  0x4b   :  { %548 = vmatmul.f32.gmra.mxu3 %v155_v60  ;;  %1321 = vmatmul.msk.f32.gmra.mxu2 %vm222_vm0, %v40_v61  ;;  %v66_v61 = vld [vmem:[%s2463_s0 + $0x1a0] sm:$0xff] }
  0x4c   :  { %607 = vmatmul.f32.gmra.mxu1 %v30_v62 }
  0x52   :  { %425 = vmatmul.f32.gmra.mxu0 %v32_v63 }
  0x53   :  { %551 = vmatmul.f32.gmra.mxu3 %v158_v0  ;;  %1322 = vmatmul.msk.f32.gmra.mxu2 %vm222_vm0, %v43_v1 }
  0x54   :  { %610 = vmatmul.f32.gmra.mxu1 %v33_v2 }
  0x5a   :  { %428 = vmatmul.f32.gmra.mxu0 %v35_v3 }
  0x5b   :  { %554 = vmatmul.f32.gmra.mxu3 %v161_v4  ;;  %1323 = vmatmul.msk.f32.gmra.mxu2 %vm222_vm0, %v46_v5  ;;  %v68_v4 = vld [vmem:[%s2463_s0 + $0x1b0] sm:$0xff] }
  0x5c   :  { %613 = vmatmul.f32.gmra.mxu1 %v36_v6  ;;  %v153_v6 = vld [vmem:[%s2463_s0 + $0x458] sm:$0xff] }
  0x62   :  { %431 = vmatmul.f32.gmra.mxu0 %v38_v7  ;;  %v79_v7 = vld [vmem:[%s2463_s0 + $0x208] sm:$0xff] }
  0x63   :  { %557 = vmatmul.f32.gmra.mxu3 %v164_v8  ;;  %1324 = vmatmul.msk.f32.gmra.mxu2 %vm222_vm0, %v49_v9  ;;  %v69_v9 = vld [vmem:[%s2463_s0 + $0x1b8] sm:$0xff] }
  0x64   :  { %616 = vmatmul.f32.gmra.mxu1 %v39_v10 }
  0x6a   :  { %434 = vmatmul.f32.gmra.mxu0 %v41_v11 }
  0x6b   :  { %560 = vmatmul.f32.gmra.mxu3 %v167_v12  ;;  %1325 = vmatmul.msk.f32.gmra.mxu2 %vm222_vm0, %v52_v13 }
  0x6c   :  { %619 = vmatmul.f32.gmra.mxu1 %v42_v14 }
  0x72   :  { %437 = vmatmul.f32.gmra.mxu0 %v44_v15 }
  0x73   :  { %563 = vmatmul.f32.gmra.mxu3 %v170_v16  ;;  %1326 = vmatmul.msk.f32.gmra.mxu2 %vm222_vm0, %v55_v17  ;;  %v71_v16 = vld [vmem:[%s2463_s0 + $0x1c8] sm:$0xff]  ;;  %v156_v17 = vld [vmem:[%s2463_s0 + $0x470] sm:$0xff] }
  0x74   :  { %622 = vmatmul.f32.gmra.mxu1 %v45_v18 }
  0x7a   :  { %440 = vmatmul.f32.gmra.mxu0 %v47_v19 }
  0x7b   :  { %566 = vmatmul.f32.gmra.mxu3 %v173_v20  ;;  %1327 = vmatmul.msk.f32.gmra.mxu2 %vm222_vm0, %v58_v21  ;;  %v82_v21 = vld [vmem:[%s2463_s0 + $0x220] sm:$0xff] }
  0x7c   :  { %625 = vmatmul.f32.gmra.mxu1 %v48_v22 }
  0x82   :  { %443 = vmatmul.f32.gmra.mxu0 %v50_v23 }
  0x83   :  { %569 = vmatmul.f32.gmra.mxu3 %v176_v24  ;;  %1328 = vmatmul.msk.f32.gmra.mxu2 %vm222_vm0, %v61_v25  ;;  %v72_v24 = vld [vmem:[%s2463_s0 + $0x1d0] sm:$0xff] }
  0x84   :  { %628 = vmatmul.f32.gmra.mxu1 %v51_v26 }
  0x8a   :  { %446 = vmatmul.f32.gmra.mxu0 %v53_v27 }
  0x8b   :  { %572 = vmatmul.f32.gmra.mxu3 %v179_v28  ;;  %1329 = vmatmul.msk.f32.gmra.mxu2 %vm222_vm0, %v64_v29 }
  0x8c   :  { %631 = vmatmul.f32.gmra.mxu1 %v54_v30 }
  0x8d   :  { %v778_v31 = vpop.f32.mrf.mxu2 }
  0x92   :  { %449 = vmatmul.f32.gmra.mxu0 %v56_v32 }
  0x93   :  { %718 = vmatmul.f32.vlgmr.msrb.gmra.mxu3 %v141_v33  ;;  %1330 = vmatmul.msk.f32.gmra.mxu2 %vm222_vm0, %v67_v34  ;;  %v159_v33 = vld [vmem:[%s2463_s0 + $0x488] sm:$0xff]  ;;  %v85_v34 = vld [vmem:[%s2463_s0 + $0x238] sm:$0xff] }
  0x94   :  { %634 = vmatmul.f32.gmra.mxu1 %v57_v35 }
  0x95   :  { %v781_v36 = vpop.f32.mrf.mxu2 }
  0x9a   :  { %452 = vmatmul.f32.gmra.mxu0 %v59_v37 }
  0x9b   :  { %721 = vmatmul.f32.gmra.mxu3 %v144_v38  ;;  %1331 = vmatmul.msk.f32.gmra.mxu2 %vm222_vm0, %v70_v39 }
  0x9c   :  { %637 = vmatmul.f32.gmra.mxu1 %v60_v40 }
  0x9d   :  { %v784_v42 = vpop.f32.mrf.mxu2 }
  0x9f   :  { %v408_v43 = vpop.f32.mrf.mxu0 }
  0xa0   :  { %v409_v45 = vadd.f32 %v1826_v41, %v408_v43 }
  0xa1   :  { %v593_v48 = vpop.f32.mrf.mxu1 }
  0xa2   :  { %455 = vmatmul.f32.gmra.mxu0 %v62_v44  ;;  %v594_v50 = vadd.f32 %v593_v48, %v409_v45  ;;  %v77_v44 = vld [vmem:[%s2463_s0 + $0x1f8] sm:$0xff]  ;;  %v162_v45 = vld [vmem:[%s2463_s0 + $0x4a0] sm:$0xff] }
  0xa3   :  { %724 = vmatmul.f32.gmra.mxu3 %v147_v46  ;;  %1332 = vmatmul.msk.f32.gmra.mxu2 %vm222_vm0, %v73_v47 }
  0xa4   :  { %v779_v51 = vadd.f32 %v778_v31, %v594_v50  ;;  %640 = vmatmul.f32.gmra.mxu1 %v63_v49  ;;  %v74_v31 = vld [vmem:[%s2463_s0 + $0x1e0] sm:$0xff]  ;;  %v88_v49 = vld [vmem:[%s2463_s0 + $0x250] sm:$0xff] }
  0xa5   :  { %v1842_v52 = vpop.f32.mrf.mxu3 }
  0xa6   :  { %v787_v53 = vpop.f32.mrf.mxu2  ;;  %v946_v54 = vmax.f32 %v779_v51, 0.0 }
  0xa7   :  { %v411_v55 = vpop.f32.mrf.mxu0 }
  0xa8   :  { %v412_v57 = vadd.f32 %v1826_v41, %v411_v55  ;;  %1003 = vst.msk [vmem:[#allocation2] sm:$0xff] %vm1002_vm1, %v946_v54 }
  0xa9   :  { %v596_v60 = vpop.f32.mrf.mxu1 }
  0xaa   :  { %458 = vmatmul.f32.gmra.mxu0 %v65_v56  ;;  %v597_v62 = vadd.f32 %v596_v60, %v412_v57  ;;  %v80_v60 = vld [vmem:[%s2463_s0 + $0x210] sm:$0xff] }
  0xab   :  { %727 = vmatmul.f32.gmra.mxu3 %v150_v58  ;;  %1333 = vmatmul.msk.f32.gmra.mxu2 %vm222_vm0, %v76_v59 }
  0xac   :  { %v782_v63 = vadd.f32 %v781_v36, %v597_v62  ;;  %643 = vmatmul.f32.gmra.mxu1 %v66_v61  ;;  %v75_v36 = vld [vmem:[%s2463_s0 + $0x1e8] sm:$0xff]  ;;  %v165_v62 = vld [vmem:[%s2463_s0 + $0x4b8] sm:$0xff] }
  0xae   :  { %v1859_v0 = vpop.f32.mrf.mxu3  ;;  %v790_v1 = vpop.f32.mrf.mxu2  ;;  %v947_v2 = vmax.f32 %v782_v63, 0.0  ;;  %v91_v63 = vld [vmem:[%s2463_s0 + $0x268] sm:$0xff] }
  0xaf   :  { %v414_v3 = vpop.f32.mrf.mxu0 }
  0xb0   :  { %v415_v5 = vadd.f32 %v1826_v41, %v414_v3  ;;  %1004 = vst.msk [vmem:[#allocation2 + $0x8] sm:$0xff] %vm1002_vm1, %v947_v2 }
  0xb1   :  { %v599_v8 = vpop.f32.mrf.mxu1 }
  0xb2   :  { %461 = vmatmul.f32.gmra.mxu0 %v68_v4  ;;  %v600_v10 = vadd.f32 %v599_v8, %v415_v5  ;;  %v81_v4 = vld [vmem:[%s2463_s0 + $0x218] sm:$0xff] }
  0xb3   :  { %730 = vmatmul.f32.gmra.mxu3 %v153_v6  ;;  %1334 = vmatmul.msk.f32.gmra.mxu2 %vm222_vm0, %v79_v7 }
  0xb4   :  { %v785_v11 = vadd.f32 %v784_v42, %v600_v10  ;;  %646 = vmatmul.f32.gmra.mxu1 %v69_v9 }
  0xb6   :  { %v1876_v12 = vpop.f32.mrf.mxu3  ;;  %v793_v13 = vpop.f32.mrf.mxu2  ;;  %v948_v14 = vmax.f32 %v785_v11, 0.0 }
  0xb7   :  { %v417_v15 = vpop.f32.mrf.mxu0  ;;  %v1059_v18 = vld [vmem:[#allocation2] ss:$2 sm:$0xff]  ;;  %v1115_v19 = vld [vmem:[#allocation2 + $0x1] ss:$2 sm:$0xff] }
  0xb8   :  { %v418_v20 = vadd.f32 %v1826_v41, %v417_v15  ;;  %v1170_v22 = vmax.f32 %v1059_v18, %v1115_v19  ;;  %1005 = vst.msk [vmem:[#allocation2 + $0x10] sm:$0xff] %vm1002_vm1, %v948_v14  ;;  %v168_v14 = vld [vmem:[%s2463_s0 + $0x4d0] sm:$0xff]  ;;  %v94_v18 = vld [vmem:[%s2463_s0 + $0x280] sm:$0xff] }
  0xb9   :  { %v602_v23 = vpop.f32.mrf.mxu1 }
  0xba   :  { %464 = vmatmul.f32.gmra.mxu0 %v71_v16  ;;  %1198 = vst.msk [vmem:[#allocation3] sm:$0xff] %vm1002_vm1, %v1170_v22  ;;  %v603_v25 = vadd.f32 %v602_v23, %v418_v20 }
  0xbb   :  { %733 = vmatmul.f32.gmra.mxu3 %v156_v17  ;;  %1335 = vmatmul.msk.f32.gmra.mxu2 %vm222_vm0, %v82_v21  ;;  %v84_v21 = vld [vmem:[%s2463_s0 + $0x230] sm:$0xff] }
  0xbc   :  { %v788_v26 = vadd.f32 %v787_v53, %v603_v25  ;;  %649 = vmatmul.f32.gmra.mxu1 %v72_v24  ;;  %v78_v53 = vld [vmem:[%s2463_s0 + $0x200] sm:$0xff] }
  0xbe   :  { %v1894_v27 = vpop.f32.mrf.mxu3  ;;  %v796_v28 = vpop.f32.mrf.mxu2  ;;  %v949_v29 = vmax.f32 %v788_v26, 0.0 }
  0xbf   :  { %v420_v30 = vpop.f32.mrf.mxu0 }
  0xc0   :  { %v421_v32 = vadd.f32 %v1826_v41, %v420_v30  ;;  %1006 = vst.msk [vmem:[#allocation2 + $0x18] sm:$0xff] %vm1002_vm1, %v949_v29  ;;  %v86_v29 = vld [vmem:[%s2463_s0 + $0x240] sm:$0xff] }
  0xc1   :  { %v605_v35 = vpop.f32.mrf.mxu1 }
  0xc2   :  { %467 = vmatmul.f32.gmra.mxu0 %v74_v31  ;;  %v606_v37 = vadd.f32 %v605_v35, %v421_v32  ;;  %v171_v31 = vld [vmem:[%s2463_s0 + $0x4e8] sm:$0xff]  ;;  %v97_v32 = vld [vmem:[%s2463_s0 + $0x298] sm:$0xff] }
  0xc3   :  { %736 = vmatmul.f32.gmra.mxu3 %v159_v33  ;;  %1336 = vmatmul.msk.f32.gmra.mxu2 %vm222_vm0, %v85_v34  ;;  %v87_v34 = vld [vmem:[%s2463_s0 + $0x248] sm:$0xff] }
  0xc4   :  { %v791_v38 = vadd.f32 %v790_v1, %v606_v37  ;;  %652 = vmatmul.f32.gmra.mxu1 %v75_v36 }
  0xc6   :  { %v1911_v39 = vpop.f32.mrf.mxu3  ;;  %v799_v40 = vpop.f32.mrf.mxu2  ;;  %v950_v42 = vmax.f32 %v791_v38, 0.0 }
  0xc7   :  { %v423_v43 = vpop.f32.mrf.mxu0  ;;  %v1061_v46 = vld [vmem:[#allocation2 + $0x10] ss:$2 sm:$0xff]  ;;  %v1117_v47 = vld [vmem:[#allocation2 + $0x11] ss:$2 sm:$0xff] }
  0xc8   :  { %v424_v48 = vadd.f32 %v1826_v41, %v423_v43  ;;  %v1171_v50 = vmax.f32 %v1061_v46, %v1117_v47  ;;  %1007 = vst.msk [vmem:[#allocation2 + $0x20] sm:$0xff] %vm1002_vm1, %v950_v42  ;;  %v89_v43 = vld [vmem:[%s2463_s0 + $0x258] sm:$0xff] }
  0xc9   :  { %v608_v51 = vpop.f32.mrf.mxu1 }
  0xca   :  { %470 = vmatmul.f32.gmra.mxu0 %v77_v44  ;;  %1199 = vst.msk [vmem:[#allocation3 + $0x8] sm:$0xff] %vm1002_vm1, %v1171_v50  ;;  %v609_v54 = vadd.f32 %v608_v51, %v424_v48  ;;  %v174_v44 = vld [vmem:[%s2463_s0 + $0x500] sm:$0xff]  ;;  %v100_v48 = vld [vmem:[%s2463_s0 + $0x2b0] sm:$0xff] }
  0xcb   :  { %739 = vmatmul.f32.gmra.mxu3 %v162_v45  ;;  %1337 = vmatmul.msk.f32.gmra.mxu2 %vm222_vm0, %v88_v49  ;;  %v90_v51 = vld [vmem:[%s2463_s0 + $0x260] sm:$0xff] }
  0xcc   :  { %v794_v55 = vadd.f32 %v793_v13, %v609_v54  ;;  %655 = vmatmul.f32.gmra.mxu1 %v78_v53  ;;  %v83_v13 = vld [vmem:[%s2463_s0 + $0x228] sm:$0xff] }
  0xce   :  { %v1929_v56 = vpop.f32.mrf.mxu3  ;;  %v802_v57 = vpop.f32.mrf.mxu2  ;;  %v951_v58 = vmax.f32 %v794_v55, 0.0 }
  0xcf   :  { %v426_v59 = vpop.f32.mrf.mxu0 }
  0xd0   :  { %v427_v61 = vadd.f32 %v1826_v41, %v426_v59  ;;  %1008 = vst.msk [vmem:[#allocation2 + $0x28] sm:$0xff] %vm1002_vm1, %v951_v58 }
  0xd1   :  { %v1226_v1 = vld [vmem:[#allocation3] ss:$2 sm:$0xff]  ;;  %v1254_v2 = vld [vmem:[#allocation3 + $0x1] ss:$2 sm:$0xff]  ;;  %v611_v3 = vpop.f32.mrf.mxu1 }
  0xd2   :  { %473 = vmatmul.f32.gmra.mxu0 %v80_v60  ;;  %v1281_v5 = vmax.f32 %v1226_v1, %v1254_v2  ;;  %v612_v6 = vadd.f32 %v611_v3, %v427_v61  ;;  %v92_v60 = vld [vmem:[%s2463_s0 + $0x270] sm:$0xff] }
  0xd3   :  { %742 = vmatmul.f32.gmra.mxu3 %v165_v62  ;;  %1338 = vmatmul.msk.f32.gmra.mxu2 %vm222_vm0, %v91_v63  ;;  %v177_v62 = vld [vmem:[%s2463_s0 + $0x518] sm:$0xff]  ;;  %v103_v63 = vld [vmem:[%s2463_s0 + $0x2c8] sm:$0xff] }
  0xd4   :  { %1295 = vst.msk [vmem:[%s2465_s3] sm:$0xff] %vm1002_vm1, %v1281_v5  ;;  %v797_v7 = vadd.f32 %v796_v28, %v612_v6  ;;  %658 = vmatmul.f32.gmra.mxu1 %v81_v4  ;;  %v93_v4 = vld [vmem:[%s2463_s0 + $0x278] sm:$0xff] }
  0xd6   :  { %v1950_v8 = vpop.f32.mrf.mxu3  ;;  %v805_v9 = vpop.f32.mrf.mxu2  ;;  %v952_v10 = vmax.f32 %v797_v7, 0.0 }
  0xd7   :  { %v429_v11 = vpop.f32.mrf.mxu0  ;;  %v1063_v15 = vld [vmem:[#allocation2 + $0x20] ss:$2 sm:$0xff]  ;;  %v1119_v16 = vld [vmem:[#allocation2 + $0x21] ss:$2 sm:$0xff] }
  0xd8   :  { %v430_v17 = vadd.f32 %v1826_v41, %v429_v11  ;;  %v1172_v19 = vmax.f32 %v1063_v15, %v1119_v16  ;;  %1009 = vst.msk [vmem:[#allocation2 + $0x30] sm:$0xff] %vm1002_vm1, %v952_v10  ;;  %v180_v15 = vld [vmem:[%s2463_s0 + $0x530] sm:$0xff] }
  0xd9   :  { %v614_v20 = vpop.f32.mrf.mxu1 }
  0xda   :  { %476 = vmatmul.f32.gmra.mxu0 %v83_v13  ;;  %1200 = vst.msk [vmem:[#allocation3 + $0x10] sm:$0xff] %vm1002_vm1, %v1172_v19  ;;  %v615_v22 = vadd.f32 %v614_v20, %v430_v17  ;;  %v106_v19 = vld [vmem:[%s2463_s0 + $0x2e0] sm:$0xff] }
  0xdb   :  { %745 = vmatmul.f32.gmra.mxu3 %v168_v14  ;;  %1339 = vmatmul.msk.f32.gmra.mxu2 %vm222_vm0, %v94_v18  ;;  %v95_v14 = vld [vmem:[%s2463_s0 + $0x288] sm:$0xff] }
  0xdc   :  { %v800_v23 = vadd.f32 %v799_v40, %v615_v22  ;;  %661 = vmatmul.f32.gmra.mxu1 %v84_v21  ;;  %v96_v22 = vld [vmem:[%s2463_s0 + $0x290] sm:$0xff] }
  0xde   :  { %v1968_v24 = vpop.f32.mrf.mxu3  ;;  %v808_v25 = vpop.f32.mrf.mxu2  ;;  %v953_v26 = vmax.f32 %v800_v23, 0.0 }
  0xdf   :  { %v432_v28 = vpop.f32.mrf.mxu0 }
  0xe0   :  { %v433_v30 = vadd.f32 %v1826_v41, %v432_v28  ;;  %1010 = vst.msk [vmem:[#allocation2 + $0x38] sm:$0xff] %vm1002_vm1, %v953_v26 }
  0xe1   :  { %v617_v33 = vpop.f32.mrf.mxu1 }
  0xe2   :  { %479 = vmatmul.f32.gmra.mxu0 %v86_v29  ;;  %v618_v35 = vadd.f32 %v617_v33, %v433_v30  ;;  %v109_v33 = vld [vmem:[%s2463_s0 + $0x2f8] sm:$0xff] }
  0xe3   :  { %748 = vmatmul.f32.gmra.mxu3 %v171_v31  ;;  %1340 = vmatmul.msk.f32.gmra.mxu2 %vm222_vm0, %v97_v32  ;;  %v98_v31 = vld [vmem:[%s2463_s0 + $0x2a0] sm:$0xff] }
  0xe4   :  { %v803_v36 = vadd.f32 %v802_v57, %v618_v35  ;;  %664 = vmatmul.f32.gmra.mxu1 %v87_v34  ;;  %v151_v34 = vld [vmem:[%s2463_s0 + $0x448] sm:$0xff] }
  0xe6   :  { %v1985_v37 = vpop.f32.mrf.mxu3  ;;  %v811_v38 = vpop.f32.mrf.mxu2  ;;  %v954_v40 = vmax.f32 %v803_v36, 0.0  ;;  %v99_v36 = vld [vmem:[%s2463_s0 + $0x2a8] sm:$0xff] }
  0xe7   :  { %v435_v42 = vpop.f32.mrf.mxu0  ;;  %v1065_v45 = vld [vmem:[#allocation2 + $0x30] ss:$2 sm:$0xff]  ;;  %v1121_v46 = vld [vmem:[#allocation2 + $0x31] ss:$2 sm:$0xff] }
  0xe8   :  { %v436_v47 = vadd.f32 %v1826_v41, %v435_v42  ;;  %v1173_v49 = vmax.f32 %v1065_v45, %v1121_v46  ;;  %1011 = vst.msk [vmem:[#allocation2 + $0x40] sm:$0xff] %vm1002_vm1, %v954_v40  ;;  %v101_v46 = vld [vmem:[%s2463_s0 + $0x2b8] sm:$0xff] }
  0xe9   :  { %v620_v50 = vpop.f32.mrf.mxu1 }
  0xea   :  { %482 = vmatmul.f32.gmra.mxu0 %v89_v43  ;;  %1201 = vst.msk [vmem:[#allocation3 + $0x18] sm:$0xff] %vm1002_vm1, %v1173_v49  ;;  %v621_v53 = vadd.f32 %v620_v50, %v436_v47  ;;  %v112_v47 = vld [vmem:[%s2463_s0 + $0x310] sm:$0xff] }
  0xeb   :  { %751 = vmatmul.f32.gmra.mxu3 %v174_v44  ;;  %1341 = vmatmul.msk.f32.gmra.mxu2 %vm222_vm0, %v100_v48 }
  0xec   :  { %v806_v54 = vadd.f32 %v805_v9, %v621_v53  ;;  %667 = vmatmul.f32.gmra.mxu1 %v90_v51  ;;  %v154_v51 = vld [vmem:[%s2463_s0 + $0x460] sm:$0xff] }
  0xee   :  { %v2003_v55 = vpop.f32.mrf.mxu3  ;;  %v814_v57 = vpop.f32.mrf.mxu2  ;;  %v955_v58 = vmax.f32 %v806_v54, 0.0 }
  0xef   :  { %v438_v59 = vpop.f32.mrf.mxu0 }
  0xf0   :  { %v439_v61 = vadd.f32 %v1826_v41, %v438_v59  ;;  %1012 = vst.msk [vmem:[#allocation2 + $0x48] sm:$0xff] %vm1002_vm1, %v955_v58 }
  0xf1   :  { %v1228_v1 = vld [vmem:[#allocation3 + $0x10] ss:$2 sm:$0xff]  ;;  %v1256_v2 = vld [vmem:[#allocation3 + $0x11] ss:$2 sm:$0xff]  ;;  %v623_v3 = vpop.f32.mrf.mxu1 }
  0xf2   :  { %485 = vmatmul.f32.gmra.mxu0 %v92_v60  ;;  %v1282_v5 = vmax.f32 %v1228_v1, %v1256_v2  ;;  %v624_v6 = vadd.f32 %v623_v3, %v439_v61  ;;  %v104_v1 = vld [vmem:[%s2463_s0 + $0x2d0] sm:$0xff]  ;;  %v115_v3 = vld [vmem:[%s2463_s0 + $0x328] sm:$0xff] }
  0xf3   :  { %754 = vmatmul.f32.gmra.mxu3 %v177_v62  ;;  %1342 = vmatmul.msk.f32.gmra.mxu2 %vm222_vm0, %v103_v63 }
  0xf4   :  { %1296 = vst.msk [vmem:[%s2465_s3 + $0x8] sm:$0xff] %vm1002_vm1, %v1282_v5  ;;  %v809_v7 = vadd.f32 %v808_v25, %v624_v6  ;;  %670 = vmatmul.f32.gmra.mxu1 %v93_v4  ;;  %v157_v4 = vld [vmem:[%s2463_s0 + $0x478] sm:$0xff] }
  0xf6   :  { %v2024_v9 = vpop.f32.mrf.mxu3  ;;  %v817_v10 = vpop.f32.mrf.mxu2  ;;  %v956_v11 = vmax.f32 %v809_v7, 0.0 }
  0xf7   :  { %v441_v13 = vpop.f32.mrf.mxu0  ;;  %v1067_v16 = vld [vmem:[#allocation2 + $0x40] ss:$2 sm:$0xff]  ;;  %v1123_v17 = vld [vmem:[#allocation2 + $0x41] ss:$2 sm:$0xff] }
  0xf8   :  { %v442_v18 = vadd.f32 %v1826_v41, %v441_v13  ;;  %v1174_v20 = vmax.f32 %v1067_v16, %v1123_v17  ;;  %1013 = vst.msk [vmem:[#allocation2 + $0x50] sm:$0xff] %vm1002_vm1, %v956_v11 }
  0xf9   :  { %v626_v21 = vpop.f32.mrf.mxu1 }
  0xfa   :  { %488 = vmatmul.f32.gmra.mxu0 %v95_v14  ;;  %1202 = vst.msk [vmem:[#allocation3 + $0x20] sm:$0xff] %vm1002_vm1, %v1174_v20  ;;  %v627_v23 = vadd.f32 %v626_v21, %v442_v18  ;;  %v535_v14 = vadd.f32 %v1826_v41, %v1842_v52  ;;  %v107_v21 = vld [vmem:[%s2463_s0 + $0x2e8] sm:$0xff]  ;;  %v118_v52 = vld [vmem:[%s2463_s0 + $0x340] sm:$0xff] }
  0xfb   :  { %757 = vmatmul.f32.gmra.mxu3 %v180_v15  ;;  %1343 = vmatmul.msk.f32.gmra.mxu2 %vm222_vm0, %v106_v19 }
  0xfc   :  { %v812_v25 = vadd.f32 %v811_v38, %v627_v23  ;;  %673 = vmatmul.f32.gmra.mxu1 %v96_v22 }
  0xfe   :  { %v2042_v26 = vpop.f32.mrf.mxu3  ;;  %v820_v28 = vpop.f32.mrf.mxu2  ;;  %v957_v29 = vmax.f32 %v812_v25, 0.0 }
  0xff   :  { %v444_v30 = vpop.f32.mrf.mxu0 }
 0x100   :  { %v445_v32 = vadd.f32 %v1826_v41, %v444_v30  ;;  %1014 = vst.msk [vmem:[#allocation2 + $0x58] sm:$0xff] %vm1002_vm1, %v957_v29 }
 0x101   :  { %v629_v35 = vpop.f32.mrf.mxu1 }
 0x102   :  { %491 = vmatmul.f32.gmra.mxu0 %v98_v31  ;;  %v630_v38 = vadd.f32 %v629_v35, %v445_v32  ;;  %v108_v31 = vld [vmem:[%s2463_s0 + $0x2f0] sm:$0xff] }
 0x103   :  { %1344 = vmatmul.msk.f32.gmra.mxu2 %vm222_vm0, %v109_v33  ;;  %1358 = vmatmul.msk.f32.vlgmr.msra.gmra.mxu3 %vm222_vm0, %v151_v34  ;;  %v538_v33 = vadd.f32 %v1826_v41, %v1859_v0  ;;  %v163_v0 = vld [vmem:[%s2463_s0 + $0x4a8] sm:$0xff] }
 0x104   :  { %v815_v40 = vadd.f32 %v814_v57, %v630_v38  ;;  %676 = vmatmul.f32.gmra.mxu1 %v99_v36  ;;  %v102_v57 = vld [vmem:[%s2463_s0 + $0x2c0] sm:$0xff] }
 0x106   :  { %v2060_v42 = vpop.f32.mrf.mxu3  ;;  %v2062_v43 = vpop.f32.mrf.mxu2  ;;  %v958_v44 = vmax.f32 %v815_v40, 0.0 }
 0x107   :  { %v447_v45 = vpop.f32.mrf.mxu0  ;;  %v1069_v48 = vld [vmem:[#allocation2 + $0x50] ss:$2 sm:$0xff]  ;;  %v1125_v49 = vld [vmem:[#allocation2 + $0x51] ss:$2 sm:$0xff] }
 0x108   :  { %v448_v50 = vadd.f32 %v1826_v41, %v447_v45  ;;  %v1175_v53 = vmax.f32 %v1069_v48, %v1125_v49  ;;  %1015 = vst.msk [vmem:[#allocation2 + $0x60] sm:$0xff] %vm1002_vm1, %v958_v44  ;;  %v110_v45 = vld [vmem:[%s2463_s0 + $0x300] sm:$0xff]  ;;  %v111_v48 = vld [vmem:[%s2463_s0 + $0x308] sm:$0xff] }
 0x109   :  { %v632_v54 = vpop.f32.mrf.mxu1 }
 0x10a   :  { %494 = vmatmul.f32.gmra.mxu0 %v101_v46  ;;  %1203 = vst.msk [vmem:[#allocation3 + $0x28] sm:$0xff] %vm1002_vm1, %v1175_v53  ;;  %v633_v58 = vadd.f32 %v632_v54, %v448_v50  ;;  %v541_v50 = vadd.f32 %v1826_v41, %v1876_v12 }
 0x10b   :  { %1345 = vmatmul.msk.f32.gmra.mxu2 %vm222_vm0, %v112_v47  ;;  %1359 = vmatmul.msk.f32.gmra.mxu3 %vm222_vm0, %v154_v51  ;;  %v121_v47 = vld [vmem:[%s2463_s0 + $0x358] sm:$0xff] }
 0x10c   :  { %v818_v59 = vadd.f32 %v817_v10, %v633_v58  ;;  %679 = vmatmul.f32.gmra.mxu1 %v102_v57  ;;  %v105_v10 = vld [vmem:[%s2463_s0 + $0x2d8] sm:$0xff] }
 0x10e   :  { %v2081_v60 = vpop.f32.mrf.mxu3  ;;  %v826_v61 = vpop.f32.mrf.mxu2  ;;  %v959_v62 = vmax.f32 %v818_v59, 0.0 }
 0x10f   :  { %v450_v63 = vpop.f32.mrf.mxu0 }
 0x110   :  { %v451_v2 = vadd.f32 %v1826_v41, %v450_v63  ;;  %1016 = vst.msk [vmem:[#allocation2 + $0x68] sm:$0xff] %vm1002_vm1, %v959_v62  ;;  %v113_v62 = vld [vmem:[%s2463_s0 + $0x318] sm:$0xff]  ;;  %v124_v63 = vld [vmem:[%s2463_s0 + $0x370] sm:$0xff] }
 0x111   :  { %v1230_v5 = vld [vmem:[#allocation3 + $0x20] ss:$2 sm:$0xff]  ;;  %v1258_v6 = vld [vmem:[#allocation3 + $0x21] ss:$2 sm:$0xff]  ;;  %v635_v7 = vpop.f32.mrf.mxu1 }
 0x112   :  { %497 = vmatmul.f32.gmra.mxu0 %v104_v1  ;;  %v1283_v11 = vmax.f32 %v1230_v5, %v1258_v6  ;;  %v636_v13 = vadd.f32 %v635_v7, %v451_v2  ;;  %v114_v5 = vld [vmem:[%s2463_s0 + $0x320] sm:$0xff]  ;;  %v544_v7 = vadd.f32 %v1826_v41, %v1894_v27  ;;  %v169_v27 = vld [vmem:[%s2463_s0 + $0x4d8] sm:$0xff] }
 0x113   :  { %1346 = vmatmul.msk.f32.gmra.mxu2 %vm222_vm0, %v115_v3  ;;  %1360 = vmatmul.msk.f32.gmra.mxu3 %vm222_vm0, %v157_v4 }
 0x114   :  { %1297 = vst.msk [vmem:[%s2465_s3 + $0x10] sm:$0xff] %vm1002_vm1, %v1283_v11  ;;  %v821_v15 = vadd.f32 %v820_v28, %v636_v13  ;;  %682 = vmatmul.f32.gmra.mxu1 %v105_v10  ;;  %v160_v28 = vld [vmem:[%s2463_s0 + $0x490] sm:$0xff] }
 0x116   :  { %v719_v16 = vpop.f32.mrf.mxu3  ;;  %v829_v17 = vpop.f32.mrf.mxu2  ;;  %v960_v18 = vmax.f32 %v821_v15, 0.0 }
 0x117   :  { %v2105_v19 = vadd.f32 %v719_v16, %v535_v14  ;;  %v453_v20 = vpop.f32.mrf.mxu0  ;;  %v1071_v22 = vld [vmem:[#allocation2 + $0x60] ss:$2 sm:$0xff]  ;;  %v1127_v23 = vld [vmem:[#allocation2 + $0x61] ss:$2 sm:$0xff] }
 0x118   :  { %v454_v25 = vadd.f32 %v1826_v41, %v453_v20  ;;  %v1176_v29 = vmax.f32 %v1071_v22, %v1127_v23  ;;  %1017 = vst.msk [vmem:[#allocation2 + $0x70] sm:$0xff] %vm1002_vm1, %v960_v18  ;;  %v116_v18 = vld [vmem:[%s2463_s0 + $0x330] sm:$0xff]  ;;  %v117_v23 = vld [vmem:[%s2463_s0 + $0x338] sm:$0xff] }
 0x119   :  { %v638_v30 = vpop.f32.mrf.mxu1 }
 0x11a   :  { %500 = vmatmul.f32.gmra.mxu0 %v107_v21  ;;  %1204 = vst.msk [vmem:[#allocation3 + $0x30] sm:$0xff] %vm1002_vm1, %v1176_v29  ;;  %v639_v32 = vadd.f32 %v638_v30, %v454_v25  ;;  %v127_v21 = vld [vmem:[%s2463_s0 + $0x388] sm:$0xff]  ;;  %v547_v29 = vadd.f32 %v1826_v41, %v1911_v39  ;;  %v130_v39 = vld [vmem:[%s2463_s0 + $0x3a0] sm:$0xff] }
 0x11b   :  { %1347 = vmatmul.msk.f32.gmra.mxu2 %vm222_vm0, %v118_v52  ;;  %1361 = vmatmul.msk.f32.gmra.mxu3 %vm222_vm0, %v160_v28 }
 0x11c   :  { %v824_v34 = vadd.f32 %v2062_v43, %v639_v32  ;;  %685 = vmatmul.f32.gmra.mxu1 %v108_v31 }
 0x11e   :  { %v722_v35 = vpop.f32.mrf.mxu3  ;;  %v832_v36 = vpop.f32.mrf.mxu2  ;;  %v961_v38 = vmax.f32 %v824_v34, 0.0 }
 0x11f   :  { %v2127_v40 = vadd.f32 %v722_v35, %v538_v33  ;;  %v456_v44 = vpop.f32.mrf.mxu0 }
 0x120   :  { %v457_v46 = vadd.f32 %v1826_v41, %v456_v44  ;;  %1018 = vst.msk [vmem:[#allocation2 + $0x78] sm:$0xff] %vm1002_vm1, %v961_v38  ;;  %v119_v38 = vld [vmem:[%s2463_s0 + $0x348] sm:$0xff] }
 0x121   :  { %v641_v43 = vpop.f32.mrf.mxu1 }
 0x122   :  { %503 = vmatmul.f32.gmra.mxu0 %v110_v45  ;;  %v642_v49 = vadd.f32 %v641_v43, %v457_v46  ;;  %v120_v43 = vld [vmem:[%s2463_s0 + $0x350] sm:$0xff] }
 0x123   :  { %1348 = vmatmul.msk.f32.gmra.mxu2 %vm222_vm0, %v121_v47  ;;  %1362 = vmatmul.msk.f32.gmra.mxu3 %vm222_vm0, %v163_v0 }
 0x124   :  { %v827_v51 = vadd.f32 %v826_v61, %v642_v49  ;;  %688 = vmatmul.f32.gmra.mxu1 %v111_v48  ;;  %v166_v61 = vld [vmem:[%s2463_s0 + $0x4c0] sm:$0xff]  ;;  %v550_v49 = vadd.f32 %v1826_v41, %v1929_v56  ;;  %v175_v56 = vld [vmem:[%s2463_s0 + $0x508] sm:$0xff] }
 0x126   :  { %v725_v53 = vpop.f32.mrf.mxu3  ;;  %v2147_v54 = vpop.f32.mrf.mxu2  ;;  %v962_v57 = vmax.f32 %v827_v51, 0.0 }
 0x127   :  { %v2149_v58 = vadd.f32 %v725_v53, %v541_v50  ;;  %v459_v59 = vpop.f32.mrf.mxu0  ;;  %v1073_v1 = vld [vmem:[#allocation2 + $0x70] ss:$2 sm:$0xff]  ;;  %v1129_v2 = vld [vmem:[#allocation2 + $0x71] ss:$2 sm:$0xff] }
 0x128   :  { %v460_v12 = vadd.f32 %v1826_v41, %v459_v59  ;;  %v1177_v3 = vmax.f32 %v1073_v1, %v1129_v2  ;;  %1019 = vst.msk [vmem:[#allocation2 + $0x80] sm:$0xff] %vm1002_vm1, %v962_v57  ;;  %v133_v2 = vld [vmem:[%s2463_s0 + $0x3b8] sm:$0xff] }
 0x129   :  { %v644_v4 = vpop.f32.mrf.mxu1 }
 0x12a   :  { %506 = vmatmul.f32.gmra.mxu0 %v113_v62  ;;  %1205 = vst.msk [vmem:[#allocation3 + $0x38] sm:$0xff] %vm1002_vm1, %v1177_v3  ;;  %v645_v6 = vadd.f32 %v644_v4, %v460_v12  ;;  %v123_v12 = vld [vmem:[%s2463_s0 + $0x368] sm:$0xff]  ;;  %v553_v3 = vadd.f32 %v1826_v41, %v1950_v8 }
 0x12b   :  { %1349 = vmatmul.msk.f32.gmra.mxu2 %vm222_vm0, %v124_v63  ;;  %1363 = vmatmul.msk.f32.gmra.mxu3 %vm222_vm0, %v166_v61  ;;  %v122_v63 = vld [vmem:[%s2463_s0 + $0x360] sm:$0xff] }
 0x12c   :  { %v830_v10 = vadd.f32 %v829_v17, %v645_v6  ;;  %691 = vmatmul.f32.gmra.mxu1 %v114_v5 }
 0x12e   :  { %v728_v11 = vpop.f32.mrf.mxu3  ;;  %v838_v13 = vpop.f32.mrf.mxu2  ;;  %v963_v14 = vmax.f32 %v830_v10, 0.0 }
 0x12f   :  { %v2170_v15 = vadd.f32 %v728_v11, %v544_v7  ;;  %v462_v16 = vpop.f32.mrf.mxu0 }
 0x130   :  { %v463_v20 = vadd.f32 %v1826_v41, %v462_v16  ;;  %1020 = vst.msk [vmem:[#allocation2 + $0x88] sm:$0xff] %vm1002_vm1, %v963_v14  ;;  %v125_v14 = vld [vmem:[%s2463_s0 + $0x378] sm:$0xff]  ;;  %v136_v16 = vld [vmem:[%s2463_s0 + $0x3d0] sm:$0xff] }
 0x131   :  { %v1232_v17 = vld [vmem:[#allocation3 + $0x30] ss:$2 sm:$0xff]  ;;  %v1260_v52 = vld [vmem:[#allocation3 + $0x31] ss:$2 sm:$0xff]  ;;  %v647_v22 = vpop.f32.mrf.mxu1 }
 0x132   :  { %509 = vmatmul.f32.gmra.mxu0 %v116_v18  ;;  %v1284_v25 = vmax.f32 %v1232_v17, %v1260_v52  ;;  %v648_v28 = vadd.f32 %v647_v22, %v463_v20  ;;  %v126_v17 = vld [vmem:[%s2463_s0 + $0x380] sm:$0xff]  ;;  %v556_v22 = vadd.f32 %v1826_v41, %v1968_v24  ;;  %v181_v24 = vld [vmem:[%s2463_s0 + $0x538] sm:$0xff] }
 0x133   :  { %1350 = vmatmul.msk.f32.gmra.mxu2 %vm222_vm0, %v127_v21  ;;  %1364 = vmatmul.msk.f32.gmra.mxu3 %vm222_vm0, %v169_v27 }
 0x134   :  { %1298 = vst.msk [vmem:[%s2465_s3 + $0x18] sm:$0xff] %vm1002_vm1, %v1284_v25  ;;  %v833_v30 = vadd.f32 %v832_v36, %v648_v28  ;;  %694 = vmatmul.f32.gmra.mxu1 %v117_v23  ;;  %v172_v36 = vld [vmem:[%s2463_s0 + $0x4f0] sm:$0xff] }
 0x136   :  { %v731_v31 = vpop.f32.mrf.mxu3  ;;  %v841_v32 = vpop.f32.mrf.mxu2  ;;  %v964_v33 = vmax.f32 %v833_v30, 0.0 }
 0x137   :  { %v2194_v34 = vadd.f32 %v731_v31, %v547_v29  ;;  %v465_v35 = vpop.f32.mrf.mxu0  ;;  %v1075_v44 = vld [vmem:[#allocation2 + $0x80] ss:$2 sm:$0xff]  ;;  %v1131_v45 = vld [vmem:[#allocation2 + $0x81] ss:$2 sm:$0xff] }
 0x138   :  { %v466_v46 = vadd.f32 %v1826_v41, %v465_v35  ;;  %v1178_v47 = vmax.f32 %v1075_v44, %v1131_v45  ;;  %1021 = vst.msk [vmem:[#allocation2 + $0x90] sm:$0xff] %vm1002_vm1, %v964_v33  ;;  %v128_v33 = vld [vmem:[%s2463_s0 + $0x390] sm:$0xff]  ;;  %v129_v45 = vld [vmem:[%s2463_s0 + $0x398] sm:$0xff] }
 0x139   :  { %v650_v0 = vpop.f32.mrf.mxu1 }
 0x13a   :  { %512 = vmatmul.f32.gmra.mxu0 %v119_v38  ;;  %1206 = vst.msk [vmem:[#allocation3 + $0x40] sm:$0xff] %vm1002_vm1, %v1178_v47  ;;  %v651_v48 = vadd.f32 %v650_v0, %v466_v46  ;;  %v139_v38 = vld [vmem:[%s2463_s0 + $0x3e8] sm:$0xff]  ;;  %v559_v47 = vadd.f32 %v1826_v41, %v1985_v37 }
 0x13b   :  { %1351 = vmatmul.msk.f32.gmra.mxu2 %vm222_vm0, %v130_v39  ;;  %1365 = vmatmul.msk.f32.gmra.mxu3 %vm222_vm0, %v172_v36 }
 0x13c   :  { %v836_v50 = vadd.f32 %v2147_v54, %v651_v48  ;;  %697 = vmatmul.f32.gmra.mxu1 %v120_v43 }
 0x13e   :  { %v734_v51 = vpop.f32.mrf.mxu3  ;;  %v844_v53 = vpop.f32.mrf.mxu2  ;;  %v965_v57 = vmax.f32 %v836_v50, 0.0 }
 0x13f   :  { %v2216_v59 = vadd.f32 %v734_v51, %v550_v49  ;;  %v468_v62 = vpop.f32.mrf.mxu0 }
 0x140   :  { %v469_v1 = vadd.f32 %v1826_v41, %v468_v62  ;;  %1022 = vst.msk [vmem:[#allocation2 + $0x98] sm:$0xff] %vm1002_vm1, %v965_v57  ;;  %v131_v57 = vld [vmem:[%s2463_s0 + $0x3a8] sm:$0xff] }
 0x141   :  { %v653_v54 = vpop.f32.mrf.mxu1 }
 0x142   :  { %515 = vmatmul.f32.gmra.mxu0 %v122_v63  ;;  %v654_v61 = vadd.f32 %v653_v54, %v469_v1  ;;  %v142_v1 = vld [vmem:[%s2463_s0 + $0x400] sm:$0xff] }
 0x143   :  { %1352 = vmatmul.msk.f32.gmra.mxu2 %vm222_vm0, %v133_v2  ;;  %1366 = vmatmul.msk.f32.gmra.mxu3 %vm222_vm0, %v175_v56  ;;  %v132_v56 = vld [vmem:[%s2463_s0 + $0x3b0] sm:$0xff] }
 0x144   :  { %v839_v4 = vadd.f32 %v838_v13, %v654_v61  ;;  %700 = vmatmul.f32.gmra.mxu1 %v123_v12  ;;  %v178_v13 = vld [vmem:[%s2463_s0 + $0x520] sm:$0xff]  ;;  %v562_v12 = vadd.f32 %v1826_v41, %v2003_v55 }
 0x146   :  { %v737_v5 = vpop.f32.mrf.mxu3  ;;  %v2236_v6 = vpop.f32.mrf.mxu2  ;;  %v966_v7 = vmax.f32 %v839_v4, 0.0 }
 0x147   :  { %v2238_v10 = vadd.f32 %v737_v5, %v553_v3  ;;  %v471_v11 = vpop.f32.mrf.mxu0  ;;  %v1077_v18 = vld [vmem:[#allocation2 + $0x90] ss:$2 sm:$0xff]  ;;  %v1133_v20 = vld [vmem:[#allocation2 + $0x91] ss:$2 sm:$0xff] }
 0x148   :  { %v472_v8 = vadd.f32 %v1826_v41, %v471_v11  ;;  %v1179_v21 = vmax.f32 %v1077_v18, %v1133_v20  ;;  %1023 = vst.msk [vmem:[#allocation2 + $0xa0] sm:$0xff] %vm1002_vm1, %v966_v7  ;;  %v145_v18 = vld [vmem:[%s2463_s0 + $0x418] sm:$0xff] }
 0x149   :  { %v656_v27 = vpop.f32.mrf.mxu1 }
 0x14a   :  { %518 = vmatmul.f32.gmra.mxu0 %v125_v14  ;;  %1207 = vst.msk [vmem:[#allocation3 + $0x48] sm:$0xff] %vm1002_vm1, %v1179_v21  ;;  %v657_v52 = vadd.f32 %v656_v27, %v472_v8  ;;  %v134_v14 = vld [vmem:[%s2463_s0 + $0x3c0] sm:$0xff]  ;;  %v565_v8 = vadd.f32 %v1826_v41, %v2024_v9  ;;  %v148_v9 = vld [vmem:[%s2463_s0 + $0x430] sm:$0xff] }
 0x14b   :  { %1353 = vmatmul.msk.f32.gmra.mxu2 %vm222_vm0, %v136_v16  ;;  %1367 = vmatmul.msk.f32.gmra.mxu3 %vm222_vm0, %v178_v13 }
 0x14c   :  { %v842_v23 = vadd.f32 %v841_v32, %v657_v52  ;;  %703 = vmatmul.f32.gmra.mxu1 %v126_v17 }
 0x14e   :  { %v740_v25 = vpop.f32.mrf.mxu3  ;;  %v850_v28 = vpop.f32.mrf.mxu2  ;;  %v967_v29 = vmax.f32 %v842_v23, 0.0  ;;  %v137_v23 = vld [vmem:[%s2463_s0 + $0x3d8] sm:$0xff] }
 0x14f   :  { %v2259_v30 = vadd.f32 %v740_v25, %v556_v22  ;;  %v474_v31 = vpop.f32.mrf.mxu0 }
 0x150   :  { %v475_v35 = vadd.f32 %v1826_v41, %v474_v31  ;;  %1024 = vst.msk [vmem:[#allocation2 + $0xa8] sm:$0xff] %vm1002_vm1, %v967_v29  ;;  %v2325_v31 = vld [vmem:[%s2464_s2] ss:$0 sm:$0xff] }
 0x151   :  { %v1234_v32 = vld [vmem:[#allocation3 + $0x40] ss:$2 sm:$0xff]  ;;  %v1262_v39 = vld [vmem:[#allocation3 + $0x41] ss:$2 sm:$0xff]  ;;  %v659_v44 = vpop.f32.mrf.mxu1 }
 0x152   :  { %521 = vmatmul.f32.gmra.mxu0 %v128_v33  ;;  %v1285_v46 = vmax.f32 %v1234_v32, %v1262_v39  ;;  %v660_v36 = vadd.f32 %v659_v44, %v475_v35  ;;  %v138_v35 = vld [vmem:[%s2463_s0 + $0x3e0] sm:$0xff] }
 0x153   :  { %1354 = vmatmul.msk.f32.gmra.mxu2 %vm222_vm0, %v139_v38  ;;  %1368 = vmatmul.msk.f32.gmra.mxu3 %vm222_vm0, %v181_v24  ;;  %v568_v24 = vadd.f32 %v2325_v31, %v2042_v26  ;;  %v571_v26 = vadd.f32 %v2325_v31, %v2060_v42 }
 0x154   :  { %1299 = vst.msk [vmem:[%s2465_s3 + $0x20] sm:$0xff] %vm1002_vm1, %v1285_v46  ;;  %v845_v0 = vadd.f32 %v844_v53, %v660_v36  ;;  %706 = vmatmul.f32.gmra.mxu1 %v129_v45 }
 0x156   :  { %v743_v43 = vpop.f32.mrf.mxu3  ;;  %v853_v48 = vpop.f32.mrf.mxu2  ;;  %v968_v49 = vmax.f32 %v845_v0, 0.0 }
 0x157   :  { %v2283_v50 = vadd.f32 %v743_v43, %v559_v47  ;;  %v477_v51 = vpop.f32.mrf.mxu0  ;;  %v1079_v62 = vld [vmem:[#allocation2 + $0xa0] ss:$2 sm:$0xff]  ;;  %v1135_v63 = vld [vmem:[#allocation2 + $0xa1] ss:$2 sm:$0xff] }
 0x158   :  { %v478_v37 = vadd.f32 %v1826_v41, %v477_v51  ;;  %v1180_v53 = vmax.f32 %v1079_v62, %v1135_v63  ;;  %1025 = vst.msk [vmem:[#allocation2 + $0xb0] sm:$0xff] %vm1002_vm1, %v968_v49 }
 0x159   :  { %v662_v2 = vpop.f32.mrf.mxu1 }
 0x15a   :  { %524 = vmatmul.f32.gmra.mxu0 %v131_v57  ;;  %1208 = vst.msk [vmem:[#allocation3 + $0x50] sm:$0xff] %vm1002_vm1, %v1180_v53  ;;  %v663_v54 = vadd.f32 %v662_v2, %v478_v37 }
 0x15b   :  { %1355 = vmatmul.msk.f32.gmra.mxu2 %vm222_vm0, %v142_v1 }
 0x15c   :  { %v848_v61 = vadd.f32 %v2236_v6, %v663_v54  ;;  %709 = vmatmul.f32.gmra.mxu1 %v132_v56  ;;  %v135_v6 = vld [vmem:[%s2463_s0 + $0x3c8] sm:$0xff] }
 0x15e   :  { %v746_v3 = vpop.f32.mrf.mxu3  ;;  %v856_v4 = vpop.f32.mrf.mxu2  ;;  %v969_v5 = vmax.f32 %v848_v61, 0.0 }
 0x15f   :  { %v2301_v7 = vadd.f32 %v746_v3, %v562_v12  ;;  %v480_v11 = vpop.f32.mrf.mxu0  ;;  %v574_v3 = vadd.f32 %v2325_v31, %v2081_v60 }
 0x160   :  { %v481_v16 = vadd.f32 %v1826_v41, %v480_v11  ;;  %1026 = vst.msk [vmem:[#allocation2 + $0xb8] sm:$0xff] %vm1002_vm1, %v969_v5 }
 0x161   :  { %v665_v55 = vpop.f32.mrf.mxu1 }
 0x162   :  { %527 = vmatmul.f32.gmra.mxu0 %v134_v14  ;;  %v666_v20 = vadd.f32 %v665_v55, %v481_v16 }
 0x163   :  { %1356 = vmatmul.msk.f32.gmra.mxu2 %vm222_vm0, %v145_v18 }
 0x164   :  { %v851_v13 = vadd.f32 %v850_v28, %v666_v20  ;;  %712 = vmatmul.f32.gmra.mxu1 %v135_v6 }
 0x166   :  { %v749_v21 = vpop.f32.mrf.mxu3  ;;  %v859_v27 = vpop.f32.mrf.mxu2  ;;  %v970_v17 = vmax.f32 %v851_v13, 0.0 }
 0x167   :  { %v2317_v52 = vadd.f32 %v749_v21, %v565_v8  ;;  %v483_v22 = vpop.f32.mrf.mxu0  ;;  %v1081_v25 = vld [vmem:[#allocation2 + $0xb0] ss:$2 sm:$0xff]  ;;  %v1137_v29 = vld [vmem:[#allocation2 + $0xb1] ss:$2 sm:$0xff] }
 0x168   :  { %v484_v41 = vadd.f32 %v2325_v31, %v483_v22  ;;  %v1181_v28 = vmax.f32 %v1081_v25, %v1137_v29  ;;  %1027 = vst.msk [vmem:[#allocation2 + $0xc0] sm:$0xff] %vm1002_vm1, %v970_v17 }
 0x169   :  { %v668_v33 = vpop.f32.mrf.mxu1 }
 0x16a   :  { %530 = vmatmul.f32.gmra.mxu0 %v137_v23  ;;  %1209 = vst.msk [vmem:[#allocation3 + $0x58] sm:$0xff] %vm1002_vm1, %v1181_v28  ;;  %v669_v38 = vadd.f32 %v668_v33, %v484_v41 }
 0x16b   :  { %1357 = vmatmul.msk.f32.gmra.mxu2 %vm222_vm0, %v148_v9 }
 0x16c   :  { %v854_v32 = vadd.f32 %v853_v48, %v669_v38  ;;  %715 = vmatmul.f32.gmra.mxu1 %v138_v35 }
 0x16e   :  { %v752_v39 = vpop.f32.mrf.mxu3  ;;  %v862_v44 = vpop.f32.mrf.mxu2  ;;  %v971_v45 = vmax.f32 %v854_v32, 0.0 }
 0x16f   :  { %v2339_v46 = vadd.f32 %v752_v39, %v568_v24  ;;  %v486_v36 = vpop.f32.mrf.mxu0 }
 0x170   :  { %v487_v47 = vadd.f32 %v2325_v31, %v486_v36  ;;  %1028 = vst.msk [vmem:[#allocation2 + $0xc8] sm:$0xff] %vm1002_vm1, %v971_v45 }
 0x171   :  { %v1236_v0 = vld [vmem:[#allocation3 + $0x50] ss:$2 sm:$0xff]  ;;  %v1264_v43 = vld [vmem:[#allocation3 + $0x51] ss:$2 sm:$0xff]  ;;  %v671_v49 = vpop.f32.mrf.mxu1 }
 0x172   :  { %v1286_v51 = vmax.f32 %v1236_v0, %v1264_v43  ;;  %v672_v57 = vadd.f32 %v671_v49, %v487_v47 }
 0x174   :  { %1300 = vst.msk [vmem:[%s2465_s3 + $0x28] sm:$0xff] %vm1002_vm1, %v1286_v51  ;;  %v857_v48 = vadd.f32 %v856_v4, %v672_v57 }
 0x176   :  { %v755_v62 = vpop.f32.mrf.mxu3  ;;  %v865_v63 = vpop.f32.mrf.mxu2  ;;  %v972_v37 = vmax.f32 %v857_v48, 0.0 }
 0x177   :  { %v2349_v1 = vadd.f32 %v755_v62, %v571_v26  ;;  %v489_v53 = vpop.f32.mrf.mxu0  ;;  %v1083_v2 = vld [vmem:[#allocation2 + $0xc0] ss:$2 sm:$0xff]  ;;  %v1139_v56 = vld [vmem:[#allocation2 + $0xc1] ss:$2 sm:$0xff] }
 0x178   :  { %v490_v54 = vadd.f32 %v2325_v31, %v489_v53  ;;  %v1182_v12 = vmax.f32 %v1083_v2, %v1139_v56  ;;  %1029 = vst.msk [vmem:[#allocation2 + $0xd0] sm:$0xff] %vm1002_vm1, %v972_v37 }
 0x179   :  { %v674_v42 = vpop.f32.mrf.mxu1 }
 0x17a   :  { %1210 = vst.msk [vmem:[#allocation3 + $0x60] sm:$0xff] %vm1002_vm1, %v1182_v12  ;;  %v675_v61 = vadd.f32 %v674_v42, %v490_v54 }
 0x17c   :  { %v860_v4 = vadd.f32 %v859_v27, %v675_v61 }
 0x17e   :  { %v758_v5 = vpop.f32.mrf.mxu3  ;;  %v868_v11 = vpop.f32.mrf.mxu2  ;;  %v973_v14 = vmax.f32 %v860_v4, 0.0 }
 0x17f   :  { %v2356_v16 = vadd.f32 %v758_v5, %v574_v3  ;;  %v492_v18 = vpop.f32.mrf.mxu0 }
 0x180   :  { %v493_v55 = vadd.f32 %v2325_v31, %v492_v18  ;;  %1030 = vst.msk [vmem:[#allocation2 + $0xd8] sm:$0xff] %vm1002_vm1, %v973_v14 }
 0x181   :  { %v677_v6 = vpop.f32.mrf.mxu1 }
 0x182   :  { %v678_v20 = vadd.f32 %v677_v6, %v493_v55 }
 0x184   :  { %v863_v8 = vadd.f32 %v862_v44, %v678_v20 }
 0x186   :  { %v871_v13 = vpop.f32.mrf.mxu2  ;;  %v913_v21 = vpop.f32.mrf.mxu3  ;;  %v974_v17 = vmax.f32 %v863_v8, 0.0 }
 0x187   :  { %v914_v22 = vadd.f32 %v913_v21, %v2170_v15  ;;  %v495_v60 = vpop.f32.mrf.mxu0  ;;  %v1085_v27 = vld [vmem:[#allocation2 + $0xd0] ss:$2 sm:$0xff]  ;;  %v1141_v23 = vld [vmem:[#allocation2 + $0xd1] ss:$2 sm:$0xff] }
 0x188   :  { %v496_v25 = vadd.f32 %v2325_v31, %v495_v60  ;;  %v1183_v29 = vmax.f32 %v1085_v27, %v1141_v23  ;;  %1031 = vst.msk [vmem:[#allocation2 + $0xe0] sm:$0xff] %vm1002_vm1, %v974_v17 }
 0x189   :  { %v991_v41 = vmax.f32 %v914_v22, 0.0  ;;  %v680_v9 = vpop.f32.mrf.mxu1 }
 0x18a   :  { %1211 = vst.msk [vmem:[#allocation3 + $0x68] sm:$0xff] %vm1002_vm1, %v1183_v29  ;;  %v681_v28 = vadd.f32 %v680_v9, %v496_v25 }
 0x18b   :  { %1048 = vst.msk [vmem:[#allocation2 + $0x168] sm:$0xff] %vm1002_vm1, %v991_v41 }
 0x18c   :  { %v866_v33 = vadd.f32 %v865_v63, %v681_v28 }
 0x18e   :  { %v874_v35 = vpop.f32.mrf.mxu2  ;;  %v916_v38 = vpop.f32.mrf.mxu3  ;;  %v975_v24 = vmax.f32 %v866_v33, 0.0 }
 0x18f   :  { %v917_v15 = vadd.f32 %v916_v38, %v2194_v34  ;;  %v498_v32 = vpop.f32.mrf.mxu0 }
 0x190   :  { %v499_v39 = vadd.f32 %v2325_v31, %v498_v32  ;;  %1032 = vst.msk [vmem:[#allocation2 + $0xe8] sm:$0xff] %vm1002_vm1, %v975_v24 }
 0x191   :  { %v992_v44 = vmax.f32 %v917_v15, 0.0  ;;  %v1238_v45 = vld [vmem:[#allocation3 + $0x60] ss:$2 sm:$0xff]  ;;  %v1266_v36 = vld [vmem:[#allocation3 + $0x61] ss:$2 sm:$0xff]  ;;  %v683_v47 = vpop.f32.mrf.mxu1 }
 0x192   :  { %v1287_v0 = vmax.f32 %v1238_v45, %v1266_v36  ;;  %v684_v43 = vadd.f32 %v683_v47, %v499_v39 }
 0x193   :  { %1049 = vst.msk [vmem:[#allocation2 + $0x170] sm:$0xff] %vm1002_vm1, %v992_v44 }
 0x194   :  { %1301 = vst.msk [vmem:[%s2465_s3 + $0x30] sm:$0xff] %vm1002_vm1, %v1287_v0  ;;  %v869_v49 = vadd.f32 %v868_v11, %v684_v43 }
 0x196   :  { %v877_v34 = vpop.f32.mrf.mxu2  ;;  %v919_v51 = vpop.f32.mrf.mxu3  ;;  %v976_v57 = vmax.f32 %v869_v49, 0.0 }
 0x197   :  { %v920_v26 = vadd.f32 %v919_v51, %v2216_v59  ;;  %v501_v48 = vpop.f32.mrf.mxu0  ;;  %v1087_v62 = vld [vmem:[#allocation2 + $0xe0] ss:$2 sm:$0xff]  ;;  %v1143_v63 = vld [vmem:[#allocation2 + $0xe1] ss:$2 sm:$0xff] }
 0x198   :  { %v502_v37 = vadd.f32 %v2325_v31, %v501_v48  ;;  %v1184_v53 = vmax.f32 %v1087_v62, %v1143_v63  ;;  %1033 = vst.msk [vmem:[#allocation2 + $0xf0] sm:$0xff] %vm1002_vm1, %v976_v57 }
 0x199   :  { %v993_v2 = vmax.f32 %v920_v26, 0.0  ;;  %v686_v56 = vpop.f32.mrf.mxu1 }
 0x19a   :  { %1212 = vst.msk [vmem:[#allocation3 + $0x70] sm:$0xff] %vm1002_vm1, %v1184_v53  ;;  %v687_v54 = vadd.f32 %v686_v56, %v502_v37 }
 0x19b   :  { %1050 = vst.msk [vmem:[#allocation2 + $0x178] sm:$0xff] %vm1002_vm1, %v993_v2 }
 0x19c   :  { %v872_v12 = vadd.f32 %v871_v13, %v687_v54 }
 0x19e   :  { %v880_v42 = vpop.f32.mrf.mxu2  ;;  %v922_v61 = vpop.f32.mrf.mxu3  ;;  %v977_v3 = vmax.f32 %v872_v12, 0.0 }
 0x19f   :  { %v923_v59 = vadd.f32 %v922_v61, %v2238_v10  ;;  %v504_v4 = vpop.f32.mrf.mxu0 }
 0x1a0   :  { %v505_v5 = vadd.f32 %v2325_v31, %v504_v4  ;;  %1034 = vst.msk [vmem:[#allocation2 + $0xf8] sm:$0xff] %vm1002_vm1, %v977_v3 }
 0x1a1   :  { %v994_v11 = vmax.f32 %v923_v59, 0.0  ;;  %v689_v14 = vpop.f32.mrf.mxu1 }
 0x1a2   :  { %v1105_v18 = vld [vmem:[#allocation2 + $0x170] ss:$2 sm:$0xff]  ;;  %v1161_v55 = vld [vmem:[#allocation2 + $0x171] ss:$2 sm:$0xff]  ;;  %v690_v6 = vadd.f32 %v689_v14, %v505_v5 }
 0x1a3   :  { %1051 = vst.msk [vmem:[#allocation2 + $0x180] sm:$0xff] %vm1002_vm1, %v994_v11  ;;  %v1193_v20 = vmax.f32 %v1105_v18, %v1161_v55 }
 0x1a4   :  { %v875_v8 = vadd.f32 %v874_v35, %v690_v6 }
 0x1a5   :  { %1221 = vst.msk [vmem:[#allocation3 + $0xb8] sm:$0xff] %vm1002_vm1, %v1193_v20 }
 0x1a6   :  { %v883_v13 = vpop.f32.mrf.mxu2  ;;  %v925_v21 = vpop.f32.mrf.mxu3  ;;  %v978_v17 = vmax.f32 %v875_v8, 0.0 }
 0x1a7   :  { %v926_v10 = vadd.f32 %v925_v21, %v2259_v30  ;;  %v507_v22 = vpop.f32.mrf.mxu0  ;;  %v1089_v60 = vld [vmem:[#allocation2 + $0xf0] ss:$2 sm:$0xff]  ;;  %v1145_v27 = vld [vmem:[#allocation2 + $0xf1] ss:$2 sm:$0xff] }
 0x1a8   :  { %v508_v23 = vadd.f32 %v2325_v31, %v507_v22  ;;  %v1185_v25 = vmax.f32 %v1089_v60, %v1145_v27  ;;  %1035 = vst.msk [vmem:[#allocation2 + $0x100] sm:$0xff] %vm1002_vm1, %v978_v17 }
 0x1a9   :  { %v995_v29 = vmax.f32 %v926_v10, 0.0  ;;  %v692_v41 = vpop.f32.mrf.mxu1 }
 0x1aa   :  { %1213 = vst.msk [vmem:[#allocation3 + $0x78] sm:$0xff] %vm1002_vm1, %v1185_v25  ;;  %v693_v9 = vadd.f32 %v692_v41, %v508_v23 }
 0x1ab   :  { %1052 = vst.msk [vmem:[#allocation2 + $0x188] sm:$0xff] %vm1002_vm1, %v995_v29 }
 0x1ac   :  { %v878_v28 = vadd.f32 %v877_v34, %v693_v9 }
 0x1ae   :  { %v886_v33 = vpop.f32.mrf.mxu2  ;;  %v928_v35 = vpop.f32.mrf.mxu3  ;;  %v979_v38 = vmax.f32 %v878_v28, 0.0 }
 0x1af   :  { %v929_v30 = vadd.f32 %v928_v35, %v2283_v50  ;;  %v510_v24 = vpop.f32.mrf.mxu0 }
 0x1b0   :  { %v511_v15 = vadd.f32 %v2325_v31, %v510_v24  ;;  %1036 = vst.msk [vmem:[#allocation2 + $0x108] sm:$0xff] %vm1002_vm1, %v979_v38 }
 0x1b1   :  { %v996_v32 = vmax.f32 %v929_v30, 0.0  ;;  %v1240_v39 = vld [vmem:[#allocation3 + $0x70] ss:$2 sm:$0xff]  ;;  %v1268_v44 = vld [vmem:[#allocation3 + $0x71] ss:$2 sm:$0xff]  ;;  %v695_v45 = vpop.f32.mrf.mxu1 }
 0x1b2   :  { %v1288_v36 = vmax.f32 %v1240_v39, %v1268_v44  ;;  %v1107_v47 = vld [vmem:[#allocation2 + $0x180] ss:$2 sm:$0xff]  ;;  %v1163_v0 = vld [vmem:[#allocation2 + $0x181] ss:$2 sm:$0xff]  ;;  %v696_v43 = vadd.f32 %v695_v45, %v511_v15 }
 0x1b3   :  { %1053 = vst.msk [vmem:[#allocation2 + $0x190] sm:$0xff] %vm1002_vm1, %v996_v32  ;;  %v1194_v49 = vmax.f32 %v1107_v47, %v1163_v0 }
 0x1b4   :  { %1302 = vst.msk [vmem:[%s2465_s3 + $0x38] sm:$0xff] %vm1002_vm1, %v1288_v36  ;;  %v881_v50 = vadd.f32 %v880_v42, %v696_v43 }
 0x1b5   :  { %1222 = vst.msk [vmem:[#allocation3 + $0xc0] sm:$0xff] %vm1002_vm1, %v1194_v49 }
 0x1b6   :  { %v889_v34 = vpop.f32.mrf.mxu2  ;;  %v931_v51 = vpop.f32.mrf.mxu3  ;;  %v980_v57 = vmax.f32 %v881_v50, 0.0 }
 0x1b7   :  { %v932_v26 = vadd.f32 %v931_v51, %v2301_v7  ;;  %v513_v48 = vpop.f32.mrf.mxu0  ;;  %v1091_v62 = vld [vmem:[#allocation2 + $0x100] ss:$2 sm:$0xff]  ;;  %v1147_v63 = vld [vmem:[#allocation2 + $0x101] ss:$2 sm:$0xff] }
 0x1b8   :  { %v514_v37 = vadd.f32 %v2325_v31, %v513_v48  ;;  %v1186_v53 = vmax.f32 %v1091_v62, %v1147_v63  ;;  %1037 = vst.msk [vmem:[#allocation2 + $0x110] sm:$0xff] %vm1002_vm1, %v980_v57 }
 0x1b9   :  { %v997_v2 = vmax.f32 %v932_v26, 0.0  ;;  %v698_v56 = vpop.f32.mrf.mxu1 }
 0x1ba   :  { %1214 = vst.msk [vmem:[#allocation3 + $0x80] sm:$0xff] %vm1002_vm1, %v1186_v53  ;;  %v699_v54 = vadd.f32 %v698_v56, %v514_v37 }
 0x1bb   :  { %1054 = vst.msk [vmem:[#allocation2 + $0x198] sm:$0xff] %vm1002_vm1, %v997_v2 }
 0x1bc   :  { %v884_v12 = vadd.f32 %v883_v13, %v699_v54 }
 0x1be   :  { %v892_v42 = vpop.f32.mrf.mxu2  ;;  %v934_v61 = vpop.f32.mrf.mxu3  ;;  %v981_v3 = vmax.f32 %v884_v12, 0.0 }
 0x1bf   :  { %v935_v7 = vadd.f32 %v934_v61, %v2317_v52  ;;  %v516_v59 = vpop.f32.mrf.mxu0 }
 0x1c0   :  { %v517_v4 = vadd.f32 %v2325_v31, %v516_v59  ;;  %1038 = vst.msk [vmem:[#allocation2 + $0x118] sm:$0xff] %vm1002_vm1, %v981_v3 }
 0x1c1   :  { %v998_v5 = vmax.f32 %v935_v7, 0.0  ;;  %v701_v11 = vpop.f32.mrf.mxu1 }
 0x1c2   :  { %v1109_v14 = vld [vmem:[#allocation2 + $0x190] ss:$2 sm:$0xff]  ;;  %v1165_v18 = vld [vmem:[#allocation2 + $0x191] ss:$2 sm:$0xff]  ;;  %v702_v55 = vadd.f32 %v701_v11, %v517_v4 }
 0x1c3   :  { %1055 = vst.msk [vmem:[#allocation2 + $0x1a0] sm:$0xff] %vm1002_vm1, %v998_v5  ;;  %v1195_v6 = vmax.f32 %v1109_v14, %v1165_v18 }
 0x1c4   :  { %v887_v20 = vadd.f32 %v886_v33, %v702_v55 }
 0x1c5   :  { %1223 = vst.msk [vmem:[#allocation3 + $0xc8] sm:$0xff] %vm1002_vm1, %v1195_v6 }
 0x1c6   :  { %v895_v8 = vpop.f32.mrf.mxu2  ;;  %v937_v13 = vpop.f32.mrf.mxu3  ;;  %v982_v21 = vmax.f32 %v887_v20, 0.0 }
 0x1c7   :  { %v938_v52 = vadd.f32 %v937_v13, %v2339_v46  ;;  %v519_v17 = vpop.f32.mrf.mxu0  ;;  %v1093_v10 = vld [vmem:[#allocation2 + $0x110] ss:$2 sm:$0xff]  ;;  %v1149_v22 = vld [vmem:[#allocation2 + $0x111] ss:$2 sm:$0xff] }
 0x1c8   :  { %v520_v60 = vadd.f32 %v2325_v31, %v519_v17  ;;  %v1187_v27 = vmax.f32 %v1093_v10, %v1149_v22  ;;  %1039 = vst.msk [vmem:[#allocation2 + $0x120] sm:$0xff] %vm1002_vm1, %v982_v21 }
 0x1c9   :  { %v999_v23 = vmax.f32 %v938_v52, 0.0  ;;  %v704_v25 = vpop.f32.mrf.mxu1 }
 0x1ca   :  { %1215 = vst.msk [vmem:[#allocation3 + $0x88] sm:$0xff] %vm1002_vm1, %v1187_v27  ;;  %v705_v29 = vadd.f32 %v704_v25, %v520_v60 }
 0x1cb   :  { %1056 = vst.msk [vmem:[#allocation2 + $0x1a8] sm:$0xff] %vm1002_vm1, %v999_v23 }
 0x1cc   :  { %v1250_v41 = vld [vmem:[#allocation3 + $0xc0] ss:$2 sm:$0xff]  ;;  %v1278_v9 = vld [vmem:[#allocation3 + $0xc1] ss:$2 sm:$0xff]  ;;  %v890_v28 = vadd.f32 %v889_v34, %v705_v29 }
 0x1cd   :  { %v1293_v33 = vmax.f32 %v1250_v41, %v1278_v9 }
 0x1ce   :  { %v898_v46 = vpop.f32.mrf.mxu2  ;;  %v940_v35 = vpop.f32.mrf.mxu3  ;;  %v983_v38 = vmax.f32 %v890_v28, 0.0 }
 0x1cf   :  { %v941_v30 = vadd.f32 %v940_v35, %v2349_v1  ;;  %v522_v24 = vpop.f32.mrf.mxu0  ;;  %1307 = vst.msk [vmem:[%s2465_s3 + $0x60] sm:$0xff] %vm1002_vm1, %v1293_v33 }
 0x1d0   :  { %v523_v15 = vadd.f32 %v2325_v31, %v522_v24  ;;  %1040 = vst.msk [vmem:[#allocation2 + $0x128] sm:$0xff] %vm1002_vm1, %v983_v38 }
 0x1d1   :  { %v1000_v32 = vmax.f32 %v941_v30, 0.0  ;;  %v1242_v39 = vld [vmem:[#allocation3 + $0x80] ss:$2 sm:$0xff]  ;;  %v1270_v44 = vld [vmem:[#allocation3 + $0x81] ss:$2 sm:$0xff]  ;;  %v707_v45 = vpop.f32.mrf.mxu1 }
 0x1d2   :  { %v1289_v36 = vmax.f32 %v1242_v39, %v1270_v44  ;;  %v1111_v47 = vld [vmem:[#allocation2 + $0x1a0] ss:$2 sm:$0xff]  ;;  %v1167_v0 = vld [vmem:[#allocation2 + $0x1a1] ss:$2 sm:$0xff]  ;;  %v708_v1 = vadd.f32 %v707_v45, %v523_v15 }
 0x1d3   :  { %1057 = vst.msk [vmem:[#allocation2 + $0x1b0] sm:$0xff] %vm1002_vm1, %v1000_v32  ;;  %v1196_v43 = vmax.f32 %v1111_v47, %v1167_v0 }
 0x1d4   :  { %1303 = vst.msk [vmem:[%s2465_s3 + $0x40] sm:$0xff] %vm1002_vm1, %v1289_v36  ;;  %v893_v49 = vadd.f32 %v892_v42, %v708_v1 }
 0x1d5   :  { %1224 = vst.msk [vmem:[#allocation3 + $0xd0] sm:$0xff] %vm1002_vm1, %v1196_v43 }
 0x1d6   :  { %v901_v50 = vpop.f32.mrf.mxu2  ;;  %v943_v34 = vpop.f32.mrf.mxu3  ;;  %v984_v51 = vmax.f32 %v893_v49, 0.0 }
 0x1d7   :  { %v944_v57 = vadd.f32 %v943_v34, %v2356_v16  ;;  %v525_v26 = vpop.f32.mrf.mxu0  ;;  %v1095_v48 = vld [vmem:[#allocation2 + $0x120] ss:$2 sm:$0xff]  ;;  %v1151_v62 = vld [vmem:[#allocation2 + $0x121] ss:$2 sm:$0xff] }
 0x1d8   :  { %v526_v63 = vadd.f32 %v2325_v31, %v525_v26  ;;  %v1188_v37 = vmax.f32 %v1095_v48, %v1151_v62  ;;  %1041 = vst.msk [vmem:[#allocation2 + $0x130] sm:$0xff] %vm1002_vm1, %v984_v51 }
 0x1d9   :  { %v1001_v53 = vmax.f32 %v944_v57, 0.0  ;;  %v710_v2 = vpop.f32.mrf.mxu1 }
 0x1da   :  { %1216 = vst.msk [vmem:[#allocation3 + $0x90] sm:$0xff] %vm1002_vm1, %v1188_v37  ;;  %v711_v56 = vadd.f32 %v710_v2, %v526_v63 }
 0x1db   :  { %1058 = vst.msk [vmem:[#allocation2 + $0x1b8] sm:$0xff] %vm1002_vm1, %v1001_v53 }
 0x1dc   :  { %v896_v54 = vadd.f32 %v895_v8, %v711_v56 }
 0x1de   :  { %v904_v12 = vpop.f32.mrf.mxu2  ;;  %v985_v42 = vmax.f32 %v896_v54, 0.0 }
 0x1df   :  { %v905_v16 = vadd.f32 %v904_v12, %v2105_v19  ;;  %v528_v61 = vpop.f32.mrf.mxu0 }
 0x1e0   :  { %v529_v3 = vadd.f32 %v2325_v31, %v528_v61  ;;  %1042 = vst.msk [vmem:[#allocation2 + $0x138] sm:$0xff] %vm1002_vm1, %v985_v42 }
 0x1e1   :  { %v988_v7 = vmax.f32 %v905_v16, 0.0  ;;  %v713_v59 = vpop.f32.mrf.mxu1 }
 0x1e2   :  { %v1113_v4 = vld [vmem:[#allocation2 + $0x1b0] ss:$2 sm:$0xff]  ;;  %v1169_v5 = vld [vmem:[#allocation2 + $0x1b1] ss:$2 sm:$0xff]  ;;  %v714_v11 = vadd.f32 %v713_v59, %v529_v3 }
 0x1e3   :  { %1045 = vst.msk [vmem:[#allocation2 + $0x150] sm:$0xff] %vm1002_vm1, %v988_v7  ;;  %v1197_v14 = vmax.f32 %v1113_v4, %v1169_v5 }
 0x1e4   :  { %v899_v18 = vadd.f32 %v898_v46, %v714_v11 }
 0x1e5   :  { %1225 = vst.msk [vmem:[#allocation3 + $0xd8] sm:$0xff] %vm1002_vm1, %v1197_v14 }
 0x1e6   :  { %v907_v55 = vpop.f32.mrf.mxu2  ;;  %v986_v6 = vmax.f32 %v899_v18, 0.0 }
 0x1e7   :  { %v908_v19 = vadd.f32 %v907_v55, %v2127_v40  ;;  %v531_v20 = vpop.f32.mrf.mxu0  ;;  %v1097_v8 = vld [vmem:[#allocation2 + $0x130] ss:$2 sm:$0xff]  ;;  %v1153_v13 = vld [vmem:[#allocation2 + $0x131] ss:$2 sm:$0xff] }
 0x1e8   :  { %v532_v21 = vadd.f32 %v2325_v31, %v531_v20  ;;  %v1189_v52 = vmax.f32 %v1097_v8, %v1153_v13  ;;  %1043 = vst.msk [vmem:[#allocation2 + $0x140] sm:$0xff] %vm1002_vm1, %v986_v6 }
 0x1e9   :  { %v989_v17 = vmax.f32 %v908_v19, 0.0  ;;  %v716_v10 = vpop.f32.mrf.mxu1 }
 0x1ea   :  { %1217 = vst.msk [vmem:[#allocation3 + $0x98] sm:$0xff] %vm1002_vm1, %v1189_v52  ;;  %v717_v22 = vadd.f32 %v716_v10, %v532_v21 }
 0x1eb   :  { %1046 = vst.msk [vmem:[#allocation2 + $0x158] sm:$0xff] %vm1002_vm1, %v989_v17 }
 0x1ec   :  { %v1252_v60 = vld [vmem:[#allocation3 + $0xd0] ss:$2 sm:$0xff]  ;;  %v1280_v27 = vld [vmem:[#allocation3 + $0xd1] ss:$2 sm:$0xff]  ;;  %v902_v23 = vadd.f32 %v901_v50, %v717_v22 }
 0x1ed   :  { %v1294_v25 = vmax.f32 %v1252_v60, %v1280_v27 }
 0x1ee   :  { %v910_v40 = vpop.f32.mrf.mxu2  ;;  %v987_v29 = vmax.f32 %v902_v23, 0.0 }
 0x1ef   :  { %v911_v41 = vadd.f32 %v910_v40, %v2149_v58  ;;  %1308 = vst.msk [vmem:[%s2465_s3 + $0x68] sm:$0xff] %vm1002_vm1, %v1294_v25 }
 0x1f0   :  { %1044 = vst.msk [vmem:[#allocation2 + $0x148] sm:$0xff] %vm1002_vm1, %v987_v29 }
 0x1f1   :  { %v990_v31 = vmax.f32 %v911_v41, 0.0  ;;  %v1244_v9 = vld [vmem:[#allocation3 + $0x90] ss:$2 sm:$0xff]  ;;  %v1272_v28 = vld [vmem:[#allocation3 + $0x91] ss:$2 sm:$0xff] }
 0x1f2   :  { %v1290_v33 = vmax.f32 %v1244_v9, %v1272_v28  ;;  %v1101_v46 = vld [vmem:[#allocation2 + $0x150] ss:$2 sm:$0xff]  ;;  %v1157_v35 = vld [vmem:[#allocation2 + $0x151] ss:$2 sm:$0xff] }
 0x1f3   :  { %1047 = vst.msk [vmem:[#allocation2 + $0x160] sm:$0xff] %vm1002_vm1, %v990_v31  ;;  %v1191_v38 = vmax.f32 %v1101_v46, %v1157_v35 }
 0x1f4   :  { %1304 = vst.msk [vmem:[%s2465_s3 + $0x48] sm:$0xff] %vm1002_vm1, %v1290_v33 }
 0x1f5   :  { %1219 = vst.msk [vmem:[#allocation3 + $0xa8] sm:$0xff] %vm1002_vm1, %v1191_v38 }
 0x1f7   :  { %v1099_v58 = vld [vmem:[#allocation2 + $0x140] ss:$2 sm:$0xff]  ;;  %v1155_v30 = vld [vmem:[#allocation2 + $0x141] ss:$2 sm:$0xff] }
 0x1f8   :  { %v1190_v24 = vmax.f32 %v1099_v58, %v1155_v30 }
 0x1fa   :  { %v1103_v15 = vld [vmem:[#allocation2 + $0x160] ss:$2 sm:$0xff]  ;;  %v1159_v32 = vld [vmem:[#allocation2 + $0x161] ss:$2 sm:$0xff]  ;;  %1218 = vst.msk [vmem:[#allocation3 + $0xa0] sm:$0xff] %vm1002_vm1, %v1190_v24 }
 0x1fb   :  { %v1192_v39 = vmax.f32 %v1103_v15, %v1159_v32 }
 0x1fd   :  { %1220 = vst.msk [vmem:[#allocation3 + $0xb0] sm:$0xff] %vm1002_vm1, %v1192_v39 }
 0x201   :  { %v1246_v44 = vld [vmem:[#allocation3 + $0xa0] ss:$2 sm:$0xff]  ;;  %v1274_v45 = vld [vmem:[#allocation3 + $0xa1] ss:$2 sm:$0xff] }
 0x202   :  { %v1291_v36 = vmax.f32 %v1246_v44, %v1274_v45 }
 0x204   :  { %v1248_v47 = vld [vmem:[#allocation3 + $0xb0] ss:$2 sm:$0xff]  ;;  %v1276_v0 = vld [vmem:[#allocation3 + $0xb1] ss:$2 sm:$0xff]  ;;  %1305 = vst.msk [vmem:[%s2465_s3 + $0x50] sm:$0xff] %vm1002_vm1, %v1291_v36 }
 0x205   :  { %v1292_v1 = vmax.f32 %v1248_v47, %v1276_v0 }
 0x207   :  { %1306 = vst.msk [vmem:[%s2465_s3 + $0x58] sm:$0xff] %vm1002_vm1, %v1292_v1 }

// kernel: cnn_forward.6
= control target key start
LH: loop header
LB: loop body
LE: loop exit
PB: predicated region body
PF: predicated region fallthrough
CT: control target
= control target key end

     0   :  { %s596_s1 = inlined_call_operand.vmem [shape: f32[256,128], index: 1, kind: input, shape index: {}]   ;;  %s597_s2 = inlined_call_operand.vmem [shape: f32[1,128], index: 2, kind: input, shape index: {}]   ;;  %s598_s0 = inlined_call_operand.vmem [shape: f32[128,256], index: 0, kind: input, shape index: {}]   ;;  %s599_s3 = inlined_call_operand.vmem [shape: f32[32,128], index: 3, kind: output, shape index: {}]  }
   0x1   :  { %v61_v0 = vld [vmem:[%s596_s1 + $0x78] sm:$0xff]  ;;  %v60_v1 = vld [vmem:[%s596_s1 + $0x70] sm:$0xff]  ;;  %v59_v4 = vld [vmem:[%s596_s1 + $0x68] sm:$0xff] }
   0x2   :  { %v77_v2 = vld [vmem:[%s596_s1 + $0xf8] sm:$0xff]  ;;  %82 = vmatpush.msra.mxu0 %v61_v0  ;;  %318 = vmatpush.msra.mxu2 %v61_v0  ;;  %v76_v3 = vld [vmem:[%s596_s1 + $0xf0] sm:$0xff]  ;;  %v75_v5 = vld [vmem:[%s596_s1 + $0xe8] sm:$0xff] }
   0x3   :  { %147 = vmatpush.msra.mxu1 %v77_v2  ;;  %334 = vmatpush.msra.mxu3 %v77_v2  ;;  %v58_v6 = vld [vmem:[%s596_s1 + $0x60] sm:$0xff]  ;;  %v57_v8 = vld [vmem:[%s596_s1 + $0x58] sm:$0xff]  ;;  %v56_v10 = vld [vmem:[%s596_s1 + $0x50] sm:$0xff] }
   0x4   :  { %83 = vmatpush.msra.mxu0 %v60_v1  ;;  %319 = vmatpush.msra.mxu2 %v60_v1  ;;  %v74_v7 = vld [vmem:[%s596_s1 + $0xe0] sm:$0xff]  ;;  %v73_v9 = vld [vmem:[%s596_s1 + $0xd8] sm:$0xff]  ;;  %v72_v11 = vld [vmem:[%s596_s1 + $0xd0] sm:$0xff] }
   0x5   :  { %148 = vmatpush.msra.mxu1 %v76_v3  ;;  %335 = vmatpush.msra.mxu3 %v76_v3  ;;  %v55_v12 = vld [vmem:[%s596_s1 + $0x48] sm:$0xff]  ;;  %v54_v14 = vld [vmem:[%s596_s1 + $0x40] sm:$0xff]  ;;  %v53_v16 = vld [vmem:[%s596_s1 + $0x38] sm:$0xff] }
   0x6   :  { %84 = vmatpush.msra.mxu0 %v59_v4  ;;  %320 = vmatpush.msra.mxu2 %v59_v4  ;;  %v71_v13 = vld [vmem:[%s596_s1 + $0xc8] sm:$0xff]  ;;  %v70_v15 = vld [vmem:[%s596_s1 + $0xc0] sm:$0xff]  ;;  %v69_v17 = vld [vmem:[%s596_s1 + $0xb8] sm:$0xff] }
   0x7   :  { %149 = vmatpush.msra.mxu1 %v75_v5  ;;  %336 = vmatpush.msra.mxu3 %v75_v5  ;;  %v52_v18 = vld [vmem:[%s596_s1 + $0x30] sm:$0xff]  ;;  %v51_v20 = vld [vmem:[%s596_s1 + $0x28] sm:$0xff]  ;;  %v50_v22 = vld [vmem:[%s596_s1 + $0x20] sm:$0xff] }
   0x8   :  { %85 = vmatpush.msra.mxu0 %v58_v6  ;;  %321 = vmatpush.msra.mxu2 %v58_v6  ;;  %v68_v19 = vld [vmem:[%s596_s1 + $0xb0] sm:$0xff]  ;;  %v67_v21 = vld [vmem:[%s596_s1 + $0xa8] sm:$0xff]  ;;  %v66_v23 = vld [vmem:[%s596_s1 + $0xa0] sm:$0xff] }
   0x9   :  { %150 = vmatpush.msra.mxu1 %v74_v7  ;;  %337 = vmatpush.msra.mxu3 %v74_v7  ;;  %v49_v24 = vld [vmem:[%s596_s1 + $0x18] sm:$0xff]  ;;  %v48_v26 = vld [vmem:[%s596_s1 + $0x10] sm:$0xff]  ;;  %v47_v28 = vld [vmem:[%s596_s1 + $0x8] sm:$0xff] }
   0xa   :  { %86 = vmatpush.msra.mxu0 %v57_v8  ;;  %322 = vmatpush.msra.mxu2 %v57_v8  ;;  %v65_v25 = vld [vmem:[%s596_s1 + $0x98] sm:$0xff]  ;;  %v64_v27 = vld [vmem:[%s596_s1 + $0x90] sm:$0xff]  ;;  %v63_v29 = vld [vmem:[%s596_s1 + $0x88] sm:$0xff] }
   0xb   :  { %151 = vmatpush.msra.mxu1 %v73_v9  ;;  %338 = vmatpush.msra.mxu3 %v73_v9  ;;  %v46_v30 = vld [vmem:[%s596_s1] sm:$0xff]  ;;  %v15_v34 = vld [vmem:[%s598_s0 + $0x8] sm:$0xff]  ;;  %v16_v36 = vld [vmem:[%s598_s0 + $0x10] sm:$0xff] }
   0xc   :  { %87 = vmatpush.msra.mxu0 %v56_v10  ;;  %323 = vmatpush.msra.mxu2 %v56_v10  ;;  %v14_v31 = vld [vmem:[%s598_s0] sm:$0xff]  ;;  %v31_v35 = vld [vmem:[%s598_s0 + $0x88] sm:$0xff]  ;;  %v32_v37 = vld [vmem:[%s598_s0 + $0x90] sm:$0xff] }
   0xd   :  { %152 = vmatpush.msra.mxu1 %v72_v11  ;;  %339 = vmatpush.msra.mxu3 %v72_v11  ;;  %v30_v32 = vld [vmem:[%s598_s0 + $0x80] sm:$0xff]  ;;  %v17_v38 = vld [vmem:[%s598_s0 + $0x18] sm:$0xff]  ;;  %v19_v42 = vld [vmem:[%s598_s0 + $0x28] sm:$0xff] }
   0xe   :  { %88 = vmatpush.msra.mxu0 %v55_v12  ;;  %324 = vmatpush.msra.mxu2 %v55_v12  ;;  %v62_v33 = vld [vmem:[%s596_s1 + $0x80] sm:$0xff]  ;;  %v33_v39 = vld [vmem:[%s598_s0 + $0x98] sm:$0xff]  ;;  %v35_v43 = vld [vmem:[%s598_s0 + $0xa8] sm:$0xff] }
   0xf   :  { %153 = vmatpush.msra.mxu1 %v71_v13  ;;  %340 = vmatpush.msra.mxu3 %v71_v13  ;;  %v18_v40 = vld [vmem:[%s598_s0 + $0x20] sm:$0xff]  ;;  %v20_v44 = vld [vmem:[%s598_s0 + $0x30] sm:$0xff]  ;;  %v21_v46 = vld [vmem:[%s598_s0 + $0x38] sm:$0xff] }
  0x10   :  { %89 = vmatpush.msra.mxu0 %v54_v14  ;;  %325 = vmatpush.msra.mxu2 %v54_v14  ;;  %v34_v41 = vld [vmem:[%s598_s0 + $0xa0] sm:$0xff]  ;;  %v36_v45 = vld [vmem:[%s598_s0 + $0xb0] sm:$0xff]  ;;  %v37_v47 = vld [vmem:[%s598_s0 + $0xb8] sm:$0xff] }
  0x11   :  { %154 = vmatpush.msra.mxu1 %v70_v15  ;;  %341 = vmatpush.msra.mxu3 %v70_v15  ;;  %v22_v48 = vld [vmem:[%s598_s0 + $0x40] sm:$0xff]  ;;  %v23_v50 = vld [vmem:[%s598_s0 + $0x48] sm:$0xff]  ;;  %v24_v52 = vld [vmem:[%s598_s0 + $0x50] sm:$0xff] }
  0x12   :  { %90 = vmatpush.msra.mxu0 %v53_v16  ;;  %326 = vmatpush.msra.mxu2 %v53_v16  ;;  %v38_v49 = vld [vmem:[%s598_s0 + $0xc0] sm:$0xff]  ;;  %v39_v51 = vld [vmem:[%s598_s0 + $0xc8] sm:$0xff]  ;;  %v40_v53 = vld [vmem:[%s598_s0 + $0xd0] sm:$0xff] }
  0x13   :  { %155 = vmatpush.msra.mxu1 %v69_v17  ;;  %342 = vmatpush.msra.mxu3 %v69_v17  ;;  %v25_v54 = vld [vmem:[%s598_s0 + $0x58] sm:$0xff]  ;;  %v26_v56 = vld [vmem:[%s598_s0 + $0x60] sm:$0xff]  ;;  %v27_v58 = vld [vmem:[%s598_s0 + $0x68] sm:$0xff] }
  0x14   :  { %91 = vmatpush.msra.mxu0 %v52_v18  ;;  %327 = vmatpush.msra.mxu2 %v52_v18  ;;  %v41_v55 = vld [vmem:[%s598_s0 + $0xd8] sm:$0xff]  ;;  %v42_v57 = vld [vmem:[%s598_s0 + $0xe0] sm:$0xff]  ;;  %v43_v59 = vld [vmem:[%s598_s0 + $0xe8] sm:$0xff] }
  0x15   :  { %156 = vmatpush.msra.mxu1 %v68_v19  ;;  %343 = vmatpush.msra.mxu3 %v68_v19  ;;  %v28_v60 = vld [vmem:[%s598_s0 + $0x70] sm:$0xff]  ;;  %v29_v62 = vld [vmem:[%s598_s0 + $0x78] sm:$0xff]  ;;  %v566_v0 = vld [vmem:[%s597_s2] ss:$0 sm:$0xff] }
  0x16   :  { %92 = vmatpush.msra.mxu0 %v51_v20  ;;  %328 = vmatpush.msra.mxu2 %v51_v20  ;;  %v44_v61 = vld [vmem:[%s598_s0 + $0xf0] sm:$0xff]  ;;  %v45_v63 = vld [vmem:[%s598_s0 + $0xf8] sm:$0xff] }
  0x17   :  { %157 = vmatpush.msra.mxu1 %v67_v21  ;;  %344 = vmatpush.msra.mxu3 %v67_v21 }
  0x18   :  { %93 = vmatpush.msra.mxu0 %v50_v22  ;;  %329 = vmatpush.msra.mxu2 %v50_v22 }
  0x19   :  { %158 = vmatpush.msra.mxu1 %v66_v23  ;;  %345 = vmatpush.msra.mxu3 %v66_v23 }
  0x1a   :  { %94 = vmatpush.msra.mxu0 %v49_v24  ;;  %330 = vmatpush.msra.mxu2 %v49_v24 }
  0x1b   :  { %159 = vmatpush.msra.mxu1 %v65_v25  ;;  %346 = vmatpush.msra.mxu3 %v65_v25 }
  0x1c   :  { %95 = vmatpush.msra.mxu0 %v48_v26  ;;  %331 = vmatpush.msra.mxu2 %v48_v26 }
  0x1d   :  { %160 = vmatpush.msra.mxu1 %v64_v27  ;;  %347 = vmatpush.msra.mxu3 %v64_v27 }
  0x1e   :  { %96 = vmatpush.msra.mxu0 %v47_v28  ;;  %332 = vmatpush.msra.mxu2 %v47_v28 }
  0x1f   :  { %161 = vmatpush.msra.mxu1 %v63_v29  ;;  %348 = vmatpush.msra.mxu3 %v63_v29 }
  0x20   :  { %97 = vmatpush.msra.mxu0 %v46_v30  ;;  %333 = vmatpush.msra.mxu2 %v46_v30 }
  0x21   :  { %98 = vmatmul.f32.vlgmr.msra.gmra.mxu0 %v14_v31  ;;  %122 = vmatmul.f32.vlgmr.msra.gmra.mxu2 %v30_v32 }
  0x22   :  { %162 = vmatpush.msra.mxu1 %v62_v33  ;;  %349 = vmatpush.msra.mxu3 %v62_v33 }
  0x23   :  { %163 = vmatmul.f32.vlgmr.msra.gmra.mxu1 %v15_v34  ;;  %187 = vmatmul.f32.vlgmr.msra.gmra.mxu3 %v31_v35 }
  0x29   :  { %101 = vmatmul.f32.gmra.mxu0 %v16_v36  ;;  %125 = vmatmul.f32.gmra.mxu2 %v32_v37 }
  0x2b   :  { %166 = vmatmul.f32.gmra.mxu1 %v17_v38  ;;  %190 = vmatmul.f32.gmra.mxu3 %v33_v39 }
  0x31   :  { %104 = vmatmul.f32.gmra.mxu0 %v18_v40  ;;  %128 = vmatmul.f32.gmra.mxu2 %v34_v41 }
  0x33   :  { %169 = vmatmul.f32.gmra.mxu1 %v19_v42  ;;  %193 = vmatmul.f32.gmra.mxu3 %v35_v43 }
  0x39   :  { %107 = vmatmul.f32.gmra.mxu0 %v20_v44  ;;  %131 = vmatmul.f32.gmra.mxu2 %v36_v45 }
  0x3b   :  { %172 = vmatmul.f32.gmra.mxu1 %v21_v46  ;;  %196 = vmatmul.f32.gmra.mxu3 %v37_v47 }
  0x41   :  { %110 = vmatmul.f32.gmra.mxu0 %v22_v48  ;;  %134 = vmatmul.f32.gmra.mxu2 %v38_v49 }
  0x43   :  { %175 = vmatmul.f32.gmra.mxu1 %v23_v50  ;;  %199 = vmatmul.f32.gmra.mxu3 %v39_v51 }
  0x49   :  { %113 = vmatmul.f32.gmra.mxu0 %v24_v52  ;;  %137 = vmatmul.f32.gmra.mxu2 %v40_v53 }
  0x4b   :  { %178 = vmatmul.f32.gmra.mxu1 %v25_v54  ;;  %202 = vmatmul.f32.gmra.mxu3 %v41_v55 }
  0x51   :  { %116 = vmatmul.f32.gmra.mxu0 %v26_v56  ;;  %140 = vmatmul.f32.gmra.mxu2 %v42_v57 }
  0x53   :  { %181 = vmatmul.f32.gmra.mxu1 %v27_v58  ;;  %205 = vmatmul.f32.gmra.mxu3 %v43_v59 }
  0x59   :  { %119 = vmatmul.f32.gmra.mxu0 %v28_v60  ;;  %143 = vmatmul.f32.gmra.mxu2 %v44_v61 }
  0x5b   :  { %184 = vmatmul.f32.gmra.mxu1 %v29_v62  ;;  %208 = vmatmul.f32.gmra.mxu3 %v45_v63 }
  0x9e   :  { %v99_v1 = vpop.f32.mrf.mxu0 }
  0x9f   :  { %v100_v2 = vadd.f32 %v566_v0, %v99_v1 }
  0xa0   :  { %v164_v3 = vpop.f32.mrf.mxu1 }
  0xa1   :  { %v165_v4 = vadd.f32 %v164_v3, %v100_v2 }
  0xa3   :  { %v212_v5 = vmax.f32 %v165_v4, 0.0 }
  0xa4   :  { %v123_v6 = vpop.f32.mrf.mxu2 }
  0xa5   :  { %228 = vst [vmem:[#allocation2] sm:$0xff] %v212_v5  ;;  %v124_v7 = vadd.f32 %v566_v0, %v123_v6 }
  0xa6   :  { %v102_v8 = vpop.f32.mrf.mxu0  ;;  %v188_v9 = vpop.f32.mrf.mxu3 }
  0xa7   :  { %v103_v10 = vadd.f32 %v566_v0, %v102_v8  ;;  %v189_v11 = vadd.f32 %v188_v9, %v124_v7 }
  0xa8   :  { %v167_v12 = vpop.f32.mrf.mxu1 }
  0xa9   :  { %v220_v13 = vmax.f32 %v189_v11, 0.0  ;;  %v168_v14 = vadd.f32 %v167_v12, %v103_v10 }
  0xab   :  { %236 = vst [vmem:[#allocation2 + $0x40] sm:$0xff] %v220_v13  ;;  %v213_v15 = vmax.f32 %v168_v14, 0.0 }
  0xac   :  { %v126_v16 = vpop.f32.mrf.mxu2 }
  0xad   :  { %229 = vst [vmem:[#allocation2 + $0x8] sm:$0xff] %v213_v15  ;;  %v127_v17 = vadd.f32 %v566_v0, %v126_v16 }
  0xae   :  { %v105_v18 = vpop.f32.mrf.mxu0  ;;  %v191_v19 = vpop.f32.mrf.mxu3 }
  0xaf   :  { %v106_v20 = vadd.f32 %v566_v0, %v105_v18  ;;  %v192_v21 = vadd.f32 %v191_v19, %v127_v17 }
  0xb0   :  { %v170_v22 = vpop.f32.mrf.mxu1 }
  0xb1   :  { %v221_v23 = vmax.f32 %v192_v21, 0.0  ;;  %v171_v24 = vadd.f32 %v170_v22, %v106_v20 }
  0xb3   :  { %237 = vst [vmem:[#allocation2 + $0x48] sm:$0xff] %v221_v23  ;;  %v214_v25 = vmax.f32 %v171_v24, 0.0 }
  0xb4   :  { %v244_v26 = vld [vmem:[#allocation2] ss:$2 sm:$0xff]  ;;  %v260_v27 = vld [vmem:[#allocation2 + $0x1] ss:$2 sm:$0xff]  ;;  %v129_v28 = vpop.f32.mrf.mxu2 }
  0xb5   :  { %v275_v29 = vmax.f32 %v244_v26, %v260_v27  ;;  %230 = vst [vmem:[#allocation2 + $0x10] sm:$0xff] %v214_v25  ;;  %v130_v30 = vadd.f32 %v566_v0, %v129_v28 }
  0xb6   :  { %v108_v31 = vpop.f32.mrf.mxu0  ;;  %v194_v32 = vpop.f32.mrf.mxu3 }
  0xb7   :  { %283 = vst [vmem:[#allocation3] sm:$0xff] %v275_v29  ;;  %v109_v33 = vadd.f32 %v566_v0, %v108_v31  ;;  %v195_v34 = vadd.f32 %v194_v32, %v130_v30 }
  0xb8   :  { %v173_v35 = vpop.f32.mrf.mxu1 }
  0xb9   :  { %v222_v36 = vmax.f32 %v195_v34, 0.0  ;;  %v174_v37 = vadd.f32 %v173_v35, %v109_v33 }
  0xba   :  { %v252_v38 = vld [vmem:[#allocation2 + $0x40] ss:$2 sm:$0xff]  ;;  %v268_v39 = vld [vmem:[#allocation2 + $0x41] ss:$2 sm:$0xff] }
  0xbb   :  { %v279_v40 = vmax.f32 %v252_v38, %v268_v39  ;;  %238 = vst [vmem:[#allocation2 + $0x50] sm:$0xff] %v222_v36  ;;  %v215_v41 = vmax.f32 %v174_v37, 0.0 }
  0xbc   :  { %v132_v42 = vpop.f32.mrf.mxu2 }
  0xbd   :  { %287 = vst [vmem:[#allocation3 + $0x20] sm:$0xff] %v279_v40  ;;  %v133_v43 = vadd.f32 %v566_v0, %v132_v42 }
  0xbe   :  { %231 = vst [vmem:[#allocation2 + $0x18] sm:$0xff] %v215_v41  ;;  %v111_v44 = vpop.f32.mrf.mxu0  ;;  %v197_v45 = vpop.f32.mrf.mxu3 }
  0xbf   :  { %v112_v46 = vadd.f32 %v566_v0, %v111_v44  ;;  %v198_v47 = vadd.f32 %v197_v45, %v133_v43 }
  0xc0   :  { %v176_v48 = vpop.f32.mrf.mxu1 }
  0xc1   :  { %v223_v49 = vmax.f32 %v198_v47, 0.0  ;;  %v177_v50 = vadd.f32 %v176_v48, %v112_v46 }
  0xc3   :  { %239 = vst [vmem:[#allocation2 + $0x58] sm:$0xff] %v223_v49  ;;  %v216_v51 = vmax.f32 %v177_v50, 0.0 }
  0xc4   :  { %v135_v52 = vpop.f32.mrf.mxu2 }
  0xc5   :  { %v246_v53 = vld [vmem:[#allocation2 + $0x10] ss:$2 sm:$0xff]  ;;  %v262_v54 = vld [vmem:[#allocation2 + $0x11] ss:$2 sm:$0xff]  ;;  %232 = vst [vmem:[#allocation2 + $0x20] sm:$0xff] %v216_v51  ;;  %v136_v55 = vadd.f32 %v566_v0, %v135_v52 }
  0xc6   :  { %v276_v56 = vmax.f32 %v246_v53, %v262_v54  ;;  %v114_v57 = vpop.f32.mrf.mxu0  ;;  %v200_v58 = vpop.f32.mrf.mxu3 }
  0xc7   :  { %v115_v59 = vadd.f32 %v566_v0, %v114_v57  ;;  %v201_v60 = vadd.f32 %v200_v58, %v136_v55 }
  0xc8   :  { %284 = vst [vmem:[#allocation3 + $0x8] sm:$0xff] %v276_v56  ;;  %v179_v61 = vpop.f32.mrf.mxu1 }
  0xc9   :  { %v224_v62 = vmax.f32 %v201_v60, 0.0  ;;  %v180_v63 = vadd.f32 %v179_v61, %v115_v59 }
  0xca   :  { %v254_v1 = vld [vmem:[#allocation2 + $0x50] ss:$2 sm:$0xff]  ;;  %v270_v2 = vld [vmem:[#allocation2 + $0x51] ss:$2 sm:$0xff] }
  0xcb   :  { %v280_v3 = vmax.f32 %v254_v1, %v270_v2  ;;  %240 = vst [vmem:[#allocation2 + $0x60] sm:$0xff] %v224_v62  ;;  %v217_v4 = vmax.f32 %v180_v63, 0.0 }
  0xcc   :  { %v138_v5 = vpop.f32.mrf.mxu2 }
  0xcd   :  { %288 = vst [vmem:[#allocation3 + $0x28] sm:$0xff] %v280_v3  ;;  %v139_v6 = vadd.f32 %v566_v0, %v138_v5 }
  0xce   :  { %233 = vst [vmem:[#allocation2 + $0x28] sm:$0xff] %v217_v4  ;;  %v117_v7 = vpop.f32.mrf.mxu0  ;;  %v203_v8 = vpop.f32.mrf.mxu3 }
  0xcf   :  { %v291_v9 = vld [vmem:[#allocation3] ss:$2 sm:$0xff]  ;;  %v299_v10 = vld [vmem:[#allocation3 + $0x1] ss:$2 sm:$0xff]  ;;  %v118_v11 = vadd.f32 %v566_v0, %v117_v7  ;;  %v204_v12 = vadd.f32 %v203_v8, %v139_v6 }
  0xd0   :  { %v306_v13 = vmax.f32 %v291_v9, %v299_v10  ;;  %v182_v14 = vpop.f32.mrf.mxu1 }
  0xd1   :  { %v225_v15 = vmax.f32 %v204_v12, 0.0  ;;  %v183_v16 = vadd.f32 %v182_v14, %v118_v11 }
  0xd2   :  { %310 = vst [vmem:[%s599_s3] sm:$0xff] %v306_v13 }
  0xd3   :  { %241 = vst [vmem:[#allocation2 + $0x68] sm:$0xff] %v225_v15  ;;  %v218_v17 = vmax.f32 %v183_v16, 0.0 }
  0xd4   :  { %v295_v18 = vld [vmem:[#allocation3 + $0x20] ss:$2 sm:$0xff]  ;;  %v303_v19 = vld [vmem:[#allocation3 + $0x21] ss:$2 sm:$0xff]  ;;  %v141_v20 = vpop.f32.mrf.mxu2 }
  0xd5   :  { %v308_v21 = vmax.f32 %v295_v18, %v303_v19  ;;  %v248_v22 = vld [vmem:[#allocation2 + $0x20] ss:$2 sm:$0xff]  ;;  %v264_v23 = vld [vmem:[#allocation2 + $0x21] ss:$2 sm:$0xff]  ;;  %234 = vst [vmem:[#allocation2 + $0x30] sm:$0xff] %v218_v17  ;;  %v142_v24 = vadd.f32 %v566_v0, %v141_v20 }
  0xd6   :  { %v277_v25 = vmax.f32 %v248_v22, %v264_v23  ;;  %v120_v26 = vpop.f32.mrf.mxu0  ;;  %v206_v27 = vpop.f32.mrf.mxu3 }
  0xd7   :  { %312 = vst [vmem:[%s599_s3 + $0x10] sm:$0xff] %v308_v21  ;;  %v121_v28 = vadd.f32 %v566_v0, %v120_v26  ;;  %v207_v29 = vadd.f32 %v206_v27, %v142_v24 }
  0xd8   :  { %285 = vst [vmem:[#allocation3 + $0x10] sm:$0xff] %v277_v25  ;;  %v185_v30 = vpop.f32.mrf.mxu1 }
  0xd9   :  { %v226_v31 = vmax.f32 %v207_v29, 0.0  ;;  %v186_v32 = vadd.f32 %v185_v30, %v121_v28 }
  0xda   :  { %v256_v33 = vld [vmem:[#allocation2 + $0x60] ss:$2 sm:$0xff]  ;;  %v272_v34 = vld [vmem:[#allocation2 + $0x61] ss:$2 sm:$0xff] }
  0xdb   :  { %v281_v35 = vmax.f32 %v256_v33, %v272_v34  ;;  %242 = vst [vmem:[#allocation2 + $0x70] sm:$0xff] %v226_v31  ;;  %v219_v36 = vmax.f32 %v186_v32, 0.0 }
  0xdc   :  { %v144_v37 = vpop.f32.mrf.mxu2 }
  0xdd   :  { %289 = vst [vmem:[#allocation3 + $0x30] sm:$0xff] %v281_v35  ;;  %v145_v38 = vadd.f32 %v566_v0, %v144_v37 }
  0xde   :  { %235 = vst [vmem:[#allocation2 + $0x38] sm:$0xff] %v219_v36  ;;  %v209_v39 = vpop.f32.mrf.mxu3 }
  0xdf   :  { %v210_v40 = vadd.f32 %v209_v39, %v145_v38 }
  0xe1   :  { %v227_v41 = vmax.f32 %v210_v40, 0.0 }
  0xe3   :  { %243 = vst [vmem:[#allocation2 + $0x78] sm:$0xff] %v227_v41 }
  0xe5   :  { %v250_v42 = vld [vmem:[#allocation2 + $0x30] ss:$2 sm:$0xff]  ;;  %v266_v43 = vld [vmem:[#allocation2 + $0x31] ss:$2 sm:$0xff] }
  0xe6   :  { %v278_v44 = vmax.f32 %v250_v42, %v266_v43 }
  0xe8   :  { %286 = vst [vmem:[#allocation3 + $0x18] sm:$0xff] %v278_v44 }
  0xea   :  { %v258_v45 = vld [vmem:[#allocation2 + $0x70] ss:$2 sm:$0xff]  ;;  %v274_v46 = vld [vmem:[#allocation2 + $0x71] ss:$2 sm:$0xff] }
  0xeb   :  { %v282_v47 = vmax.f32 %v258_v45, %v274_v46 }
  0xed   :  { %290 = vst [vmem:[#allocation3 + $0x38] sm:$0xff] %v282_v47 }
  0xef   :  { %v293_v48 = vld [vmem:[#allocation3 + $0x10] ss:$2 sm:$0xff]  ;;  %v301_v49 = vld [vmem:[#allocation3 + $0x11] ss:$2 sm:$0xff] }
  0xf0   :  { %v307_v50 = vmax.f32 %v293_v48, %v301_v49 }
  0xf2   :  { %311 = vst [vmem:[%s599_s3 + $0x8] sm:$0xff] %v307_v50 }
  0xf4   :  { %v297_v0 = vld [vmem:[#allocation3 + $0x30] ss:$2 sm:$0xff]  ;;  %v305_v51 = vld [vmem:[#allocation3 + $0x31] ss:$2 sm:$0xff] }
  0xf5   :  { %v309_v52 = vmax.f32 %v297_v0, %v305_v51 }
  0xf7   :  { %313 = vst [vmem:[%s599_s3 + $0x18] sm:$0xff] %v309_v52 }

// kernel: cnn_forward.7
= control target key start
LH: loop header
LB: loop body
LE: loop exit
PB: predicated region body
PF: predicated region fallthrough
CT: control target
= control target key end

     0   :  { %s7528_s0 = inlined_call_operand.vmem [shape: f32[2,2048], index: 0, kind: input, shape index: {}]   ;;  %s7529_s1 = inlined_call_operand.vmem [shape: f32[2048,640], index: 1, kind: input, shape index: {}]   ;;  %s7530_s2 = inlined_call_operand.vmem [shape: f32[1,640], index: 2, kind: input, shape index: {}]   ;;  %s7531_s3 = inlined_call_operand.vmem [shape: f32[640,10], index: 3, kind: input, shape index: {}]   ;;  %s7532_s4 = inlined_call_operand.vmem [shape: f32[1,10], index: 4, kind: input, shape index: {}]   ;;  %s7533_s5 = inlined_call_operand.hbm [shape: f32[2,10], index: 5, kind: output, shape index: {}]  }
   0x1   :  { %v100_v0 = vld [vmem:[%s7529_s1 + $0x258] sm:$0xff]  ;;  %v95_v4 = vld [vmem:[%s7529_s1 + $0x230] sm:$0xff]  ;;  %v90_v8 = vld [vmem:[%s7529_s1 + $0x208] sm:$0xff] }
   0x2   :  { %v180_v1 = vld [vmem:[%s7529_s1 + $0x4d8] sm:$0xff]  ;;  %1358 = vmatpush.msra.mxu0 %v100_v0  ;;  %v175_v5 = vld [vmem:[%s7529_s1 + $0x4b0] sm:$0xff]  ;;  %v170_v9 = vld [vmem:[%s7529_s1 + $0x488] sm:$0xff] }
   0x3   :  { %v260_v2 = vld [vmem:[%s7529_s1 + $0x758] sm:$0xff]  ;;  %1378 = vmatpush.msra.mxu1 %v180_v1  ;;  %v255_v6 = vld [vmem:[%s7529_s1 + $0x730] sm:$0xff]  ;;  %v250_v10 = vld [vmem:[%s7529_s1 + $0x708] sm:$0xff] }
   0x4   :  { %v340_v3 = vld [vmem:[%s7529_s1 + $0x9d8] sm:$0xff]  ;;  %1398 = vmatpush.msra.mxu2 %v260_v2  ;;  %v335_v7 = vld [vmem:[%s7529_s1 + $0x9b0] sm:$0xff]  ;;  %1359 = vmatpush.msra.mxu0 %v95_v4  ;;  %v330_v11 = vld [vmem:[%s7529_s1 + $0x988] sm:$0xff] }
   0x5   :  { %1418 = vmatpush.msra.mxu3 %v340_v3  ;;  %1379 = vmatpush.msra.mxu1 %v175_v5  ;;  %v85_v12 = vld [vmem:[%s7529_s1 + $0x1e0] sm:$0xff]  ;;  %v80_v16 = vld [vmem:[%s7529_s1 + $0x1b8] sm:$0xff]  ;;  %v75_v20 = vld [vmem:[%s7529_s1 + $0x190] sm:$0xff] }
   0x6   :  { %1399 = vmatpush.msra.mxu2 %v255_v6  ;;  %v165_v13 = vld [vmem:[%s7529_s1 + $0x460] sm:$0xff]  ;;  %1360 = vmatpush.msra.mxu0 %v90_v8  ;;  %v160_v17 = vld [vmem:[%s7529_s1 + $0x438] sm:$0xff]  ;;  %v155_v21 = vld [vmem:[%s7529_s1 + $0x410] sm:$0xff] }
   0x7   :  { %1419 = vmatpush.msra.mxu3 %v335_v7  ;;  %1380 = vmatpush.msra.mxu1 %v170_v9  ;;  %v245_v14 = vld [vmem:[%s7529_s1 + $0x6e0] sm:$0xff]  ;;  %v240_v18 = vld [vmem:[%s7529_s1 + $0x6b8] sm:$0xff]  ;;  %v235_v22 = vld [vmem:[%s7529_s1 + $0x690] sm:$0xff] }
   0x8   :  { %v325_v15 = vld [vmem:[%s7529_s1 + $0x960] sm:$0xff]  ;;  %1400 = vmatpush.msra.mxu2 %v250_v10  ;;  %1361 = vmatpush.msra.mxu0 %v85_v12  ;;  %v320_v19 = vld [vmem:[%s7529_s1 + $0x938] sm:$0xff]  ;;  %v315_v23 = vld [vmem:[%s7529_s1 + $0x910] sm:$0xff] }
   0x9   :  { %1420 = vmatpush.msra.mxu3 %v330_v11  ;;  %1381 = vmatpush.msra.mxu1 %v165_v13  ;;  %v70_v24 = vld [vmem:[%s7529_s1 + $0x168] sm:$0xff]  ;;  %v65_v28 = vld [vmem:[%s7529_s1 + $0x140] sm:$0xff]  ;;  %v60_v32 = vld [vmem:[%s7529_s1 + $0x118] sm:$0xff] }
   0xa   :  { %1401 = vmatpush.msra.mxu2 %v245_v14  ;;  %1362 = vmatpush.msra.mxu0 %v80_v16  ;;  %v150_v25 = vld [vmem:[%s7529_s1 + $0x3e8] sm:$0xff]  ;;  %v145_v29 = vld [vmem:[%s7529_s1 + $0x3c0] sm:$0xff]  ;;  %v140_v33 = vld [vmem:[%s7529_s1 + $0x398] sm:$0xff] }
   0xb   :  { %1421 = vmatpush.msra.mxu3 %v325_v15  ;;  %1382 = vmatpush.msra.mxu1 %v160_v17  ;;  %v230_v26 = vld [vmem:[%s7529_s1 + $0x668] sm:$0xff]  ;;  %v225_v30 = vld [vmem:[%s7529_s1 + $0x640] sm:$0xff]  ;;  %v220_v34 = vld [vmem:[%s7529_s1 + $0x618] sm:$0xff] }
   0xc   :  { %1402 = vmatpush.msra.mxu2 %v240_v18  ;;  %1363 = vmatpush.msra.mxu0 %v75_v20  ;;  %v310_v27 = vld [vmem:[%s7529_s1 + $0x8e8] sm:$0xff]  ;;  %v305_v31 = vld [vmem:[%s7529_s1 + $0x8c0] sm:$0xff]  ;;  %v300_v35 = vld [vmem:[%s7529_s1 + $0x898] sm:$0xff] }
   0xd   :  { %1422 = vmatpush.msra.mxu3 %v320_v19  ;;  %1383 = vmatpush.msra.mxu1 %v155_v21  ;;  %v55_v36 = vld [vmem:[%s7529_s1 + $0xf0] sm:$0xff]  ;;  %v50_v40 = vld [vmem:[%s7529_s1 + $0xc8] sm:$0xff]  ;;  %v45_v44 = vld [vmem:[%s7529_s1 + $0xa0] sm:$0xff] }
   0xe   :  { %1403 = vmatpush.msra.mxu2 %v235_v22  ;;  %1364 = vmatpush.msra.mxu0 %v70_v24  ;;  %v135_v37 = vld [vmem:[%s7529_s1 + $0x370] sm:$0xff]  ;;  %v130_v41 = vld [vmem:[%s7529_s1 + $0x348] sm:$0xff]  ;;  %v125_v45 = vld [vmem:[%s7529_s1 + $0x320] sm:$0xff] }
   0xf   :  { %1423 = vmatpush.msra.mxu3 %v315_v23  ;;  %1384 = vmatpush.msra.mxu1 %v150_v25  ;;  %v215_v38 = vld [vmem:[%s7529_s1 + $0x5f0] sm:$0xff]  ;;  %v210_v42 = vld [vmem:[%s7529_s1 + $0x5c8] sm:$0xff]  ;;  %v205_v46 = vld [vmem:[%s7529_s1 + $0x5a0] sm:$0xff] }
  0x10   :  { %1404 = vmatpush.msra.mxu2 %v230_v26  ;;  %1365 = vmatpush.msra.mxu0 %v65_v28  ;;  %v295_v39 = vld [vmem:[%s7529_s1 + $0x870] sm:$0xff]  ;;  %v290_v43 = vld [vmem:[%s7529_s1 + $0x848] sm:$0xff]  ;;  %v285_v47 = vld [vmem:[%s7529_s1 + $0x820] sm:$0xff] }
  0x11   :  { %1424 = vmatpush.msra.mxu3 %v310_v27  ;;  %1385 = vmatpush.msra.mxu1 %v145_v29  ;;  %v40_v48 = vld [vmem:[%s7529_s1 + $0x78] sm:$0xff]  ;;  %v35_v52 = vld [vmem:[%s7529_s1 + $0x50] sm:$0xff]  ;;  %v30_v56 = vld [vmem:[%s7529_s1 + $0x28] sm:$0xff] }
  0x12   :  { %1405 = vmatpush.msra.mxu2 %v225_v30  ;;  %1366 = vmatpush.msra.mxu0 %v60_v32  ;;  %v120_v49 = vld [vmem:[%s7529_s1 + $0x2f8] sm:$0xff]  ;;  %v115_v53 = vld [vmem:[%s7529_s1 + $0x2d0] sm:$0xff]  ;;  %v110_v57 = vld [vmem:[%s7529_s1 + $0x2a8] sm:$0xff] }
  0x13   :  { %1425 = vmatpush.msra.mxu3 %v305_v31  ;;  %1386 = vmatpush.msra.mxu1 %v140_v33  ;;  %v200_v50 = vld [vmem:[%s7529_s1 + $0x578] sm:$0xff]  ;;  %v195_v54 = vld [vmem:[%s7529_s1 + $0x550] sm:$0xff]  ;;  %v190_v58 = vld [vmem:[%s7529_s1 + $0x528] sm:$0xff] }
  0x14   :  { %1406 = vmatpush.msra.mxu2 %v220_v34  ;;  %1367 = vmatpush.msra.mxu0 %v55_v36  ;;  %v280_v51 = vld [vmem:[%s7529_s1 + $0x7f8] sm:$0xff]  ;;  %v275_v55 = vld [vmem:[%s7529_s1 + $0x7d0] sm:$0xff]  ;;  %v270_v59 = vld [vmem:[%s7529_s1 + $0x7a8] sm:$0xff] }
  0x15   :  { %1426 = vmatpush.msra.mxu3 %v300_v35  ;;  %1387 = vmatpush.msra.mxu1 %v135_v37  ;;  %v25_v60 = vld [vmem:[%s7529_s1] sm:$0xff]  ;;  %v420_v0 = vld [vmem:[%s7529_s1 + $0xc58] sm:$0xff]  ;;  %v415_v4 = vld [vmem:[%s7529_s1 + $0xc30] sm:$0xff] }
  0x16   :  { %1407 = vmatpush.msra.mxu2 %v215_v38  ;;  %1368 = vmatpush.msra.mxu0 %v50_v40  ;;  %v105_v61 = vld [vmem:[%s7529_s1 + $0x280] sm:$0xff]  ;;  %v500_v1 = vld [vmem:[%s7529_s1 + $0xed8] sm:$0xff]  ;;  %v495_v5 = vld [vmem:[%s7529_s1 + $0xeb0] sm:$0xff] }
  0x17   :  { %1427 = vmatpush.msra.mxu3 %v295_v39  ;;  %1388 = vmatpush.msra.mxu1 %v130_v41  ;;  %v185_v62 = vld [vmem:[%s7529_s1 + $0x500] sm:$0xff]  ;;  %v580_v2 = vld [vmem:[%s7529_s1 + $0x1158] sm:$0xff]  ;;  %v575_v6 = vld [vmem:[%s7529_s1 + $0x1130] sm:$0xff] }
  0x18   :  { %1408 = vmatpush.msra.mxu2 %v210_v42  ;;  %1369 = vmatpush.msra.mxu0 %v45_v44  ;;  %v265_v63 = vld [vmem:[%s7529_s1 + $0x780] sm:$0xff]  ;;  %v660_v3 = vld [vmem:[%s7529_s1 + $0x13d8] sm:$0xff]  ;;  %v655_v7 = vld [vmem:[%s7529_s1 + $0x13b0] sm:$0xff] }
  0x19   :  { %1428 = vmatpush.msra.mxu3 %v290_v43  ;;  %1389 = vmatpush.msra.mxu1 %v125_v45  ;;  %v410_v8 = vld [vmem:[%s7529_s1 + $0xc08] sm:$0xff]  ;;  %v405_v12 = vld [vmem:[%s7529_s1 + $0xbe0] sm:$0xff]  ;;  %v400_v16 = vld [vmem:[%s7529_s1 + $0xbb8] sm:$0xff] }
  0x1a   :  { %1409 = vmatpush.msra.mxu2 %v205_v46  ;;  %1370 = vmatpush.msra.mxu0 %v40_v48  ;;  %v490_v9 = vld [vmem:[%s7529_s1 + $0xe88] sm:$0xff]  ;;  %v485_v13 = vld [vmem:[%s7529_s1 + $0xe60] sm:$0xff]  ;;  %v480_v17 = vld [vmem:[%s7529_s1 + $0xe38] sm:$0xff] }
  0x1b   :  { %1429 = vmatpush.msra.mxu3 %v285_v47  ;;  %1390 = vmatpush.msra.mxu1 %v120_v49  ;;  %v570_v10 = vld [vmem:[%s7529_s1 + $0x1108] sm:$0xff]  ;;  %v565_v14 = vld [vmem:[%s7529_s1 + $0x10e0] sm:$0xff]  ;;  %v560_v18 = vld [vmem:[%s7529_s1 + $0x10b8] sm:$0xff] }
  0x1c   :  { %1410 = vmatpush.msra.mxu2 %v200_v50  ;;  %1371 = vmatpush.msra.mxu0 %v35_v52  ;;  %v650_v11 = vld [vmem:[%s7529_s1 + $0x1388] sm:$0xff]  ;;  %v645_v15 = vld [vmem:[%s7529_s1 + $0x1360] sm:$0xff]  ;;  %v640_v19 = vld [vmem:[%s7529_s1 + $0x1338] sm:$0xff] }
  0x1d   :  { %1430 = vmatpush.msra.mxu3 %v280_v51  ;;  %1391 = vmatpush.msra.mxu1 %v115_v53  ;;  %v395_v20 = vld [vmem:[%s7529_s1 + $0xb90] sm:$0xff]  ;;  %v390_v24 = vld [vmem:[%s7529_s1 + $0xb68] sm:$0xff]  ;;  %v21_v26 = vld [vmem:[%s7528_s0] sm:$0xff] }
  0x1e   :  { %1411 = vmatpush.msra.mxu2 %v195_v54  ;;  %1372 = vmatpush.msra.mxu0 %v30_v56  ;;  %v475_v21 = vld [vmem:[%s7529_s1 + $0xe10] sm:$0xff]  ;;  %v470_v25 = vld [vmem:[%s7529_s1 + $0xde8] sm:$0xff]  ;;  %1321 = vst [vmem:[#allocation1] ss:$4 sm:$0xff] %v21_v26  ;;  %v385_v29 = vld [vmem:[%s7529_s1 + $0xb40] sm:$0xff] }
  0x1f   :  { %1431 = vmatpush.msra.mxu3 %v275_v55  ;;  %1392 = vmatpush.msra.mxu1 %v110_v57  ;;  %v555_v22 = vld [vmem:[%s7529_s1 + $0x1090] sm:$0xff]  ;;  %v550_v27 = vld [vmem:[%s7529_s1 + $0x1068] sm:$0xff]  ;;  %v465_v30 = vld [vmem:[%s7529_s1 + $0xdc0] sm:$0xff] }
  0x20   :  { %1412 = vmatpush.msra.mxu2 %v190_v58  ;;  %1373 = vmatpush.msra.mxu0 %v25_v60  ;;  %v635_v23 = vld [vmem:[%s7529_s1 + $0x1310] sm:$0xff]  ;;  %v630_v28 = vld [vmem:[%s7529_s1 + $0x12e8] sm:$0xff]  ;;  %v545_v31 = vld [vmem:[%s7529_s1 + $0x1040] sm:$0xff] }
  0x21   :  { %1432 = vmatpush.msra.mxu3 %v270_v59  ;;  %1393 = vmatpush.msra.mxu1 %v105_v61  ;;  %v625_v32 = vld [vmem:[%s7529_s1 + $0x12c0] sm:$0xff]  ;;  %v380_v33 = vld [vmem:[%s7529_s1 + $0xb18] sm:$0xff]  ;;  %v375_v37 = vld [vmem:[%s7529_s1 + $0xaf0] sm:$0xff] }
  0x22   :  { %1413 = vmatpush.msra.mxu2 %v185_v62  ;;  %1438 = vmatpush.msrb.mxu0 %v420_v0  ;;  %v460_v34 = vld [vmem:[%s7529_s1 + $0xd98] sm:$0xff]  ;;  %v455_v38 = vld [vmem:[%s7529_s1 + $0xd70] sm:$0xff]  ;;  %v370_v41 = vld [vmem:[%s7529_s1 + $0xac8] sm:$0xff] }
  0x23   :  { %1433 = vmatpush.msra.mxu3 %v265_v63  ;;  %1458 = vmatpush.msrb.mxu1 %v500_v1  ;;  %v540_v35 = vld [vmem:[%s7529_s1 + $0x1018] sm:$0xff]  ;;  %v535_v39 = vld [vmem:[%s7529_s1 + $0xff0] sm:$0xff]  ;;  %v450_v42 = vld [vmem:[%s7529_s1 + $0xd48] sm:$0xff] }
  0x24   :  { %1478 = vmatpush.msrb.mxu2 %v580_v2  ;;  %1439 = vmatpush.msrb.mxu0 %v415_v4  ;;  %v620_v36 = vld [vmem:[%s7529_s1 + $0x1298] sm:$0xff]  ;;  %v615_v40 = vld [vmem:[%s7529_s1 + $0x1270] sm:$0xff]  ;;  %v22_v43 = vld [vmem:[%s7528_s0 + $0x8] sm:$0xff] }
  0x25   :  { %1498 = vmatpush.msrb.mxu3 %v660_v3  ;;  %1459 = vmatpush.msrb.mxu1 %v495_v5  ;;  %v530_v44 = vld [vmem:[%s7529_s1 + $0xfc8] sm:$0xff]  ;;  %v23_v46 = vld [vmem:[%s7528_s0 + $0x10] sm:$0xff]  ;;  %1323 = vst [vmem:[#allocation1 + $0x20] ss:$4 sm:$0xff] %v22_v43  ;;  %v365_v47 = vld [vmem:[%s7529_s1 + $0xaa0] sm:$0xff] }
  0x26   :  { %1479 = vmatpush.msrb.mxu2 %v575_v6  ;;  %1440 = vmatpush.msrb.mxu0 %v410_v8  ;;  %v610_v45 = vld [vmem:[%s7529_s1 + $0x1248] sm:$0xff]  ;;  %v3593_v48 = vld.sshfl [vmem:[#allocation1] sm:$0xff pattern:$0x73625140]  ;;  %v360_v55 = vld [vmem:[%s7529_s1 + $0xa78] sm:$0xff] }
  0x27   :  { %1499 = vmatpush.msrb.mxu3 %v655_v7  ;;  %1460 = vmatpush.msrb.mxu1 %v490_v9  ;;  %v3595_v49 = vld.sshfl [vmem:[#allocation1 + $0x8] sm:$0xff pattern:$0x73625140]  ;;  %v3597_v50 = vld.sshfl [vmem:[#allocation1 + $0x10] sm:$0xff pattern:$0x73625140] }
  0x28   :  { %1480 = vmatpush.msrb.mxu2 %v570_v10  ;;  %1441 = vmatpush.msrb.mxu0 %v405_v12  ;;  %v3599_v51 = vld.sshfl [vmem:[#allocation1 + $0x18] sm:$0xff pattern:$0x73625140]  ;;  %v445_v52 = vld [vmem:[%s7529_s1 + $0xd20] sm:$0xff]  ;;  %v355_v59 = vld [vmem:[%s7529_s1 + $0xa50] sm:$0xff] }
  0x29   :  { %1500 = vmatpush.msrb.mxu3 %v650_v11  ;;  %1461 = vmatpush.msrb.mxu1 %v485_v13  ;;  %v525_v53 = vld [vmem:[%s7529_s1 + $0xfa0] sm:$0xff]  ;;  %1332 = vst [vmem:[#allocation1] ss:$4 sm:$0xff] %v23_v46  ;;  %v440_v56 = vld [vmem:[%s7529_s1 + $0xcf8] sm:$0xff]  ;;  %v435_v60 = vld [vmem:[%s7529_s1 + $0xcd0] sm:$0xff] }
  0x2a   :  { %1481 = vmatpush.msrb.mxu2 %v565_v14  ;;  %1442 = vmatpush.msrb.mxu0 %v400_v16  ;;  %v605_v54 = vld [vmem:[%s7529_s1 + $0x1220] sm:$0xff]  ;;  %v520_v57 = vld [vmem:[%s7529_s1 + $0xf78] sm:$0xff]  ;;  %v515_v61 = vld [vmem:[%s7529_s1 + $0xf50] sm:$0xff] }
  0x2b   :  { %1501 = vmatpush.msrb.mxu3 %v645_v15  ;;  %1462 = vmatpush.msrb.mxu1 %v480_v17  ;;  %v600_v58 = vld [vmem:[%s7529_s1 + $0x11f8] sm:$0xff]  ;;  %v595_v62 = vld [vmem:[%s7529_s1 + $0x11d0] sm:$0xff]  ;;  %v350_v4 = vld [vmem:[%s7529_s1 + $0xa28] sm:$0xff] }
  0x2c   :  { %1482 = vmatpush.msrb.mxu2 %v560_v18  ;;  %1443 = vmatpush.msrb.mxu0 %v395_v20  ;;  %v24_v63 = vld [vmem:[%s7528_s0 + $0x18] sm:$0xff]  ;;  %v3637_v0 = vld.sshfl [vmem:[#allocation1 + $0x30] sm:$0xff pattern:$0x73625140]  ;;  %v430_v5 = vld [vmem:[%s7529_s1 + $0xca8] sm:$0xff] }
  0x2d   :  { %1502 = vmatpush.msrb.mxu3 %v640_v19  ;;  %1463 = vmatpush.msrb.mxu1 %v475_v21  ;;  %v3639_v1 = vld.sshfl [vmem:[#allocation1 + $0x20] sm:$0xff pattern:$0x73625140]  ;;  %v3641_v2 = vld.sshfl [vmem:[#allocation1 + $0x38] sm:$0xff pattern:$0x73625140] }
  0x2e   :  { %1483 = vmatpush.msrb.mxu2 %v555_v22  ;;  %1444 = vmatpush.msrb.mxu0 %v390_v24  ;;  %v3643_v3 = vld.sshfl [vmem:[#allocation1 + $0x28] sm:$0xff pattern:$0x73625140]  ;;  %v345_v8 = vld [vmem:[%s7529_s1 + $0xa00] sm:$0xff]  ;;  %v740_v12 = vld [vmem:[%s7529_s1 + $0x1658] sm:$0xff] }
  0x2f   :  { %1503 = vmatpush.msrb.mxu3 %v635_v23  ;;  %1464 = vmatpush.msrb.mxu1 %v470_v25  ;;  %1333 = vst [vmem:[#allocation1 + $0x20] ss:$4 sm:$0xff] %v24_v63  ;;  %v510_v6 = vld [vmem:[%s7529_s1 + $0xf28] sm:$0xff]  ;;  %v425_v9 = vld [vmem:[%s7529_s1 + $0xc80] sm:$0xff]  ;;  %v820_v13 = vld [vmem:[%s7529_s1 + $0x18d8] sm:$0xff] }
  0x30   :  { %1484 = vmatpush.msrb.mxu2 %v550_v27  ;;  %1445 = vmatpush.msrb.mxu0 %v385_v29  ;;  %v590_v7 = vld [vmem:[%s7529_s1 + $0x11a8] sm:$0xff]  ;;  %v505_v10 = vld [vmem:[%s7529_s1 + $0xf00] sm:$0xff]  ;;  %v900_v14 = vld [vmem:[%s7529_s1 + $0x1b58] sm:$0xff] }
  0x31   :  { %1504 = vmatpush.msrb.mxu3 %v630_v28  ;;  %1465 = vmatpush.msrb.mxu1 %v465_v30  ;;  %v585_v11 = vld [vmem:[%s7529_s1 + $0x1180] sm:$0xff]  ;;  %v980_v15 = vld [vmem:[%s7529_s1 + $0x1dd8] sm:$0xff]  ;;  %v735_v16 = vld [vmem:[%s7529_s1 + $0x1630] sm:$0xff] }
  0x32   :  { %1485 = vmatpush.msrb.mxu2 %v545_v31  ;;  %1446 = vmatpush.msrb.mxu0 %v380_v33  ;;  %v815_v17 = vld [vmem:[%s7529_s1 + $0x18b0] sm:$0xff]  ;;  %v730_v20 = vld [vmem:[%s7529_s1 + $0x1608] sm:$0xff]  ;;  %v725_v24 = vld [vmem:[%s7529_s1 + $0x15e0] sm:$0xff] }
  0x33   :  { %1505 = vmatpush.msrb.mxu3 %v625_v32  ;;  %1466 = vmatpush.msrb.mxu1 %v460_v34  ;;  %v895_v18 = vld [vmem:[%s7529_s1 + $0x1b30] sm:$0xff]  ;;  %v810_v21 = vld [vmem:[%s7529_s1 + $0x1888] sm:$0xff]  ;;  %v805_v25 = vld [vmem:[%s7529_s1 + $0x1860] sm:$0xff] }
  0x34   :  { %1486 = vmatpush.msrb.mxu2 %v540_v35  ;;  %1447 = vmatpush.msrb.mxu0 %v375_v37  ;;  %v975_v19 = vld [vmem:[%s7529_s1 + $0x1db0] sm:$0xff]  ;;  %v890_v22 = vld [vmem:[%s7529_s1 + $0x1b08] sm:$0xff]  ;;  %v885_v26 = vld [vmem:[%s7529_s1 + $0x1ae0] sm:$0xff] }
  0x35   :  { %1506 = vmatpush.msrb.mxu3 %v620_v36  ;;  %1467 = vmatpush.msrb.mxu1 %v455_v38  ;;  %v970_v23 = vld [vmem:[%s7529_s1 + $0x1d88] sm:$0xff]  ;;  %v965_v27 = vld [vmem:[%s7529_s1 + $0x1d60] sm:$0xff]  ;;  %v720_v28 = vld [vmem:[%s7529_s1 + $0x15b8] sm:$0xff] }
  0x36   :  { %1487 = vmatpush.msrb.mxu2 %v535_v39  ;;  %1448 = vmatpush.msrb.mxu0 %v370_v41  ;;  %v800_v29 = vld [vmem:[%s7529_s1 + $0x1838] sm:$0xff] }
  0x37   :  { %1507 = vmatpush.msrb.mxu3 %v615_v40  ;;  %1468 = vmatpush.msrb.mxu1 %v450_v42  ;;  %v880_v30 = vld [vmem:[%s7529_s1 + $0x1ab8] sm:$0xff] }
  0x38   :  { %1488 = vmatpush.msrb.mxu2 %v530_v44  ;;  %1449 = vmatpush.msrb.mxu0 %v365_v47 }
  0x39   :  { %1508 = vmatpush.msrb.mxu3 %v610_v45  ;;  %1469 = vmatpush.msrb.mxu1 %v445_v52 }
  0x3a   :  { %1489 = vmatpush.msrb.mxu2 %v525_v53  ;;  %1450 = vmatpush.msrb.mxu0 %v360_v55 }
  0x3b   :  { %1509 = vmatpush.msrb.mxu3 %v605_v54  ;;  %1470 = vmatpush.msrb.mxu1 %v440_v56 }
  0x3c   :  { %1490 = vmatpush.msrb.mxu2 %v520_v57  ;;  %1451 = vmatpush.msrb.mxu0 %v355_v59 }
  0x3d   :  { %1510 = vmatpush.msrb.mxu3 %v600_v58  ;;  %1471 = vmatpush.msrb.mxu1 %v435_v60 }
  0x3e   :  { %1491 = vmatpush.msrb.mxu2 %v515_v61  ;;  %1452 = vmatpush.msrb.mxu0 %v350_v4 }
  0x3f   :  { %1511 = vmatpush.msrb.mxu3 %v595_v62  ;;  %1472 = vmatpush.msrb.mxu1 %v430_v5 }
  0x40   :  { %1492 = vmatpush.msrb.mxu2 %v510_v6  ;;  %1453 = vmatpush.msrb.mxu0 %v345_v8 }
  0x41   :  { %1512 = vmatpush.msrb.mxu3 %v590_v7  ;;  %1473 = vmatpush.msrb.mxu1 %v425_v9 }
  0x42   :  { %1493 = vmatpush.msrb.mxu2 %v505_v10  ;;  %1374 = vmatmul.f32.vlgmr.msra.gmra.mxu0 %v3593_v48 }
  0x43   :  { %1513 = vmatpush.msrb.mxu3 %v585_v11  ;;  %1394 = vmatmul.f32.vlgmr.msra.gmra.mxu1 %v3595_v49 }
  0x44   :  { %1414 = vmatmul.f32.vlgmr.msra.gmra.mxu2 %v3597_v50  ;;  %1434 = vmatmul.f32.vlgmr.msra.gmra.mxu3 %v3599_v51 }
  0x45   :  { %1518 = vmatpush.msra.mxu0 %v740_v12  ;;  %1538 = vmatpush.msra.mxu1 %v820_v13 }
  0x46   :  { %1558 = vmatpush.msra.mxu2 %v900_v14  ;;  %1578 = vmatpush.msra.mxu3 %v980_v15 }
  0x47   :  { %1519 = vmatpush.msra.mxu0 %v735_v16  ;;  %1539 = vmatpush.msra.mxu1 %v815_v17 }
  0x48   :  { %1559 = vmatpush.msra.mxu2 %v895_v18  ;;  %1579 = vmatpush.msra.mxu3 %v975_v19 }
  0x49   :  { %1520 = vmatpush.msra.mxu0 %v730_v20  ;;  %1540 = vmatpush.msra.mxu1 %v810_v21 }
  0x4a   :  { %1560 = vmatpush.msra.mxu2 %v890_v22  ;;  %1580 = vmatpush.msra.mxu3 %v970_v23 }
  0x4b   :  { %1521 = vmatpush.msra.mxu0 %v725_v24  ;;  %1541 = vmatpush.msra.mxu1 %v805_v25 }
  0x4c   :  { %10 = vsyncpa [#allocation3], 0  ;;  %1561 = vmatpush.msra.mxu2 %v885_v26  ;;  %1581 = vmatpush.msra.mxu3 %v965_v27  ;;  %v960_v31 = vld [vmem:[%s7529_s1 + $0x1d38] sm:$0xff]  ;;  %v715_v32 = vld [vmem:[%s7529_s1 + $0x1590] sm:$0xff]  ;;  %s3226_s15 = smov [#allocation2]   ;;  %s3156_s0 = sshll.u32 %s7533_s5, 4  ;;  %s3157_s0 = int_to_ptr.hbm [resolvable:$true] %s3156_s0 }
  0x4d   :  { %1494 = vmatmul.f32.vlgmr.msrb.gmra.mxu2 %v3637_v0  ;;  %1522 = vmatpush.msra.mxu0 %v720_v28  ;;  %v795_v33 = vld [vmem:[%s7529_s1 + $0x1810] sm:$0xff]  ;;  %v710_v36 = vld [vmem:[%s7529_s1 + $0x1568] sm:$0xff]  ;;  %v705_v40 = vld [vmem:[%s7529_s1 + $0x1540] sm:$0xff]  ;;  %s3154_s16 = sshll.u32 %s3226_s15, 4  ;;  %vm3147_vm0 = vcmask 74752   ;;  %s3155_s16 = int_to_ptr.vmem [resolvable:$true] %s3154_s16 }
  0x4e   :  { %1542 = vmatpush.msra.mxu1 %v800_v29  ;;  %1562 = vmatpush.msra.mxu2 %v880_v30  ;;  %v875_v34 = vld [vmem:[%s7529_s1 + $0x1a90] sm:$0xff]  ;;  %v790_v37 = vld [vmem:[%s7529_s1 + $0x17e8] sm:$0xff]  ;;  %v785_v41 = vld [vmem:[%s7529_s1 + $0x17c0] sm:$0xff] }
  0x4f   :  { %1582 = vmatpush.msra.mxu3 %v960_v31  ;;  %1454 = vmatmul.f32.vlgmr.msrb.gmra.mxu0 %v3639_v1  ;;  %v955_v35 = vld [vmem:[%s7529_s1 + $0x1d10] sm:$0xff]  ;;  %v870_v38 = vld [vmem:[%s7529_s1 + $0x1a68] sm:$0xff]  ;;  %v865_v42 = vld [vmem:[%s7529_s1 + $0x1a40] sm:$0xff] }
  0x50   :  { %1514 = vmatmul.f32.vlgmr.msrb.gmra.mxu3 %v3641_v2  ;;  %1523 = vmatpush.msra.mxu0 %v715_v32  ;;  %v950_v39 = vld [vmem:[%s7529_s1 + $0x1ce8] sm:$0xff]  ;;  %v945_v43 = vld [vmem:[%s7529_s1 + $0x1cc0] sm:$0xff]  ;;  %v700_v44 = vld [vmem:[%s7529_s1 + $0x1518] sm:$0xff] }
  0x51   :  { %1543 = vmatpush.msra.mxu1 %v795_v33  ;;  %1563 = vmatpush.msra.mxu2 %v875_v34  ;;  %v780_v45 = vld [vmem:[%s7529_s1 + $0x1798] sm:$0xff]  ;;  %v695_v52 = vld [vmem:[%s7529_s1 + $0x14f0] sm:$0xff]  ;;  %v690_v56 = vld [vmem:[%s7529_s1 + $0x14c8] sm:$0xff] }
  0x52   :  { %1583 = vmatpush.msra.mxu3 %v955_v35  ;;  %1474 = vmatmul.f32.vlgmr.msrb.gmra.mxu1 %v3643_v3  ;;  %v860_v46 = vld [vmem:[%s7529_s1 + $0x1a18] sm:$0xff]  ;;  %v775_v53 = vld [vmem:[%s7529_s1 + $0x1770] sm:$0xff]  ;;  %v770_v57 = vld [vmem:[%s7529_s1 + $0x1748] sm:$0xff] }
  0x53   :  { %1524 = vmatpush.msra.mxu0 %v710_v36  ;;  %1544 = vmatpush.msra.mxu1 %v790_v37  ;;  %v940_v47 = vld [vmem:[%s7529_s1 + $0x1c98] sm:$0xff]  ;;  %v855_v54 = vld [vmem:[%s7529_s1 + $0x19f0] sm:$0xff]  ;;  %v850_v58 = vld [vmem:[%s7529_s1 + $0x19c8] sm:$0xff] }
  0x54   :  { %1564 = vmatpush.msra.mxu2 %v870_v38  ;;  %1584 = vmatpush.msra.mxu3 %v950_v39  ;;  %v935_v55 = vld [vmem:[%s7529_s1 + $0x1c70] sm:$0xff]  ;;  %v930_v59 = vld [vmem:[%s7529_s1 + $0x1c48] sm:$0xff]  ;;  %v685_v60 = vld [vmem:[%s7529_s1 + $0x14a0] sm:$0xff] }
  0x55   :  { %1525 = vmatpush.msra.mxu0 %v705_v40  ;;  %1545 = vmatpush.msra.mxu1 %v785_v41  ;;  %v765_v61 = vld [vmem:[%s7529_s1 + $0x1720] sm:$0xff]  ;;  %v680_v4 = vld [vmem:[%s7529_s1 + $0x1478] sm:$0xff]  ;;  %v675_v8 = vld [vmem:[%s7529_s1 + $0x1450] sm:$0xff] }
  0x56   :  { %1565 = vmatpush.msra.mxu2 %v865_v42  ;;  %1585 = vmatpush.msra.mxu3 %v945_v43  ;;  %v845_v62 = vld [vmem:[%s7529_s1 + $0x19a0] sm:$0xff]  ;;  %v760_v5 = vld [vmem:[%s7529_s1 + $0x16f8] sm:$0xff]  ;;  %v755_v9 = vld [vmem:[%s7529_s1 + $0x16d0] sm:$0xff] }
  0x57   :  { %1526 = vmatpush.msra.mxu0 %v700_v44  ;;  %1546 = vmatpush.msra.mxu1 %v780_v45  ;;  %v925_v63 = vld [vmem:[%s7529_s1 + $0x1c20] sm:$0xff]  ;;  %v840_v6 = vld [vmem:[%s7529_s1 + $0x1978] sm:$0xff]  ;;  %v835_v10 = vld [vmem:[%s7529_s1 + $0x1950] sm:$0xff] }
  0x58   :  { %1566 = vmatpush.msra.mxu2 %v860_v46  ;;  %1586 = vmatpush.msra.mxu3 %v940_v47  ;;  %v920_v7 = vld [vmem:[%s7529_s1 + $0x1bf8] sm:$0xff]  ;;  %v915_v11 = vld [vmem:[%s7529_s1 + $0x1bd0] sm:$0xff]  ;;  %v670_v12 = vld [vmem:[%s7529_s1 + $0x1428] sm:$0xff] }
  0x59   :  { %1527 = vmatpush.msra.mxu0 %v695_v52  ;;  %1547 = vmatpush.msra.mxu1 %v775_v53  ;;  %v750_v13 = vld [vmem:[%s7529_s1 + $0x16a8] sm:$0xff]  ;;  %v665_v16 = vld [vmem:[%s7529_s1 + $0x1400] sm:$0xff]  ;;  %v1336_v21 = vld.sshfl [vmem:[#allocation1 + $0x10] sm:$0xff pattern:$0x73625140] }
  0x5a   :  { %1567 = vmatpush.msra.mxu2 %v855_v54  ;;  %1587 = vmatpush.msra.mxu3 %v935_v55  ;;  %v830_v14 = vld [vmem:[%s7529_s1 + $0x1928] sm:$0xff]  ;;  %v745_v17 = vld [vmem:[%s7529_s1 + $0x1680] sm:$0xff]  ;;  %v1060_v22 = vld [vmem:[%s7529_s1 + $0x2058] sm:$0xff] }
  0x5b   :  { %1528 = vmatpush.msra.mxu0 %v690_v56  ;;  %1548 = vmatpush.msra.mxu1 %v770_v57  ;;  %v910_v15 = vld [vmem:[%s7529_s1 + $0x1ba8] sm:$0xff]  ;;  %v825_v18 = vld [vmem:[%s7529_s1 + $0x1900] sm:$0xff]  ;;  %v1140_v23 = vld [vmem:[%s7529_s1 + $0x22d8] sm:$0xff] }
  0x5c   :  { %1568 = vmatpush.msra.mxu2 %v850_v58  ;;  %1588 = vmatpush.msra.mxu3 %v930_v59  ;;  %v905_v19 = vld [vmem:[%s7529_s1 + $0x1b80] sm:$0xff]  ;;  %v1220_v24 = vld [vmem:[%s7529_s1 + $0x2558] sm:$0xff]  ;;  %v1335_v26 = vld.sshfl [vmem:[#allocation1 + $0x8] sm:$0xff pattern:$0x73625140] }
  0x5d   :  { %1529 = vmatpush.msra.mxu0 %v685_v60  ;;  %1549 = vmatpush.msra.mxu1 %v765_v61  ;;  %v1334_v20 = vld.sshfl [vmem:[#allocation1] sm:$0xff pattern:$0x73625140]  ;;  %v1300_v25 = vld [vmem:[%s7529_s1 + $0x27d8] sm:$0xff]  ;;  %v1055_v28 = vld [vmem:[%s7529_s1 + $0x2030] sm:$0xff] }
  0x5e   :  { %1569 = vmatpush.msra.mxu2 %v845_v62  ;;  %1589 = vmatpush.msra.mxu3 %v925_v63  ;;  %v1337_v27 = vld.sshfl [vmem:[#allocation1 + $0x18] sm:$0xff pattern:$0x73625140]  ;;  %v1135_v29 = vld [vmem:[%s7529_s1 + $0x22b0] sm:$0xff]  ;;  %v1050_v32 = vld [vmem:[%s7529_s1 + $0x2008] sm:$0xff] }
  0x5f   :  { %1530 = vmatpush.msra.mxu0 %v680_v4  ;;  %1550 = vmatpush.msra.mxu1 %v760_v5  ;;  %v1215_v30 = vld [vmem:[%s7529_s1 + $0x2530] sm:$0xff]  ;;  %v1130_v33 = vld [vmem:[%s7529_s1 + $0x2288] sm:$0xff]  ;;  %v1045_v36 = vld [vmem:[%s7529_s1 + $0x1fe0] sm:$0xff] }
  0x60   :  { %1570 = vmatpush.msra.mxu2 %v840_v6  ;;  %1590 = vmatpush.msra.mxu3 %v920_v7  ;;  %v1295_v31 = vld [vmem:[%s7529_s1 + $0x27b0] sm:$0xff]  ;;  %v1210_v34 = vld [vmem:[%s7529_s1 + $0x2508] sm:$0xff]  ;;  %v1125_v37 = vld [vmem:[%s7529_s1 + $0x2260] sm:$0xff] }
  0x61   :  { %1531 = vmatpush.msra.mxu0 %v675_v8  ;;  %1551 = vmatpush.msra.mxu1 %v755_v9  ;;  %v1290_v35 = vld [vmem:[%s7529_s1 + $0x2788] sm:$0xff]  ;;  %v1205_v38 = vld [vmem:[%s7529_s1 + $0x24e0] sm:$0xff]  ;;  %v1040_v40 = vld [vmem:[%s7529_s1 + $0x1fb8] sm:$0xff] }
  0x62   :  { %1571 = vmatpush.msra.mxu2 %v835_v10  ;;  %1591 = vmatpush.msra.mxu3 %v915_v11  ;;  %v1285_v39 = vld [vmem:[%s7529_s1 + $0x2760] sm:$0xff]  ;;  %v1120_v41 = vld [vmem:[%s7529_s1 + $0x2238] sm:$0xff]  ;;  %v1035_v44 = vld [vmem:[%s7529_s1 + $0x1f90] sm:$0xff] }
  0x63   :  { %1532 = vmatpush.msra.mxu0 %v670_v12  ;;  %1552 = vmatpush.msra.mxu1 %v750_v13  ;;  %v1200_v42 = vld [vmem:[%s7529_s1 + $0x24b8] sm:$0xff]  ;;  %v1115_v45 = vld [vmem:[%s7529_s1 + $0x2210] sm:$0xff]  ;;  %v1030_v52 = vld [vmem:[%s7529_s1 + $0x1f68] sm:$0xff] }
  0x64   :  { %1572 = vmatpush.msra.mxu2 %v830_v14  ;;  %1592 = vmatpush.msra.mxu3 %v910_v15  ;;  %v1280_v43 = vld [vmem:[%s7529_s1 + $0x2738] sm:$0xff]  ;;  %v1195_v46 = vld [vmem:[%s7529_s1 + $0x2490] sm:$0xff]  ;;  %v1110_v53 = vld [vmem:[%s7529_s1 + $0x21e8] sm:$0xff] }
  0x65   :  { %1533 = vmatpush.msra.mxu0 %v665_v16  ;;  %1553 = vmatpush.msra.mxu1 %v745_v17  ;;  %v1275_v47 = vld [vmem:[%s7529_s1 + $0x2710] sm:$0xff]  ;;  %v1190_v54 = vld [vmem:[%s7529_s1 + $0x2468] sm:$0xff]  ;;  %v1025_v56 = vld [vmem:[%s7529_s1 + $0x1f40] sm:$0xff] }
  0x66   :  { %1573 = vmatpush.msra.mxu2 %v825_v18  ;;  %1593 = vmatpush.msra.mxu3 %v905_v19  ;;  %v1270_v55 = vld [vmem:[%s7529_s1 + $0x26e8] sm:$0xff]  ;;  %v1105_v57 = vld [vmem:[%s7529_s1 + $0x21c0] sm:$0xff]  ;;  %v1020_v60 = vld [vmem:[%s7529_s1 + $0x1f18] sm:$0xff] }
  0x67   :  { %1534 = vmatmul.f32.vlgmr.msra.gmra.mxu0 %v1334_v20  ;;  %1574 = vmatmul.f32.vlgmr.msra.gmra.mxu2 %v1336_v21  ;;  %v1185_v58 = vld [vmem:[%s7529_s1 + $0x2440] sm:$0xff]  ;;  %v1100_v61 = vld [vmem:[%s7529_s1 + $0x2198] sm:$0xff]  ;;  %v1015_v4 = vld [vmem:[%s7529_s1 + $0x1ef0] sm:$0xff] }
  0x68   :  { %1598 = vmatpush.msrb.mxu0 %v1060_v22  ;;  %1618 = vmatpush.msrb.mxu1 %v1140_v23  ;;  %v1265_v59 = vld [vmem:[%s7529_s1 + $0x26c0] sm:$0xff]  ;;  %v1180_v62 = vld [vmem:[%s7529_s1 + $0x2418] sm:$0xff]  ;;  %v1095_v5 = vld [vmem:[%s7529_s1 + $0x2170] sm:$0xff] }
  0x69   :  { %1638 = vmatpush.msrb.mxu2 %v1220_v24  ;;  %1658 = vmatpush.msrb.mxu3 %v1300_v25  ;;  %v1260_v63 = vld [vmem:[%s7529_s1 + $0x2698] sm:$0xff]  ;;  %v1175_v6 = vld [vmem:[%s7529_s1 + $0x23f0] sm:$0xff]  ;;  %v1010_v8 = vld [vmem:[%s7529_s1 + $0x1ec8] sm:$0xff] }
  0x6a   :  { %1554 = vmatmul.f32.vlgmr.msra.gmra.mxu1 %v1335_v26  ;;  %1594 = vmatmul.f32.vlgmr.msra.gmra.mxu3 %v1337_v27  ;;  %v1255_v7 = vld [vmem:[%s7529_s1 + $0x2670] sm:$0xff]  ;;  %v1090_v9 = vld [vmem:[%s7529_s1 + $0x2148] sm:$0xff]  ;;  %v1005_v12 = vld [vmem:[%s7529_s1 + $0x1ea0] sm:$0xff] }
  0x6b   :  { %1599 = vmatpush.msrb.mxu0 %v1055_v28  ;;  %1619 = vmatpush.msrb.mxu1 %v1135_v29  ;;  %v1170_v10 = vld [vmem:[%s7529_s1 + $0x23c8] sm:$0xff]  ;;  %v1085_v13 = vld [vmem:[%s7529_s1 + $0x2120] sm:$0xff]  ;;  %v1000_v16 = vld [vmem:[%s7529_s1 + $0x1e78] sm:$0xff] }
  0x6c   :  { %1639 = vmatpush.msrb.mxu2 %v1215_v30  ;;  %1659 = vmatpush.msrb.mxu3 %v1295_v31  ;;  %v1250_v11 = vld [vmem:[%s7529_s1 + $0x2648] sm:$0xff]  ;;  %v1165_v14 = vld [vmem:[%s7529_s1 + $0x23a0] sm:$0xff]  ;;  %v1080_v17 = vld [vmem:[%s7529_s1 + $0x20f8] sm:$0xff] }
  0x6d   :  { %1600 = vmatpush.msrb.mxu0 %v1050_v32  ;;  %1620 = vmatpush.msrb.mxu1 %v1130_v33  ;;  %v1245_v15 = vld [vmem:[%s7529_s1 + $0x2620] sm:$0xff]  ;;  %v1160_v18 = vld [vmem:[%s7529_s1 + $0x2378] sm:$0xff]  ;;  %v995_v20 = vld [vmem:[%s7529_s1 + $0x1e50] sm:$0xff] }
  0x6e   :  { %1640 = vmatpush.msrb.mxu2 %v1210_v34  ;;  %1660 = vmatpush.msrb.mxu3 %v1290_v35  ;;  %v1240_v19 = vld [vmem:[%s7529_s1 + $0x25f8] sm:$0xff]  ;;  %v1075_v21 = vld [vmem:[%s7529_s1 + $0x20d0] sm:$0xff]  ;;  %v990_v24 = vld [vmem:[%s7529_s1 + $0x1e28] sm:$0xff] }
  0x6f   :  { %1601 = vmatpush.msrb.mxu0 %v1045_v36  ;;  %1621 = vmatpush.msrb.mxu1 %v1125_v37  ;;  %v1155_v22 = vld [vmem:[%s7529_s1 + $0x2350] sm:$0xff]  ;;  %v1070_v25 = vld [vmem:[%s7529_s1 + $0x20a8] sm:$0xff]  ;;  %v985_v28 = vld [vmem:[%s7529_s1 + $0x1e00] sm:$0xff] }
  0x70   :  { %1641 = vmatpush.msrb.mxu2 %v1205_v38  ;;  %1661 = vmatpush.msrb.mxu3 %v1285_v39  ;;  %v1235_v23 = vld [vmem:[%s7529_s1 + $0x25d0] sm:$0xff]  ;;  %v1150_v26 = vld [vmem:[%s7529_s1 + $0x2328] sm:$0xff]  ;;  %v1065_v29 = vld [vmem:[%s7529_s1 + $0x2080] sm:$0xff] }
  0x71   :  { %1602 = vmatpush.msrb.mxu0 %v1040_v40  ;;  %1622 = vmatpush.msrb.mxu1 %v1120_v41  ;;  %v1230_v27 = vld [vmem:[%s7529_s1 + $0x25a8] sm:$0xff]  ;;  %v1145_v30 = vld [vmem:[%s7529_s1 + $0x2300] sm:$0xff]  ;;  %v1340_v33 = vld.sshfl [vmem:[#allocation1 + $0x30] sm:$0xff pattern:$0x73625140] }
  0x72   :  { %1642 = vmatpush.msrb.mxu2 %v1200_v42  ;;  %1662 = vmatpush.msrb.mxu3 %v1280_v43  ;;  %v1225_v31 = vld [vmem:[%s7529_s1 + $0x2580] sm:$0xff]  ;;  %v1339_v38 = vld.sshfl [vmem:[#allocation1 + $0x28] sm:$0xff pattern:$0x73625140]  ;;  %v96_v40 = vld [vmem:[%s7529_s1 + $0x238] sm:$0xff] }
  0x73   :  { %1603 = vmatpush.msrb.mxu0 %v1035_v44  ;;  %1623 = vmatpush.msrb.mxu1 %v1115_v45  ;;  %v1338_v32 = vld.sshfl [vmem:[#allocation1 + $0x20] sm:$0xff pattern:$0x73625140]  ;;  %v1341_v39 = vld.sshfl [vmem:[#allocation1 + $0x38] sm:$0xff pattern:$0x73625140] }
  0x74   :  { %1643 = vmatpush.msrb.mxu2 %v1195_v46  ;;  %1663 = vmatpush.msrb.mxu3 %v1275_v47  ;;  %v101_v34 = vld [vmem:[%s7529_s1 + $0x260] sm:$0xff]  ;;  %v176_v41 = vld [vmem:[%s7529_s1 + $0x4b8] sm:$0xff]  ;;  %v91_v44 = vld [vmem:[%s7529_s1 + $0x210] sm:$0xff] }
  0x75   :  { %1604 = vmatpush.msrb.mxu0 %v1030_v52  ;;  %1624 = vmatpush.msrb.mxu1 %v1110_v53  ;;  %v181_v35 = vld [vmem:[%s7529_s1 + $0x4e0] sm:$0xff]  ;;  %v256_v42 = vld [vmem:[%s7529_s1 + $0x738] sm:$0xff]  ;;  %v171_v45 = vld [vmem:[%s7529_s1 + $0x490] sm:$0xff] }
  0x76   :  { %1644 = vmatpush.msrb.mxu2 %v1190_v54  ;;  %1664 = vmatpush.msrb.mxu3 %v1270_v55  ;;  %v261_v36 = vld [vmem:[%s7529_s1 + $0x760] sm:$0xff]  ;;  %v336_v43 = vld [vmem:[%s7529_s1 + $0x9b8] sm:$0xff]  ;;  %v251_v46 = vld [vmem:[%s7529_s1 + $0x710] sm:$0xff] }
  0x77   :  { %1605 = vmatpush.msrb.mxu0 %v1025_v56  ;;  %1625 = vmatpush.msrb.mxu1 %v1105_v57  ;;  %v341_v37 = vld [vmem:[%s7529_s1 + $0x9e0] sm:$0xff]  ;;  %v331_v47 = vld [vmem:[%s7529_s1 + $0x990] sm:$0xff]  ;;  %v86_v52 = vld [vmem:[%s7529_s1 + $0x1e8] sm:$0xff] }
  0x78   :  { %1645 = vmatpush.msrb.mxu2 %v1185_v58  ;;  %1665 = vmatpush.msrb.mxu3 %v1265_v59  ;;  %v166_v53 = vld [vmem:[%s7529_s1 + $0x468] sm:$0xff]  ;;  %v81_v56 = vld [vmem:[%s7529_s1 + $0x1c0] sm:$0xff] }
  0x79   :  { %1606 = vmatpush.msrb.mxu0 %v1020_v60  ;;  %1626 = vmatpush.msrb.mxu1 %v1100_v61  ;;  %v246_v54 = vld [vmem:[%s7529_s1 + $0x6e8] sm:$0xff]  ;;  %v161_v57 = vld [vmem:[%s7529_s1 + $0x440] sm:$0xff]  ;;  %v76_v60 = vld [vmem:[%s7529_s1 + $0x198] sm:$0xff] }
  0x7a   :  { %1646 = vmatpush.msrb.mxu2 %v1180_v62  ;;  %1666 = vmatpush.msrb.mxu3 %v1260_v63  ;;  %v326_v55 = vld [vmem:[%s7529_s1 + $0x968] sm:$0xff]  ;;  %v241_v58 = vld [vmem:[%s7529_s1 + $0x6c0] sm:$0xff]  ;;  %v156_v61 = vld [vmem:[%s7529_s1 + $0x418] sm:$0xff] }
  0x7b   :  { %1607 = vmatpush.msrb.mxu0 %v1015_v4  ;;  %1627 = vmatpush.msrb.mxu1 %v1095_v5  ;;  %v321_v59 = vld [vmem:[%s7529_s1 + $0x940] sm:$0xff]  ;;  %v236_v62 = vld [vmem:[%s7529_s1 + $0x698] sm:$0xff]  ;;  %v71_v4 = vld [vmem:[%s7529_s1 + $0x170] sm:$0xff] }
  0x7c   :  { %1647 = vmatpush.msrb.mxu2 %v1175_v6  ;;  %1667 = vmatpush.msrb.mxu3 %v1255_v7  ;;  %v316_v63 = vld [vmem:[%s7529_s1 + $0x918] sm:$0xff]  ;;  %v151_v5 = vld [vmem:[%s7529_s1 + $0x3f0] sm:$0xff] }
  0x7d   :  { %1608 = vmatpush.msrb.mxu0 %v1010_v8  ;;  %1628 = vmatpush.msrb.mxu1 %v1090_v9  ;;  %v231_v6 = vld [vmem:[%s7529_s1 + $0x670] sm:$0xff]  ;;  %v66_v8 = vld [vmem:[%s7529_s1 + $0x148] sm:$0xff] }
  0x7e   :  { %1648 = vmatpush.msrb.mxu2 %v1170_v10  ;;  %1668 = vmatpush.msrb.mxu3 %v1250_v11  ;;  %v311_v7 = vld [vmem:[%s7529_s1 + $0x8f0] sm:$0xff]  ;;  %v146_v9 = vld [vmem:[%s7529_s1 + $0x3c8] sm:$0xff] }
  0x7f   :  { %1609 = vmatpush.msrb.mxu0 %v1005_v12  ;;  %1629 = vmatpush.msrb.mxu1 %v1085_v13  ;;  %v226_v10 = vld [vmem:[%s7529_s1 + $0x648] sm:$0xff]  ;;  %v61_v12 = vld [vmem:[%s7529_s1 + $0x120] sm:$0xff] }
  0x80   :  { %1649 = vmatpush.msrb.mxu2 %v1165_v14  ;;  %1669 = vmatpush.msrb.mxu3 %v1245_v15  ;;  %v306_v11 = vld [vmem:[%s7529_s1 + $0x8c8] sm:$0xff]  ;;  %v141_v13 = vld [vmem:[%s7529_s1 + $0x3a0] sm:$0xff] }
  0x81   :  { %1610 = vmatpush.msrb.mxu0 %v1000_v16  ;;  %1630 = vmatpush.msrb.mxu1 %v1080_v17  ;;  %v221_v14 = vld [vmem:[%s7529_s1 + $0x620] sm:$0xff]  ;;  %v56_v16 = vld [vmem:[%s7529_s1 + $0xf8] sm:$0xff] }
  0x82   :  { %1650 = vmatpush.msrb.mxu2 %v1160_v18  ;;  %1670 = vmatpush.msrb.mxu3 %v1240_v19  ;;  %v301_v15 = vld [vmem:[%s7529_s1 + $0x8a0] sm:$0xff]  ;;  %v136_v17 = vld [vmem:[%s7529_s1 + $0x378] sm:$0xff] }
  0x83   :  { %1611 = vmatpush.msrb.mxu0 %v995_v20  ;;  %1631 = vmatpush.msrb.mxu1 %v1075_v21  ;;  %v216_v18 = vld [vmem:[%s7529_s1 + $0x5f8] sm:$0xff]  ;;  %v51_v20 = vld [vmem:[%s7529_s1 + $0xd0] sm:$0xff] }
  0x84   :  { %1651 = vmatpush.msrb.mxu2 %v1155_v22  ;;  %1671 = vmatpush.msrb.mxu3 %v1235_v23  ;;  %v296_v19 = vld [vmem:[%s7529_s1 + $0x878] sm:$0xff]  ;;  %v131_v21 = vld [vmem:[%s7529_s1 + $0x350] sm:$0xff] }
  0x85   :  { %1612 = vmatpush.msrb.mxu0 %v990_v24  ;;  %1632 = vmatpush.msrb.mxu1 %v1070_v25  ;;  %v211_v22 = vld [vmem:[%s7529_s1 + $0x5d0] sm:$0xff]  ;;  %v46_v24 = vld [vmem:[%s7529_s1 + $0xa8] sm:$0xff] }
  0x86   :  { %1652 = vmatpush.msrb.mxu2 %v1150_v26  ;;  %1672 = vmatpush.msrb.mxu3 %v1230_v27  ;;  %v291_v23 = vld [vmem:[%s7529_s1 + $0x850] sm:$0xff]  ;;  %v126_v25 = vld [vmem:[%s7529_s1 + $0x328] sm:$0xff] }
  0x87   :  { %1613 = vmatpush.msrb.mxu0 %v985_v28  ;;  %1633 = vmatpush.msrb.mxu1 %v1065_v29  ;;  %v206_v26 = vld [vmem:[%s7529_s1 + $0x5a8] sm:$0xff]  ;;  %v41_v28 = vld [vmem:[%s7529_s1 + $0x80] sm:$0xff] }
  0x88   :  { %1653 = vmatpush.msrb.mxu2 %v1145_v30  ;;  %1673 = vmatpush.msrb.mxu3 %v1225_v31  ;;  %v286_v27 = vld [vmem:[%s7529_s1 + $0x828] sm:$0xff]  ;;  %v121_v29 = vld [vmem:[%s7529_s1 + $0x300] sm:$0xff] }
  0x89   :  { %1614 = vmatmul.f32.vlgmr.msrb.gmra.mxu0 %v1338_v32  ;;  %1654 = vmatmul.f32.vlgmr.msrb.gmra.mxu2 %v1340_v33  ;;  %v201_v30 = vld [vmem:[%s7529_s1 + $0x580] sm:$0xff]  ;;  %v36_v32 = vld [vmem:[%s7529_s1 + $0x58] sm:$0xff] }
  0x8a   :  { %1678 = vmatpush.msra.mxu0 %v101_v34  ;;  %1698 = vmatpush.msra.mxu1 %v181_v35  ;;  %v281_v31 = vld [vmem:[%s7529_s1 + $0x800] sm:$0xff]  ;;  %v116_v33 = vld [vmem:[%s7529_s1 + $0x2d8] sm:$0xff] }
  0x8b   :  { %1718 = vmatpush.msra.mxu2 %v261_v36  ;;  %1738 = vmatpush.msra.mxu3 %v341_v37  ;;  %v196_v34 = vld [vmem:[%s7529_s1 + $0x558] sm:$0xff]  ;;  %v31_v36 = vld [vmem:[%s7529_s1 + $0x30] sm:$0xff] }
  0x8c   :  { %1634 = vmatmul.f32.vlgmr.msrb.gmra.mxu1 %v1339_v38  ;;  %1674 = vmatmul.f32.vlgmr.msrb.gmra.mxu3 %v1341_v39  ;;  %v276_v35 = vld [vmem:[%s7529_s1 + $0x7d8] sm:$0xff]  ;;  %v111_v37 = vld [vmem:[%s7529_s1 + $0x2b0] sm:$0xff] }
  0x8d   :  { %1679 = vmatpush.msra.mxu0 %v96_v40  ;;  %1699 = vmatpush.msra.mxu1 %v176_v41  ;;  %v191_v38 = vld [vmem:[%s7529_s1 + $0x530] sm:$0xff]  ;;  %v26_v40 = vld [vmem:[%s7529_s1 + $0x8] sm:$0xff] }
  0x8e   :  { %1719 = vmatpush.msra.mxu2 %v256_v42  ;;  %1739 = vmatpush.msra.mxu3 %v336_v43  ;;  %v271_v39 = vld [vmem:[%s7529_s1 + $0x7b0] sm:$0xff]  ;;  %v106_v41 = vld [vmem:[%s7529_s1 + $0x288] sm:$0xff] }
  0x8f   :  { %1680 = vmatpush.msra.mxu0 %v91_v44  ;;  %1700 = vmatpush.msra.mxu1 %v171_v45  ;;  %v186_v42 = vld [vmem:[%s7529_s1 + $0x508] sm:$0xff]  ;;  %v421_v44 = vld [vmem:[%s7529_s1 + $0xc60] sm:$0xff] }
  0x90   :  { %1720 = vmatpush.msra.mxu2 %v251_v46  ;;  %1740 = vmatpush.msra.mxu3 %v331_v47  ;;  %v266_v43 = vld [vmem:[%s7529_s1 + $0x788] sm:$0xff]  ;;  %v501_v45 = vld [vmem:[%s7529_s1 + $0xee0] sm:$0xff] }
  0x91   :  { %1681 = vmatpush.msra.mxu0 %v86_v52  ;;  %1701 = vmatpush.msra.mxu1 %v166_v53  ;;  %v581_v46 = vld [vmem:[%s7529_s1 + $0x1160] sm:$0xff]  ;;  %v416_v52 = vld [vmem:[%s7529_s1 + $0xc38] sm:$0xff] }
  0x92   :  { %1721 = vmatpush.msra.mxu2 %v246_v54  ;;  %1741 = vmatpush.msra.mxu3 %v326_v55  ;;  %v661_v47 = vld [vmem:[%s7529_s1 + $0x13e0] sm:$0xff]  ;;  %v496_v53 = vld [vmem:[%s7529_s1 + $0xeb8] sm:$0xff] }
  0x93   :  { %1682 = vmatpush.msra.mxu0 %v81_v56  ;;  %1702 = vmatpush.msra.mxu1 %v161_v57  ;;  %v576_v54 = vld [vmem:[%s7529_s1 + $0x1138] sm:$0xff]  ;;  %v411_v56 = vld [vmem:[%s7529_s1 + $0xc10] sm:$0xff] }
  0x94   :  { %1722 = vmatpush.msra.mxu2 %v241_v58  ;;  %1742 = vmatpush.msra.mxu3 %v321_v59  ;;  %v656_v55 = vld [vmem:[%s7529_s1 + $0x13b8] sm:$0xff]  ;;  %v491_v57 = vld [vmem:[%s7529_s1 + $0xe90] sm:$0xff] }
  0x95   :  { %1683 = vmatpush.msra.mxu0 %v76_v60  ;;  %1703 = vmatpush.msra.mxu1 %v156_v61  ;;  %v571_v58 = vld [vmem:[%s7529_s1 + $0x1110] sm:$0xff]  ;;  %v406_v60 = vld [vmem:[%s7529_s1 + $0xbe8] sm:$0xff] }
  0x96   :  { %1723 = vmatpush.msra.mxu2 %v236_v62  ;;  %1743 = vmatpush.msra.mxu3 %v316_v63  ;;  %v651_v59 = vld [vmem:[%s7529_s1 + $0x1390] sm:$0xff]  ;;  %v486_v61 = vld [vmem:[%s7529_s1 + $0xe68] sm:$0xff] }
  0x97   :  { %1684 = vmatpush.msra.mxu0 %v71_v4  ;;  %1704 = vmatpush.msra.mxu1 %v151_v5  ;;  %v566_v62 = vld [vmem:[%s7529_s1 + $0x10e8] sm:$0xff]  ;;  %v401_v4 = vld [vmem:[%s7529_s1 + $0xbc0] sm:$0xff] }
  0x98   :  { %1724 = vmatpush.msra.mxu2 %v231_v6  ;;  %1744 = vmatpush.msra.mxu3 %v311_v7  ;;  %v646_v63 = vld [vmem:[%s7529_s1 + $0x1368] sm:$0xff]  ;;  %v481_v5 = vld [vmem:[%s7529_s1 + $0xe40] sm:$0xff] }
  0x99   :  { %1685 = vmatpush.msra.mxu0 %v66_v8  ;;  %1705 = vmatpush.msra.mxu1 %v146_v9  ;;  %v561_v6 = vld [vmem:[%s7529_s1 + $0x10c0] sm:$0xff]  ;;  %v396_v8 = vld [vmem:[%s7529_s1 + $0xb98] sm:$0xff] }
  0x9a   :  { %1725 = vmatpush.msra.mxu2 %v226_v10  ;;  %1745 = vmatpush.msra.mxu3 %v306_v11  ;;  %v641_v7 = vld [vmem:[%s7529_s1 + $0x1340] sm:$0xff]  ;;  %v476_v9 = vld [vmem:[%s7529_s1 + $0xe18] sm:$0xff] }
  0x9b   :  { %1686 = vmatpush.msra.mxu0 %v61_v12  ;;  %1706 = vmatpush.msra.mxu1 %v141_v13  ;;  %v556_v10 = vld [vmem:[%s7529_s1 + $0x1098] sm:$0xff]  ;;  %v391_v12 = vld [vmem:[%s7529_s1 + $0xb70] sm:$0xff] }
  0x9c   :  { %1726 = vmatpush.msra.mxu2 %v221_v14  ;;  %1746 = vmatpush.msra.mxu3 %v301_v15  ;;  %v636_v11 = vld [vmem:[%s7529_s1 + $0x1318] sm:$0xff]  ;;  %v471_v13 = vld [vmem:[%s7529_s1 + $0xdf0] sm:$0xff] }
  0x9d   :  { %1687 = vmatpush.msra.mxu0 %v56_v16  ;;  %1707 = vmatpush.msra.mxu1 %v136_v17  ;;  %v551_v14 = vld [vmem:[%s7529_s1 + $0x1070] sm:$0xff]  ;;  %v386_v16 = vld [vmem:[%s7529_s1 + $0xb48] sm:$0xff] }
  0x9e   :  { %1727 = vmatpush.msra.mxu2 %v216_v18  ;;  %1747 = vmatpush.msra.mxu3 %v296_v19  ;;  %v631_v15 = vld [vmem:[%s7529_s1 + $0x12f0] sm:$0xff]  ;;  %v466_v17 = vld [vmem:[%s7529_s1 + $0xdc8] sm:$0xff] }
  0x9f   :  { %1688 = vmatpush.msra.mxu0 %v51_v20  ;;  %1708 = vmatpush.msra.mxu1 %v131_v21  ;;  %v546_v18 = vld [vmem:[%s7529_s1 + $0x1048] sm:$0xff]  ;;  %v381_v20 = vld [vmem:[%s7529_s1 + $0xb20] sm:$0xff] }
  0xa0   :  { %1728 = vmatpush.msra.mxu2 %v211_v22  ;;  %1748 = vmatpush.msra.mxu3 %v291_v23  ;;  %v626_v19 = vld [vmem:[%s7529_s1 + $0x12c8] sm:$0xff]  ;;  %v461_v21 = vld [vmem:[%s7529_s1 + $0xda0] sm:$0xff] }
  0xa1   :  { %1689 = vmatpush.msra.mxu0 %v46_v24  ;;  %1709 = vmatpush.msra.mxu1 %v126_v25  ;;  %v541_v22 = vld [vmem:[%s7529_s1 + $0x1020] sm:$0xff]  ;;  %v376_v24 = vld [vmem:[%s7529_s1 + $0xaf8] sm:$0xff] }
  0xa2   :  { %1729 = vmatpush.msra.mxu2 %v206_v26  ;;  %1749 = vmatpush.msra.mxu3 %v286_v27  ;;  %v621_v23 = vld [vmem:[%s7529_s1 + $0x12a0] sm:$0xff]  ;;  %v456_v25 = vld [vmem:[%s7529_s1 + $0xd78] sm:$0xff] }
  0xa3   :  { %1690 = vmatpush.msra.mxu0 %v41_v28  ;;  %1710 = vmatpush.msra.mxu1 %v121_v29  ;;  %v1305_v26 = vld [vmem:[%s7530_s2] sm:$0x1f]  ;;  %v536_v27 = vld [vmem:[%s7529_s1 + $0xff8] sm:$0xff]  ;;  %v371_v29 = vld [vmem:[%s7529_s1 + $0xad0] sm:$0xff] }
  0xa4   :  { %1730 = vmatpush.msra.mxu2 %v201_v30  ;;  %1750 = vmatpush.msra.mxu3 %v281_v31  ;;  %v616_v28 = vld [vmem:[%s7529_s1 + $0x1278] sm:$0xff]  ;;  %v451_v30 = vld [vmem:[%s7529_s1 + $0xd50] sm:$0xff] }
  0xa5   :  { %1691 = vmatpush.msra.mxu0 %v36_v32  ;;  %1711 = vmatpush.msra.mxu1 %v116_v33  ;;  %v531_v31 = vld [vmem:[%s7529_s1 + $0xfd0] sm:$0xff]  ;;  %v1307_v33 = vperm.slane %v1305_v26, 0  ;;  %v966_v26 = vld [vmem:[%s7529_s1 + $0x1d68] sm:$0xff] }
  0xa6   :  { %1731 = vmatpush.msra.mxu2 %v196_v34  ;;  %1751 = vmatpush.msra.mxu3 %v276_v35  ;;  %v611_v32 = vld [vmem:[%s7529_s1 + $0x1250] sm:$0xff]  ;;  %v366_v34 = vld [vmem:[%s7529_s1 + $0xaa8] sm:$0xff] }
  0xa7   :  { %1692 = vmatpush.msra.mxu0 %v31_v36  ;;  %1712 = vmatpush.msra.mxu1 %v111_v37  ;;  %v446_v35 = vld [vmem:[%s7529_s1 + $0xd28] sm:$0xff] }
  0xa8   :  { %1732 = vmatpush.msra.mxu2 %v191_v38  ;;  %1752 = vmatpush.msra.mxu3 %v271_v39  ;;  %v526_v36 = vld [vmem:[%s7529_s1 + $0xfa8] sm:$0xff]  ;;  %v361_v38 = vld [vmem:[%s7529_s1 + $0xa80] sm:$0xff] }
  0xa9   :  { %1693 = vmatpush.msra.mxu0 %v26_v40  ;;  %1713 = vmatpush.msra.mxu1 %v106_v41  ;;  %v606_v37 = vld [vmem:[%s7529_s1 + $0x1228] sm:$0xff]  ;;  %v441_v39 = vld [vmem:[%s7529_s1 + $0xd00] sm:$0xff] }
  0xaa   :  { %1733 = vmatpush.msra.mxu2 %v186_v42  ;;  %1753 = vmatpush.msra.mxu3 %v266_v43  ;;  %v521_v42 = vld [vmem:[%s7529_s1 + $0xf80] sm:$0xff] }
  0xab   :  { %1758 = vmatpush.msrb.mxu0 %v421_v44  ;;  %1778 = vmatpush.msrb.mxu1 %v501_v45  ;;  %v601_v43 = vld [vmem:[%s7529_s1 + $0x1200] sm:$0xff]  ;;  %v356_v45 = vld [vmem:[%s7529_s1 + $0xa58] sm:$0xff] }
  0xac   :  { %1798 = vmatpush.msrb.mxu2 %v581_v46  ;;  %1818 = vmatpush.msrb.mxu3 %v661_v47  ;;  %v436_v46 = vld [vmem:[%s7529_s1 + $0xcd8] sm:$0xff] }
  0xad   :  { %1759 = vmatpush.msrb.mxu0 %v416_v52  ;;  %1779 = vmatpush.msrb.mxu1 %v496_v53  ;;  %v516_v47 = vld [vmem:[%s7529_s1 + $0xf58] sm:$0xff] }
  0xae   :  { %1799 = vmatpush.msrb.mxu2 %v576_v54  ;;  %1819 = vmatpush.msrb.mxu3 %v656_v55  ;;  %v596_v52 = vld [vmem:[%s7529_s1 + $0x11d8] sm:$0xff]  ;;  %v351_v54 = vld [vmem:[%s7529_s1 + $0xa30] sm:$0xff] }
  0xaf   :  { %1760 = vmatpush.msrb.mxu0 %v411_v56  ;;  %1780 = vmatpush.msrb.mxu1 %v491_v57  ;;  %v431_v55 = vld [vmem:[%s7529_s1 + $0xcb0] sm:$0xff] }
  0xb0   :  { %1800 = vmatpush.msrb.mxu2 %v571_v58  ;;  %1820 = vmatpush.msrb.mxu3 %v651_v59  ;;  %v511_v56 = vld [vmem:[%s7529_s1 + $0xf30] sm:$0xff]  ;;  %v346_v58 = vld [vmem:[%s7529_s1 + $0xa08] sm:$0xff] }
  0xb1   :  { %1761 = vmatpush.msrb.mxu0 %v406_v60  ;;  %1781 = vmatpush.msrb.mxu1 %v486_v61  ;;  %v591_v57 = vld [vmem:[%s7529_s1 + $0x11b0] sm:$0xff]  ;;  %v426_v59 = vld [vmem:[%s7529_s1 + $0xc88] sm:$0xff] }
  0xb2   :  { %1801 = vmatpush.msrb.mxu2 %v566_v62  ;;  %1821 = vmatpush.msrb.mxu3 %v646_v63  ;;  %v506_v60 = vld [vmem:[%s7529_s1 + $0xf08] sm:$0xff] }
  0xb3   :  { %1762 = vmatpush.msrb.mxu0 %v401_v4  ;;  %1782 = vmatpush.msrb.mxu1 %v481_v5  ;;  %v586_v61 = vld [vmem:[%s7529_s1 + $0x1188] sm:$0xff]  ;;  %v741_v5 = vld [vmem:[%s7529_s1 + $0x1660] sm:$0xff] }
  0xb4   :  { %1802 = vmatpush.msrb.mxu2 %v561_v6  ;;  %1822 = vmatpush.msrb.mxu3 %v641_v7  ;;  %v821_v6 = vld [vmem:[%s7529_s1 + $0x18e0] sm:$0xff] }
  0xb5   :  { %1763 = vmatpush.msrb.mxu0 %v396_v8  ;;  %1783 = vmatpush.msrb.mxu1 %v476_v9  ;;  %v901_v8 = vld [vmem:[%s7529_s1 + $0x1b60] sm:$0xff] }
  0xb6   :  { %1803 = vmatpush.msrb.mxu2 %v556_v10  ;;  %1823 = vmatpush.msrb.mxu3 %v636_v11  ;;  %v981_v9 = vld [vmem:[%s7529_s1 + $0x1de0] sm:$0xff]  ;;  %v736_v10 = vld [vmem:[%s7529_s1 + $0x1638] sm:$0xff] }
  0xb7   :  { %1764 = vmatpush.msrb.mxu0 %v391_v12  ;;  %1784 = vmatpush.msrb.mxu1 %v471_v13  ;;  %v816_v11 = vld [vmem:[%s7529_s1 + $0x18b8] sm:$0xff] }
  0xb8   :  { %1804 = vmatpush.msrb.mxu2 %v551_v14  ;;  %1824 = vmatpush.msrb.mxu3 %v631_v15  ;;  %v896_v13 = vld [vmem:[%s7529_s1 + $0x1b38] sm:$0xff] }
  0xb9   :  { %1765 = vmatpush.msrb.mxu0 %v386_v16  ;;  %1785 = vmatpush.msrb.mxu1 %v466_v17  ;;  %v976_v14 = vld [vmem:[%s7529_s1 + $0x1db8] sm:$0xff]  ;;  %v731_v16 = vld [vmem:[%s7529_s1 + $0x1610] sm:$0xff] }
  0xba   :  { %1805 = vmatpush.msrb.mxu2 %v546_v18  ;;  %1825 = vmatpush.msrb.mxu3 %v626_v19  ;;  %v811_v17 = vld [vmem:[%s7529_s1 + $0x1890] sm:$0xff] }
  0xbb   :  { %1766 = vmatpush.msrb.mxu0 %v381_v20  ;;  %1786 = vmatpush.msrb.mxu1 %v461_v21  ;;  %v891_v18 = vld [vmem:[%s7529_s1 + $0x1b10] sm:$0xff]  ;;  %v726_v21 = vld [vmem:[%s7529_s1 + $0x15e8] sm:$0xff] }
  0xbc   :  { %1806 = vmatpush.msrb.mxu2 %v541_v22  ;;  %1826 = vmatpush.msrb.mxu3 %v621_v23  ;;  %v971_v19 = vld [vmem:[%s7529_s1 + $0x1d90] sm:$0xff]  ;;  %v806_v22 = vld [vmem:[%s7529_s1 + $0x1868] sm:$0xff] }
  0xbd   :  { %1767 = vmatpush.msrb.mxu0 %v376_v24  ;;  %1787 = vmatpush.msrb.mxu1 %v456_v25  ;;  %v886_v25 = vld [vmem:[%s7529_s1 + $0x1ae8] sm:$0xff] }
  0xbe   :  { %1807 = vmatpush.msrb.mxu2 %v536_v27  ;;  %1827 = vmatpush.msrb.mxu3 %v616_v28  ;;  %v721_v27 = vld [vmem:[%s7529_s1 + $0x15c0] sm:$0xff] }
  0xbf   :  { %1768 = vmatpush.msrb.mxu0 %v371_v29  ;;  %1788 = vmatpush.msrb.mxu1 %v451_v30  ;;  %v1375_v40 = vpop.f32.mrf.mxu0  ;;  %v801_v29 = vld [vmem:[%s7529_s1 + $0x1840] sm:$0xff] }
  0xc0   :  { %1808 = vmatpush.msrb.mxu2 %v531_v31  ;;  %1828 = vmatpush.msrb.mxu3 %v611_v32  ;;  %v1395_v41 = vpop.f32.mrf.mxu1  ;;  %v1376_v44 = vadd.f32 %v1375_v40, %v1307_v33  ;;  %v881_v30 = vld [vmem:[%s7529_s1 + $0x1ac0] sm:$0xff]  ;;  %v871_v40 = vld [vmem:[%s7529_s1 + $0x1a70] sm:$0xff] }
  0xc1   :  { %1769 = vmatpush.msrb.mxu0 %v366_v34  ;;  %1789 = vmatpush.msrb.mxu1 %v446_v35  ;;  %v961_v32 = vld [vmem:[%s7529_s1 + $0x1d40] sm:$0xff]  ;;  %v716_v34 = vld [vmem:[%s7529_s1 + $0x1598] sm:$0xff] }
  0xc2   :  { %1809 = vmatpush.msrb.mxu2 %v526_v36  ;;  %1829 = vmatpush.msrb.mxu3 %v606_v37  ;;  %v1396_v53 = vadd.f32 %v1395_v41, %v1376_v44  ;;  %v796_v35 = vld [vmem:[%s7529_s1 + $0x1818] sm:$0xff]  ;;  %v951_v41 = vld [vmem:[%s7529_s1 + $0x1cf0] sm:$0xff]  ;;  %v866_v44 = vld [vmem:[%s7529_s1 + $0x1a48] sm:$0xff] }
  0xc3   :  { %1770 = vmatpush.msrb.mxu0 %v361_v38  ;;  %1790 = vmatpush.msrb.mxu1 %v441_v39  ;;  %v876_v36 = vld [vmem:[%s7529_s1 + $0x1a98] sm:$0xff]  ;;  %v711_v38 = vld [vmem:[%s7529_s1 + $0x1570] sm:$0xff] }
  0xc4   :  { %1810 = vmatpush.msrb.mxu2 %v521_v42  ;;  %1830 = vmatpush.msrb.mxu3 %v601_v43  ;;  %v956_v37 = vld [vmem:[%s7529_s1 + $0x1d18] sm:$0xff]  ;;  %v791_v39 = vld [vmem:[%s7529_s1 + $0x17f0] sm:$0xff]  ;;  %v706_v42 = vld [vmem:[%s7529_s1 + $0x1548] sm:$0xff] }
  0xc5   :  { %1771 = vmatpush.msrb.mxu0 %v356_v45  ;;  %1791 = vmatpush.msrb.mxu1 %v436_v46  ;;  %v786_v43 = vld [vmem:[%s7529_s1 + $0x17c8] sm:$0xff]  ;;  %v701_v46 = vld [vmem:[%s7529_s1 + $0x1520] sm:$0xff] }
  0xc6   :  { %1811 = vmatpush.msrb.mxu2 %v516_v47  ;;  %1831 = vmatpush.msrb.mxu3 %v596_v52  ;;  %v946_v45 = vld [vmem:[%s7529_s1 + $0x1cc8] sm:$0xff]  ;;  %v781_v47 = vld [vmem:[%s7529_s1 + $0x17a0] sm:$0xff] }
  0xc7   :  { %1772 = vmatpush.msrb.mxu0 %v351_v54  ;;  %1792 = vmatpush.msrb.mxu1 %v431_v55  ;;  %v1415_v62 = vpop.f32.mrf.mxu2  ;;  %v1435_v63 = vpop.f32.mrf.mxu3  ;;  %v861_v52 = vld [vmem:[%s7529_s1 + $0x1a20] sm:$0xff]  ;;  %v696_v54 = vld [vmem:[%s7529_s1 + $0x14f8] sm:$0xff] }
  0xc8   :  { %1812 = vmatpush.msrb.mxu2 %v511_v56  ;;  %1832 = vmatpush.msrb.mxu3 %v591_v57  ;;  %v1416_v4 = vadd.f32 %v1415_v62, %v1396_v53  ;;  %v941_v53 = vld [vmem:[%s7529_s1 + $0x1ca0] sm:$0xff]  ;;  %v776_v55 = vld [vmem:[%s7529_s1 + $0x1778] sm:$0xff]  ;;  %v686_v62 = vld [vmem:[%s7529_s1 + $0x14a8] sm:$0xff] }
  0xc9   :  { %1773 = vmatpush.msrb.mxu0 %v346_v58  ;;  %1793 = vmatpush.msrb.mxu1 %v426_v59  ;;  %v856_v56 = vld [vmem:[%s7529_s1 + $0x19f8] sm:$0xff]  ;;  %v691_v58 = vld [vmem:[%s7529_s1 + $0x14d0] sm:$0xff] }
  0xca   :  { %1813 = vmatpush.msrb.mxu2 %v506_v60  ;;  %1833 = vmatpush.msrb.mxu3 %v586_v61  ;;  %v1436_v7 = vadd.f32 %v1435_v63, %v1416_v4  ;;  %v936_v57 = vld [vmem:[%s7529_s1 + $0x1c78] sm:$0xff]  ;;  %v771_v59 = vld [vmem:[%s7529_s1 + $0x1750] sm:$0xff]  ;;  %v766_v63 = vld [vmem:[%s7529_s1 + $0x1728] sm:$0xff] }
  0xcb   :  { %1694 = vmatmul.f32.vlgmr.msra.gmra.mxu0 %v3593_v48  ;;  %1714 = vmatmul.f32.vlgmr.msra.gmra.mxu1 %v3595_v49  ;;  %v851_v60 = vld [vmem:[%s7529_s1 + $0x19d0] sm:$0xff]  ;;  %v846_v4 = vld [vmem:[%s7529_s1 + $0x19a8] sm:$0xff] }
  0xcc   :  { %1734 = vmatmul.f32.vlgmr.msra.gmra.mxu2 %v3597_v50  ;;  %1754 = vmatmul.f32.vlgmr.msra.gmra.mxu3 %v3599_v51  ;;  %v1455_v12 = vpop.f32.mrf.mxu0  ;;  %v931_v61 = vld [vmem:[%s7529_s1 + $0x1c50] sm:$0xff] }
  0xcd   :  { %1838 = vmatpush.msra.mxu0 %v741_v5  ;;  %1858 = vmatpush.msra.mxu1 %v821_v6  ;;  %v1456_v15 = vadd.f32 %v1455_v12, %v1436_v7  ;;  %v926_v5 = vld [vmem:[%s7529_s1 + $0x1c28] sm:$0xff]  ;;  %v681_v6 = vld [vmem:[%s7529_s1 + $0x1480] sm:$0xff]  ;;  %v676_v12 = vld [vmem:[%s7529_s1 + $0x1458] sm:$0xff] }
  0xce   :  { %1878 = vmatpush.msra.mxu2 %v901_v8  ;;  %1898 = vmatpush.msra.mxu3 %v981_v9  ;;  %v761_v7 = vld [vmem:[%s7529_s1 + $0x1700] sm:$0xff] }
  0xcf   :  { %1839 = vmatpush.msra.mxu0 %v736_v10  ;;  %1859 = vmatpush.msra.mxu1 %v816_v11  ;;  %v1475_v20 = vpop.f32.mrf.mxu1  ;;  %v841_v9 = vld [vmem:[%s7529_s1 + $0x1980] sm:$0xff] }
  0xd0   :  { %1879 = vmatpush.msra.mxu2 %v896_v13  ;;  %1899 = vmatpush.msra.mxu3 %v976_v14  ;;  %v1476_v23 = vadd.f32 %v1475_v20, %v1456_v15  ;;  %v1495_v24 = vpop.f32.mrf.mxu2  ;;  %v921_v10 = vld [vmem:[%s7529_s1 + $0x1c00] sm:$0xff]  ;;  %v756_v13 = vld [vmem:[%s7529_s1 + $0x16d8] sm:$0xff]  ;;  %v831_v20 = vld [vmem:[%s7529_s1 + $0x1930] sm:$0xff] }
  0xd1   :  { %1840 = vmatpush.msra.mxu0 %v731_v16  ;;  %1860 = vmatpush.msra.mxu1 %v811_v17  ;;  %v836_v14 = vld [vmem:[%s7529_s1 + $0x1958] sm:$0xff]  ;;  %v671_v17 = vld [vmem:[%s7529_s1 + $0x1430] sm:$0xff] }
  0xd2   :  { %1880 = vmatpush.msra.mxu2 %v891_v18  ;;  %1900 = vmatpush.msra.mxu3 %v971_v19  ;;  %v1496_v28 = vadd.f32 %v1495_v24, %v1476_v23  ;;  %v916_v15 = vld [vmem:[%s7529_s1 + $0x1bd8] sm:$0xff]  ;;  %v751_v18 = vld [vmem:[%s7529_s1 + $0x16b0] sm:$0xff]  ;;  %v746_v23 = vld [vmem:[%s7529_s1 + $0x1688] sm:$0xff] }
  0xd3   :  { %1841 = vmatpush.msra.mxu0 %v726_v21  ;;  %1861 = vmatpush.msra.mxu1 %v806_v22  ;;  %v1515_v31 = vpop.f32.mrf.mxu3  ;;  %v911_v21 = vld [vmem:[%s7529_s1 + $0x1bb0] sm:$0xff]  ;;  %v666_v22 = vld [vmem:[%s7529_s1 + $0x1408] sm:$0xff] }
  0xd4   :  { %1881 = vmatpush.msra.mxu2 %v886_v25  ;;  %1901 = vmatpush.msra.mxu3 %v966_v26  ;;  %v4512_v33 = vadd.f32 %v1515_v31, %v1496_v28  ;;  %v826_v25 = vld [vmem:[%s7529_s1 + $0x1908] sm:$0xff]  ;;  %v1061_v28 = vld [vmem:[%s7529_s1 + $0x2060] sm:$0xff] }
  0xd5   :  { %1814 = vmatmul.f32.vlgmr.msrb.gmra.mxu2 %v3637_v0  ;;  %1842 = vmatpush.msra.mxu0 %v721_v27  ;;  %v906_v26 = vld [vmem:[%s7529_s1 + $0x1b88] sm:$0xff]  ;;  %v1221_v31 = vld [vmem:[%s7529_s1 + $0x2560] sm:$0xff] }
  0xd6   :  { %1862 = vmatpush.msra.mxu1 %v801_v29  ;;  %1882 = vmatpush.msra.mxu2 %v881_v30  ;;  %v1141_v29 = vld [vmem:[%s7529_s1 + $0x22e0] sm:$0xff] }
  0xd7   :  { %1902 = vmatpush.msra.mxu3 %v961_v32  ;;  %1774 = vmatmul.f32.vlgmr.msrb.gmra.mxu0 %v3639_v1  ;;  %v1301_v32 = vld [vmem:[%s7529_s1 + $0x27e0] sm:$0xff] }
  0xd8   :  { %1834 = vmatmul.f32.vlgmr.msrb.gmra.mxu3 %v3641_v2  ;;  %1843 = vmatpush.msra.mxu0 %v716_v34  ;;  %v3167_v34 = vld.sshfl [vmem:[#allocation1] sm:$0xff pattern:$0x73625140] }
  0xd9   :  { %1863 = vmatpush.msra.mxu1 %v796_v35  ;;  %1883 = vmatpush.msra.mxu2 %v876_v36  ;;  %v3168_v35 = vld.sshfl [vmem:[#allocation1 + $0x10] sm:$0xff pattern:$0x73625140]  ;;  %v1056_v36 = vld [vmem:[%s7529_s1 + $0x2038] sm:$0xff] }
  0xda   :  { %1903 = vmatpush.msra.mxu3 %v956_v37  ;;  %1794 = vmatmul.f32.vlgmr.msrb.gmra.mxu1 %v3643_v3  ;;  %v1136_v37 = vld [vmem:[%s7529_s1 + $0x22b8] sm:$0xff] }
  0xdb   :  { %1844 = vmatpush.msra.mxu0 %v711_v38  ;;  %1864 = vmatpush.msra.mxu1 %v791_v39  ;;  %v1216_v38 = vld [vmem:[%s7529_s1 + $0x2538] sm:$0xff] }
  0xdc   :  { %1884 = vmatpush.msra.mxu2 %v871_v40  ;;  %1904 = vmatpush.msra.mxu3 %v951_v41  ;;  %v1296_v39 = vld [vmem:[%s7529_s1 + $0x27b8] sm:$0xff]  ;;  %v3169_v40 = vld.sshfl [vmem:[#allocation1 + $0x8] sm:$0xff pattern:$0x73625140] }
  0xdd   :  { %1845 = vmatpush.msra.mxu0 %v706_v42  ;;  %1865 = vmatpush.msra.mxu1 %v786_v43  ;;  %v3170_v41 = vld.sshfl [vmem:[#allocation1 + $0x18] sm:$0xff pattern:$0x73625140]  ;;  %v1051_v42 = vld [vmem:[%s7529_s1 + $0x2010] sm:$0xff] }
  0xde   :  { %1885 = vmatpush.msra.mxu2 %v866_v44  ;;  %1905 = vmatpush.msra.mxu3 %v946_v45  ;;  %v1131_v43 = vld [vmem:[%s7529_s1 + $0x2290] sm:$0xff] }
  0xdf   :  { %1846 = vmatpush.msra.mxu0 %v701_v46  ;;  %1866 = vmatpush.msra.mxu1 %v781_v47  ;;  %v1211_v44 = vld [vmem:[%s7529_s1 + $0x2510] sm:$0xff]  ;;  %v1046_v46 = vld [vmem:[%s7529_s1 + $0x1fe8] sm:$0xff] }
  0xe0   :  { %1886 = vmatpush.msra.mxu2 %v861_v52  ;;  %1906 = vmatpush.msra.mxu3 %v941_v53  ;;  %v1291_v45 = vld [vmem:[%s7529_s1 + $0x2790] sm:$0xff]  ;;  %v1126_v47 = vld [vmem:[%s7529_s1 + $0x2268] sm:$0xff] }
  0xe1   :  { %1847 = vmatpush.msra.mxu0 %v696_v54  ;;  %1867 = vmatpush.msra.mxu1 %v776_v55  ;;  %v1206_v52 = vld [vmem:[%s7529_s1 + $0x24e8] sm:$0xff]  ;;  %v1041_v54 = vld [vmem:[%s7529_s1 + $0x1fc0] sm:$0xff] }
  0xe2   :  { %1887 = vmatpush.msra.mxu2 %v856_v56  ;;  %1907 = vmatpush.msra.mxu3 %v936_v57  ;;  %v1286_v53 = vld [vmem:[%s7529_s1 + $0x2768] sm:$0xff]  ;;  %v1121_v55 = vld [vmem:[%s7529_s1 + $0x2240] sm:$0xff] }
  0xe3   :  { %1848 = vmatpush.msra.mxu0 %v691_v58  ;;  %1868 = vmatpush.msra.mxu1 %v771_v59  ;;  %v1201_v56 = vld [vmem:[%s7529_s1 + $0x24c0] sm:$0xff]  ;;  %v1036_v58 = vld [vmem:[%s7529_s1 + $0x1f98] sm:$0xff] }
  0xe4   :  { %1888 = vmatpush.msra.mxu2 %v851_v60  ;;  %1908 = vmatpush.msra.mxu3 %v931_v61  ;;  %v1535_v8 = vpop.f32.mrf.mxu0  ;;  %v1281_v57 = vld [vmem:[%s7529_s1 + $0x2740] sm:$0xff]  ;;  %v1116_v59 = vld [vmem:[%s7529_s1 + $0x2218] sm:$0xff] }
  0xe5   :  { %1849 = vmatpush.msra.mxu0 %v686_v62  ;;  %1869 = vmatpush.msra.mxu1 %v766_v63  ;;  %v1536_v11 = vadd.f32 %v1535_v8, %v4512_v33  ;;  %v1196_v60 = vld [vmem:[%s7529_s1 + $0x2498] sm:$0xff]  ;;  %v1031_v62 = vld [vmem:[%s7529_s1 + $0x1f70] sm:$0xff]  ;;  %v1186_v8 = vld [vmem:[%s7529_s1 + $0x2448] sm:$0xff] }
  0xe6   :  { %1889 = vmatpush.msra.mxu2 %v846_v4  ;;  %1909 = vmatpush.msra.mxu3 %v926_v5  ;;  %v1276_v61 = vld [vmem:[%s7529_s1 + $0x2718] sm:$0xff]  ;;  %v1111_v63 = vld [vmem:[%s7529_s1 + $0x21f0] sm:$0xff] }
  0xe7   :  { %1850 = vmatpush.msra.mxu0 %v681_v6  ;;  %1870 = vmatpush.msra.mxu1 %v761_v7  ;;  %v1555_v16 = vpop.f32.mrf.mxu1  ;;  %v1191_v4 = vld [vmem:[%s7529_s1 + $0x2470] sm:$0xff]  ;;  %v1026_v6 = vld [vmem:[%s7529_s1 + $0x1f48] sm:$0xff] }
  0xe8   :  { %1890 = vmatpush.msra.mxu2 %v841_v9  ;;  %1910 = vmatpush.msra.mxu3 %v921_v10  ;;  %v1556_v19 = vadd.f32 %v1555_v16, %v1536_v11  ;;  %v1271_v5 = vld [vmem:[%s7529_s1 + $0x26f0] sm:$0xff]  ;;  %v1106_v7 = vld [vmem:[%s7529_s1 + $0x21c8] sm:$0xff]  ;;  %v1021_v10 = vld [vmem:[%s7529_s1 + $0x1f20] sm:$0xff] }
  0xe9   :  { %1851 = vmatpush.msra.mxu0 %v676_v12  ;;  %1871 = vmatpush.msra.mxu1 %v756_v13  ;;  %v1266_v9 = vld [vmem:[%s7529_s1 + $0x26c8] sm:$0xff]  ;;  %v1101_v11 = vld [vmem:[%s7529_s1 + $0x21a0] sm:$0xff]  ;;  %v1176_v16 = vld [vmem:[%s7529_s1 + $0x23f8] sm:$0xff] }
  0xea   :  { %1891 = vmatpush.msra.mxu2 %v836_v14  ;;  %1911 = vmatpush.msra.mxu3 %v916_v15  ;;  %v1575_v24 = vpop.f32.mrf.mxu2  ;;  %v1181_v12 = vld [vmem:[%s7529_s1 + $0x2420] sm:$0xff]  ;;  %v1016_v14 = vld [vmem:[%s7529_s1 + $0x1ef8] sm:$0xff] }
  0xeb   :  { %1852 = vmatpush.msra.mxu0 %v671_v17  ;;  %1872 = vmatpush.msra.mxu1 %v751_v18  ;;  %v1576_v27 = vadd.f32 %v1575_v24, %v1556_v19  ;;  %v1261_v13 = vld [vmem:[%s7529_s1 + $0x26a0] sm:$0xff]  ;;  %v1096_v15 = vld [vmem:[%s7529_s1 + $0x2178] sm:$0xff]  ;;  %v1011_v18 = vld [vmem:[%s7529_s1 + $0x1ed0] sm:$0xff] }
  0xec   :  { %1892 = vmatpush.msra.mxu2 %v831_v20  ;;  %1912 = vmatpush.msra.mxu3 %v911_v21  ;;  %v1256_v17 = vld [vmem:[%s7529_s1 + $0x2678] sm:$0xff]  ;;  %v1091_v19 = vld [vmem:[%s7529_s1 + $0x2150] sm:$0xff]  ;;  %v1166_v24 = vld [vmem:[%s7529_s1 + $0x23a8] sm:$0xff] }
  0xed   :  { %1853 = vmatpush.msra.mxu0 %v666_v22  ;;  %1873 = vmatpush.msra.mxu1 %v746_v23  ;;  %v1595_v30 = vpop.f32.mrf.mxu3  ;;  %v1171_v20 = vld [vmem:[%s7529_s1 + $0x23d0] sm:$0xff]  ;;  %v1006_v22 = vld [vmem:[%s7529_s1 + $0x1ea8] sm:$0xff] }
  0xee   :  { %1893 = vmatpush.msra.mxu2 %v826_v25  ;;  %1913 = vmatpush.msra.mxu3 %v906_v26  ;;  %v4663_v33 = vadd.f32 %v1595_v30, %v1576_v27  ;;  %v1251_v21 = vld [vmem:[%s7529_s1 + $0x2650] sm:$0xff]  ;;  %v1086_v23 = vld [vmem:[%s7529_s1 + $0x2128] sm:$0xff]  ;;  %v1001_v26 = vld [vmem:[%s7529_s1 + $0x1e80] sm:$0xff] }
  0xef   :  { %1854 = vmatmul.f32.vlgmr.msra.gmra.mxu0 %v3167_v34  ;;  %1894 = vmatmul.f32.vlgmr.msra.gmra.mxu2 %v3168_v35  ;;  %v1246_v25 = vld [vmem:[%s7529_s1 + $0x2628] sm:$0xff]  ;;  %v1081_v27 = vld [vmem:[%s7529_s1 + $0x2100] sm:$0xff]  ;;  %v1076_v34 = vld [vmem:[%s7529_s1 + $0x20d8] sm:$0xff] }
  0xf0   :  { %1918 = vmatpush.msrb.mxu0 %v1061_v28  ;;  %1938 = vmatpush.msrb.mxu1 %v1141_v29  ;;  %v1161_v29 = vld [vmem:[%s7529_s1 + $0x2380] sm:$0xff]  ;;  %v1156_v35 = vld [vmem:[%s7529_s1 + $0x2358] sm:$0xff] }
  0xf1   :  { %1958 = vmatpush.msrb.mxu2 %v1221_v31  ;;  %1978 = vmatpush.msrb.mxu3 %v1301_v32  ;;  %v1241_v30 = vld [vmem:[%s7529_s1 + $0x2600] sm:$0xff]  ;;  %v996_v32 = vld [vmem:[%s7529_s1 + $0x1e58] sm:$0xff] }
  0xf2   :  { %1874 = vmatmul.f32.vlgmr.msra.gmra.mxu1 %v3169_v40  ;;  %1914 = vmatmul.f32.vlgmr.msra.gmra.mxu3 %v3170_v41  ;;  %v1151_v40 = vld [vmem:[%s7529_s1 + $0x2330] sm:$0xff] }
  0xf3   :  { %1919 = vmatpush.msrb.mxu0 %v1056_v36  ;;  %1939 = vmatpush.msrb.mxu1 %v1136_v37  ;;  %v991_v37 = vld [vmem:[%s7529_s1 + $0x1e30] sm:$0xff] }
  0xf4   :  { %1959 = vmatpush.msrb.mxu2 %v1216_v38  ;;  %1979 = vmatpush.msrb.mxu3 %v1296_v39  ;;  %v1071_v38 = vld [vmem:[%s7529_s1 + $0x20b0] sm:$0xff] }
  0xf5   :  { %1920 = vmatpush.msrb.mxu0 %v1051_v42  ;;  %1940 = vmatpush.msrb.mxu1 %v1131_v43  ;;  %v1231_v41 = vld [vmem:[%s7529_s1 + $0x25b0] sm:$0xff]  ;;  %v986_v42 = vld [vmem:[%s7529_s1 + $0x1e08] sm:$0xff] }
  0xf6   :  { %1960 = vmatpush.msrb.mxu2 %v1211_v44  ;;  %1980 = vmatpush.msrb.mxu3 %v1291_v45  ;;  %v1066_v43 = vld [vmem:[%s7529_s1 + $0x2088] sm:$0xff] }
  0xf7   :  { %1921 = vmatpush.msrb.mxu0 %v1046_v46  ;;  %1941 = vmatpush.msrb.mxu1 %v1126_v47  ;;  %v1146_v45 = vld [vmem:[%s7529_s1 + $0x2308] sm:$0xff] }
  0xf8   :  { %1961 = vmatpush.msrb.mxu2 %v1206_v52  ;;  %1981 = vmatpush.msrb.mxu3 %v1286_v53  ;;  %v1226_v46 = vld [vmem:[%s7529_s1 + $0x2588] sm:$0xff] }
  0xf9   :  { %1922 = vmatpush.msrb.mxu0 %v1041_v54  ;;  %1942 = vmatpush.msrb.mxu1 %v1121_v55  ;;  %v102_v52 = vld [vmem:[%s7529_s1 + $0x268] sm:$0xff] }
  0xfa   :  { %1962 = vmatpush.msrb.mxu2 %v1201_v56  ;;  %1982 = vmatpush.msrb.mxu3 %v1281_v57  ;;  %v182_v53 = vld [vmem:[%s7529_s1 + $0x4e8] sm:$0xff] }
  0xfb   :  { %1923 = vmatpush.msrb.mxu0 %v1036_v58  ;;  %1943 = vmatpush.msrb.mxu1 %v1116_v59  ;;  %v262_v55 = vld [vmem:[%s7529_s1 + $0x768] sm:$0xff]  ;;  %v3171_v58 = vld.sshfl [vmem:[#allocation1 + $0x20] sm:$0xff pattern:$0x73625140] }
  0xfc   :  { %1963 = vmatpush.msrb.mxu2 %v1196_v60  ;;  %1983 = vmatpush.msrb.mxu3 %v1276_v61  ;;  %v342_v56 = vld [vmem:[%s7529_s1 + $0x9e8] sm:$0xff]  ;;  %v3172_v59 = vld.sshfl [vmem:[#allocation1 + $0x30] sm:$0xff pattern:$0x73625140]  ;;  %v97_v60 = vld [vmem:[%s7529_s1 + $0x240] sm:$0xff] }
  0xfd   :  { %1924 = vmatpush.msrb.mxu0 %v1031_v62  ;;  %1944 = vmatpush.msrb.mxu1 %v1111_v63  ;;  %v177_v61 = vld [vmem:[%s7529_s1 + $0x4c0] sm:$0xff] }
  0xfe   :  { %1964 = vmatpush.msrb.mxu2 %v1191_v4  ;;  %1984 = vmatpush.msrb.mxu3 %v1271_v5  ;;  %v257_v62 = vld [vmem:[%s7529_s1 + $0x740] sm:$0xff]  ;;  %v3173_v4 = vld.sshfl [vmem:[#allocation1 + $0x28] sm:$0xff pattern:$0x73625140] }
  0xff   :  { %1925 = vmatpush.msrb.mxu0 %v1026_v6  ;;  %1945 = vmatpush.msrb.mxu1 %v1106_v7  ;;  %v337_v63 = vld [vmem:[%s7529_s1 + $0x9c0] sm:$0xff]  ;;  %v3174_v5 = vld.sshfl [vmem:[#allocation1 + $0x38] sm:$0xff pattern:$0x73625140] }
 0x100   :  { %1965 = vmatpush.msrb.mxu2 %v1186_v8  ;;  %1985 = vmatpush.msrb.mxu3 %v1266_v9  ;;  %v92_v6 = vld [vmem:[%s7529_s1 + $0x218] sm:$0xff] }
 0x101   :  { %1926 = vmatpush.msrb.mxu0 %v1021_v10  ;;  %1946 = vmatpush.msrb.mxu1 %v1101_v11  ;;  %v172_v7 = vld [vmem:[%s7529_s1 + $0x498] sm:$0xff]  ;;  %v87_v10 = vld [vmem:[%s7529_s1 + $0x1f0] sm:$0xff] }
 0x102   :  { %1966 = vmatpush.msrb.mxu2 %v1181_v12  ;;  %1986 = vmatpush.msrb.mxu3 %v1261_v13  ;;  %v252_v8 = vld [vmem:[%s7529_s1 + $0x718] sm:$0xff]  ;;  %v167_v11 = vld [vmem:[%s7529_s1 + $0x470] sm:$0xff] }
 0x103   :  { %1927 = vmatpush.msrb.mxu0 %v1016_v14  ;;  %1947 = vmatpush.msrb.mxu1 %v1096_v15  ;;  %v332_v9 = vld [vmem:[%s7529_s1 + $0x998] sm:$0xff]  ;;  %v247_v12 = vld [vmem:[%s7529_s1 + $0x6f0] sm:$0xff]  ;;  %v82_v14 = vld [vmem:[%s7529_s1 + $0x1c8] sm:$0xff] }
 0x104   :  { %1967 = vmatpush.msrb.mxu2 %v1176_v16  ;;  %1987 = vmatpush.msrb.mxu3 %v1256_v17  ;;  %v327_v13 = vld [vmem:[%s7529_s1 + $0x970] sm:$0xff]  ;;  %v162_v15 = vld [vmem:[%s7529_s1 + $0x448] sm:$0xff] }
 0x105   :  { %1928 = vmatpush.msrb.mxu0 %v1011_v18  ;;  %1948 = vmatpush.msrb.mxu1 %v1091_v19  ;;  %v242_v16 = vld [vmem:[%s7529_s1 + $0x6c8] sm:$0xff]  ;;  %v77_v18 = vld [vmem:[%s7529_s1 + $0x1a0] sm:$0xff] }
 0x106   :  { %1968 = vmatpush.msrb.mxu2 %v1171_v20  ;;  %1988 = vmatpush.msrb.mxu3 %v1251_v21  ;;  %v1615_v28 = vpop.f32.mrf.mxu0  ;;  %v322_v17 = vld [vmem:[%s7529_s1 + $0x948] sm:$0xff]  ;;  %v157_v19 = vld [vmem:[%s7529_s1 + $0x420] sm:$0xff] }
 0x107   :  { %1929 = vmatpush.msrb.mxu0 %v1006_v22  ;;  %1949 = vmatpush.msrb.mxu1 %v1086_v23  ;;  %v1616_v31 = vadd.f32 %v1615_v28, %v4663_v33  ;;  %v1236_v33 = vld [vmem:[%s7529_s1 + $0x25d8] sm:$0xff]  ;;  %v237_v20 = vld [vmem:[%s7529_s1 + $0x6a0] sm:$0xff]  ;;  %v227_v28 = vld [vmem:[%s7529_s1 + $0x650] sm:$0xff] }
 0x108   :  { %1969 = vmatpush.msrb.mxu2 %v1166_v24  ;;  %1989 = vmatpush.msrb.mxu3 %v1246_v25  ;;  %v317_v21 = vld [vmem:[%s7529_s1 + $0x920] sm:$0xff]  ;;  %v72_v22 = vld [vmem:[%s7529_s1 + $0x178] sm:$0xff] }
 0x109   :  { %1930 = vmatpush.msrb.mxu0 %v1001_v26  ;;  %1950 = vmatpush.msrb.mxu1 %v1081_v27  ;;  %v1635_v36 = vpop.f32.mrf.mxu1  ;;  %v152_v23 = vld [vmem:[%s7529_s1 + $0x3f8] sm:$0xff]  ;;  %v67_v26 = vld [vmem:[%s7529_s1 + $0x150] sm:$0xff] }
 0x10a   :  { %1970 = vmatpush.msrb.mxu2 %v1161_v29  ;;  %1990 = vmatpush.msrb.mxu3 %v1241_v30  ;;  %v1636_v39 = vadd.f32 %v1635_v36, %v1616_v31  ;;  %v232_v24 = vld [vmem:[%s7529_s1 + $0x678] sm:$0xff]  ;;  %v147_v27 = vld [vmem:[%s7529_s1 + $0x3d0] sm:$0xff]  ;;  %v62_v30 = vld [vmem:[%s7529_s1 + $0x128] sm:$0xff] }
 0x10b   :  { %1931 = vmatpush.msrb.mxu0 %v996_v32  ;;  %1951 = vmatpush.msrb.mxu1 %v1076_v34  ;;  %v312_v25 = vld [vmem:[%s7529_s1 + $0x8f8] sm:$0xff]  ;;  %v307_v29 = vld [vmem:[%s7529_s1 + $0x8d0] sm:$0xff]  ;;  %v142_v31 = vld [vmem:[%s7529_s1 + $0x3a8] sm:$0xff] }
 0x10c   :  { %1971 = vmatpush.msrb.mxu2 %v1156_v35  ;;  %1991 = vmatpush.msrb.mxu3 %v1236_v33  ;;  %v1655_v44 = vpop.f32.mrf.mxu2  ;;  %v222_v32 = vld [vmem:[%s7529_s1 + $0x628] sm:$0xff]  ;;  %v57_v35 = vld [vmem:[%s7529_s1 + $0x100] sm:$0xff] }
 0x10d   :  { %1932 = vmatpush.msrb.mxu0 %v991_v37  ;;  %1952 = vmatpush.msrb.mxu1 %v1071_v38  ;;  %v1656_v47 = vadd.f32 %v1655_v44, %v1636_v39  ;;  %v302_v34 = vld [vmem:[%s7529_s1 + $0x8a8] sm:$0xff]  ;;  %v137_v33 = vld [vmem:[%s7529_s1 + $0x380] sm:$0xff]  ;;  %v52_v38 = vld [vmem:[%s7529_s1 + $0xd8] sm:$0xff] }
 0x10e   :  { %1972 = vmatpush.msrb.mxu2 %v1151_v40  ;;  %1992 = vmatpush.msrb.mxu3 %v1231_v41  ;;  %v217_v36 = vld [vmem:[%s7529_s1 + $0x600] sm:$0xff]  ;;  %v132_v39 = vld [vmem:[%s7529_s1 + $0x358] sm:$0xff]  ;;  %v207_v44 = vld [vmem:[%s7529_s1 + $0x5b0] sm:$0xff] }
 0x10f   :  { %1933 = vmatpush.msrb.mxu0 %v986_v42  ;;  %1953 = vmatpush.msrb.mxu1 %v1066_v43  ;;  %v1675_v54 = vpop.f32.mrf.mxu3  ;;  %v297_v37 = vld [vmem:[%s7529_s1 + $0x880] sm:$0xff]  ;;  %v212_v40 = vld [vmem:[%s7529_s1 + $0x5d8] sm:$0xff]  ;;  %v47_v42 = vld [vmem:[%s7529_s1 + $0xb0] sm:$0xff] }
 0x110   :  { %1973 = vmatpush.msrb.mxu2 %v1146_v45  ;;  %1993 = vmatpush.msrb.mxu3 %v1226_v46  ;;  %v4858_v57 = vadd.f32 %v1675_v54, %v1656_v47  ;;  %v292_v41 = vld [vmem:[%s7529_s1 + $0x858] sm:$0xff]  ;;  %v127_v43 = vld [vmem:[%s7529_s1 + $0x330] sm:$0xff]  ;;  %v42_v46 = vld [vmem:[%s7529_s1 + $0x88] sm:$0xff] }
 0x111   :  { %1934 = vmatmul.f32.vlgmr.msrb.gmra.mxu0 %v3171_v58  ;;  %1974 = vmatmul.f32.vlgmr.msrb.gmra.mxu2 %v3172_v59  ;;  %v287_v45 = vld [vmem:[%s7529_s1 + $0x830] sm:$0xff]  ;;  %v122_v47 = vld [vmem:[%s7529_s1 + $0x308] sm:$0xff]  ;;  %v37_v54 = vld [vmem:[%s7529_s1 + $0x60] sm:$0xff] }
 0x112   :  { %1998 = vmatpush.msra.mxu0 %v102_v52  ;;  %2018 = vmatpush.msra.mxu1 %v182_v53  ;;  %v202_v52 = vld [vmem:[%s7529_s1 + $0x588] sm:$0xff]  ;;  %v277_v58 = vld [vmem:[%s7529_s1 + $0x7e0] sm:$0xff]  ;;  %v32_v59 = vld [vmem:[%s7529_s1 + $0x38] sm:$0xff] }
 0x113   :  { %2038 = vmatpush.msra.mxu2 %v262_v55  ;;  %2058 = vmatpush.msra.mxu3 %v342_v56  ;;  %v282_v53 = vld [vmem:[%s7529_s1 + $0x808] sm:$0xff]  ;;  %v117_v55 = vld [vmem:[%s7529_s1 + $0x2e0] sm:$0xff] }
 0x114   :  { %1954 = vmatmul.f32.vlgmr.msrb.gmra.mxu1 %v3173_v4  ;;  %1994 = vmatmul.f32.vlgmr.msrb.gmra.mxu3 %v3174_v5  ;;  %v197_v56 = vld [vmem:[%s7529_s1 + $0x560] sm:$0xff]  ;;  %v107_v4 = vld [vmem:[%s7529_s1 + $0x290] sm:$0xff] }
 0x115   :  { %1999 = vmatpush.msra.mxu0 %v97_v60  ;;  %2019 = vmatpush.msra.mxu1 %v177_v61  ;;  %v112_v60 = vld [vmem:[%s7529_s1 + $0x2b8] sm:$0xff]  ;;  %v187_v5 = vld [vmem:[%s7529_s1 + $0x510] sm:$0xff] }
 0x116   :  { %2039 = vmatpush.msra.mxu2 %v257_v62  ;;  %2059 = vmatpush.msra.mxu3 %v337_v63  ;;  %v192_v61 = vld [vmem:[%s7529_s1 + $0x538] sm:$0xff]  ;;  %v27_v63 = vld [vmem:[%s7529_s1 + $0x10] sm:$0xff] }
 0x117   :  { %2000 = vmatpush.msra.mxu0 %v92_v6  ;;  %2020 = vmatpush.msra.mxu1 %v172_v7  ;;  %v272_v62 = vld [vmem:[%s7529_s1 + $0x7b8] sm:$0xff]  ;;  %v267_v6 = vld [vmem:[%s7529_s1 + $0x790] sm:$0xff]  ;;  %v422_v7 = vld [vmem:[%s7529_s1 + $0xc68] sm:$0xff] }
 0x118   :  { %2040 = vmatpush.msra.mxu2 %v252_v8  ;;  %2060 = vmatpush.msra.mxu3 %v332_v9  ;;  %v502_v8 = vld [vmem:[%s7529_s1 + $0xee8] sm:$0xff] }
 0x119   :  { %2001 = vmatpush.msra.mxu0 %v87_v10  ;;  %2021 = vmatpush.msra.mxu1 %v167_v11  ;;  %v582_v9 = vld [vmem:[%s7529_s1 + $0x1168] sm:$0xff]  ;;  %v417_v11 = vld [vmem:[%s7529_s1 + $0xc40] sm:$0xff] }
 0x11a   :  { %2041 = vmatpush.msra.mxu2 %v247_v12  ;;  %2061 = vmatpush.msra.mxu3 %v327_v13  ;;  %v662_v10 = vld [vmem:[%s7529_s1 + $0x13e8] sm:$0xff]  ;;  %v497_v12 = vld [vmem:[%s7529_s1 + $0xec0] sm:$0xff] }
 0x11b   :  { %2002 = vmatpush.msra.mxu0 %v82_v14  ;;  %2022 = vmatpush.msra.mxu1 %v162_v15  ;;  %v577_v13 = vld [vmem:[%s7529_s1 + $0x1140] sm:$0xff]  ;;  %v412_v15 = vld [vmem:[%s7529_s1 + $0xc18] sm:$0xff] }
 0x11c   :  { %2042 = vmatpush.msra.mxu2 %v242_v16  ;;  %2062 = vmatpush.msra.mxu3 %v322_v17  ;;  %v657_v14 = vld [vmem:[%s7529_s1 + $0x13c0] sm:$0xff]  ;;  %v492_v16 = vld [vmem:[%s7529_s1 + $0xe98] sm:$0xff] }
 0x11d   :  { %2003 = vmatpush.msra.mxu0 %v77_v18  ;;  %2023 = vmatpush.msra.mxu1 %v157_v19  ;;  %v572_v17 = vld [vmem:[%s7529_s1 + $0x1118] sm:$0xff]  ;;  %v407_v19 = vld [vmem:[%s7529_s1 + $0xbf0] sm:$0xff] }
 0x11e   :  { %2043 = vmatpush.msra.mxu2 %v237_v20  ;;  %2063 = vmatpush.msra.mxu3 %v317_v21  ;;  %v652_v18 = vld [vmem:[%s7529_s1 + $0x1398] sm:$0xff]  ;;  %v487_v20 = vld [vmem:[%s7529_s1 + $0xe70] sm:$0xff] }
 0x11f   :  { %2004 = vmatpush.msra.mxu0 %v72_v22  ;;  %2024 = vmatpush.msra.mxu1 %v152_v23  ;;  %v567_v21 = vld [vmem:[%s7529_s1 + $0x10f0] sm:$0xff]  ;;  %v402_v23 = vld [vmem:[%s7529_s1 + $0xbc8] sm:$0xff] }
 0x120   :  { %2044 = vmatpush.msra.mxu2 %v232_v24  ;;  %2064 = vmatpush.msra.mxu3 %v312_v25  ;;  %v647_v22 = vld [vmem:[%s7529_s1 + $0x1370] sm:$0xff]  ;;  %v482_v24 = vld [vmem:[%s7529_s1 + $0xe48] sm:$0xff] }
 0x121   :  { %2005 = vmatpush.msra.mxu0 %v67_v26  ;;  %2025 = vmatpush.msra.mxu1 %v147_v27  ;;  %v562_v25 = vld [vmem:[%s7529_s1 + $0x10c8] sm:$0xff]  ;;  %v397_v27 = vld [vmem:[%s7529_s1 + $0xba0] sm:$0xff] }
 0x122   :  { %2045 = vmatpush.msra.mxu2 %v227_v28  ;;  %2065 = vmatpush.msra.mxu3 %v307_v29  ;;  %v642_v26 = vld [vmem:[%s7529_s1 + $0x1348] sm:$0xff]  ;;  %v477_v28 = vld [vmem:[%s7529_s1 + $0xe20] sm:$0xff] }
 0x123   :  { %2006 = vmatpush.msra.mxu0 %v62_v30  ;;  %2026 = vmatpush.msra.mxu1 %v142_v31  ;;  %v557_v29 = vld [vmem:[%s7529_s1 + $0x10a0] sm:$0xff]  ;;  %v392_v31 = vld [vmem:[%s7529_s1 + $0xb78] sm:$0xff] }
 0x124   :  { %2046 = vmatpush.msra.mxu2 %v222_v32  ;;  %2066 = vmatpush.msra.mxu3 %v302_v34  ;;  %v637_v30 = vld [vmem:[%s7529_s1 + $0x1320] sm:$0xff]  ;;  %v472_v32 = vld [vmem:[%s7529_s1 + $0xdf8] sm:$0xff] }
 0x125   :  { %2007 = vmatpush.msra.mxu0 %v57_v35  ;;  %2027 = vmatpush.msra.mxu1 %v137_v33  ;;  %v552_v34 = vld [vmem:[%s7529_s1 + $0x1078] sm:$0xff]  ;;  %v387_v33 = vld [vmem:[%s7529_s1 + $0xb50] sm:$0xff] }
 0x126   :  { %2047 = vmatpush.msra.mxu2 %v217_v36  ;;  %2067 = vmatpush.msra.mxu3 %v297_v37  ;;  %v632_v35 = vld [vmem:[%s7529_s1 + $0x12f8] sm:$0xff]  ;;  %v467_v36 = vld [vmem:[%s7529_s1 + $0xdd0] sm:$0xff] }
 0x127   :  { %2008 = vmatpush.msra.mxu0 %v52_v38  ;;  %2028 = vmatpush.msra.mxu1 %v132_v39  ;;  %v547_v37 = vld [vmem:[%s7529_s1 + $0x1050] sm:$0xff]  ;;  %v382_v39 = vld [vmem:[%s7529_s1 + $0xb28] sm:$0xff] }
 0x128   :  { %2048 = vmatpush.msra.mxu2 %v212_v40  ;;  %2068 = vmatpush.msra.mxu3 %v292_v41  ;;  %v627_v38 = vld [vmem:[%s7529_s1 + $0x12d0] sm:$0xff]  ;;  %v462_v40 = vld [vmem:[%s7529_s1 + $0xda8] sm:$0xff] }
 0x129   :  { %2009 = vmatpush.msra.mxu0 %v47_v42  ;;  %2029 = vmatpush.msra.mxu1 %v127_v43  ;;  %v542_v41 = vld [vmem:[%s7529_s1 + $0x1028] sm:$0xff]  ;;  %v377_v43 = vld [vmem:[%s7529_s1 + $0xb00] sm:$0xff] }
 0x12a   :  { %2049 = vmatpush.msra.mxu2 %v207_v44  ;;  %2069 = vmatpush.msra.mxu3 %v287_v45  ;;  %v622_v42 = vld [vmem:[%s7529_s1 + $0x12a8] sm:$0xff]  ;;  %v457_v44 = vld [vmem:[%s7529_s1 + $0xd80] sm:$0xff] }
 0x12b   :  { %2010 = vmatpush.msra.mxu0 %v42_v46  ;;  %2030 = vmatpush.msra.mxu1 %v122_v47  ;;  %v537_v45 = vld [vmem:[%s7529_s1 + $0x1000] sm:$0xff]  ;;  %v372_v47 = vld [vmem:[%s7529_s1 + $0xad8] sm:$0xff] }
 0x12c   :  { %2050 = vmatpush.msra.mxu2 %v202_v52  ;;  %2070 = vmatpush.msra.mxu3 %v282_v53  ;;  %v617_v46 = vld [vmem:[%s7529_s1 + $0x1280] sm:$0xff]  ;;  %v452_v52 = vld [vmem:[%s7529_s1 + $0xd58] sm:$0xff] }
 0x12d   :  { %2011 = vmatpush.msra.mxu0 %v37_v54  ;;  %2031 = vmatpush.msra.mxu1 %v117_v55  ;;  %v532_v53 = vld [vmem:[%s7529_s1 + $0xfd8] sm:$0xff]  ;;  %v367_v55 = vld [vmem:[%s7529_s1 + $0xab0] sm:$0xff] }
 0x12e   :  { %2051 = vmatpush.msra.mxu2 %v197_v56  ;;  %2071 = vmatpush.msra.mxu3 %v277_v58  ;;  %v612_v54 = vld [vmem:[%s7529_s1 + $0x1258] sm:$0xff]  ;;  %v447_v56 = vld [vmem:[%s7529_s1 + $0xd30] sm:$0xff] }
 0x12f   :  { %2012 = vmatpush.msra.mxu0 %v32_v59  ;;  %2032 = vmatpush.msra.mxu1 %v112_v60  ;;  %v527_v58 = vld [vmem:[%s7529_s1 + $0xfb0] sm:$0xff]  ;;  %v362_v60 = vld [vmem:[%s7529_s1 + $0xa88] sm:$0xff] }
 0x130   :  { %2052 = vmatpush.msra.mxu2 %v192_v61  ;;  %2072 = vmatpush.msra.mxu3 %v272_v62  ;;  %v607_v59 = vld [vmem:[%s7529_s1 + $0x1230] sm:$0xff]  ;;  %v442_v61 = vld [vmem:[%s7529_s1 + $0xd08] sm:$0xff] }
 0x131   :  { %2013 = vmatpush.msra.mxu0 %v27_v63  ;;  %2033 = vmatpush.msra.mxu1 %v107_v4  ;;  %v522_v62 = vld [vmem:[%s7529_s1 + $0xf88] sm:$0xff]  ;;  %v357_v4 = vld [vmem:[%s7529_s1 + $0xa60] sm:$0xff] }
 0x132   :  { %2053 = vmatpush.msra.mxu2 %v187_v5  ;;  %2073 = vmatpush.msra.mxu3 %v267_v6  ;;  %v602_v63 = vld [vmem:[%s7529_s1 + $0x1208] sm:$0xff]  ;;  %v437_v5 = vld [vmem:[%s7529_s1 + $0xce0] sm:$0xff] }
 0x133   :  { %2078 = vmatpush.msrb.mxu0 %v422_v7  ;;  %2098 = vmatpush.msrb.mxu1 %v502_v8  ;;  %v517_v6 = vld [vmem:[%s7529_s1 + $0xf60] sm:$0xff]  ;;  %v352_v8 = vld [vmem:[%s7529_s1 + $0xa38] sm:$0xff] }
 0x134   :  { %2118 = vmatpush.msrb.mxu2 %v582_v9  ;;  %2138 = vmatpush.msrb.mxu3 %v662_v10  ;;  %v597_v7 = vld [vmem:[%s7529_s1 + $0x11e0] sm:$0xff]  ;;  %v432_v9 = vld [vmem:[%s7529_s1 + $0xcb8] sm:$0xff] }
 0x135   :  { %2079 = vmatpush.msrb.mxu0 %v417_v11  ;;  %2099 = vmatpush.msrb.mxu1 %v497_v12  ;;  %v512_v10 = vld [vmem:[%s7529_s1 + $0xf38] sm:$0xff]  ;;  %v347_v12 = vld [vmem:[%s7529_s1 + $0xa10] sm:$0xff] }
 0x136   :  { %2119 = vmatpush.msrb.mxu2 %v577_v13  ;;  %2139 = vmatpush.msrb.mxu3 %v657_v14  ;;  %v592_v11 = vld [vmem:[%s7529_s1 + $0x11b8] sm:$0xff]  ;;  %v427_v13 = vld [vmem:[%s7529_s1 + $0xc90] sm:$0xff] }
 0x137   :  { %2080 = vmatpush.msrb.mxu0 %v412_v15  ;;  %2100 = vmatpush.msrb.mxu1 %v492_v16  ;;  %v507_v14 = vld [vmem:[%s7529_s1 + $0xf10] sm:$0xff]  ;;  %v742_v16 = vld [vmem:[%s7529_s1 + $0x1668] sm:$0xff] }
 0x138   :  { %2120 = vmatpush.msrb.mxu2 %v572_v17  ;;  %2140 = vmatpush.msrb.mxu3 %v652_v18  ;;  %v587_v15 = vld [vmem:[%s7529_s1 + $0x1190] sm:$0xff]  ;;  %v822_v17 = vld [vmem:[%s7529_s1 + $0x18e8] sm:$0xff] }
 0x139   :  { %2081 = vmatpush.msrb.mxu0 %v407_v19  ;;  %2101 = vmatpush.msrb.mxu1 %v487_v20  ;;  %v902_v18 = vld [vmem:[%s7529_s1 + $0x1b68] sm:$0xff]  ;;  %v737_v20 = vld [vmem:[%s7529_s1 + $0x1640] sm:$0xff] }
 0x13a   :  { %2121 = vmatpush.msrb.mxu2 %v567_v21  ;;  %2141 = vmatpush.msrb.mxu3 %v647_v22  ;;  %v982_v19 = vld [vmem:[%s7529_s1 + $0x1de8] sm:$0xff]  ;;  %v817_v21 = vld [vmem:[%s7529_s1 + $0x18c0] sm:$0xff] }
 0x13b   :  { %2082 = vmatpush.msrb.mxu0 %v402_v23  ;;  %2102 = vmatpush.msrb.mxu1 %v482_v24  ;;  %v897_v22 = vld [vmem:[%s7529_s1 + $0x1b40] sm:$0xff]  ;;  %v732_v24 = vld [vmem:[%s7529_s1 + $0x1618] sm:$0xff] }
 0x13c   :  { %2122 = vmatpush.msrb.mxu2 %v562_v25  ;;  %2142 = vmatpush.msrb.mxu3 %v642_v26  ;;  %v977_v23 = vld [vmem:[%s7529_s1 + $0x1dc0] sm:$0xff]  ;;  %v812_v25 = vld [vmem:[%s7529_s1 + $0x1898] sm:$0xff] }
 0x13d   :  { %2083 = vmatpush.msrb.mxu0 %v397_v27  ;;  %2103 = vmatpush.msrb.mxu1 %v477_v28  ;;  %v892_v26 = vld [vmem:[%s7529_s1 + $0x1b18] sm:$0xff]  ;;  %v727_v28 = vld [vmem:[%s7529_s1 + $0x15f0] sm:$0xff] }
 0x13e   :  { %2123 = vmatpush.msrb.mxu2 %v557_v29  ;;  %2143 = vmatpush.msrb.mxu3 %v637_v30  ;;  %v972_v27 = vld [vmem:[%s7529_s1 + $0x1d98] sm:$0xff]  ;;  %v807_v29 = vld [vmem:[%s7529_s1 + $0x1870] sm:$0xff] }
 0x13f   :  { %2084 = vmatpush.msrb.mxu0 %v392_v31  ;;  %2104 = vmatpush.msrb.mxu1 %v472_v32  ;;  %v887_v30 = vld [vmem:[%s7529_s1 + $0x1af0] sm:$0xff]  ;;  %v722_v32 = vld [vmem:[%s7529_s1 + $0x15c8] sm:$0xff] }
 0x140   :  { %2124 = vmatpush.msrb.mxu2 %v552_v34  ;;  %2144 = vmatpush.msrb.mxu3 %v632_v35  ;;  %v967_v31 = vld [vmem:[%s7529_s1 + $0x1d70] sm:$0xff]  ;;  %v802_v34 = vld [vmem:[%s7529_s1 + $0x1848] sm:$0xff] }
 0x141   :  { %2085 = vmatpush.msrb.mxu0 %v387_v33  ;;  %2105 = vmatpush.msrb.mxu1 %v467_v36  ;;  %v882_v35 = vld [vmem:[%s7529_s1 + $0x1ac8] sm:$0xff]  ;;  %v717_v36 = vld [vmem:[%s7529_s1 + $0x15a0] sm:$0xff] }
 0x142   :  { %2125 = vmatpush.msrb.mxu2 %v547_v37  ;;  %2145 = vmatpush.msrb.mxu3 %v627_v38  ;;  %v962_v33 = vld [vmem:[%s7529_s1 + $0x1d48] sm:$0xff]  ;;  %v797_v37 = vld [vmem:[%s7529_s1 + $0x1820] sm:$0xff] }
 0x143   :  { %2086 = vmatpush.msrb.mxu0 %v382_v39  ;;  %2106 = vmatpush.msrb.mxu1 %v462_v40  ;;  %v877_v38 = vld [vmem:[%s7529_s1 + $0x1aa0] sm:$0xff]  ;;  %v712_v40 = vld [vmem:[%s7529_s1 + $0x1578] sm:$0xff] }
 0x144   :  { %2126 = vmatpush.msrb.mxu2 %v542_v41  ;;  %2146 = vmatpush.msrb.mxu3 %v622_v42  ;;  %v957_v39 = vld [vmem:[%s7529_s1 + $0x1d20] sm:$0xff]  ;;  %v792_v41 = vld [vmem:[%s7529_s1 + $0x17f8] sm:$0xff] }
 0x145   :  { %2087 = vmatpush.msrb.mxu0 %v377_v43  ;;  %2107 = vmatpush.msrb.mxu1 %v457_v44  ;;  %v872_v42 = vld [vmem:[%s7529_s1 + $0x1a78] sm:$0xff]  ;;  %v707_v44 = vld [vmem:[%s7529_s1 + $0x1550] sm:$0xff] }
 0x146   :  { %2127 = vmatpush.msrb.mxu2 %v537_v45  ;;  %2147 = vmatpush.msrb.mxu3 %v617_v46  ;;  %v952_v43 = vld [vmem:[%s7529_s1 + $0x1cf8] sm:$0xff]  ;;  %v787_v45 = vld [vmem:[%s7529_s1 + $0x17d0] sm:$0xff] }
 0x147   :  { %2088 = vmatpush.msrb.mxu0 %v372_v47  ;;  %2108 = vmatpush.msrb.mxu1 %v452_v52  ;;  %v867_v46 = vld [vmem:[%s7529_s1 + $0x1a50] sm:$0xff]  ;;  %v702_v52 = vld [vmem:[%s7529_s1 + $0x1528] sm:$0xff] }
 0x148   :  { %2128 = vmatpush.msrb.mxu2 %v532_v53  ;;  %2148 = vmatpush.msrb.mxu3 %v612_v54  ;;  %v947_v47 = vld [vmem:[%s7529_s1 + $0x1cd0] sm:$0xff]  ;;  %v782_v53 = vld [vmem:[%s7529_s1 + $0x17a8] sm:$0xff] }
 0x149   :  { %2089 = vmatpush.msrb.mxu0 %v367_v55  ;;  %2109 = vmatpush.msrb.mxu1 %v447_v56  ;;  %v862_v54 = vld [vmem:[%s7529_s1 + $0x1a28] sm:$0xff]  ;;  %v697_v56 = vld [vmem:[%s7529_s1 + $0x1500] sm:$0xff] }
 0x14a   :  { %2129 = vmatpush.msrb.mxu2 %v527_v58  ;;  %2149 = vmatpush.msrb.mxu3 %v607_v59  ;;  %v942_v55 = vld [vmem:[%s7529_s1 + $0x1ca8] sm:$0xff]  ;;  %v777_v58 = vld [vmem:[%s7529_s1 + $0x1780] sm:$0xff] }
 0x14b   :  { %2090 = vmatpush.msrb.mxu0 %v362_v60  ;;  %2110 = vmatpush.msrb.mxu1 %v442_v61  ;;  %v857_v59 = vld [vmem:[%s7529_s1 + $0x1a00] sm:$0xff]  ;;  %v692_v61 = vld [vmem:[%s7529_s1 + $0x14d8] sm:$0xff] }
 0x14c   :  { %2130 = vmatpush.msrb.mxu2 %v522_v62  ;;  %2150 = vmatpush.msrb.mxu3 %v602_v63  ;;  %v937_v60 = vld [vmem:[%s7529_s1 + $0x1c80] sm:$0xff]  ;;  %v772_v62 = vld [vmem:[%s7529_s1 + $0x1758] sm:$0xff] }
 0x14d   :  { %2091 = vmatpush.msrb.mxu0 %v357_v4  ;;  %2111 = vmatpush.msrb.mxu1 %v437_v5  ;;  %v852_v63 = vld [vmem:[%s7529_s1 + $0x19d8] sm:$0xff]  ;;  %v687_v5 = vld [vmem:[%s7529_s1 + $0x14b0] sm:$0xff] }
 0x14e   :  { %2131 = vmatpush.msrb.mxu2 %v517_v6  ;;  %2151 = vmatpush.msrb.mxu3 %v597_v7  ;;  %v932_v4 = vld [vmem:[%s7529_s1 + $0x1c58] sm:$0xff]  ;;  %v767_v6 = vld [vmem:[%s7529_s1 + $0x1730] sm:$0xff] }
 0x14f   :  { %2092 = vmatpush.msrb.mxu0 %v352_v8  ;;  %2112 = vmatpush.msrb.mxu1 %v432_v9  ;;  %v847_v7 = vld [vmem:[%s7529_s1 + $0x19b0] sm:$0xff]  ;;  %v682_v9 = vld [vmem:[%s7529_s1 + $0x1488] sm:$0xff] }
 0x150   :  { %2132 = vmatpush.msrb.mxu2 %v512_v10  ;;  %2152 = vmatpush.msrb.mxu3 %v592_v11  ;;  %v927_v8 = vld [vmem:[%s7529_s1 + $0x1c30] sm:$0xff]  ;;  %v762_v10 = vld [vmem:[%s7529_s1 + $0x1708] sm:$0xff] }
 0x151   :  { %2093 = vmatpush.msrb.mxu0 %v347_v12  ;;  %2113 = vmatpush.msrb.mxu1 %v427_v13  ;;  %v842_v11 = vld [vmem:[%s7529_s1 + $0x1988] sm:$0xff]  ;;  %v677_v13 = vld [vmem:[%s7529_s1 + $0x1460] sm:$0xff] }
 0x152   :  { %2133 = vmatpush.msrb.mxu2 %v507_v14  ;;  %2153 = vmatpush.msrb.mxu3 %v587_v15  ;;  %v922_v12 = vld [vmem:[%s7529_s1 + $0x1c08] sm:$0xff]  ;;  %v757_v14 = vld [vmem:[%s7529_s1 + $0x16e0] sm:$0xff] }
 0x153   :  { %2014 = vmatmul.f32.vlgmr.msra.gmra.mxu0 %v3593_v48  ;;  %2034 = vmatmul.f32.vlgmr.msra.gmra.mxu1 %v3595_v49  ;;  %v837_v15 = vld [vmem:[%s7529_s1 + $0x1960] sm:$0xff] }
 0x154   :  { %2054 = vmatmul.f32.vlgmr.msra.gmra.mxu2 %v3597_v50  ;;  %2074 = vmatmul.f32.vlgmr.msra.gmra.mxu3 %v3599_v51 }
 0x155   :  { %2158 = vmatpush.msra.mxu0 %v742_v16  ;;  %2178 = vmatpush.msra.mxu1 %v822_v17  ;;  %v917_v16 = vld [vmem:[%s7529_s1 + $0x1be0] sm:$0xff]  ;;  %v672_v17 = vld [vmem:[%s7529_s1 + $0x1438] sm:$0xff] }
 0x156   :  { %2198 = vmatpush.msra.mxu2 %v902_v18  ;;  %2218 = vmatpush.msra.mxu3 %v982_v19  ;;  %v752_v18 = vld [vmem:[%s7529_s1 + $0x16b8] sm:$0xff] }
 0x157   :  { %2159 = vmatpush.msra.mxu0 %v737_v20  ;;  %2179 = vmatpush.msra.mxu1 %v817_v21  ;;  %v832_v19 = vld [vmem:[%s7529_s1 + $0x1938] sm:$0xff]  ;;  %v667_v21 = vld [vmem:[%s7529_s1 + $0x1410] sm:$0xff] }
 0x158   :  { %2199 = vmatpush.msra.mxu2 %v897_v22  ;;  %2219 = vmatpush.msra.mxu3 %v977_v23  ;;  %v912_v20 = vld [vmem:[%s7529_s1 + $0x1bb8] sm:$0xff]  ;;  %v747_v22 = vld [vmem:[%s7529_s1 + $0x1690] sm:$0xff] }
 0x159   :  { %2160 = vmatpush.msra.mxu0 %v732_v24  ;;  %2180 = vmatpush.msra.mxu1 %v812_v25  ;;  %v827_v23 = vld [vmem:[%s7529_s1 + $0x1910] sm:$0xff]  ;;  %v1062_v25 = vld [vmem:[%s7529_s1 + $0x2068] sm:$0xff] }
 0x15a   :  { %2200 = vmatpush.msra.mxu2 %v892_v26  ;;  %2220 = vmatpush.msra.mxu3 %v972_v27  ;;  %v907_v24 = vld [vmem:[%s7529_s1 + $0x1b90] sm:$0xff]  ;;  %v1142_v26 = vld [vmem:[%s7529_s1 + $0x22e8] sm:$0xff] }
 0x15b   :  { %2161 = vmatpush.msra.mxu0 %v727_v28  ;;  %2181 = vmatpush.msra.mxu1 %v807_v29  ;;  %v1222_v27 = vld [vmem:[%s7529_s1 + $0x2568] sm:$0xff]  ;;  %v3175_v29 = vld.sshfl [vmem:[#allocation1] sm:$0xff pattern:$0x73625140] }
 0x15c   :  { %2201 = vmatpush.msra.mxu2 %v887_v30  ;;  %2221 = vmatpush.msra.mxu3 %v967_v31  ;;  %v1302_v28 = vld [vmem:[%s7529_s1 + $0x27e8] sm:$0xff]  ;;  %v3176_v30 = vld.sshfl [vmem:[#allocation1 + $0x10] sm:$0xff pattern:$0x73625140]  ;;  %v1057_v31 = vld [vmem:[%s7529_s1 + $0x2040] sm:$0xff] }
 0x15d   :  { %2134 = vmatmul.f32.vlgmr.msrb.gmra.mxu2 %v3637_v0  ;;  %2162 = vmatpush.msra.mxu0 %v722_v32  ;;  %v1137_v32 = vld [vmem:[%s7529_s1 + $0x22c0] sm:$0xff] }
 0x15e   :  { %2182 = vmatpush.msra.mxu1 %v802_v34  ;;  %2202 = vmatpush.msra.mxu2 %v882_v35  ;;  %v1217_v34 = vld [vmem:[%s7529_s1 + $0x2540] sm:$0xff] }
 0x15f   :  { %2222 = vmatpush.msra.mxu3 %v962_v33  ;;  %2094 = vmatmul.f32.vlgmr.msrb.gmra.mxu0 %v3639_v1  ;;  %v1297_v35 = vld [vmem:[%s7529_s1 + $0x27c0] sm:$0xff]  ;;  %v3177_v33 = vld.sshfl [vmem:[#allocation1 + $0x8] sm:$0xff pattern:$0x73625140] }
 0x160   :  { %2154 = vmatmul.f32.vlgmr.msrb.gmra.mxu3 %v3641_v2  ;;  %2163 = vmatpush.msra.mxu0 %v717_v36  ;;  %v3178_v36 = vld.sshfl [vmem:[#allocation1 + $0x18] sm:$0xff pattern:$0x73625140] }
 0x161   :  { %2183 = vmatpush.msra.mxu1 %v797_v37  ;;  %2203 = vmatpush.msra.mxu2 %v877_v38  ;;  %v1052_v37 = vld [vmem:[%s7529_s1 + $0x2018] sm:$0xff] }
 0x162   :  { %2223 = vmatpush.msra.mxu3 %v957_v39  ;;  %2114 = vmatmul.f32.vlgmr.msrb.gmra.mxu1 %v3643_v3  ;;  %v1132_v38 = vld [vmem:[%s7529_s1 + $0x2298] sm:$0xff] }
 0x163   :  { %2164 = vmatpush.msra.mxu0 %v712_v40  ;;  %2184 = vmatpush.msra.mxu1 %v792_v41  ;;  %v1212_v39 = vld [vmem:[%s7529_s1 + $0x2518] sm:$0xff]  ;;  %v1047_v41 = vld [vmem:[%s7529_s1 + $0x1ff0] sm:$0xff] }
 0x164   :  { %2204 = vmatpush.msra.mxu2 %v872_v42  ;;  %2224 = vmatpush.msra.mxu3 %v952_v43  ;;  %v1292_v40 = vld [vmem:[%s7529_s1 + $0x2798] sm:$0xff]  ;;  %v1127_v42 = vld [vmem:[%s7529_s1 + $0x2270] sm:$0xff] }
 0x165   :  { %2165 = vmatpush.msra.mxu0 %v707_v44  ;;  %2185 = vmatpush.msra.mxu1 %v787_v45  ;;  %v1207_v43 = vld [vmem:[%s7529_s1 + $0x24f0] sm:$0xff]  ;;  %v1042_v45 = vld [vmem:[%s7529_s1 + $0x1fc8] sm:$0xff] }
 0x166   :  { %2205 = vmatpush.msra.mxu2 %v867_v46  ;;  %2225 = vmatpush.msra.mxu3 %v947_v47  ;;  %v1287_v44 = vld [vmem:[%s7529_s1 + $0x2770] sm:$0xff]  ;;  %v1122_v46 = vld [vmem:[%s7529_s1 + $0x2248] sm:$0xff] }
 0x167   :  { %2166 = vmatpush.msra.mxu0 %v702_v52  ;;  %2186 = vmatpush.msra.mxu1 %v782_v53  ;;  %v1202_v47 = vld [vmem:[%s7529_s1 + $0x24c8] sm:$0xff]  ;;  %v1037_v53 = vld [vmem:[%s7529_s1 + $0x1fa0] sm:$0xff] }
 0x168   :  { %2206 = vmatpush.msra.mxu2 %v862_v54  ;;  %2226 = vmatpush.msra.mxu3 %v942_v55  ;;  %v1282_v52 = vld [vmem:[%s7529_s1 + $0x2748] sm:$0xff]  ;;  %v1117_v54 = vld [vmem:[%s7529_s1 + $0x2220] sm:$0xff] }
 0x169   :  { %2167 = vmatpush.msra.mxu0 %v697_v56  ;;  %2187 = vmatpush.msra.mxu1 %v777_v58  ;;  %v1197_v55 = vld [vmem:[%s7529_s1 + $0x24a0] sm:$0xff]  ;;  %v1032_v58 = vld [vmem:[%s7529_s1 + $0x1f78] sm:$0xff] }
 0x16a   :  { %2207 = vmatpush.msra.mxu2 %v857_v59  ;;  %2227 = vmatpush.msra.mxu3 %v937_v60  ;;  %v1277_v56 = vld [vmem:[%s7529_s1 + $0x2720] sm:$0xff]  ;;  %v1112_v59 = vld [vmem:[%s7529_s1 + $0x21f8] sm:$0xff] }
 0x16b   :  { %2168 = vmatpush.msra.mxu0 %v692_v61  ;;  %2188 = vmatpush.msra.mxu1 %v772_v62  ;;  %v1192_v60 = vld [vmem:[%s7529_s1 + $0x2478] sm:$0xff]  ;;  %v1027_v62 = vld [vmem:[%s7529_s1 + $0x1f50] sm:$0xff] }
 0x16c   :  { %2208 = vmatpush.msra.mxu2 %v852_v63  ;;  %2228 = vmatpush.msra.mxu3 %v932_v4  ;;  %v1272_v61 = vld [vmem:[%s7529_s1 + $0x26f8] sm:$0xff]  ;;  %v1107_v63 = vld [vmem:[%s7529_s1 + $0x21d0] sm:$0xff] }
 0x16d   :  { %2169 = vmatpush.msra.mxu0 %v687_v5  ;;  %2189 = vmatpush.msra.mxu1 %v767_v6  ;;  %v1187_v4 = vld [vmem:[%s7529_s1 + $0x2450] sm:$0xff]  ;;  %v1022_v6 = vld [vmem:[%s7529_s1 + $0x1f28] sm:$0xff] }
 0x16e   :  { %2209 = vmatpush.msra.mxu2 %v847_v7  ;;  %2229 = vmatpush.msra.mxu3 %v927_v8  ;;  %v1267_v5 = vld [vmem:[%s7529_s1 + $0x26d0] sm:$0xff]  ;;  %v1102_v7 = vld [vmem:[%s7529_s1 + $0x21a8] sm:$0xff] }
 0x16f   :  { %2170 = vmatpush.msra.mxu0 %v682_v9  ;;  %2190 = vmatpush.msra.mxu1 %v762_v10  ;;  %v1182_v8 = vld [vmem:[%s7529_s1 + $0x2428] sm:$0xff]  ;;  %v1017_v10 = vld [vmem:[%s7529_s1 + $0x1f00] sm:$0xff] }
 0x170   :  { %2210 = vmatpush.msra.mxu2 %v842_v11  ;;  %2230 = vmatpush.msra.mxu3 %v922_v12  ;;  %v1262_v9 = vld [vmem:[%s7529_s1 + $0x26a8] sm:$0xff]  ;;  %v1097_v11 = vld [vmem:[%s7529_s1 + $0x2180] sm:$0xff] }
 0x171   :  { %2171 = vmatpush.msra.mxu0 %v677_v13  ;;  %2191 = vmatpush.msra.mxu1 %v757_v14  ;;  %v1177_v12 = vld [vmem:[%s7529_s1 + $0x2400] sm:$0xff]  ;;  %v1012_v14 = vld [vmem:[%s7529_s1 + $0x1ed8] sm:$0xff] }
 0x172   :  { %2211 = vmatpush.msra.mxu2 %v837_v15  ;;  %2231 = vmatpush.msra.mxu3 %v917_v16  ;;  %v1257_v13 = vld [vmem:[%s7529_s1 + $0x2680] sm:$0xff]  ;;  %v1092_v15 = vld [vmem:[%s7529_s1 + $0x2158] sm:$0xff] }
 0x173   :  { %2172 = vmatpush.msra.mxu0 %v672_v17  ;;  %2192 = vmatpush.msra.mxu1 %v752_v18  ;;  %v1172_v16 = vld [vmem:[%s7529_s1 + $0x23d8] sm:$0xff]  ;;  %v1007_v18 = vld [vmem:[%s7529_s1 + $0x1eb0] sm:$0xff] }
 0x174   :  { %2212 = vmatpush.msra.mxu2 %v832_v19  ;;  %2232 = vmatpush.msra.mxu3 %v912_v20  ;;  %v1252_v17 = vld [vmem:[%s7529_s1 + $0x2658] sm:$0xff]  ;;  %v1087_v19 = vld [vmem:[%s7529_s1 + $0x2130] sm:$0xff] }
 0x175   :  { %2173 = vmatpush.msra.mxu0 %v667_v21  ;;  %2193 = vmatpush.msra.mxu1 %v747_v22  ;;  %v1167_v20 = vld [vmem:[%s7529_s1 + $0x23b0] sm:$0xff]  ;;  %v1002_v22 = vld [vmem:[%s7529_s1 + $0x1e88] sm:$0xff] }
 0x176   :  { %2213 = vmatpush.msra.mxu2 %v827_v23  ;;  %2233 = vmatpush.msra.mxu3 %v907_v24  ;;  %v1247_v21 = vld [vmem:[%s7529_s1 + $0x2630] sm:$0xff]  ;;  %v1082_v23 = vld [vmem:[%s7529_s1 + $0x2108] sm:$0xff] }
 0x177   :  { %2174 = vmatmul.f32.vlgmr.msra.gmra.mxu0 %v3175_v29  ;;  %2214 = vmatmul.f32.vlgmr.msra.gmra.mxu2 %v3176_v30  ;;  %v1162_v24 = vld [vmem:[%s7529_s1 + $0x2388] sm:$0xff]  ;;  %v1237_v29 = vld [vmem:[%s7529_s1 + $0x25e0] sm:$0xff]  ;;  %v992_v30 = vld [vmem:[%s7529_s1 + $0x1e38] sm:$0xff] }
 0x178   :  { %2238 = vmatpush.msrb.mxu0 %v1062_v25  ;;  %2258 = vmatpush.msrb.mxu1 %v1142_v26  ;;  %v1242_v25 = vld [vmem:[%s7529_s1 + $0x2608] sm:$0xff]  ;;  %v997_v26 = vld [vmem:[%s7529_s1 + $0x1e60] sm:$0xff] }
 0x179   :  { %2278 = vmatpush.msrb.mxu2 %v1222_v27  ;;  %2298 = vmatpush.msrb.mxu3 %v1302_v28  ;;  %v1077_v27 = vld [vmem:[%s7529_s1 + $0x20e0] sm:$0xff] }
 0x17a   :  { %2194 = vmatmul.f32.vlgmr.msra.gmra.mxu1 %v3177_v33  ;;  %2234 = vmatmul.f32.vlgmr.msra.gmra.mxu3 %v3178_v36  ;;  %v1157_v28 = vld [vmem:[%s7529_s1 + $0x2360] sm:$0xff]  ;;  %v1067_v33 = vld [vmem:[%s7529_s1 + $0x2090] sm:$0xff] }
 0x17b   :  { %2239 = vmatpush.msrb.mxu0 %v1057_v31  ;;  %2259 = vmatpush.msrb.mxu1 %v1137_v32  ;;  %v1072_v31 = vld [vmem:[%s7529_s1 + $0x20b8] sm:$0xff]  ;;  %v1147_v36 = vld [vmem:[%s7529_s1 + $0x2310] sm:$0xff] }
 0x17c   :  { %2279 = vmatpush.msrb.mxu2 %v1217_v34  ;;  %2299 = vmatpush.msrb.mxu3 %v1297_v35  ;;  %v1152_v32 = vld [vmem:[%s7529_s1 + $0x2338] sm:$0xff]  ;;  %v987_v35 = vld [vmem:[%s7529_s1 + $0x1e10] sm:$0xff] }
 0x17d   :  { %2240 = vmatpush.msrb.mxu0 %v1052_v37  ;;  %2260 = vmatpush.msrb.mxu1 %v1132_v38  ;;  %v1232_v34 = vld [vmem:[%s7529_s1 + $0x25b8] sm:$0xff]  ;;  %v1227_v37 = vld [vmem:[%s7529_s1 + $0x2590] sm:$0xff] }
 0x17e   :  { %2280 = vmatpush.msrb.mxu2 %v1212_v39  ;;  %2300 = vmatpush.msrb.mxu3 %v1292_v40  ;;  %v103_v38 = vld [vmem:[%s7529_s1 + $0x270] sm:$0xff] }
 0x17f   :  { %2241 = vmatpush.msrb.mxu0 %v1047_v41  ;;  %2261 = vmatpush.msrb.mxu1 %v1127_v42  ;;  %v183_v39 = vld [vmem:[%s7529_s1 + $0x4f0] sm:$0xff]  ;;  %v3179_v42 = vld.sshfl [vmem:[#allocation1 + $0x20] sm:$0xff pattern:$0x73625140] }
 0x180   :  { %2281 = vmatpush.msrb.mxu2 %v1207_v43  ;;  %2301 = vmatpush.msrb.mxu3 %v1287_v44  ;;  %v263_v40 = vld [vmem:[%s7529_s1 + $0x770] sm:$0xff]  ;;  %v98_v44 = vld [vmem:[%s7529_s1 + $0x248] sm:$0xff] }
 0x181   :  { %2242 = vmatpush.msrb.mxu0 %v1042_v45  ;;  %2262 = vmatpush.msrb.mxu1 %v1122_v46  ;;  %v343_v41 = vld [vmem:[%s7529_s1 + $0x9f0] sm:$0xff]  ;;  %v178_v45 = vld [vmem:[%s7529_s1 + $0x4c8] sm:$0xff] }
 0x182   :  { %2282 = vmatpush.msrb.mxu2 %v1202_v47  ;;  %2302 = vmatpush.msrb.mxu3 %v1282_v52  ;;  %v3180_v43 = vld.sshfl [vmem:[#allocation1 + $0x30] sm:$0xff pattern:$0x73625140]  ;;  %v258_v46 = vld [vmem:[%s7529_s1 + $0x748] sm:$0xff] }
 0x183   :  { %2243 = vmatpush.msrb.mxu0 %v1037_v53  ;;  %2263 = vmatpush.msrb.mxu1 %v1117_v54  ;;  %v338_v47 = vld [vmem:[%s7529_s1 + $0x9c8] sm:$0xff]  ;;  %v3182_v53 = vld.sshfl [vmem:[#allocation1 + $0x38] sm:$0xff pattern:$0x73625140]  ;;  %v93_v54 = vld [vmem:[%s7529_s1 + $0x220] sm:$0xff] }
 0x184   :  { %2283 = vmatpush.msrb.mxu2 %v1197_v55  ;;  %2303 = vmatpush.msrb.mxu3 %v1277_v56  ;;  %v3181_v52 = vld.sshfl [vmem:[#allocation1 + $0x28] sm:$0xff pattern:$0x73625140]  ;;  %v173_v55 = vld [vmem:[%s7529_s1 + $0x4a0] sm:$0xff] }
 0x185   :  { %2244 = vmatpush.msrb.mxu0 %v1032_v58  ;;  %2264 = vmatpush.msrb.mxu1 %v1112_v59  ;;  %v253_v56 = vld [vmem:[%s7529_s1 + $0x720] sm:$0xff]  ;;  %v88_v59 = vld [vmem:[%s7529_s1 + $0x1f8] sm:$0xff] }
 0x186   :  { %2284 = vmatpush.msrb.mxu2 %v1192_v60  ;;  %2304 = vmatpush.msrb.mxu3 %v1272_v61  ;;  %v333_v58 = vld [vmem:[%s7529_s1 + $0x9a0] sm:$0xff]  ;;  %v168_v60 = vld [vmem:[%s7529_s1 + $0x478] sm:$0xff] }
 0x187   :  { %2245 = vmatpush.msrb.mxu0 %v1027_v62  ;;  %2265 = vmatpush.msrb.mxu1 %v1107_v63  ;;  %v248_v61 = vld [vmem:[%s7529_s1 + $0x6f8] sm:$0xff]  ;;  %v83_v63 = vld [vmem:[%s7529_s1 + $0x1d0] sm:$0xff] }
 0x188   :  { %2285 = vmatpush.msrb.mxu2 %v1187_v4  ;;  %2305 = vmatpush.msrb.mxu3 %v1267_v5  ;;  %v328_v62 = vld [vmem:[%s7529_s1 + $0x978] sm:$0xff]  ;;  %v163_v4 = vld [vmem:[%s7529_s1 + $0x450] sm:$0xff] }
 0x189   :  { %2246 = vmatpush.msrb.mxu0 %v1022_v6  ;;  %2266 = vmatpush.msrb.mxu1 %v1102_v7  ;;  %v243_v5 = vld [vmem:[%s7529_s1 + $0x6d0] sm:$0xff]  ;;  %v78_v7 = vld [vmem:[%s7529_s1 + $0x1a8] sm:$0xff] }
 0x18a   :  { %2286 = vmatpush.msrb.mxu2 %v1182_v8  ;;  %2306 = vmatpush.msrb.mxu3 %v1262_v9  ;;  %v323_v6 = vld [vmem:[%s7529_s1 + $0x950] sm:$0xff]  ;;  %v158_v8 = vld [vmem:[%s7529_s1 + $0x428] sm:$0xff] }
 0x18b   :  { %2247 = vmatpush.msrb.mxu0 %v1017_v10  ;;  %2267 = vmatpush.msrb.mxu1 %v1097_v11  ;;  %v238_v9 = vld [vmem:[%s7529_s1 + $0x6a8] sm:$0xff]  ;;  %v73_v11 = vld [vmem:[%s7529_s1 + $0x180] sm:$0xff] }
 0x18c   :  { %2287 = vmatpush.msrb.mxu2 %v1177_v12  ;;  %2307 = vmatpush.msrb.mxu3 %v1257_v13  ;;  %v318_v10 = vld [vmem:[%s7529_s1 + $0x928] sm:$0xff]  ;;  %v153_v12 = vld [vmem:[%s7529_s1 + $0x400] sm:$0xff] }
 0x18d   :  { %2248 = vmatpush.msrb.mxu0 %v1012_v14  ;;  %2268 = vmatpush.msrb.mxu1 %v1092_v15  ;;  %v233_v13 = vld [vmem:[%s7529_s1 + $0x680] sm:$0xff]  ;;  %v68_v15 = vld [vmem:[%s7529_s1 + $0x158] sm:$0xff] }
 0x18e   :  { %2288 = vmatpush.msrb.mxu2 %v1172_v16  ;;  %2308 = vmatpush.msrb.mxu3 %v1252_v17  ;;  %v313_v14 = vld [vmem:[%s7529_s1 + $0x900] sm:$0xff]  ;;  %v148_v16 = vld [vmem:[%s7529_s1 + $0x3d8] sm:$0xff] }
 0x18f   :  { %2249 = vmatpush.msrb.mxu0 %v1007_v18  ;;  %2269 = vmatpush.msrb.mxu1 %v1087_v19  ;;  %v228_v17 = vld [vmem:[%s7529_s1 + $0x658] sm:$0xff]  ;;  %v63_v19 = vld [vmem:[%s7529_s1 + $0x130] sm:$0xff] }
 0x190   :  { %2289 = vmatpush.msrb.mxu2 %v1167_v20  ;;  %2309 = vmatpush.msrb.mxu3 %v1247_v21  ;;  %v308_v18 = vld [vmem:[%s7529_s1 + $0x8d8] sm:$0xff]  ;;  %v143_v20 = vld [vmem:[%s7529_s1 + $0x3b0] sm:$0xff] }
 0x191   :  { %2250 = vmatpush.msrb.mxu0 %v1002_v22  ;;  %2270 = vmatpush.msrb.mxu1 %v1082_v23  ;;  %v223_v21 = vld [vmem:[%s7529_s1 + $0x630] sm:$0xff]  ;;  %v58_v23 = vld [vmem:[%s7529_s1 + $0x108] sm:$0xff] }
 0x192   :  { %2290 = vmatpush.msrb.mxu2 %v1162_v24  ;;  %2310 = vmatpush.msrb.mxu3 %v1242_v25  ;;  %v303_v22 = vld [vmem:[%s7529_s1 + $0x8b0] sm:$0xff]  ;;  %v138_v24 = vld [vmem:[%s7529_s1 + $0x388] sm:$0xff] }
 0x193   :  { %2251 = vmatpush.msrb.mxu0 %v997_v26  ;;  %2271 = vmatpush.msrb.mxu1 %v1077_v27  ;;  %v218_v25 = vld [vmem:[%s7529_s1 + $0x608] sm:$0xff]  ;;  %v53_v27 = vld [vmem:[%s7529_s1 + $0xe0] sm:$0xff] }
 0x194   :  { %2291 = vmatpush.msrb.mxu2 %v1157_v28  ;;  %2311 = vmatpush.msrb.mxu3 %v1237_v29  ;;  %v298_v26 = vld [vmem:[%s7529_s1 + $0x888] sm:$0xff]  ;;  %v133_v28 = vld [vmem:[%s7529_s1 + $0x360] sm:$0xff] }
 0x195   :  { %2252 = vmatpush.msrb.mxu0 %v992_v30  ;;  %2272 = vmatpush.msrb.mxu1 %v1072_v31  ;;  %v213_v29 = vld [vmem:[%s7529_s1 + $0x5e0] sm:$0xff]  ;;  %v48_v31 = vld [vmem:[%s7529_s1 + $0xb8] sm:$0xff] }
 0x196   :  { %2292 = vmatpush.msrb.mxu2 %v1152_v32  ;;  %2312 = vmatpush.msrb.mxu3 %v1232_v34  ;;  %v293_v30 = vld [vmem:[%s7529_s1 + $0x860] sm:$0xff]  ;;  %v128_v32 = vld [vmem:[%s7529_s1 + $0x338] sm:$0xff] }
 0x197   :  { %2253 = vmatpush.msrb.mxu0 %v987_v35  ;;  %2273 = vmatpush.msrb.mxu1 %v1067_v33  ;;  %v208_v34 = vld [vmem:[%s7529_s1 + $0x5b8] sm:$0xff]  ;;  %v43_v33 = vld [vmem:[%s7529_s1 + $0x90] sm:$0xff] }
 0x198   :  { %2293 = vmatpush.msrb.mxu2 %v1147_v36  ;;  %2313 = vmatpush.msrb.mxu3 %v1227_v37  ;;  %v288_v35 = vld [vmem:[%s7529_s1 + $0x838] sm:$0xff]  ;;  %v123_v36 = vld [vmem:[%s7529_s1 + $0x310] sm:$0xff] }
 0x199   :  { %2254 = vmatmul.f32.vlgmr.msrb.gmra.mxu0 %v3179_v42  ;;  %2294 = vmatmul.f32.vlgmr.msrb.gmra.mxu2 %v3180_v43  ;;  %v203_v37 = vld [vmem:[%s7529_s1 + $0x590] sm:$0xff]  ;;  %v278_v42 = vld [vmem:[%s7529_s1 + $0x7e8] sm:$0xff]  ;;  %v33_v43 = vld [vmem:[%s7529_s1 + $0x40] sm:$0xff] }
 0x19a   :  { %2318 = vmatpush.msra.mxu0 %v103_v38  ;;  %2338 = vmatpush.msra.mxu1 %v183_v39  ;;  %v283_v38 = vld [vmem:[%s7529_s1 + $0x810] sm:$0xff]  ;;  %v38_v39 = vld [vmem:[%s7529_s1 + $0x68] sm:$0xff] }
 0x19b   :  { %2358 = vmatpush.msra.mxu2 %v263_v40  ;;  %2378 = vmatpush.msra.mxu3 %v343_v41  ;;  %v118_v40 = vld [vmem:[%s7529_s1 + $0x2e8] sm:$0xff] }
 0x19c   :  { %2274 = vmatmul.f32.vlgmr.msrb.gmra.mxu1 %v3181_v52  ;;  %2314 = vmatmul.f32.vlgmr.msrb.gmra.mxu3 %v3182_v53  ;;  %v198_v41 = vld [vmem:[%s7529_s1 + $0x568] sm:$0xff]  ;;  %v108_v52 = vld [vmem:[%s7529_s1 + $0x298] sm:$0xff] }
 0x19d   :  { %2319 = vmatpush.msra.mxu0 %v98_v44  ;;  %2339 = vmatpush.msra.mxu1 %v178_v45  ;;  %v113_v44 = vld [vmem:[%s7529_s1 + $0x2c0] sm:$0xff]  ;;  %v188_v53 = vld [vmem:[%s7529_s1 + $0x518] sm:$0xff] }
 0x19e   :  { %2359 = vmatpush.msra.mxu2 %v258_v46  ;;  %2379 = vmatpush.msra.mxu3 %v338_v47  ;;  %v193_v45 = vld [vmem:[%s7529_s1 + $0x540] sm:$0xff]  ;;  %v28_v47 = vld [vmem:[%s7529_s1 + $0x18] sm:$0xff] }
 0x19f   :  { %2320 = vmatpush.msra.mxu0 %v93_v54  ;;  %2340 = vmatpush.msra.mxu1 %v173_v55  ;;  %v273_v46 = vld [vmem:[%s7529_s1 + $0x7c0] sm:$0xff]  ;;  %v268_v54 = vld [vmem:[%s7529_s1 + $0x798] sm:$0xff]  ;;  %v423_v55 = vld [vmem:[%s7529_s1 + $0xc70] sm:$0xff] }
 0x1a0   :  { %2360 = vmatpush.msra.mxu2 %v253_v56  ;;  %2380 = vmatpush.msra.mxu3 %v333_v58  ;;  %v503_v56 = vld [vmem:[%s7529_s1 + $0xef0] sm:$0xff] }
 0x1a1   :  { %2321 = vmatpush.msra.mxu0 %v88_v59  ;;  %2341 = vmatpush.msra.mxu1 %v168_v60  ;;  %v583_v58 = vld [vmem:[%s7529_s1 + $0x1170] sm:$0xff]  ;;  %v418_v60 = vld [vmem:[%s7529_s1 + $0xc48] sm:$0xff] }
 0x1a2   :  { %2361 = vmatpush.msra.mxu2 %v248_v61  ;;  %2381 = vmatpush.msra.mxu3 %v328_v62  ;;  %v663_v59 = vld [vmem:[%s7529_s1 + $0x13f0] sm:$0xff]  ;;  %v498_v61 = vld [vmem:[%s7529_s1 + $0xec8] sm:$0xff] }
 0x1a3   :  { %2322 = vmatpush.msra.mxu0 %v83_v63  ;;  %2342 = vmatpush.msra.mxu1 %v163_v4  ;;  %v578_v62 = vld [vmem:[%s7529_s1 + $0x1148] sm:$0xff]  ;;  %v413_v4 = vld [vmem:[%s7529_s1 + $0xc20] sm:$0xff] }
 0x1a4   :  { %2362 = vmatpush.msra.mxu2 %v243_v5  ;;  %2382 = vmatpush.msra.mxu3 %v323_v6  ;;  %v658_v63 = vld [vmem:[%s7529_s1 + $0x13c8] sm:$0xff]  ;;  %v493_v5 = vld [vmem:[%s7529_s1 + $0xea0] sm:$0xff] }
 0x1a5   :  { %2323 = vmatpush.msra.mxu0 %v78_v7  ;;  %2343 = vmatpush.msra.mxu1 %v158_v8  ;;  %v573_v6 = vld [vmem:[%s7529_s1 + $0x1120] sm:$0xff]  ;;  %v408_v8 = vld [vmem:[%s7529_s1 + $0xbf8] sm:$0xff] }
 0x1a6   :  { %2363 = vmatpush.msra.mxu2 %v238_v9  ;;  %2383 = vmatpush.msra.mxu3 %v318_v10  ;;  %v653_v7 = vld [vmem:[%s7529_s1 + $0x13a0] sm:$0xff]  ;;  %v488_v9 = vld [vmem:[%s7529_s1 + $0xe78] sm:$0xff] }
 0x1a7   :  { %2324 = vmatpush.msra.mxu0 %v73_v11  ;;  %2344 = vmatpush.msra.mxu1 %v153_v12  ;;  %v568_v10 = vld [vmem:[%s7529_s1 + $0x10f8] sm:$0xff]  ;;  %v403_v12 = vld [vmem:[%s7529_s1 + $0xbd0] sm:$0xff] }
 0x1a8   :  { %2364 = vmatpush.msra.mxu2 %v233_v13  ;;  %2384 = vmatpush.msra.mxu3 %v313_v14  ;;  %v648_v11 = vld [vmem:[%s7529_s1 + $0x1378] sm:$0xff]  ;;  %v483_v13 = vld [vmem:[%s7529_s1 + $0xe50] sm:$0xff] }
 0x1a9   :  { %2325 = vmatpush.msra.mxu0 %v68_v15  ;;  %2345 = vmatpush.msra.mxu1 %v148_v16  ;;  %v563_v14 = vld [vmem:[%s7529_s1 + $0x10d0] sm:$0xff]  ;;  %v398_v16 = vld [vmem:[%s7529_s1 + $0xba8] sm:$0xff] }
 0x1aa   :  { %2365 = vmatpush.msra.mxu2 %v228_v17  ;;  %2385 = vmatpush.msra.mxu3 %v308_v18  ;;  %v643_v15 = vld [vmem:[%s7529_s1 + $0x1350] sm:$0xff]  ;;  %v478_v17 = vld [vmem:[%s7529_s1 + $0xe28] sm:$0xff] }
 0x1ab   :  { %2326 = vmatpush.msra.mxu0 %v63_v19  ;;  %2346 = vmatpush.msra.mxu1 %v143_v20  ;;  %v558_v18 = vld [vmem:[%s7529_s1 + $0x10a8] sm:$0xff]  ;;  %v393_v20 = vld [vmem:[%s7529_s1 + $0xb80] sm:$0xff] }
 0x1ac   :  { %2366 = vmatpush.msra.mxu2 %v223_v21  ;;  %2386 = vmatpush.msra.mxu3 %v303_v22  ;;  %v638_v19 = vld [vmem:[%s7529_s1 + $0x1328] sm:$0xff]  ;;  %v473_v21 = vld [vmem:[%s7529_s1 + $0xe00] sm:$0xff] }
 0x1ad   :  { %2327 = vmatpush.msra.mxu0 %v58_v23  ;;  %2347 = vmatpush.msra.mxu1 %v138_v24  ;;  %v553_v22 = vld [vmem:[%s7529_s1 + $0x1080] sm:$0xff]  ;;  %v388_v24 = vld [vmem:[%s7529_s1 + $0xb58] sm:$0xff] }
 0x1ae   :  { %2367 = vmatpush.msra.mxu2 %v218_v25  ;;  %2387 = vmatpush.msra.mxu3 %v298_v26  ;;  %v633_v23 = vld [vmem:[%s7529_s1 + $0x1300] sm:$0xff]  ;;  %v468_v25 = vld [vmem:[%s7529_s1 + $0xdd8] sm:$0xff] }
 0x1af   :  { %2328 = vmatpush.msra.mxu0 %v53_v27  ;;  %2348 = vmatpush.msra.mxu1 %v133_v28  ;;  %v548_v26 = vld [vmem:[%s7529_s1 + $0x1058] sm:$0xff]  ;;  %v383_v28 = vld [vmem:[%s7529_s1 + $0xb30] sm:$0xff] }
 0x1b0   :  { %2368 = vmatpush.msra.mxu2 %v213_v29  ;;  %2388 = vmatpush.msra.mxu3 %v293_v30  ;;  %v628_v27 = vld [vmem:[%s7529_s1 + $0x12d8] sm:$0xff]  ;;  %v463_v29 = vld [vmem:[%s7529_s1 + $0xdb0] sm:$0xff] }
 0x1b1   :  { %2329 = vmatpush.msra.mxu0 %v48_v31  ;;  %2349 = vmatpush.msra.mxu1 %v128_v32  ;;  %v543_v30 = vld [vmem:[%s7529_s1 + $0x1030] sm:$0xff]  ;;  %v378_v32 = vld [vmem:[%s7529_s1 + $0xb08] sm:$0xff] }
 0x1b2   :  { %2369 = vmatpush.msra.mxu2 %v208_v34  ;;  %2389 = vmatpush.msra.mxu3 %v288_v35  ;;  %v623_v31 = vld [vmem:[%s7529_s1 + $0x12b0] sm:$0xff]  ;;  %v458_v34 = vld [vmem:[%s7529_s1 + $0xd88] sm:$0xff] }
 0x1b3   :  { %2330 = vmatpush.msra.mxu0 %v43_v33  ;;  %2350 = vmatpush.msra.mxu1 %v123_v36  ;;  %v538_v35 = vld [vmem:[%s7529_s1 + $0x1008] sm:$0xff]  ;;  %v373_v36 = vld [vmem:[%s7529_s1 + $0xae0] sm:$0xff] }
 0x1b4   :  { %2370 = vmatpush.msra.mxu2 %v203_v37  ;;  %2390 = vmatpush.msra.mxu3 %v283_v38  ;;  %v618_v33 = vld [vmem:[%s7529_s1 + $0x1288] sm:$0xff]  ;;  %v453_v37 = vld [vmem:[%s7529_s1 + $0xd60] sm:$0xff] }
 0x1b5   :  { %2331 = vmatpush.msra.mxu0 %v38_v39  ;;  %2351 = vmatpush.msra.mxu1 %v118_v40  ;;  %v533_v38 = vld [vmem:[%s7529_s1 + $0xfe0] sm:$0xff]  ;;  %v368_v40 = vld [vmem:[%s7529_s1 + $0xab8] sm:$0xff] }
 0x1b6   :  { %2371 = vmatpush.msra.mxu2 %v198_v41  ;;  %2391 = vmatpush.msra.mxu3 %v278_v42  ;;  %v613_v39 = vld [vmem:[%s7529_s1 + $0x1260] sm:$0xff]  ;;  %v448_v41 = vld [vmem:[%s7529_s1 + $0xd38] sm:$0xff] }
 0x1b7   :  { %2332 = vmatpush.msra.mxu0 %v33_v43  ;;  %2352 = vmatpush.msra.mxu1 %v113_v44  ;;  %v528_v42 = vld [vmem:[%s7529_s1 + $0xfb8] sm:$0xff]  ;;  %v363_v44 = vld [vmem:[%s7529_s1 + $0xa90] sm:$0xff] }
 0x1b8   :  { %2372 = vmatpush.msra.mxu2 %v193_v45  ;;  %2392 = vmatpush.msra.mxu3 %v273_v46  ;;  %v608_v43 = vld [vmem:[%s7529_s1 + $0x1238] sm:$0xff]  ;;  %v443_v45 = vld [vmem:[%s7529_s1 + $0xd10] sm:$0xff] }
 0x1b9   :  { %2333 = vmatpush.msra.mxu0 %v28_v47  ;;  %2353 = vmatpush.msra.mxu1 %v108_v52  ;;  %v523_v46 = vld [vmem:[%s7529_s1 + $0xf90] sm:$0xff]  ;;  %v358_v52 = vld [vmem:[%s7529_s1 + $0xa68] sm:$0xff] }
 0x1ba   :  { %2373 = vmatpush.msra.mxu2 %v188_v53  ;;  %2393 = vmatpush.msra.mxu3 %v268_v54  ;;  %v603_v47 = vld [vmem:[%s7529_s1 + $0x1210] sm:$0xff]  ;;  %v438_v53 = vld [vmem:[%s7529_s1 + $0xce8] sm:$0xff] }
 0x1bb   :  { %2398 = vmatpush.msrb.mxu0 %v423_v55  ;;  %2418 = vmatpush.msrb.mxu1 %v503_v56  ;;  %v518_v54 = vld [vmem:[%s7529_s1 + $0xf68] sm:$0xff]  ;;  %v353_v56 = vld [vmem:[%s7529_s1 + $0xa40] sm:$0xff] }
 0x1bc   :  { %2438 = vmatpush.msrb.mxu2 %v583_v58  ;;  %2458 = vmatpush.msrb.mxu3 %v663_v59  ;;  %v598_v55 = vld [vmem:[%s7529_s1 + $0x11e8] sm:$0xff]  ;;  %v433_v58 = vld [vmem:[%s7529_s1 + $0xcc0] sm:$0xff] }
 0x1bd   :  { %2399 = vmatpush.msrb.mxu0 %v418_v60  ;;  %2419 = vmatpush.msrb.mxu1 %v498_v61  ;;  %v513_v59 = vld [vmem:[%s7529_s1 + $0xf40] sm:$0xff]  ;;  %v348_v61 = vld [vmem:[%s7529_s1 + $0xa18] sm:$0xff] }
 0x1be   :  { %2439 = vmatpush.msrb.mxu2 %v578_v62  ;;  %2459 = vmatpush.msrb.mxu3 %v658_v63  ;;  %v593_v60 = vld [vmem:[%s7529_s1 + $0x11c0] sm:$0xff]  ;;  %v428_v62 = vld [vmem:[%s7529_s1 + $0xc98] sm:$0xff] }
 0x1bf   :  { %2400 = vmatpush.msrb.mxu0 %v413_v4  ;;  %2420 = vmatpush.msrb.mxu1 %v493_v5  ;;  %v508_v63 = vld [vmem:[%s7529_s1 + $0xf18] sm:$0xff]  ;;  %v743_v5 = vld [vmem:[%s7529_s1 + $0x1670] sm:$0xff] }
 0x1c0   :  { %2440 = vmatpush.msrb.mxu2 %v573_v6  ;;  %2460 = vmatpush.msrb.mxu3 %v653_v7  ;;  %v588_v4 = vld [vmem:[%s7529_s1 + $0x1198] sm:$0xff]  ;;  %v823_v6 = vld [vmem:[%s7529_s1 + $0x18f0] sm:$0xff] }
 0x1c1   :  { %2401 = vmatpush.msrb.mxu0 %v408_v8  ;;  %2421 = vmatpush.msrb.mxu1 %v488_v9  ;;  %v903_v7 = vld [vmem:[%s7529_s1 + $0x1b70] sm:$0xff]  ;;  %v738_v9 = vld [vmem:[%s7529_s1 + $0x1648] sm:$0xff] }
 0x1c2   :  { %2441 = vmatpush.msrb.mxu2 %v568_v10  ;;  %2461 = vmatpush.msrb.mxu3 %v648_v11  ;;  %v983_v8 = vld [vmem:[%s7529_s1 + $0x1df0] sm:$0xff]  ;;  %v818_v10 = vld [vmem:[%s7529_s1 + $0x18c8] sm:$0xff] }
 0x1c3   :  { %2402 = vmatpush.msrb.mxu0 %v403_v12  ;;  %2422 = vmatpush.msrb.mxu1 %v483_v13  ;;  %v898_v11 = vld [vmem:[%s7529_s1 + $0x1b48] sm:$0xff]  ;;  %v733_v13 = vld [vmem:[%s7529_s1 + $0x1620] sm:$0xff] }
 0x1c4   :  { %2442 = vmatpush.msrb.mxu2 %v563_v14  ;;  %2462 = vmatpush.msrb.mxu3 %v643_v15  ;;  %v978_v12 = vld [vmem:[%s7529_s1 + $0x1dc8] sm:$0xff]  ;;  %v813_v14 = vld [vmem:[%s7529_s1 + $0x18a0] sm:$0xff] }
 0x1c5   :  { %2403 = vmatpush.msrb.mxu0 %v398_v16  ;;  %2423 = vmatpush.msrb.mxu1 %v478_v17  ;;  %v893_v15 = vld [vmem:[%s7529_s1 + $0x1b20] sm:$0xff]  ;;  %v728_v17 = vld [vmem:[%s7529_s1 + $0x15f8] sm:$0xff] }
 0x1c6   :  { %2443 = vmatpush.msrb.mxu2 %v558_v18  ;;  %2463 = vmatpush.msrb.mxu3 %v638_v19  ;;  %v973_v16 = vld [vmem:[%s7529_s1 + $0x1da0] sm:$0xff]  ;;  %v808_v18 = vld [vmem:[%s7529_s1 + $0x1878] sm:$0xff] }
 0x1c7   :  { %2404 = vmatpush.msrb.mxu0 %v393_v20  ;;  %2424 = vmatpush.msrb.mxu1 %v473_v21  ;;  %v888_v19 = vld [vmem:[%s7529_s1 + $0x1af8] sm:$0xff]  ;;  %v723_v21 = vld [vmem:[%s7529_s1 + $0x15d0] sm:$0xff] }
 0x1c8   :  { %2444 = vmatpush.msrb.mxu2 %v553_v22  ;;  %2464 = vmatpush.msrb.mxu3 %v633_v23  ;;  %v968_v20 = vld [vmem:[%s7529_s1 + $0x1d78] sm:$0xff]  ;;  %v803_v22 = vld [vmem:[%s7529_s1 + $0x1850] sm:$0xff] }
 0x1c9   :  { %2405 = vmatpush.msrb.mxu0 %v388_v24  ;;  %2425 = vmatpush.msrb.mxu1 %v468_v25  ;;  %v883_v23 = vld [vmem:[%s7529_s1 + $0x1ad0] sm:$0xff]  ;;  %v718_v25 = vld [vmem:[%s7529_s1 + $0x15a8] sm:$0xff] }
 0x1ca   :  { %2445 = vmatpush.msrb.mxu2 %v548_v26  ;;  %2465 = vmatpush.msrb.mxu3 %v628_v27  ;;  %v963_v24 = vld [vmem:[%s7529_s1 + $0x1d50] sm:$0xff]  ;;  %v798_v26 = vld [vmem:[%s7529_s1 + $0x1828] sm:$0xff] }
 0x1cb   :  { %2406 = vmatpush.msrb.mxu0 %v383_v28  ;;  %2426 = vmatpush.msrb.mxu1 %v463_v29  ;;  %v878_v27 = vld [vmem:[%s7529_s1 + $0x1aa8] sm:$0xff]  ;;  %v713_v29 = vld [vmem:[%s7529_s1 + $0x1580] sm:$0xff] }
 0x1cc   :  { %2446 = vmatpush.msrb.mxu2 %v543_v30  ;;  %2466 = vmatpush.msrb.mxu3 %v623_v31  ;;  %v958_v28 = vld [vmem:[%s7529_s1 + $0x1d28] sm:$0xff]  ;;  %v793_v30 = vld [vmem:[%s7529_s1 + $0x1800] sm:$0xff] }
 0x1cd   :  { %2407 = vmatpush.msrb.mxu0 %v378_v32  ;;  %2427 = vmatpush.msrb.mxu1 %v458_v34  ;;  %v873_v31 = vld [vmem:[%s7529_s1 + $0x1a80] sm:$0xff]  ;;  %v708_v34 = vld [vmem:[%s7529_s1 + $0x1558] sm:$0xff] }
 0x1ce   :  { %2447 = vmatpush.msrb.mxu2 %v538_v35  ;;  %2467 = vmatpush.msrb.mxu3 %v618_v33  ;;  %v953_v32 = vld [vmem:[%s7529_s1 + $0x1d00] sm:$0xff]  ;;  %v788_v35 = vld [vmem:[%s7529_s1 + $0x17d8] sm:$0xff] }
 0x1cf   :  { %2408 = vmatpush.msrb.mxu0 %v373_v36  ;;  %2428 = vmatpush.msrb.mxu1 %v453_v37  ;;  %v868_v33 = vld [vmem:[%s7529_s1 + $0x1a58] sm:$0xff]  ;;  %v703_v37 = vld [vmem:[%s7529_s1 + $0x1530] sm:$0xff] }
 0x1d0   :  { %2448 = vmatpush.msrb.mxu2 %v533_v38  ;;  %2468 = vmatpush.msrb.mxu3 %v613_v39  ;;  %v948_v36 = vld [vmem:[%s7529_s1 + $0x1cd8] sm:$0xff]  ;;  %v783_v38 = vld [vmem:[%s7529_s1 + $0x17b0] sm:$0xff] }
 0x1d1   :  { %2409 = vmatpush.msrb.mxu0 %v368_v40  ;;  %2429 = vmatpush.msrb.mxu1 %v448_v41  ;;  %v863_v39 = vld [vmem:[%s7529_s1 + $0x1a30] sm:$0xff]  ;;  %v698_v41 = vld [vmem:[%s7529_s1 + $0x1508] sm:$0xff] }
 0x1d2   :  { %2449 = vmatpush.msrb.mxu2 %v528_v42  ;;  %2469 = vmatpush.msrb.mxu3 %v608_v43  ;;  %v943_v40 = vld [vmem:[%s7529_s1 + $0x1cb0] sm:$0xff]  ;;  %v778_v42 = vld [vmem:[%s7529_s1 + $0x1788] sm:$0xff] }
 0x1d3   :  { %2410 = vmatpush.msrb.mxu0 %v363_v44  ;;  %2430 = vmatpush.msrb.mxu1 %v443_v45  ;;  %v858_v43 = vld [vmem:[%s7529_s1 + $0x1a08] sm:$0xff]  ;;  %v693_v45 = vld [vmem:[%s7529_s1 + $0x14e0] sm:$0xff] }
 0x1d4   :  { %2450 = vmatpush.msrb.mxu2 %v523_v46  ;;  %2470 = vmatpush.msrb.mxu3 %v603_v47  ;;  %v938_v44 = vld [vmem:[%s7529_s1 + $0x1c88] sm:$0xff]  ;;  %v773_v46 = vld [vmem:[%s7529_s1 + $0x1760] sm:$0xff] }
 0x1d5   :  { %2411 = vmatpush.msrb.mxu0 %v358_v52  ;;  %2431 = vmatpush.msrb.mxu1 %v438_v53  ;;  %v853_v47 = vld [vmem:[%s7529_s1 + $0x19e0] sm:$0xff]  ;;  %v688_v53 = vld [vmem:[%s7529_s1 + $0x14b8] sm:$0xff] }
 0x1d6   :  { %2451 = vmatpush.msrb.mxu2 %v518_v54  ;;  %2471 = vmatpush.msrb.mxu3 %v598_v55  ;;  %v933_v52 = vld [vmem:[%s7529_s1 + $0x1c60] sm:$0xff]  ;;  %v768_v54 = vld [vmem:[%s7529_s1 + $0x1738] sm:$0xff] }
 0x1d7   :  { %2412 = vmatpush.msrb.mxu0 %v353_v56  ;;  %2432 = vmatpush.msrb.mxu1 %v433_v58  ;;  %v848_v55 = vld [vmem:[%s7529_s1 + $0x19b8] sm:$0xff]  ;;  %v683_v58 = vld [vmem:[%s7529_s1 + $0x1490] sm:$0xff] }
 0x1d8   :  { %2452 = vmatpush.msrb.mxu2 %v513_v59  ;;  %2472 = vmatpush.msrb.mxu3 %v593_v60  ;;  %v928_v56 = vld [vmem:[%s7529_s1 + $0x1c38] sm:$0xff]  ;;  %v763_v59 = vld [vmem:[%s7529_s1 + $0x1710] sm:$0xff] }
 0x1d9   :  { %2413 = vmatpush.msrb.mxu0 %v348_v61  ;;  %2433 = vmatpush.msrb.mxu1 %v428_v62  ;;  %v843_v60 = vld [vmem:[%s7529_s1 + $0x1990] sm:$0xff]  ;;  %v678_v62 = vld [vmem:[%s7529_s1 + $0x1468] sm:$0xff] }
 0x1da   :  { %2453 = vmatpush.msrb.mxu2 %v508_v63  ;;  %2473 = vmatpush.msrb.mxu3 %v588_v4  ;;  %v923_v61 = vld [vmem:[%s7529_s1 + $0x1c10] sm:$0xff]  ;;  %v758_v63 = vld [vmem:[%s7529_s1 + $0x16e8] sm:$0xff] }
 0x1db   :  { %2334 = vmatmul.f32.vlgmr.msra.gmra.mxu0 %v3593_v48  ;;  %2354 = vmatmul.f32.vlgmr.msra.gmra.mxu1 %v3595_v49  ;;  %v838_v4 = vld [vmem:[%s7529_s1 + $0x1968] sm:$0xff] }
 0x1dc   :  { %2374 = vmatmul.f32.vlgmr.msra.gmra.mxu2 %v3597_v50  ;;  %2394 = vmatmul.f32.vlgmr.msra.gmra.mxu3 %v3599_v51 }
 0x1dd   :  { %2478 = vmatpush.msra.mxu0 %v743_v5  ;;  %2498 = vmatpush.msra.mxu1 %v823_v6  ;;  %v918_v5 = vld [vmem:[%s7529_s1 + $0x1be8] sm:$0xff]  ;;  %v673_v6 = vld [vmem:[%s7529_s1 + $0x1440] sm:$0xff] }
 0x1de   :  { %2518 = vmatpush.msra.mxu2 %v903_v7  ;;  %2538 = vmatpush.msra.mxu3 %v983_v8  ;;  %v753_v7 = vld [vmem:[%s7529_s1 + $0x16c0] sm:$0xff] }
 0x1df   :  { %2479 = vmatpush.msra.mxu0 %v738_v9  ;;  %2499 = vmatpush.msra.mxu1 %v818_v10  ;;  %v833_v8 = vld [vmem:[%s7529_s1 + $0x1940] sm:$0xff]  ;;  %v668_v10 = vld [vmem:[%s7529_s1 + $0x1418] sm:$0xff] }
 0x1e0   :  { %2519 = vmatpush.msra.mxu2 %v898_v11  ;;  %2539 = vmatpush.msra.mxu3 %v978_v12  ;;  %v913_v9 = vld [vmem:[%s7529_s1 + $0x1bc0] sm:$0xff]  ;;  %v748_v11 = vld [vmem:[%s7529_s1 + $0x1698] sm:$0xff] }
 0x1e1   :  { %2480 = vmatpush.msra.mxu0 %v733_v13  ;;  %2500 = vmatpush.msra.mxu1 %v813_v14  ;;  %v828_v12 = vld [vmem:[%s7529_s1 + $0x1918] sm:$0xff]  ;;  %v1063_v14 = vld [vmem:[%s7529_s1 + $0x2070] sm:$0xff] }
 0x1e2   :  { %2520 = vmatpush.msra.mxu2 %v893_v15  ;;  %2540 = vmatpush.msra.mxu3 %v973_v16  ;;  %v908_v13 = vld [vmem:[%s7529_s1 + $0x1b98] sm:$0xff]  ;;  %v1143_v15 = vld [vmem:[%s7529_s1 + $0x22f0] sm:$0xff] }
 0x1e3   :  { %2481 = vmatpush.msra.mxu0 %v728_v17  ;;  %2501 = vmatpush.msra.mxu1 %v808_v18  ;;  %v1223_v16 = vld [vmem:[%s7529_s1 + $0x2570] sm:$0xff]  ;;  %v3183_v18 = vld.sshfl [vmem:[#allocation1] sm:$0xff pattern:$0x73625140] }
 0x1e4   :  { %2521 = vmatpush.msra.mxu2 %v888_v19  ;;  %2541 = vmatpush.msra.mxu3 %v968_v20  ;;  %v1303_v17 = vld [vmem:[%s7529_s1 + $0x27f0] sm:$0xff]  ;;  %v1058_v20 = vld [vmem:[%s7529_s1 + $0x2048] sm:$0xff] }
 0x1e5   :  { %2454 = vmatmul.f32.vlgmr.msrb.gmra.mxu2 %v3637_v0  ;;  %2482 = vmatpush.msra.mxu0 %v723_v21  ;;  %v3184_v19 = vld.sshfl [vmem:[#allocation1 + $0x10] sm:$0xff pattern:$0x73625140]  ;;  %v1138_v21 = vld [vmem:[%s7529_s1 + $0x22c8] sm:$0xff] }
 0x1e6   :  { %2502 = vmatpush.msra.mxu1 %v803_v22  ;;  %2522 = vmatpush.msra.mxu2 %v883_v23  ;;  %v1218_v22 = vld [vmem:[%s7529_s1 + $0x2548] sm:$0xff] }
 0x1e7   :  { %2542 = vmatpush.msra.mxu3 %v963_v24  ;;  %2414 = vmatmul.f32.vlgmr.msrb.gmra.mxu0 %v3639_v1  ;;  %v1298_v23 = vld [vmem:[%s7529_s1 + $0x27c8] sm:$0xff] }
 0x1e8   :  { %2474 = vmatmul.f32.vlgmr.msrb.gmra.mxu3 %v3641_v2  ;;  %2483 = vmatpush.msra.mxu0 %v718_v25  ;;  %v3185_v24 = vld.sshfl [vmem:[#allocation1 + $0x8] sm:$0xff pattern:$0x73625140]  ;;  %v3186_v25 = vld.sshfl [vmem:[#allocation1 + $0x18] sm:$0xff pattern:$0x73625140] }
 0x1e9   :  { %2503 = vmatpush.msra.mxu1 %v798_v26  ;;  %2523 = vmatpush.msra.mxu2 %v878_v27  ;;  %v1053_v26 = vld [vmem:[%s7529_s1 + $0x2020] sm:$0xff] }
 0x1ea   :  { %2543 = vmatpush.msra.mxu3 %v958_v28  ;;  %2434 = vmatmul.f32.vlgmr.msrb.gmra.mxu1 %v3643_v3  ;;  %v1133_v27 = vld [vmem:[%s7529_s1 + $0x22a0] sm:$0xff] }
 0x1eb   :  { %2484 = vmatpush.msra.mxu0 %v713_v29  ;;  %2504 = vmatpush.msra.mxu1 %v793_v30  ;;  %v1213_v28 = vld [vmem:[%s7529_s1 + $0x2520] sm:$0xff]  ;;  %v1048_v30 = vld [vmem:[%s7529_s1 + $0x1ff8] sm:$0xff] }
 0x1ec   :  { %2524 = vmatpush.msra.mxu2 %v873_v31  ;;  %2544 = vmatpush.msra.mxu3 %v953_v32  ;;  %v1293_v29 = vld [vmem:[%s7529_s1 + $0x27a0] sm:$0xff]  ;;  %v1128_v31 = vld [vmem:[%s7529_s1 + $0x2278] sm:$0xff] }
 0x1ed   :  { %2485 = vmatpush.msra.mxu0 %v708_v34  ;;  %2505 = vmatpush.msra.mxu1 %v788_v35  ;;  %v1208_v32 = vld [vmem:[%s7529_s1 + $0x24f8] sm:$0xff]  ;;  %v1043_v35 = vld [vmem:[%s7529_s1 + $0x1fd0] sm:$0xff] }
 0x1ee   :  { %2525 = vmatpush.msra.mxu2 %v868_v33  ;;  %2545 = vmatpush.msra.mxu3 %v948_v36  ;;  %v1288_v34 = vld [vmem:[%s7529_s1 + $0x2778] sm:$0xff]  ;;  %v1123_v33 = vld [vmem:[%s7529_s1 + $0x2250] sm:$0xff] }
 0x1ef   :  { %2486 = vmatpush.msra.mxu0 %v703_v37  ;;  %2506 = vmatpush.msra.mxu1 %v783_v38  ;;  %v1203_v36 = vld [vmem:[%s7529_s1 + $0x24d0] sm:$0xff]  ;;  %v1038_v38 = vld [vmem:[%s7529_s1 + $0x1fa8] sm:$0xff] }
 0x1f0   :  { %2526 = vmatpush.msra.mxu2 %v863_v39  ;;  %2546 = vmatpush.msra.mxu3 %v943_v40  ;;  %v1283_v37 = vld [vmem:[%s7529_s1 + $0x2750] sm:$0xff]  ;;  %v1118_v39 = vld [vmem:[%s7529_s1 + $0x2228] sm:$0xff] }
 0x1f1   :  { %2487 = vmatpush.msra.mxu0 %v698_v41  ;;  %2507 = vmatpush.msra.mxu1 %v778_v42  ;;  %v1198_v40 = vld [vmem:[%s7529_s1 + $0x24a8] sm:$0xff]  ;;  %v1033_v42 = vld [vmem:[%s7529_s1 + $0x1f80] sm:$0xff] }
 0x1f2   :  { %2527 = vmatpush.msra.mxu2 %v858_v43  ;;  %2547 = vmatpush.msra.mxu3 %v938_v44  ;;  %v1278_v41 = vld [vmem:[%s7529_s1 + $0x2728] sm:$0xff]  ;;  %v1113_v43 = vld [vmem:[%s7529_s1 + $0x2200] sm:$0xff] }
 0x1f3   :  { %2488 = vmatpush.msra.mxu0 %v693_v45  ;;  %2508 = vmatpush.msra.mxu1 %v773_v46  ;;  %v1193_v44 = vld [vmem:[%s7529_s1 + $0x2480] sm:$0xff]  ;;  %v1028_v46 = vld [vmem:[%s7529_s1 + $0x1f58] sm:$0xff] }
 0x1f4   :  { %2528 = vmatpush.msra.mxu2 %v853_v47  ;;  %2548 = vmatpush.msra.mxu3 %v933_v52  ;;  %v1273_v45 = vld [vmem:[%s7529_s1 + $0x2700] sm:$0xff]  ;;  %v1108_v47 = vld [vmem:[%s7529_s1 + $0x21d8] sm:$0xff] }
 0x1f5   :  { %2489 = vmatpush.msra.mxu0 %v688_v53  ;;  %2509 = vmatpush.msra.mxu1 %v768_v54  ;;  %v1188_v52 = vld [vmem:[%s7529_s1 + $0x2458] sm:$0xff]  ;;  %v1023_v54 = vld [vmem:[%s7529_s1 + $0x1f30] sm:$0xff] }
 0x1f6   :  { %2529 = vmatpush.msra.mxu2 %v848_v55  ;;  %2549 = vmatpush.msra.mxu3 %v928_v56  ;;  %v1268_v53 = vld [vmem:[%s7529_s1 + $0x26d8] sm:$0xff]  ;;  %v1103_v55 = vld [vmem:[%s7529_s1 + $0x21b0] sm:$0xff] }
 0x1f7   :  { %2490 = vmatpush.msra.mxu0 %v683_v58  ;;  %2510 = vmatpush.msra.mxu1 %v763_v59  ;;  %v1183_v56 = vld [vmem:[%s7529_s1 + $0x2430] sm:$0xff]  ;;  %v1018_v59 = vld [vmem:[%s7529_s1 + $0x1f08] sm:$0xff] }
 0x1f8   :  { %2530 = vmatpush.msra.mxu2 %v843_v60  ;;  %2550 = vmatpush.msra.mxu3 %v923_v61  ;;  %v1263_v58 = vld [vmem:[%s7529_s1 + $0x26b0] sm:$0xff]  ;;  %v1098_v60 = vld [vmem:[%s7529_s1 + $0x2188] sm:$0xff] }
 0x1f9   :  { %2491 = vmatpush.msra.mxu0 %v678_v62  ;;  %2511 = vmatpush.msra.mxu1 %v758_v63  ;;  %v1178_v61 = vld [vmem:[%s7529_s1 + $0x2408] sm:$0xff]  ;;  %v1013_v63 = vld [vmem:[%s7529_s1 + $0x1ee0] sm:$0xff] }
 0x1fa   :  { %2531 = vmatpush.msra.mxu2 %v838_v4  ;;  %2551 = vmatpush.msra.mxu3 %v918_v5  ;;  %v1258_v62 = vld [vmem:[%s7529_s1 + $0x2688] sm:$0xff]  ;;  %v1093_v4 = vld [vmem:[%s7529_s1 + $0x2160] sm:$0xff] }
 0x1fb   :  { %2492 = vmatpush.msra.mxu0 %v673_v6  ;;  %2512 = vmatpush.msra.mxu1 %v753_v7  ;;  %v1173_v5 = vld [vmem:[%s7529_s1 + $0x23e0] sm:$0xff]  ;;  %v1008_v7 = vld [vmem:[%s7529_s1 + $0x1eb8] sm:$0xff] }
 0x1fc   :  { %2532 = vmatpush.msra.mxu2 %v833_v8  ;;  %2552 = vmatpush.msra.mxu3 %v913_v9  ;;  %v1253_v6 = vld [vmem:[%s7529_s1 + $0x2660] sm:$0xff]  ;;  %v1088_v8 = vld [vmem:[%s7529_s1 + $0x2138] sm:$0xff] }
 0x1fd   :  { %2493 = vmatpush.msra.mxu0 %v668_v10  ;;  %2513 = vmatpush.msra.mxu1 %v748_v11  ;;  %v1168_v9 = vld [vmem:[%s7529_s1 + $0x23b8] sm:$0xff]  ;;  %v1003_v11 = vld [vmem:[%s7529_s1 + $0x1e90] sm:$0xff] }
 0x1fe   :  { %2533 = vmatpush.msra.mxu2 %v828_v12  ;;  %2553 = vmatpush.msra.mxu3 %v908_v13  ;;  %v1248_v10 = vld [vmem:[%s7529_s1 + $0x2638] sm:$0xff]  ;;  %v1083_v12 = vld [vmem:[%s7529_s1 + $0x2110] sm:$0xff] }
 0x1ff   :  { %2494 = vmatmul.f32.vlgmr.msra.gmra.mxu0 %v3183_v18  ;;  %2534 = vmatmul.f32.vlgmr.msra.gmra.mxu2 %v3184_v19  ;;  %v1163_v13 = vld [vmem:[%s7529_s1 + $0x2390] sm:$0xff]  ;;  %v1238_v18 = vld [vmem:[%s7529_s1 + $0x25e8] sm:$0xff]  ;;  %v993_v19 = vld [vmem:[%s7529_s1 + $0x1e40] sm:$0xff] }
 0x200   :  { %2558 = vmatpush.msrb.mxu0 %v1063_v14  ;;  %2578 = vmatpush.msrb.mxu1 %v1143_v15  ;;  %v1243_v14 = vld [vmem:[%s7529_s1 + $0x2610] sm:$0xff]  ;;  %v998_v15 = vld [vmem:[%s7529_s1 + $0x1e68] sm:$0xff] }
 0x201   :  { %2598 = vmatpush.msrb.mxu2 %v1223_v16  ;;  %2618 = vmatpush.msrb.mxu3 %v1303_v17  ;;  %v1078_v16 = vld [vmem:[%s7529_s1 + $0x20e8] sm:$0xff] }
 0x202   :  { %2514 = vmatmul.f32.vlgmr.msra.gmra.mxu1 %v3185_v24  ;;  %2554 = vmatmul.f32.vlgmr.msra.gmra.mxu3 %v3186_v25  ;;  %v1158_v17 = vld [vmem:[%s7529_s1 + $0x2368] sm:$0xff]  ;;  %v1068_v24 = vld [vmem:[%s7529_s1 + $0x2098] sm:$0xff] }
 0x203   :  { %2559 = vmatpush.msrb.mxu0 %v1058_v20  ;;  %2579 = vmatpush.msrb.mxu1 %v1138_v21  ;;  %v1073_v20 = vld [vmem:[%s7529_s1 + $0x20c0] sm:$0xff]  ;;  %v1148_v25 = vld [vmem:[%s7529_s1 + $0x2318] sm:$0xff] }
 0x204   :  { %2599 = vmatpush.msrb.mxu2 %v1218_v22  ;;  %2619 = vmatpush.msrb.mxu3 %v1298_v23  ;;  %v1153_v21 = vld [vmem:[%s7529_s1 + $0x2340] sm:$0xff]  ;;  %v988_v23 = vld [vmem:[%s7529_s1 + $0x1e18] sm:$0xff] }
 0x205   :  { %2560 = vmatpush.msrb.mxu0 %v1053_v26  ;;  %2580 = vmatpush.msrb.mxu1 %v1133_v27  ;;  %v1233_v22 = vld [vmem:[%s7529_s1 + $0x25c0] sm:$0xff]  ;;  %v1228_v26 = vld [vmem:[%s7529_s1 + $0x2598] sm:$0xff] }
 0x206   :  { %2600 = vmatpush.msrb.mxu2 %v1213_v28  ;;  %2620 = vmatpush.msrb.mxu3 %v1293_v29  ;;  %v104_v27 = vld [vmem:[%s7529_s1 + $0x278] sm:$0xff] }
 0x207   :  { %2561 = vmatpush.msrb.mxu0 %v1048_v30  ;;  %2581 = vmatpush.msrb.mxu1 %v1128_v31  ;;  %v184_v28 = vld [vmem:[%s7529_s1 + $0x4f8] sm:$0xff]  ;;  %v3187_v31 = vld.sshfl [vmem:[#allocation1 + $0x20] sm:$0xff pattern:$0x73625140] }
 0x208   :  { %2601 = vmatpush.msrb.mxu2 %v1208_v32  ;;  %2621 = vmatpush.msrb.mxu3 %v1288_v34  ;;  %v264_v29 = vld [vmem:[%s7529_s1 + $0x778] sm:$0xff]  ;;  %v3188_v32 = vld.sshfl [vmem:[#allocation1 + $0x30] sm:$0xff pattern:$0x73625140] }
 0x209   :  { %2562 = vmatpush.msrb.mxu0 %v1043_v35  ;;  %2582 = vmatpush.msrb.mxu1 %v1123_v33  ;;  %v344_v30 = vld [vmem:[%s7529_s1 + $0x9f8] sm:$0xff]  ;;  %v99_v34 = vld [vmem:[%s7529_s1 + $0x250] sm:$0xff] }
 0x20a   :  { %2602 = vmatpush.msrb.mxu2 %v1203_v36  ;;  %2622 = vmatpush.msrb.mxu3 %v1283_v37  ;;  %v179_v35 = vld [vmem:[%s7529_s1 + $0x4d0] sm:$0xff]  ;;  %v3189_v37 = vld.sshfl [vmem:[#allocation1 + $0x28] sm:$0xff pattern:$0x73625140] }
 0x20b   :  { %2563 = vmatpush.msrb.mxu0 %v1038_v38  ;;  %2583 = vmatpush.msrb.mxu1 %v1118_v39  ;;  %v259_v33 = vld [vmem:[%s7529_s1 + $0x750] sm:$0xff]  ;;  %v3190_v38 = vld.sshfl [vmem:[#allocation1 + $0x38] sm:$0xff pattern:$0x73625140]  ;;  %v94_v39 = vld [vmem:[%s7529_s1 + $0x228] sm:$0xff] }
 0x20c   :  { %2603 = vmatpush.msrb.mxu2 %v1198_v40  ;;  %2623 = vmatpush.msrb.mxu3 %v1278_v41  ;;  %v339_v36 = vld [vmem:[%s7529_s1 + $0x9d0] sm:$0xff]  ;;  %v174_v40 = vld [vmem:[%s7529_s1 + $0x4a8] sm:$0xff] }
 0x20d   :  { %2564 = vmatpush.msrb.mxu0 %v1033_v42  ;;  %2584 = vmatpush.msrb.mxu1 %v1113_v43  ;;  %v254_v41 = vld [vmem:[%s7529_s1 + $0x728] sm:$0xff]  ;;  %v89_v43 = vld [vmem:[%s7529_s1 + $0x200] sm:$0xff] }
 0x20e   :  { %2604 = vmatpush.msrb.mxu2 %v1193_v44  ;;  %2624 = vmatpush.msrb.mxu3 %v1273_v45  ;;  %v334_v42 = vld [vmem:[%s7529_s1 + $0x9a8] sm:$0xff]  ;;  %v169_v44 = vld [vmem:[%s7529_s1 + $0x480] sm:$0xff] }
 0x20f   :  { %2565 = vmatpush.msrb.mxu0 %v1028_v46  ;;  %2585 = vmatpush.msrb.mxu1 %v1108_v47  ;;  %v249_v45 = vld [vmem:[%s7529_s1 + $0x700] sm:$0xff]  ;;  %v84_v47 = vld [vmem:[%s7529_s1 + $0x1d8] sm:$0xff] }
 0x210   :  { %2605 = vmatpush.msrb.mxu2 %v1188_v52  ;;  %2625 = vmatpush.msrb.mxu3 %v1268_v53  ;;  %v329_v46 = vld [vmem:[%s7529_s1 + $0x980] sm:$0xff]  ;;  %v164_v52 = vld [vmem:[%s7529_s1 + $0x458] sm:$0xff] }
 0x211   :  { %2566 = vmatpush.msrb.mxu0 %v1023_v54  ;;  %2586 = vmatpush.msrb.mxu1 %v1103_v55  ;;  %v244_v53 = vld [vmem:[%s7529_s1 + $0x6d8] sm:$0xff]  ;;  %v79_v55 = vld [vmem:[%s7529_s1 + $0x1b0] sm:$0xff] }
 0x212   :  { %2606 = vmatpush.msrb.mxu2 %v1183_v56  ;;  %2626 = vmatpush.msrb.mxu3 %v1263_v58  ;;  %v324_v54 = vld [vmem:[%s7529_s1 + $0x958] sm:$0xff]  ;;  %v159_v56 = vld [vmem:[%s7529_s1 + $0x430] sm:$0xff] }
 0x213   :  { %2567 = vmatpush.msrb.mxu0 %v1018_v59  ;;  %2587 = vmatpush.msrb.mxu1 %v1098_v60  ;;  %v239_v58 = vld [vmem:[%s7529_s1 + $0x6b0] sm:$0xff]  ;;  %v74_v60 = vld [vmem:[%s7529_s1 + $0x188] sm:$0xff] }
 0x214   :  { %2607 = vmatpush.msrb.mxu2 %v1178_v61  ;;  %2627 = vmatpush.msrb.mxu3 %v1258_v62  ;;  %v319_v59 = vld [vmem:[%s7529_s1 + $0x930] sm:$0xff]  ;;  %v154_v61 = vld [vmem:[%s7529_s1 + $0x408] sm:$0xff] }
 0x215   :  { %2568 = vmatpush.msrb.mxu0 %v1013_v63  ;;  %2588 = vmatpush.msrb.mxu1 %v1093_v4  ;;  %v234_v62 = vld [vmem:[%s7529_s1 + $0x688] sm:$0xff]  ;;  %v69_v4 = vld [vmem:[%s7529_s1 + $0x160] sm:$0xff] }
 0x216   :  { %2608 = vmatpush.msrb.mxu2 %v1173_v5  ;;  %2628 = vmatpush.msrb.mxu3 %v1253_v6  ;;  %v314_v63 = vld [vmem:[%s7529_s1 + $0x908] sm:$0xff]  ;;  %v149_v5 = vld [vmem:[%s7529_s1 + $0x3e0] sm:$0xff] }
 0x217   :  { %2569 = vmatpush.msrb.mxu0 %v1008_v7  ;;  %2589 = vmatpush.msrb.mxu1 %v1088_v8  ;;  %v229_v6 = vld [vmem:[%s7529_s1 + $0x660] sm:$0xff]  ;;  %v64_v8 = vld [vmem:[%s7529_s1 + $0x138] sm:$0xff] }
 0x218   :  { %2609 = vmatpush.msrb.mxu2 %v1168_v9  ;;  %2629 = vmatpush.msrb.mxu3 %v1248_v10  ;;  %v309_v7 = vld [vmem:[%s7529_s1 + $0x8e0] sm:$0xff]  ;;  %v144_v9 = vld [vmem:[%s7529_s1 + $0x3b8] sm:$0xff] }
 0x219   :  { %2570 = vmatpush.msrb.mxu0 %v1003_v11  ;;  %2590 = vmatpush.msrb.mxu1 %v1083_v12  ;;  %v224_v10 = vld [vmem:[%s7529_s1 + $0x638] sm:$0xff]  ;;  %v59_v12 = vld [vmem:[%s7529_s1 + $0x110] sm:$0xff] }
 0x21a   :  { %2610 = vmatpush.msrb.mxu2 %v1163_v13  ;;  %2630 = vmatpush.msrb.mxu3 %v1243_v14  ;;  %v304_v11 = vld [vmem:[%s7529_s1 + $0x8b8] sm:$0xff]  ;;  %v139_v13 = vld [vmem:[%s7529_s1 + $0x390] sm:$0xff] }
 0x21b   :  { %2571 = vmatpush.msrb.mxu0 %v998_v15  ;;  %2591 = vmatpush.msrb.mxu1 %v1078_v16  ;;  %v219_v14 = vld [vmem:[%s7529_s1 + $0x610] sm:$0xff]  ;;  %v54_v16 = vld [vmem:[%s7529_s1 + $0xe8] sm:$0xff] }
 0x21c   :  { %2611 = vmatpush.msrb.mxu2 %v1158_v17  ;;  %2631 = vmatpush.msrb.mxu3 %v1238_v18  ;;  %v299_v15 = vld [vmem:[%s7529_s1 + $0x890] sm:$0xff]  ;;  %v134_v17 = vld [vmem:[%s7529_s1 + $0x368] sm:$0xff] }
 0x21d   :  { %2572 = vmatpush.msrb.mxu0 %v993_v19  ;;  %2592 = vmatpush.msrb.mxu1 %v1073_v20  ;;  %v214_v18 = vld [vmem:[%s7529_s1 + $0x5e8] sm:$0xff]  ;;  %v49_v20 = vld [vmem:[%s7529_s1 + $0xc0] sm:$0xff] }
 0x21e   :  { %2612 = vmatpush.msrb.mxu2 %v1153_v21  ;;  %2632 = vmatpush.msrb.mxu3 %v1233_v22  ;;  %v294_v19 = vld [vmem:[%s7529_s1 + $0x868] sm:$0xff]  ;;  %v129_v21 = vld [vmem:[%s7529_s1 + $0x340] sm:$0xff] }
 0x21f   :  { %2573 = vmatpush.msrb.mxu0 %v988_v23  ;;  %2593 = vmatpush.msrb.mxu1 %v1068_v24  ;;  %v209_v22 = vld [vmem:[%s7529_s1 + $0x5c0] sm:$0xff]  ;;  %v44_v24 = vld [vmem:[%s7529_s1 + $0x98] sm:$0xff] }
 0x220   :  { %2613 = vmatpush.msrb.mxu2 %v1148_v25  ;;  %2633 = vmatpush.msrb.mxu3 %v1228_v26  ;;  %v289_v23 = vld [vmem:[%s7529_s1 + $0x840] sm:$0xff]  ;;  %v124_v25 = vld [vmem:[%s7529_s1 + $0x318] sm:$0xff] }
 0x221   :  { %2574 = vmatmul.f32.vlgmr.msrb.gmra.mxu0 %v3187_v31  ;;  %2614 = vmatmul.f32.vlgmr.msrb.gmra.mxu2 %v3188_v32  ;;  %v204_v26 = vld [vmem:[%s7529_s1 + $0x598] sm:$0xff]  ;;  %v279_v31 = vld [vmem:[%s7529_s1 + $0x7f0] sm:$0xff]  ;;  %v34_v32 = vld [vmem:[%s7529_s1 + $0x48] sm:$0xff] }
 0x222   :  { %2638 = vmatpush.msra.mxu0 %v104_v27  ;;  %2658 = vmatpush.msra.mxu1 %v184_v28  ;;  %v284_v27 = vld [vmem:[%s7529_s1 + $0x818] sm:$0xff]  ;;  %v39_v28 = vld [vmem:[%s7529_s1 + $0x70] sm:$0xff] }
 0x223   :  { %2678 = vmatpush.msra.mxu2 %v264_v29  ;;  %2698 = vmatpush.msra.mxu3 %v344_v30  ;;  %v119_v29 = vld [vmem:[%s7529_s1 + $0x2f0] sm:$0xff] }
 0x224   :  { %2594 = vmatmul.f32.vlgmr.msrb.gmra.mxu1 %v3189_v37  ;;  %2634 = vmatmul.f32.vlgmr.msrb.gmra.mxu3 %v3190_v38  ;;  %v199_v30 = vld [vmem:[%s7529_s1 + $0x570] sm:$0xff]  ;;  %v109_v37 = vld [vmem:[%s7529_s1 + $0x2a0] sm:$0xff] }
 0x225   :  { %2639 = vmatpush.msra.mxu0 %v99_v34  ;;  %2659 = vmatpush.msra.mxu1 %v179_v35  ;;  %v114_v34 = vld [vmem:[%s7529_s1 + $0x2c8] sm:$0xff]  ;;  %v189_v38 = vld [vmem:[%s7529_s1 + $0x520] sm:$0xff] }
 0x226   :  { %2679 = vmatpush.msra.mxu2 %v259_v33  ;;  %2699 = vmatpush.msra.mxu3 %v339_v36  ;;  %v194_v35 = vld [vmem:[%s7529_s1 + $0x548] sm:$0xff]  ;;  %v29_v36 = vld [vmem:[%s7529_s1 + $0x20] sm:$0xff] }
 0x227   :  { %2640 = vmatpush.msra.mxu0 %v94_v39  ;;  %2660 = vmatpush.msra.mxu1 %v174_v40  ;;  %v274_v33 = vld [vmem:[%s7529_s1 + $0x7c8] sm:$0xff]  ;;  %v269_v39 = vld [vmem:[%s7529_s1 + $0x7a0] sm:$0xff]  ;;  %v424_v40 = vld [vmem:[%s7529_s1 + $0xc78] sm:$0xff] }
 0x228   :  { %2680 = vmatpush.msra.mxu2 %v254_v41  ;;  %2700 = vmatpush.msra.mxu3 %v334_v42  ;;  %v504_v41 = vld [vmem:[%s7529_s1 + $0xef8] sm:$0xff] }
 0x229   :  { %2641 = vmatpush.msra.mxu0 %v89_v43  ;;  %2661 = vmatpush.msra.mxu1 %v169_v44  ;;  %v584_v42 = vld [vmem:[%s7529_s1 + $0x1178] sm:$0xff]  ;;  %v419_v44 = vld [vmem:[%s7529_s1 + $0xc50] sm:$0xff] }
 0x22a   :  { %2681 = vmatpush.msra.mxu2 %v249_v45  ;;  %2701 = vmatpush.msra.mxu3 %v329_v46  ;;  %v664_v43 = vld [vmem:[%s7529_s1 + $0x13f8] sm:$0xff]  ;;  %v499_v45 = vld [vmem:[%s7529_s1 + $0xed0] sm:$0xff] }
 0x22b   :  { %2642 = vmatpush.msra.mxu0 %v84_v47  ;;  %2662 = vmatpush.msra.mxu1 %v164_v52  ;;  %v579_v46 = vld [vmem:[%s7529_s1 + $0x1150] sm:$0xff]  ;;  %v414_v52 = vld [vmem:[%s7529_s1 + $0xc28] sm:$0xff] }
 0x22c   :  { %2682 = vmatpush.msra.mxu2 %v244_v53  ;;  %2702 = vmatpush.msra.mxu3 %v324_v54  ;;  %v659_v47 = vld [vmem:[%s7529_s1 + $0x13d0] sm:$0xff]  ;;  %v494_v53 = vld [vmem:[%s7529_s1 + $0xea8] sm:$0xff] }
 0x22d   :  { %2643 = vmatpush.msra.mxu0 %v79_v55  ;;  %2663 = vmatpush.msra.mxu1 %v159_v56  ;;  %v574_v54 = vld [vmem:[%s7529_s1 + $0x1128] sm:$0xff]  ;;  %v409_v56 = vld [vmem:[%s7529_s1 + $0xc00] sm:$0xff] }
 0x22e   :  { %2683 = vmatpush.msra.mxu2 %v239_v58  ;;  %2703 = vmatpush.msra.mxu3 %v319_v59  ;;  %v654_v55 = vld [vmem:[%s7529_s1 + $0x13a8] sm:$0xff]  ;;  %v489_v58 = vld [vmem:[%s7529_s1 + $0xe80] sm:$0xff] }
 0x22f   :  { %2644 = vmatpush.msra.mxu0 %v74_v60  ;;  %2664 = vmatpush.msra.mxu1 %v154_v61  ;;  %v569_v59 = vld [vmem:[%s7529_s1 + $0x1100] sm:$0xff]  ;;  %v404_v61 = vld [vmem:[%s7529_s1 + $0xbd8] sm:$0xff] }
 0x230   :  { %2684 = vmatpush.msra.mxu2 %v234_v62  ;;  %2704 = vmatpush.msra.mxu3 %v314_v63  ;;  %v649_v60 = vld [vmem:[%s7529_s1 + $0x1380] sm:$0xff]  ;;  %v484_v62 = vld [vmem:[%s7529_s1 + $0xe58] sm:$0xff] }
 0x231   :  { %2645 = vmatpush.msra.mxu0 %v69_v4  ;;  %2665 = vmatpush.msra.mxu1 %v149_v5  ;;  %v564_v63 = vld [vmem:[%s7529_s1 + $0x10d8] sm:$0xff]  ;;  %v399_v5 = vld [vmem:[%s7529_s1 + $0xbb0] sm:$0xff] }
 0x232   :  { %2685 = vmatpush.msra.mxu2 %v229_v6  ;;  %2705 = vmatpush.msra.mxu3 %v309_v7  ;;  %v644_v4 = vld [vmem:[%s7529_s1 + $0x1358] sm:$0xff]  ;;  %v479_v6 = vld [vmem:[%s7529_s1 + $0xe30] sm:$0xff]  ;;  %v6658_v7 = vpop.f32.mrf.mxu0 }
 0x233   :  { %2646 = vmatpush.msra.mxu0 %v64_v8  ;;  %2666 = vmatpush.msra.mxu1 %v144_v9  ;;  %v559_v8 = vld [vmem:[%s7529_s1 + $0x10b0] sm:$0xff] }
 0x234   :  { %2686 = vmatpush.msra.mxu2 %v224_v10  ;;  %2706 = vmatpush.msra.mxu3 %v304_v11  ;;  %v639_v9 = vld [vmem:[%s7529_s1 + $0x1330] sm:$0xff]  ;;  %v394_v10 = vld [vmem:[%s7529_s1 + $0xb88] sm:$0xff] }
 0x235   :  { %2647 = vmatpush.msra.mxu0 %v59_v12  ;;  %2667 = vmatpush.msra.mxu1 %v139_v13  ;;  %v474_v11 = vld [vmem:[%s7529_s1 + $0xe08] sm:$0xff] }
 0x236   :  { %2687 = vmatpush.msra.mxu2 %v219_v14  ;;  %2707 = vmatpush.msra.mxu3 %v299_v15  ;;  %v554_v12 = vld [vmem:[%s7529_s1 + $0x1088] sm:$0xff]  ;;  %v389_v14 = vld [vmem:[%s7529_s1 + $0xb60] sm:$0xff] }
 0x237   :  { %2648 = vmatpush.msra.mxu0 %v54_v16  ;;  %2668 = vmatpush.msra.mxu1 %v134_v17  ;;  %v634_v13 = vld [vmem:[%s7529_s1 + $0x1308] sm:$0xff]  ;;  %v469_v15 = vld [vmem:[%s7529_s1 + $0xde0] sm:$0xff]  ;;  %v6684_v16 = vpop.f32.mrf.mxu1 }
 0x238   :  { %2688 = vmatpush.msra.mxu2 %v214_v18  ;;  %2708 = vmatpush.msra.mxu3 %v294_v19  ;;  %v549_v17 = vld [vmem:[%s7529_s1 + $0x1060] sm:$0xff]  ;;  %v384_v19 = vld [vmem:[%s7529_s1 + $0xb38] sm:$0xff] }
 0x239   :  { %2649 = vmatpush.msra.mxu0 %v49_v20  ;;  %2669 = vmatpush.msra.mxu1 %v129_v21  ;;  %v629_v18 = vld [vmem:[%s7529_s1 + $0x12e0] sm:$0xff]  ;;  %v464_v20 = vld [vmem:[%s7529_s1 + $0xdb8] sm:$0xff] }
 0x23a   :  { %2689 = vmatpush.msra.mxu2 %v209_v22  ;;  %2709 = vmatpush.msra.mxu3 %v289_v23  ;;  %v544_v21 = vld [vmem:[%s7529_s1 + $0x1038] sm:$0xff]  ;;  %v379_v23 = vld [vmem:[%s7529_s1 + $0xb10] sm:$0xff] }
 0x23b   :  { %2650 = vmatpush.msra.mxu0 %v44_v24  ;;  %2670 = vmatpush.msra.mxu1 %v124_v25  ;;  %v624_v22 = vld [vmem:[%s7529_s1 + $0x12b8] sm:$0xff]  ;;  %v459_v24 = vld [vmem:[%s7529_s1 + $0xd90] sm:$0xff]  ;;  %v6710_v25 = vpop.f32.mrf.mxu2 }
 0x23c   :  { %2690 = vmatpush.msra.mxu2 %v204_v26  ;;  %2710 = vmatpush.msra.mxu3 %v284_v27  ;;  %v539_v26 = vld [vmem:[%s7529_s1 + $0x1010] sm:$0xff] }
 0x23d   :  { %2651 = vmatpush.msra.mxu0 %v39_v28  ;;  %2671 = vmatpush.msra.mxu1 %v119_v29  ;;  %v619_v27 = vld [vmem:[%s7529_s1 + $0x1290] sm:$0xff]  ;;  %v374_v28 = vld [vmem:[%s7529_s1 + $0xae8] sm:$0xff] }
 0x23e   :  { %2691 = vmatpush.msra.mxu2 %v199_v30  ;;  %2711 = vmatpush.msra.mxu3 %v279_v31  ;;  %v454_v29 = vld [vmem:[%s7529_s1 + $0xd68] sm:$0xff]  ;;  %v6724_v30 = vpop.f32.mrf.mxu0 }
 0x23f   :  { %2652 = vmatpush.msra.mxu0 %v34_v32  ;;  %2672 = vmatpush.msra.mxu1 %v114_v34  ;;  %v534_v31 = vld [vmem:[%s7529_s1 + $0xfe8] sm:$0xff]  ;;  %v369_v34 = vld [vmem:[%s7529_s1 + $0xac0] sm:$0xff] }
 0x240   :  { %2692 = vmatpush.msra.mxu2 %v194_v35  ;;  %2712 = vmatpush.msra.mxu3 %v274_v33  ;;  %v614_v32 = vld [vmem:[%s7529_s1 + $0x1268] sm:$0xff]  ;;  %v449_v35 = vld [vmem:[%s7529_s1 + $0xd40] sm:$0xff]  ;;  %v6738_v33 = vpop.f32.mrf.mxu3 }
 0x241   :  { %2653 = vmatpush.msra.mxu0 %v29_v36  ;;  %2673 = vmatpush.msra.mxu1 %v109_v37  ;;  %v529_v36 = vld [vmem:[%s7529_s1 + $0xfc0] sm:$0xff] }
 0x242   :  { %2693 = vmatpush.msra.mxu2 %v189_v38  ;;  %2713 = vmatpush.msra.mxu3 %v269_v39  ;;  %v609_v37 = vld [vmem:[%s7529_s1 + $0x1240] sm:$0xff]  ;;  %v364_v38 = vld [vmem:[%s7529_s1 + $0xa98] sm:$0xff] }
 0x243   :  { %2718 = vmatpush.msrb.mxu0 %v424_v40  ;;  %2738 = vmatpush.msrb.mxu1 %v504_v41  ;;  %v444_v39 = vld [vmem:[%s7529_s1 + $0xd18] sm:$0xff]  ;;  %v6752_v40 = vpop.f32.mrf.mxu1 }
 0x244   :  { %2758 = vmatpush.msrb.mxu2 %v584_v42  ;;  %2778 = vmatpush.msrb.mxu3 %v664_v43  ;;  %v524_v41 = vld [vmem:[%s7529_s1 + $0xf98] sm:$0xff]  ;;  %v359_v43 = vld [vmem:[%s7529_s1 + $0xa70] sm:$0xff] }
 0x245   :  { %2719 = vmatpush.msrb.mxu0 %v419_v44  ;;  %2739 = vmatpush.msrb.mxu1 %v499_v45  ;;  %v604_v42 = vld [vmem:[%s7529_s1 + $0x1218] sm:$0xff]  ;;  %v439_v44 = vld [vmem:[%s7529_s1 + $0xcf0] sm:$0xff] }
 0x246   :  { %2759 = vmatpush.msrb.mxu2 %v579_v46  ;;  %2779 = vmatpush.msrb.mxu3 %v659_v47  ;;  %v519_v45 = vld [vmem:[%s7529_s1 + $0xf70] sm:$0xff]  ;;  %v354_v47 = vld [vmem:[%s7529_s1 + $0xa48] sm:$0xff] }
 0x247   :  { %2720 = vmatpush.msrb.mxu0 %v414_v52  ;;  %2740 = vmatpush.msrb.mxu1 %v494_v53  ;;  %v599_v46 = vld [vmem:[%s7529_s1 + $0x11f0] sm:$0xff]  ;;  %v434_v52 = vld [vmem:[%s7529_s1 + $0xcc8] sm:$0xff]  ;;  %v6778_v53 = vpop.f32.mrf.mxu2 }
 0x248   :  { %2760 = vmatpush.msrb.mxu2 %v574_v54  ;;  %2780 = vmatpush.msrb.mxu3 %v654_v55  ;;  %v6780_v54 = vpop.f32.mrf.mxu0  ;;  %v514_v55 = vld [vmem:[%s7529_s1 + $0xf48] sm:$0xff] }
 0x249   :  { %2721 = vmatpush.msrb.mxu0 %v409_v56  ;;  %2741 = vmatpush.msrb.mxu1 %v489_v58  ;;  %v594_v56 = vld [vmem:[%s7529_s1 + $0x11c8] sm:$0xff]  ;;  %v349_v58 = vld [vmem:[%s7529_s1 + $0xa20] sm:$0xff] }
 0x24a   :  { %2761 = vmatpush.msrb.mxu2 %v569_v59  ;;  %2781 = vmatpush.msrb.mxu3 %v649_v60  ;;  %v429_v59 = vld [vmem:[%s7529_s1 + $0xca0] sm:$0xff] }
 0x24b   :  { %2722 = vmatpush.msrb.mxu0 %v404_v61  ;;  %2742 = vmatpush.msrb.mxu1 %v484_v62  ;;  %v509_v60 = vld [vmem:[%s7529_s1 + $0xf20] sm:$0xff]  ;;  %v6800_v62 = vpop.f32.mrf.mxu3 }
 0x24c   :  { %2762 = vmatpush.msrb.mxu2 %v564_v63  ;;  %2782 = vmatpush.msrb.mxu3 %v644_v4  ;;  %v589_v61 = vld [vmem:[%s7529_s1 + $0x11a0] sm:$0xff]  ;;  %v6802_v63 = vpop.f32.mrf.mxu1  ;;  %v744_v4 = vld [vmem:[%s7529_s1 + $0x1678] sm:$0xff] }
 0x24d   :  { %2723 = vmatpush.msrb.mxu0 %v399_v5  ;;  %2743 = vmatpush.msrb.mxu1 %v479_v6  ;;  %v824_v5 = vld [vmem:[%s7529_s1 + $0x18f8] sm:$0xff] }
 0x24e   :  { %2763 = vmatpush.msrb.mxu2 %v559_v8  ;;  %2783 = vmatpush.msrb.mxu3 %v639_v9  ;;  %v904_v6 = vld [vmem:[%s7529_s1 + $0x1b78] sm:$0xff]  ;;  %v739_v9 = vld [vmem:[%s7529_s1 + $0x1650] sm:$0xff] }
 0x24f   :  { %2724 = vmatpush.msrb.mxu0 %v394_v10  ;;  %2744 = vmatpush.msrb.mxu1 %v474_v11  ;;  %v984_v8 = vld [vmem:[%s7529_s1 + $0x1df8] sm:$0xff]  ;;  %v734_v11 = vld [vmem:[%s7529_s1 + $0x1628] sm:$0xff] }
 0x250   :  { %2764 = vmatpush.msrb.mxu2 %v554_v12  ;;  %2784 = vmatpush.msrb.mxu3 %v634_v13  ;;  %v6828_v10 = vpop.f32.mrf.mxu0  ;;  %v814_v12 = vld [vmem:[%s7529_s1 + $0x18a8] sm:$0xff] }
 0x251   :  { %2725 = vmatpush.msrb.mxu0 %v389_v14  ;;  %2745 = vmatpush.msrb.mxu1 %v469_v15  ;;  %v894_v13 = vld [vmem:[%s7529_s1 + $0x1b28] sm:$0xff]  ;;  %v729_v15 = vld [vmem:[%s7529_s1 + $0x1600] sm:$0xff] }
 0x252   :  { %2765 = vmatpush.msrb.mxu2 %v549_v17  ;;  %2785 = vmatpush.msrb.mxu3 %v629_v18  ;;  %v974_v14 = vld [vmem:[%s7529_s1 + $0x1da8] sm:$0xff]  ;;  %v809_v17 = vld [vmem:[%s7529_s1 + $0x1880] sm:$0xff] }
 0x253   :  { %2726 = vmatpush.msrb.mxu0 %v384_v19  ;;  %2746 = vmatpush.msrb.mxu1 %v464_v20  ;;  %v6854_v18 = vpop.f32.mrf.mxu3  ;;  %v889_v20 = vld [vmem:[%s7529_s1 + $0x1b00] sm:$0xff] }
 0x254   :  { %2766 = vmatpush.msrb.mxu2 %v544_v21  ;;  %2786 = vmatpush.msrb.mxu3 %v624_v22  ;;  %v6856_v19 = vpop.f32.mrf.mxu1  ;;  %v969_v21 = vld [vmem:[%s7529_s1 + $0x1d80] sm:$0xff]  ;;  %v724_v22 = vld [vmem:[%s7529_s1 + $0x15d8] sm:$0xff] }
 0x255   :  { %2727 = vmatpush.msrb.mxu0 %v379_v23  ;;  %2747 = vmatpush.msrb.mxu1 %v459_v24  ;;  %v804_v23 = vld [vmem:[%s7529_s1 + $0x1858] sm:$0xff] }
 0x256   :  { %2767 = vmatpush.msrb.mxu2 %v539_v26  ;;  %2787 = vmatpush.msrb.mxu3 %v619_v27  ;;  %v884_v24 = vld [vmem:[%s7529_s1 + $0x1ad8] sm:$0xff] }
 0x257   :  { %2728 = vmatpush.msrb.mxu0 %v374_v28  ;;  %2748 = vmatpush.msrb.mxu1 %v454_v29  ;;  %v964_v26 = vld [vmem:[%s7529_s1 + $0x1d58] sm:$0xff]  ;;  %v719_v29 = vld [vmem:[%s7529_s1 + $0x15b0] sm:$0xff] }
 0x258   :  { %2768 = vmatpush.msrb.mxu2 %v534_v31  ;;  %2788 = vmatpush.msrb.mxu3 %v614_v32  ;;  %v6878_v28 = vpop.f32.mrf.mxu0  ;;  %v799_v31 = vld [vmem:[%s7529_s1 + $0x1830] sm:$0xff] }
 0x259   :  { %2729 = vmatpush.msrb.mxu0 %v369_v34  ;;  %2749 = vmatpush.msrb.mxu1 %v449_v35  ;;  %v879_v32 = vld [vmem:[%s7529_s1 + $0x1ab0] sm:$0xff]  ;;  %v714_v34 = vld [vmem:[%s7529_s1 + $0x1588] sm:$0xff] }
 0x25a   :  { %2769 = vmatpush.msrb.mxu2 %v529_v36  ;;  %2789 = vmatpush.msrb.mxu3 %v609_v37  ;;  %v794_v35 = vld [vmem:[%s7529_s1 + $0x1808] sm:$0xff] }
 0x25b   :  { %2730 = vmatpush.msrb.mxu0 %v364_v38  ;;  %2750 = vmatpush.msrb.mxu1 %v444_v39  ;;  %v6901_v36 = vpop.f32.mrf.mxu3  ;;  %v709_v38 = vld [vmem:[%s7529_s1 + $0x1560] sm:$0xff] }
 0x25c   :  { %2770 = vmatpush.msrb.mxu2 %v524_v41  ;;  %2790 = vmatpush.msrb.mxu3 %v604_v42  ;;  %v6903_v37 = vpop.f32.mrf.mxu1  ;;  %v789_v39 = vld [vmem:[%s7529_s1 + $0x17e0] sm:$0xff] }
 0x25d   :  { %2731 = vmatpush.msrb.mxu0 %v359_v43  ;;  %2751 = vmatpush.msrb.mxu1 %v439_v44  ;;  %v869_v41 = vld [vmem:[%s7529_s1 + $0x1a60] sm:$0xff]  ;;  %v784_v43 = vld [vmem:[%s7529_s1 + $0x17b8] sm:$0xff] }
 0x25e   :  { %2771 = vmatpush.msrb.mxu2 %v519_v45  ;;  %2791 = vmatpush.msrb.mxu3 %v599_v46  ;;  %v949_v42 = vld [vmem:[%s7529_s1 + $0x1ce0] sm:$0xff]  ;;  %v864_v45 = vld [vmem:[%s7529_s1 + $0x1a38] sm:$0xff] }
 0x25f   :  { %2732 = vmatpush.msrb.mxu0 %v354_v47  ;;  %2752 = vmatpush.msrb.mxu1 %v434_v52  ;;  %v944_v46 = vld [vmem:[%s7529_s1 + $0x1cb8] sm:$0xff]  ;;  %v699_v47 = vld [vmem:[%s7529_s1 + $0x1510] sm:$0xff] }
 0x260   :  { %2772 = vmatpush.msrb.mxu2 %v514_v55  ;;  %2792 = vmatpush.msrb.mxu3 %v594_v56  ;;  %v779_v52 = vld [vmem:[%s7529_s1 + $0x1790] sm:$0xff]  ;;  %v6944_v55 = vpop.f32.mrf.mxu0 }
 0x261   :  { %2733 = vmatpush.msrb.mxu0 %v349_v58  ;;  %2753 = vmatpush.msrb.mxu1 %v429_v59  ;;  %v859_v56 = vld [vmem:[%s7529_s1 + $0x1a10] sm:$0xff]  ;;  %v694_v59 = vld [vmem:[%s7529_s1 + $0x14e8] sm:$0xff] }
 0x262   :  { %2773 = vmatpush.msrb.mxu2 %v509_v60  ;;  %2793 = vmatpush.msrb.mxu3 %v589_v61  ;;  %v939_v58 = vld [vmem:[%s7529_s1 + $0x1c90] sm:$0xff]  ;;  %v774_v60 = vld [vmem:[%s7529_s1 + $0x1768] sm:$0xff] }
 0x263   :  { %2654 = vmatmul.f32.vlgmr.msra.gmra.mxu0 %v3593_v48  ;;  %2674 = vmatmul.f32.vlgmr.msra.gmra.mxu1 %v3595_v49  ;;  %v819_v48 = vld [vmem:[%s7529_s1 + $0x18d0] sm:$0xff]  ;;  %v6826_v49 = vpop.f32.mrf.mxu2  ;;  %v6958_v61 = vpop.f32.mrf.mxu3 }
 0x264   :  { %2694 = vmatmul.f32.vlgmr.msra.gmra.mxu2 %v3597_v50  ;;  %2714 = vmatmul.f32.vlgmr.msra.gmra.mxu3 %v3599_v51  ;;  %v899_v50 = vld [vmem:[%s7529_s1 + $0x1b50] sm:$0xff] }
 0x265   :  { %2798 = vmatpush.msra.mxu0 %v744_v4  ;;  %2818 = vmatpush.msra.mxu1 %v824_v5  ;;  %v979_v51 = vld [vmem:[%s7529_s1 + $0x1dd0] sm:$0xff]  ;;  %v854_v4 = vld [vmem:[%s7529_s1 + $0x19e8] sm:$0xff] }
 0x266   :  { %2838 = vmatpush.msra.mxu2 %v904_v6  ;;  %2858 = vmatpush.msra.mxu3 %v984_v8  ;;  %v934_v5 = vld [vmem:[%s7529_s1 + $0x1c68] sm:$0xff]  ;;  %v689_v6 = vld [vmem:[%s7529_s1 + $0x14c0] sm:$0xff] }
 0x267   :  { %2799 = vmatpush.msra.mxu0 %v739_v9  ;;  %2819 = vmatpush.msra.mxu1 %v819_v48  ;;  %v769_v8 = vld [vmem:[%s7529_s1 + $0x1740] sm:$0xff]  ;;  %v6972_v9 = vpop.f32.mrf.mxu1 }
 0x268   :  { %2839 = vmatpush.msra.mxu2 %v899_v50  ;;  %2859 = vmatpush.msra.mxu3 %v979_v51  ;;  %v849_v48 = vld [vmem:[%s7529_s1 + $0x19c0] sm:$0xff]  ;;  %v684_v51 = vld [vmem:[%s7529_s1 + $0x1498] sm:$0xff] }
 0x269   :  { %2800 = vmatpush.msra.mxu0 %v734_v11  ;;  %2820 = vmatpush.msra.mxu1 %v814_v12  ;;  %v929_v50 = vld [vmem:[%s7529_s1 + $0x1c40] sm:$0xff]  ;;  %v764_v11 = vld [vmem:[%s7529_s1 + $0x1718] sm:$0xff] }
 0x26a   :  { %2840 = vmatpush.msra.mxu2 %v894_v13  ;;  %2860 = vmatpush.msra.mxu3 %v974_v14  ;;  %v844_v12 = vld [vmem:[%s7529_s1 + $0x1998] sm:$0xff]  ;;  %v679_v14 = vld [vmem:[%s7529_s1 + $0x1470] sm:$0xff] }
 0x26b   :  { %2801 = vmatpush.msra.mxu0 %v729_v15  ;;  %2821 = vmatpush.msra.mxu1 %v809_v17  ;;  %v6876_v27 = vpop.f32.mrf.mxu2  ;;  %v924_v13 = vld [vmem:[%s7529_s1 + $0x1c18] sm:$0xff]  ;;  %v759_v15 = vld [vmem:[%s7529_s1 + $0x16f0] sm:$0xff] }
 0x26c   :  { %2841 = vmatpush.msra.mxu2 %v889_v20  ;;  %2861 = vmatpush.msra.mxu3 %v969_v21  ;;  %v7000_v20 = vpop.f32.mrf.mxu0  ;;  %v839_v21 = vld [vmem:[%s7529_s1 + $0x1970] sm:$0xff] }
 0x26d   :  { %2774 = vmatmul.f32.vlgmr.msrb.gmra.mxu2 %v3637_v0  ;;  %2802 = vmatpush.msra.mxu0 %v724_v22  ;;  %v959_v0 = vld [vmem:[%s7529_s1 + $0x1d30] sm:$0xff] }
 0x26e   :  { %2822 = vmatpush.msra.mxu1 %v804_v23  ;;  %2842 = vmatpush.msra.mxu2 %v884_v24  ;;  %v919_v22 = vld [vmem:[%s7529_s1 + $0x1bf0] sm:$0xff]  ;;  %v674_v23 = vld [vmem:[%s7529_s1 + $0x1448] sm:$0xff] }
 0x26f   :  { %2862 = vmatpush.msra.mxu3 %v964_v26  ;;  %2734 = vmatmul.f32.vlgmr.msrb.gmra.mxu0 %v3639_v1  ;;  %v874_v1 = vld [vmem:[%s7529_s1 + $0x1a88] sm:$0xff] }
 0x270   :  { %2794 = vmatmul.f32.vlgmr.msrb.gmra.mxu3 %v3641_v2  ;;  %2803 = vmatpush.msra.mxu0 %v719_v29  ;;  %v954_v2 = vld [vmem:[%s7529_s1 + $0x1d08] sm:$0xff] }
 0x271   :  { %2823 = vmatpush.msra.mxu1 %v799_v31  ;;  %2843 = vmatpush.msra.mxu2 %v879_v32  ;;  %v754_v24 = vld [vmem:[%s7529_s1 + $0x16c8] sm:$0xff]  ;;  %v669_v31 = vld [vmem:[%s7529_s1 + $0x1420] sm:$0xff] }
 0x272   :  { %2863 = vmatpush.msra.mxu3 %v959_v0  ;;  %2754 = vmatmul.f32.vlgmr.msrb.gmra.mxu1 %v3643_v3  ;;  %v704_v3 = vld [vmem:[%s7529_s1 + $0x1538] sm:$0xff]  ;;  %v834_v26 = vld [vmem:[%s7529_s1 + $0x1948] sm:$0xff]  ;;  %v749_v32 = vld [vmem:[%s7529_s1 + $0x16a0] sm:$0xff]  ;;  %v7026_v0 = vpop.f32.mrf.mxu3 }
 0x273   :  { %2804 = vmatpush.msra.mxu0 %v714_v34  ;;  %2824 = vmatpush.msra.mxu1 %v794_v35  ;;  %v6930_v44 = vpop.f32.mrf.mxu2  ;;  %v914_v29 = vld [vmem:[%s7529_s1 + $0x1bc8] sm:$0xff]  ;;  %v7028_v34 = vpop.f32.mrf.mxu1  ;;  %v829_v35 = vld [vmem:[%s7529_s1 + $0x1920] sm:$0xff] }
 0x274   :  { %2844 = vmatpush.msra.mxu2 %v874_v1  ;;  %2864 = vmatpush.msra.mxu3 %v954_v2  ;;  %v909_v1 = vld [vmem:[%s7529_s1 + $0x1ba0] sm:$0xff]  ;;  %v1064_v2 = vld [vmem:[%s7529_s1 + $0x2078] sm:$0xff] }
 0x275   :  { %2805 = vmatpush.msra.mxu0 %v709_v38  ;;  %2825 = vmatpush.msra.mxu1 %v789_v39  ;;  %v1144_v38 = vld [vmem:[%s7529_s1 + $0x22f8] sm:$0xff] }
 0x276   :  { %2845 = vmatpush.msra.mxu2 %v869_v41  ;;  %2865 = vmatpush.msra.mxu3 %v949_v42  ;;  %v1224_v39 = vld [vmem:[%s7529_s1 + $0x2578] sm:$0xff] }
 0x277   :  { %2806 = vmatpush.msra.mxu0 %v704_v3  ;;  %2826 = vmatpush.msra.mxu1 %v784_v43  ;;  %v1304_v41 = vld [vmem:[%s7529_s1 + $0x27f8] sm:$0xff]  ;;  %v7050_v3 = vpop.f32.mrf.mxu0  ;;  %v3191_v43 = vld.sshfl [vmem:[#allocation1] sm:$0xff pattern:$0x73625140] }
 0x278   :  { %2846 = vmatpush.msra.mxu2 %v864_v45  ;;  %2866 = vmatpush.msra.mxu3 %v944_v46  ;;  %v3192_v45 = vld.sshfl [vmem:[#allocation1 + $0x10] sm:$0xff pattern:$0x73625140] }
 0x279   :  { %2807 = vmatpush.msra.mxu0 %v699_v47  ;;  %2827 = vmatpush.msra.mxu1 %v779_v52  ;;  %v1059_v46 = vld [vmem:[%s7529_s1 + $0x2050] sm:$0xff] }
 0x27a   :  { %2847 = vmatpush.msra.mxu2 %v859_v56  ;;  %2867 = vmatpush.msra.mxu3 %v939_v58  ;;  %v1139_v47 = vld [vmem:[%s7529_s1 + $0x22d0] sm:$0xff]  ;;  %v3193_v58 = vld.sshfl [vmem:[#allocation1 + $0x8] sm:$0xff pattern:$0x73625140] }
 0x27b   :  { %2808 = vmatpush.msra.mxu0 %v694_v59  ;;  %2828 = vmatpush.msra.mxu1 %v774_v60  ;;  %v6998_v17 = vpop.f32.mrf.mxu2  ;;  %v1219_v52 = vld [vmem:[%s7529_s1 + $0x2550] sm:$0xff]  ;;  %v3194_v59 = vld.sshfl [vmem:[#allocation1 + $0x18] sm:$0xff pattern:$0x73625140]  ;;  %v1054_v60 = vld [vmem:[%s7529_s1 + $0x2028] sm:$0xff] }
 0x27c   :  { %2848 = vmatpush.msra.mxu2 %v854_v4  ;;  %2868 = vmatpush.msra.mxu3 %v934_v5  ;;  %v1299_v56 = vld [vmem:[%s7529_s1 + $0x27d0] sm:$0xff]  ;;  %v1134_v4 = vld [vmem:[%s7529_s1 + $0x22a8] sm:$0xff]  ;;  %v7070_v5 = vpop.f32.mrf.mxu3 }
 0x27d   :  { %2809 = vmatpush.msra.mxu0 %v689_v6  ;;  %2829 = vmatpush.msra.mxu1 %v769_v8  ;;  %v7072_v6 = vpop.f32.mrf.mxu1  ;;  %v1214_v8 = vld [vmem:[%s7529_s1 + $0x2528] sm:$0xff] }
 0x27e   :  { %2849 = vmatpush.msra.mxu2 %v849_v48  ;;  %2869 = vmatpush.msra.mxu3 %v929_v50  ;;  %v1294_v48 = vld [vmem:[%s7529_s1 + $0x27a8] sm:$0xff]  ;;  %v1049_v50 = vld [vmem:[%s7529_s1 + $0x2000] sm:$0xff] }
 0x27f   :  { %2810 = vmatpush.msra.mxu0 %v684_v51  ;;  %2830 = vmatpush.msra.mxu1 %v764_v11  ;;  %v1129_v51 = vld [vmem:[%s7529_s1 + $0x2280] sm:$0xff] }
 0x280   :  { %2850 = vmatpush.msra.mxu2 %v844_v12  ;;  %2870 = vmatpush.msra.mxu3 %v924_v13  ;;  %v7089_v11 = vld [vmem:[%s7530_s2] sm:$0x1f] }
 0x281   :  { %2811 = vmatpush.msra.mxu0 %v679_v14  ;;  %2831 = vmatpush.msra.mxu1 %v759_v15  ;;  %v1308_v12 = vperm.slane %v7089_v11, 1  ;;  %v1209_v13 = vld [vmem:[%s7529_s1 + $0x2500] sm:$0xff]  ;;  %v1309_v15 = vperm.slane %v7089_v11, 2 }
 0x282   :  { %2851 = vmatpush.msra.mxu2 %v839_v21  ;;  %2871 = vmatpush.msra.mxu3 %v919_v22  ;;  %v1289_v14 = vld [vmem:[%s7529_s1 + $0x2780] sm:$0xff]  ;;  %v1310_v21 = vperm.slane %v7089_v11, 3  ;;  %v1044_v22 = vld [vmem:[%s7529_s1 + $0x1fd8] sm:$0xff] }
 0x283   :  { %2812 = vmatpush.msra.mxu0 %v674_v23  ;;  %2832 = vmatpush.msra.mxu1 %v754_v24  ;;  %v7048_v42 = vpop.f32.mrf.mxu2  ;;  %v1124_v23 = vld [vmem:[%s7529_s1 + $0x2258] sm:$0xff] }
 0x284   :  { %2852 = vmatpush.msra.mxu2 %v834_v26  ;;  %2872 = vmatpush.msra.mxu3 %v914_v29  ;;  %v2335_v26 = vpop.f32.mrf.mxu0  ;;  %v1204_v29 = vld [vmem:[%s7529_s1 + $0x24d8] sm:$0xff] }
 0x285   :  { %2813 = vmatpush.msra.mxu0 %v669_v31  ;;  %2833 = vmatpush.msra.mxu1 %v749_v32  ;;  %v1284_v31 = vld [vmem:[%s7529_s1 + $0x2758] sm:$0xff]  ;;  %v1039_v32 = vld [vmem:[%s7529_s1 + $0x1fb0] sm:$0xff] }
 0x286   :  { %2853 = vmatpush.msra.mxu2 %v829_v35  ;;  %2873 = vmatpush.msra.mxu3 %v909_v1  ;;  %v1119_v35 = vld [vmem:[%s7529_s1 + $0x2230] sm:$0xff]  ;;  %v1696_v1 = vadd.f32 %v6658_v7, %v1308_v12  ;;  %v1114_v7 = vld [vmem:[%s7529_s1 + $0x2208] sm:$0xff] }
 0x287   :  { %2814 = vmatmul.f32.vlgmr.msra.gmra.mxu0 %v3191_v43  ;;  %2854 = vmatmul.f32.vlgmr.msra.gmra.mxu2 %v3192_v45  ;;  %v1034_v43 = vld [vmem:[%s7529_s1 + $0x1f88] sm:$0xff]  ;;  %v7134_v45 = vpop.f32.mrf.mxu3  ;;  %v1019_v12 = vld [vmem:[%s7529_s1 + $0x1f10] sm:$0xff] }
 0x288   :  { %2878 = vmatpush.msrb.mxu0 %v1064_v2  ;;  %2898 = vmatpush.msrb.mxu1 %v1144_v38  ;;  %v1199_v2 = vld [vmem:[%s7529_s1 + $0x24b0] sm:$0xff] }
 0x289   :  { %2918 = vmatpush.msrb.mxu2 %v1224_v39  ;;  %2938 = vmatpush.msrb.mxu3 %v1304_v41  ;;  %v1279_v38 = vld [vmem:[%s7529_s1 + $0x2730] sm:$0xff]  ;;  %v2016_v39 = vadd.f32 %v6878_v28, %v1309_v15  ;;  %v2336_v41 = vadd.f32 %v2335_v26, %v1310_v21  ;;  %v1194_v28 = vld [vmem:[%s7529_s1 + $0x2488] sm:$0xff] }
 0x28a   :  { %2834 = vmatmul.f32.vlgmr.msra.gmra.mxu1 %v3193_v58  ;;  %2874 = vmatmul.f32.vlgmr.msra.gmra.mxu3 %v3194_v59  ;;  %v1716_v58 = vadd.f32 %v6684_v16, %v1696_v1  ;;  %v1189_v59 = vld [vmem:[%s7529_s1 + $0x2460] sm:$0xff]  ;;  %v1104_v16 = vld [vmem:[%s7529_s1 + $0x21b8] sm:$0xff]  ;;  %v1179_v15 = vld [vmem:[%s7529_s1 + $0x2410] sm:$0xff] }
 0x28b   :  { %2879 = vmatpush.msrb.mxu0 %v1059_v46  ;;  %2899 = vmatpush.msrb.mxu1 %v1139_v47  ;;  %v7106_v24 = vpop.f32.mrf.mxu2  ;;  %v2355_v46 = vpop.f32.mrf.mxu1  ;;  %v1274_v47 = vld [vmem:[%s7529_s1 + $0x2708] sm:$0xff]  ;;  %v1259_v21 = vld [vmem:[%s7529_s1 + $0x2690] sm:$0xff] }
 0x28c   :  { %2919 = vmatpush.msrb.mxu2 %v1219_v52  ;;  %2939 = vmatpush.msrb.mxu3 %v1299_v56  ;;  %v1029_v52 = vld [vmem:[%s7529_s1 + $0x1f60] sm:$0xff]  ;;  %v1014_v26 = vld [vmem:[%s7529_s1 + $0x1ee8] sm:$0xff] }
 0x28d   :  { %2880 = vmatpush.msrb.mxu0 %v1054_v60  ;;  %2900 = vmatpush.msrb.mxu1 %v1134_v4  ;;  %v1109_v56 = vld [vmem:[%s7529_s1 + $0x21e0] sm:$0xff]  ;;  %v2036_v4 = vadd.f32 %v6903_v37, %v2016_v39  ;;  %v1264_v37 = vld [vmem:[%s7529_s1 + $0x26b8] sm:$0xff] }
 0x28e   :  { %2920 = vmatpush.msrb.mxu2 %v1214_v8  ;;  %2940 = vmatpush.msrb.mxu3 %v1294_v48  ;;  %v1269_v60 = vld [vmem:[%s7529_s1 + $0x26e0] sm:$0xff]  ;;  %v2356_v8 = vadd.f32 %v2355_v46, %v2336_v41  ;;  %v1024_v48 = vld [vmem:[%s7529_s1 + $0x1f38] sm:$0xff] }
 0x28f   :  { %2881 = vmatpush.msrb.mxu0 %v1049_v50  ;;  %2901 = vmatpush.msrb.mxu1 %v1129_v51  ;;  %v1184_v51 = vld [vmem:[%s7529_s1 + $0x2438] sm:$0xff] }
 0x290   :  { %2921 = vmatpush.msrb.mxu2 %v1209_v13  ;;  %2941 = vmatpush.msrb.mxu3 %v1289_v14  ;;  %v1099_v13 = vld [vmem:[%s7529_s1 + $0x2190] sm:$0xff]  ;;  %v1736_v14 = vadd.f32 %v6710_v25, %v1716_v58  ;;  %v1094_v25 = vld [vmem:[%s7529_s1 + $0x2168] sm:$0xff]  ;;  %v1164_v46 = vld [vmem:[%s7529_s1 + $0x2398] sm:$0xff] }
 0x291   :  { %2882 = vmatpush.msrb.mxu0 %v1044_v22  ;;  %2902 = vmatpush.msrb.mxu1 %v1124_v23  ;;  %v2056_v22 = vadd.f32 %v6930_v44, %v2036_v4  ;;  %v1254_v44 = vld [vmem:[%s7529_s1 + $0x2668] sm:$0xff]  ;;  %v1239_v58 = vld [vmem:[%s7529_s1 + $0x25f0] sm:$0xff] }
 0x292   :  { %2922 = vmatpush.msrb.mxu2 %v1204_v29  ;;  %2942 = vmatpush.msrb.mxu3 %v1284_v31  ;;  %v2395_v29 = vpop.f32.mrf.mxu3  ;;  %v1174_v31 = vld [vmem:[%s7529_s1 + $0x23e8] sm:$0xff]  ;;  %v1756_v1 = vadd.f32 %v6738_v33, %v1736_v14  ;;  %v1084_v33 = vld [vmem:[%s7529_s1 + $0x2118] sm:$0xff] }
 0x293   :  { %2883 = vmatpush.msrb.mxu0 %v1039_v32  ;;  %2903 = vmatpush.msrb.mxu1 %v1119_v35  ;;  %v2375_v50 = vpop.f32.mrf.mxu2  ;;  %v1009_v32 = vld [vmem:[%s7529_s1 + $0x1ec0] sm:$0xff]  ;;  %v2076_v39 = vadd.f32 %v6958_v61, %v2056_v22  ;;  %v1244_v61 = vld [vmem:[%s7529_s1 + $0x2618] sm:$0xff]  ;;  %v994_v4 = vld [vmem:[%s7529_s1 + $0x1e48] sm:$0xff] }
 0x294   :  { %2923 = vmatpush.msrb.mxu2 %v1199_v2  ;;  %2943 = vmatpush.msrb.mxu3 %v1279_v38  ;;  %v2376_v23 = vadd.f32 %v2375_v50, %v2356_v8  ;;  %v1089_v35 = vld [vmem:[%s7529_s1 + $0x2140] sm:$0xff]  ;;  %v2435_v8 = vpop.f32.mrf.mxu1  ;;  %v3026_v22 = vld [vmem:[%s7531_s3 + $0x1f8] sm:$0xff] }
 0x295   :  { %2884 = vmatpush.msrb.mxu0 %v1034_v43  ;;  %2904 = vmatpush.msrb.mxu1 %v1114_v7  ;;  %v1169_v2 = vld [vmem:[%s7529_s1 + $0x23c0] sm:$0xff]  ;;  %v1004_v43 = vld [vmem:[%s7529_s1 + $0x1e98] sm:$0xff]  ;;  %v2415_v7 = vpop.f32.mrf.mxu0 }
 0x296   :  { %2924 = vmatpush.msrb.mxu2 %v1194_v28  ;;  %2944 = vmatpush.msrb.mxu3 %v1274_v47  ;;  %v1249_v38 = vld [vmem:[%s7529_s1 + $0x2640] sm:$0xff]  ;;  %v2396_v41 = vadd.f32 %v2395_v29, %v2376_v23  ;;  %v999_v28 = vld [vmem:[%s7529_s1 + $0x1e70] sm:$0xff] }
 0x297   :  { %2885 = vmatpush.msrb.mxu0 %v1029_v52  ;;  %2905 = vmatpush.msrb.mxu1 %v1109_v56  ;;  %v1079_v47 = vld [vmem:[%s7529_s1 + $0x20f0] sm:$0xff]  ;;  %v1776_v52 = vadd.f32 %v6724_v30, %v1756_v1  ;;  %v1074_v30 = vld [vmem:[%s7529_s1 + $0x20c8] sm:$0xff]  ;;  %v1069_v50 = vld [vmem:[%s7529_s1 + $0x20a0] sm:$0xff] }
 0x298   :  { %2925 = vmatpush.msrb.mxu2 %v1189_v59  ;;  %2945 = vmatpush.msrb.mxu3 %v1269_v60  ;;  %v1159_v56 = vld [vmem:[%s7529_s1 + $0x2370] sm:$0xff]  ;;  %v2096_v59 = vadd.f32 %v6944_v55, %v2076_v39  ;;  %v2416_v60 = vadd.f32 %v2415_v7, %v2396_v41  ;;  %v1234_v55 = vld [vmem:[%s7529_s1 + $0x25c8] sm:$0xff] }
 0x299   :  { %2886 = vmatpush.msrb.mxu0 %v1024_v48  ;;  %2906 = vmatpush.msrb.mxu1 %v1104_v16  ;;  %v1154_v48 = vld [vmem:[%s7529_s1 + $0x2348] sm:$0xff]  ;;  %v989_v16 = vld [vmem:[%s7529_s1 + $0x1e20] sm:$0xff] }
 0x29a   :  { %2926 = vmatpush.msrb.mxu2 %v1184_v51  ;;  %2946 = vmatpush.msrb.mxu3 %v1264_v37  ;;  %v1796_v51 = vadd.f32 %v6752_v40, %v1776_v52  ;;  %v1149_v37 = vld [vmem:[%s7529_s1 + $0x2320] sm:$0xff]  ;;  %v2436_v14 = vadd.f32 %v2435_v8, %v2416_v60  ;;  %v2978_v40 = vld [vmem:[%s7531_s3 + $0x78] sm:$0xff]  ;;  %v3198_v1 = vld.sshfl [vmem:[#allocation1 + $0x28] sm:$0xff pattern:$0x73625140] }
 0x29b   :  { %2887 = vmatpush.msrb.mxu0 %v1019_v12  ;;  %2907 = vmatpush.msrb.mxu1 %v1099_v13  ;;  %v1229_v12 = vld [vmem:[%s7529_s1 + $0x25a0] sm:$0xff]  ;;  %v2116_v13 = vadd.f32 %v6972_v9, %v2096_v59  ;;  %v3010_v9 = vld [vmem:[%s7531_s3 + $0x178] sm:$0xff]  ;;  %v2992_v39 = vld [vmem:[%s7531_s3 + $0xe8] sm:$0xff] }
 0x29c   :  { %2927 = vmatpush.msrb.mxu2 %v1179_v15  ;;  %2947 = vmatpush.msrb.mxu3 %v1259_v21  ;;  %v2455_v15 = vpop.f32.mrf.mxu2  ;;  %v2994_v21 = vld [vmem:[%s7531_s3 + $0xf8] sm:$0xff]  ;;  %v1816_v23 = vadd.f32 %v6778_v53, %v1796_v51  ;;  %v3009_v53 = vld [vmem:[%s7531_s3 + $0x170] sm:$0xff]  ;;  %v3024_v7 = vld [vmem:[%s7531_s3 + $0x1e8] sm:$0xff]  ;;  %v2515_v60 = vpop.f32.mrf.mxu1 }
 0x29d   :  { %2888 = vmatpush.msrb.mxu0 %v1014_v26  ;;  %2908 = vmatpush.msrb.mxu1 %v1094_v25  ;;  %v3196_v26 = vld.sshfl [vmem:[#allocation1 + $0x20] sm:$0xff pattern:$0x73625140]  ;;  %v3197_v25 = vld.sshfl [vmem:[#allocation1 + $0x30] sm:$0xff pattern:$0x73625140]  ;;  %v2136_v29 = vadd.f32 %v6998_v17, %v2116_v13 }
 0x29e   :  { %2928 = vmatpush.msrb.mxu2 %v1174_v31  ;;  %2948 = vmatpush.msrb.mxu3 %v1254_v44  ;;  %v2456_v31 = vadd.f32 %v2455_v15, %v2436_v14  ;;  %v2977_v44 = vld [vmem:[%s7531_s3 + $0x70] sm:$0xff]  ;;  %v1836_v41 = vadd.f32 %v6800_v62, %v1816_v23  ;;  %v2975_v62 = vld [vmem:[%s7531_s3 + $0x60] sm:$0xff]  ;;  %v2974_v59 = vld [vmem:[%s7531_s3 + $0x58] sm:$0xff] }
 0x29f   :  { %2889 = vmatpush.msrb.mxu0 %v1009_v32  ;;  %2909 = vmatpush.msrb.mxu1 %v1089_v35  ;;  %v2993_v32 = vld [vmem:[%s7531_s3 + $0xf0] sm:$0xff]  ;;  %v2475_v35 = vpop.f32.mrf.mxu3  ;;  %v3007_v52 = vld [vmem:[%s7531_s3 + $0x160] sm:$0xff]  ;;  %v3004_v14 = vld [vmem:[%s7531_s3 + $0x148] sm:$0xff] }
 0x2a0   :  { %2929 = vmatpush.msrb.mxu2 %v1169_v2  ;;  %2949 = vmatpush.msrb.mxu3 %v1249_v38  ;;  %v3025_v17 = vld [vmem:[%s7531_s3 + $0x1f0] sm:$0xff]  ;;  %v3199_v2 = vld.sshfl [vmem:[#allocation1 + $0x38] sm:$0xff pattern:$0x73625140]  ;;  %v2976_v38 = vld [vmem:[%s7531_s3 + $0x68] sm:$0xff] }
 0x2a1   :  { %2890 = vmatpush.msrb.mxu0 %v1004_v43  ;;  %2910 = vmatpush.msrb.mxu1 %v1084_v33  ;;  %v2495_v43 = vpop.f32.mrf.mxu0  ;;  %v3008_v33 = vld [vmem:[%s7531_s3 + $0x168] sm:$0xff]  ;;  %v2989_v8 = vld [vmem:[%s7531_s3 + $0xd0] sm:$0xff]  ;;  %v2970_v23 = vld [vmem:[%s7531_s3 + $0x38] sm:$0xff] }
 0x2a2   :  { %2930 = vmatpush.msrb.mxu2 %v1164_v46  ;;  %2950 = vmatpush.msrb.mxu3 %v1244_v61  ;;  %v2156_v46 = vadd.f32 %v7026_v0, %v2136_v29  ;;  %v2476_v61 = vadd.f32 %v2475_v35, %v2456_v31  ;;  %v3023_v0 = vld [vmem:[%s7531_s3 + $0x1e0] sm:$0xff]  ;;  %v3002_v31 = vld [vmem:[%s7531_s3 + $0x138] sm:$0xff] }
 0x2a3   :  { %2891 = vmatpush.msrb.mxu0 %v999_v28  ;;  %2911 = vmatpush.msrb.mxu1 %v1079_v47  ;;  %v2991_v28 = vld [vmem:[%s7531_s3 + $0xe0] sm:$0xff]  ;;  %v1856_v47 = vadd.f32 %v6780_v54, %v1836_v41  ;;  %v2990_v54 = vld [vmem:[%s7531_s3 + $0xd8] sm:$0xff] }
 0x2a4   :  { %2931 = vmatpush.msrb.mxu2 %v1159_v56  ;;  %2951 = vmatpush.msrb.mxu3 %v1239_v58  ;;  %v2176_v56 = vadd.f32 %v7000_v20, %v2156_v46  ;;  %v2496_v58 = vadd.f32 %v2495_v43, %v2476_v61  ;;  %v3022_v20 = vld [vmem:[%s7531_s3 + $0x1d8] sm:$0xff]  ;;  %v2595_v41 = vpop.f32.mrf.mxu1  ;;  %v3000_v43 = vld [vmem:[%s7531_s3 + $0x128] sm:$0xff] }
 0x2a5   :  { %2892 = vmatpush.msrb.mxu0 %v994_v4  ;;  %2912 = vmatpush.msrb.mxu1 %v1074_v30  ;;  %v3006_v4 = vld [vmem:[%s7531_s3 + $0x158] sm:$0xff]  ;;  %v2973_v30 = vld [vmem:[%s7531_s3 + $0x50] sm:$0xff] }
 0x2a6   :  { %2932 = vmatpush.msrb.mxu2 %v1154_v48  ;;  %2952 = vmatpush.msrb.mxu3 %v1234_v55  ;;  %v1876_v48 = vadd.f32 %v6802_v63, %v1856_v47  ;;  %v2535_v55 = vpop.f32.mrf.mxu2  ;;  %v2196_v51 = vadd.f32 %v7028_v34, %v2176_v56  ;;  %v2972_v63 = vld [vmem:[%s7531_s3 + $0x48] sm:$0xff] }
 0x2a7   :  { %2893 = vmatpush.msrb.mxu0 %v989_v16  ;;  %2913 = vmatpush.msrb.mxu1 %v1069_v50  ;;  %v3005_v16 = vld [vmem:[%s7531_s3 + $0x150] sm:$0xff]  ;;  %v3020_v34 = vld [vmem:[%s7531_s3 + $0x1c8] sm:$0xff] }
 0x2a8   :  { %2933 = vmatpush.msrb.mxu2 %v1149_v37  ;;  %2953 = vmatpush.msrb.mxu3 %v1229_v12  ;;  %v3021_v50 = vld [vmem:[%s7531_s3 + $0x1d0] sm:$0xff]  ;;  %v2516_v37 = vadd.f32 %v2515_v60, %v2496_v58  ;;  %v2988_v12 = vld [vmem:[%s7531_s3 + $0xc8] sm:$0xff]  ;;  %v1896_v13 = vadd.f32 %v6826_v49, %v1876_v48  ;;  %v2216_v15 = vadd.f32 %v7048_v42, %v2196_v51  ;;  %v2987_v49 = vld [vmem:[%s7531_s3 + $0xc0] sm:$0xff] }
 0x2a9   :  { %2894 = vmatmul.f32.vlgmr.msrb.gmra.mxu0 %v3196_v26  ;;  %2934 = vmatmul.f32.vlgmr.msrb.gmra.mxu2 %v3197_v25  ;;  %v3019_v42 = vld [vmem:[%s7531_s3 + $0x1c0] sm:$0xff]  ;;  %v2986_v26 = vld [vmem:[%s7531_s3 + $0xb8] sm:$0xff]  ;;  %v2575_v29 = vpop.f32.mrf.mxu0  ;;  %v2965_v60 = vld [vmem:[%s7531_s3 + $0x10] sm:$0xff] }
 0x2aa   :  { %3047 = vmatpush.msra.mxu0 %v2978_v40  ;;  %3067 = vmatpush.msra.mxu1 %v2994_v21  ;;  %v2536_v40 = vadd.f32 %v2535_v55, %v2516_v37  ;;  %v2971_v21 = vld [vmem:[%s7531_s3 + $0x40] sm:$0xff]  ;;  %v1916_v25 = vadd.f32 %v6854_v18, %v1896_v13  ;;  %v2969_v18 = vld [vmem:[%s7531_s3 + $0x30] sm:$0xff]  ;;  %v2998_v58 = vld [vmem:[%s7531_s3 + $0x118] sm:$0xff] }
 0x2ab   :  { %3087 = vmatpush.msra.mxu2 %v3010_v9  ;;  %3107 = vmatpush.msra.mxu3 %v3026_v22  ;;  %v2555_v9 = vpop.f32.mrf.mxu3  ;;  %v3003_v22 = vld [vmem:[%s7531_s3 + $0x140] sm:$0xff]  ;;  %v2996_v55 = vld [vmem:[%s7531_s3 + $0x108] sm:$0xff] }
 0x2ac   :  { %2914 = vmatmul.f32.vlgmr.msrb.gmra.mxu1 %v3198_v1  ;;  %2954 = vmatmul.f32.vlgmr.msrb.gmra.mxu3 %v3199_v2  ;;  %v2556_v35 = vadd.f32 %v2555_v9, %v2536_v40  ;;  %v3001_v1 = vld [vmem:[%s7531_s3 + $0x130] sm:$0xff]  ;;  %v2963_v37 = vld [vmem:[%s7531_s3] sm:$0xff] }
 0x2ad   :  { %3048 = vmatpush.msra.mxu0 %v2977_v44  ;;  %3068 = vmatpush.msra.mxu1 %v2993_v32  ;;  %v3018_v44 = vld [vmem:[%s7531_s3 + $0x1b8] sm:$0xff]  ;;  %v2236_v32 = vadd.f32 %v7070_v5, %v2216_v15  ;;  %v3017_v5 = vld [vmem:[%s7531_s3 + $0x1b0] sm:$0xff] }
 0x2ae   :  { %3088 = vmatpush.msra.mxu2 %v3009_v53  ;;  %3108 = vmatpush.msra.mxu3 %v3025_v17  ;;  %v2985_v53 = vld [vmem:[%s7531_s3 + $0xb0] sm:$0xff]  ;;  %v1936_v17 = vadd.f32 %v6828_v10, %v1916_v25  ;;  %v2984_v10 = vld [vmem:[%s7531_s3 + $0xa8] sm:$0xff]  ;;  %v2615_v61 = vpop.f32.mrf.mxu2  ;;  %v3042_v15 = vld [vmem:[%s7531_s3 + $0x278] sm:$0xff] }
 0x2af   :  { %3049 = vmatpush.msra.mxu0 %v2976_v38  ;;  %3069 = vmatpush.msra.mxu1 %v2992_v39  ;;  %v2256_v2 = vadd.f32 %v7050_v3, %v2236_v32  ;;  %v2576_v38 = vadd.f32 %v2575_v29, %v2556_v35  ;;  %v2968_v39 = vld [vmem:[%s7531_s3 + $0x28] sm:$0xff]  ;;  %v3041_v40 = vld [vmem:[%s7531_s3 + $0x270] sm:$0xff]  ;;  %v3034_v25 = vld [vmem:[%s7531_s3 + $0x238] sm:$0xff] }
 0x2b0   :  { %3089 = vmatpush.msra.mxu2 %v3008_v33  ;;  %3109 = vmatpush.msra.mxu3 %v3024_v7  ;;  %v3016_v3 = vld [vmem:[%s7531_s3 + $0x1a8] sm:$0xff]  ;;  %v2967_v33 = vld [vmem:[%s7531_s3 + $0x20] sm:$0xff]  ;;  %v1956_v46 = vadd.f32 %v6856_v19, %v1936_v17  ;;  %v2966_v19 = vld [vmem:[%s7531_s3 + $0x18] sm:$0xff] }
 0x2b1   :  { %3050 = vmatpush.msra.mxu0 %v2975_v62  ;;  %3070 = vmatpush.msra.mxu1 %v2991_v28  ;;  %v2983_v7 = vld [vmem:[%s7531_s3 + $0xa0] sm:$0xff]  ;;  %v2276_v47 = vadd.f32 %v7072_v6, %v2256_v2  ;;  %v3014_v6 = vld [vmem:[%s7531_s3 + $0x198] sm:$0xff]  ;;  %v3037_v9 = vld [vmem:[%s7531_s3 + $0x250] sm:$0xff] }
 0x2b2   :  { %3090 = vmatpush.msra.mxu2 %v3007_v52  ;;  %3110 = vmatpush.msra.mxu3 %v3023_v0  ;;  %v2999_v62 = vld [vmem:[%s7531_s3 + $0x120] sm:$0xff]  ;;  %v2596_v52 = vadd.f32 %v2595_v41, %v2576_v38  ;;  %v2982_v0 = vld [vmem:[%s7531_s3 + $0x98] sm:$0xff]  ;;  %v1976_v56 = vadd.f32 %v6876_v27, %v1956_v46  ;;  %v2981_v27 = vld [vmem:[%s7531_s3 + $0x90] sm:$0xff] }
 0x2b3   :  { %3051 = vmatpush.msra.mxu0 %v2974_v59  ;;  %3071 = vmatpush.msra.mxu1 %v2990_v54  ;;  %v3015_v28 = vld [vmem:[%s7531_s3 + $0x1a0] sm:$0xff]  ;;  %v2296_v59 = vadd.f32 %v7106_v24, %v2276_v47  ;;  %v3013_v24 = vld [vmem:[%s7531_s3 + $0x190] sm:$0xff]  ;;  %v3030_v38 = vld [vmem:[%s7531_s3 + $0x218] sm:$0xff] }
 0x2b4   :  { %3091 = vmatpush.msra.mxu2 %v3006_v4  ;;  %3111 = vmatpush.msra.mxu3 %v3022_v20  ;;  %v2616_v54 = vadd.f32 %v2615_v61, %v2596_v52  ;;  %v2635_v4 = vpop.f32.mrf.mxu3  ;;  %v2997_v20 = vld [vmem:[%s7531_s3 + $0x110] sm:$0xff]  ;;  %v1996_v48 = vadd.f32 %v6901_v36, %v1976_v56  ;;  %v2979_v36 = vld [vmem:[%s7531_s3 + $0x80] sm:$0xff] }
 0x2b5   :  { %3052 = vmatpush.msra.mxu0 %v2973_v30  ;;  %3072 = vmatpush.msra.mxu1 %v2989_v8  ;;  %v2964_v30 = vld [vmem:[%s7531_s3 + $0x8] sm:$0xff]  ;;  %v3029_v41 = vld [vmem:[%s7531_s3 + $0x210] sm:$0xff] }
 0x2b6   :  { %3092 = vmatpush.msra.mxu2 %v3005_v16  ;;  %3112 = vmatpush.msra.mxu3 %v3021_v50  ;;  %v2980_v8 = vld [vmem:[%s7531_s3 + $0x88] sm:$0xff]  ;;  %v2316_v50 = vadd.f32 %v7134_v45, %v2296_v59  ;;  %v2636_v51 = vadd.f32 %v2635_v4, %v2616_v54  ;;  %v3011_v45 = vld [vmem:[%s7531_s3 + $0x180] sm:$0xff]  ;;  %v2959_v13 = vmax.f32 %v1996_v48, 0.0 }
 0x2b7   :  { %3053 = vmatpush.msra.mxu0 %v2972_v63  ;;  %3073 = vmatpush.msra.mxu1 %v2988_v12  ;;  %v3012_v16 = vld [vmem:[%s7531_s3 + $0x188] sm:$0xff]  ;;  %v2995_v63 = vld [vmem:[%s7531_s3 + $0x100] sm:$0xff]  ;;  %v2958_v12 = vmax.f32 %v4858_v57, 0.0 }
 0x2b8   :  { %3093 = vmatpush.msra.mxu2 %v3004_v14  ;;  %3113 = vmatpush.msra.mxu3 %v3020_v34  ;;  %v2960_v14 = vmax.f32 %v2316_v50, 0.0  ;;  %v2961_v34 = vmax.f32 %v2636_v51, 0.0  ;;  %v3040_v57 = vld [vmem:[%s7531_s3 + $0x268] sm:$0xff] }
 0x2b9   :  { %3054 = vmatpush.msra.mxu0 %v2971_v21  ;;  %3074 = vmatpush.msra.mxu1 %v2987_v49  ;;  %v3039_v21 = vld [vmem:[%s7531_s3 + $0x260] sm:$0xff]  ;;  %v3038_v49 = vld [vmem:[%s7531_s3 + $0x258] sm:$0xff] }
 0x2ba   :  { %3094 = vmatpush.msra.mxu2 %v3003_v22  ;;  %3114 = vmatpush.msra.mxu3 %v3019_v42  ;;  %v3036_v22 = vld [vmem:[%s7531_s3 + $0x248] sm:$0xff]  ;;  %v1311_v42 = vperm.slane %v7089_v11, 4  ;;  %v3033_v11 = vld [vmem:[%s7531_s3 + $0x230] sm:$0xff] }
 0x2bb   :  { %3055 = vmatpush.msra.mxu0 %v2970_v23  ;;  %3075 = vmatpush.msra.mxu1 %v2986_v26  ;;  %v3035_v26 = vld [vmem:[%s7531_s3 + $0x240] sm:$0xff] }
 0x2bc   :  { %3095 = vmatpush.msra.mxu2 %v3002_v31  ;;  %3115 = vmatpush.msra.mxu3 %v3018_v44 }
 0x2bd   :  { %3056 = vmatpush.msra.mxu0 %v2969_v18  ;;  %3076 = vmatpush.msra.mxu1 %v2985_v53 }
 0x2be   :  { %3096 = vmatpush.msra.mxu2 %v3001_v1  ;;  %3116 = vmatpush.msra.mxu3 %v3017_v5  ;;  %v3032_v1 = vld [vmem:[%s7531_s3 + $0x228] sm:$0xff]  ;;  %v3031_v5 = vld [vmem:[%s7531_s3 + $0x220] sm:$0xff] }
 0x2bf   :  { %3057 = vmatpush.msra.mxu0 %v2968_v39  ;;  %3077 = vmatpush.msra.mxu1 %v2984_v10 }
 0x2c0   :  { %3097 = vmatpush.msra.mxu2 %v3000_v43  ;;  %3117 = vmatpush.msra.mxu3 %v3016_v3  ;;  %v3028_v3 = vld [vmem:[%s7531_s3 + $0x208] sm:$0xff] }
 0x2c1   :  { %3058 = vmatpush.msra.mxu0 %v2967_v33  ;;  %3078 = vmatpush.msra.mxu1 %v2983_v7  ;;  %v3027_v33 = vld [vmem:[%s7531_s3 + $0x200] sm:$0xff] }
 0x2c2   :  { %3098 = vmatpush.msra.mxu2 %v2999_v62  ;;  %3118 = vmatpush.msra.mxu3 %v3015_v28 }
 0x2c3   :  { %3059 = vmatpush.msra.mxu0 %v2966_v19  ;;  %3079 = vmatpush.msra.mxu1 %v2982_v0 }
 0x2c4   :  { %3099 = vmatpush.msra.mxu2 %v2998_v58  ;;  %3119 = vmatpush.msra.mxu3 %v3014_v6 }
 0x2c5   :  { %3060 = vmatpush.msra.mxu0 %v2965_v60  ;;  %3080 = vmatpush.msra.mxu1 %v2981_v27 }
 0x2c6   :  { %3100 = vmatpush.msra.mxu2 %v2997_v20  ;;  %3120 = vmatpush.msra.mxu3 %v3013_v24 }
 0x2c7   :  { %3061 = vmatpush.msra.mxu0 %v2964_v30  ;;  %3081 = vmatpush.msra.mxu1 %v2980_v8  ;;  %v3166_v8 = vld [vmem:[%s7532_s4] ss:$0 sm:$0xff] }
 0x2c8   :  { %3101 = vmatpush.msra.mxu2 %v2996_v55  ;;  %3121 = vmatpush.msra.mxu3 %v3012_v16 }
 0x2c9   :  { %3062 = vmatpush.msra.mxu0 %v2963_v37  ;;  %3082 = vmatpush.msra.mxu1 %v2979_v36 }
 0x2ca   :  { %3102 = vmatpush.msra.mxu2 %v2995_v63  ;;  %3122 = vmatpush.msra.mxu3 %v3011_v45 }
 0x2cb   :  { %3063 = vmatmul.f32.vlgmr.msra.gmra.mxu0 %v2958_v12  ;;  %3083 = vmatmul.f32.vlgmr.msra.gmra.mxu1 %v2959_v13 }
 0x2cc   :  { %3103 = vmatmul.f32.vlgmr.msra.gmra.mxu2 %v2960_v14  ;;  %3123 = vmatmul.f32.vlgmr.msra.gmra.mxu3 %v2961_v34 }
 0x2cd   :  { %3127 = vmatpush.msrb.mxu0 %v3042_v15 }
 0x2cf   :  { %3128 = vmatpush.msrb.mxu0 %v3041_v40 }
 0x2d1   :  { %3129 = vmatpush.msrb.mxu0 %v3040_v57 }
 0x2d3   :  { %3130 = vmatpush.msrb.mxu0 %v3039_v21 }
 0x2d5   :  { %3131 = vmatpush.msrb.mxu0 %v3038_v49 }
 0x2d7   :  { %3132 = vmatpush.msrb.mxu0 %v3037_v9 }
 0x2d9   :  { %3133 = vmatpush.msrb.mxu0 %v3036_v22 }
 0x2db   :  { %3134 = vmatpush.msrb.mxu0 %v3035_v26 }
 0x2dd   :  { %3135 = vmatpush.msrb.mxu0 %v3034_v25 }
 0x2df   :  { %3136 = vmatpush.msrb.mxu0 %v3033_v11 }
 0x2e0   :  { %v2655_v23 = vpop.f32.mrf.mxu0  ;;  %v2675_v31 = vpop.f32.mrf.mxu1 }
 0x2e1   :  { %v2656_v29 = vadd.f32 %v2655_v23, %v1311_v42  ;;  %3137 = vmatpush.msrb.mxu0 %v3032_v1 }
 0x2e3   :  { %v2676_v44 = vadd.f32 %v2675_v31, %v2656_v29  ;;  %3138 = vmatpush.msrb.mxu0 %v3031_v5 }
 0x2e5   :  { %3139 = vmatpush.msrb.mxu0 %v3030_v38 }
 0x2e7   :  { %v2695_v32 = vpop.f32.mrf.mxu2  ;;  %v2715_v18 = vpop.f32.mrf.mxu3  ;;  %3140 = vmatpush.msrb.mxu0 %v3029_v41 }
 0x2e8   :  { %v2696_v35 = vadd.f32 %v2695_v32, %v2676_v44 }
 0x2e9   :  { %3141 = vmatpush.msrb.mxu0 %v3028_v3 }
 0x2ea   :  { %v2716_v53 = vadd.f32 %v2715_v18, %v2696_v35 }
 0x2eb   :  { %3142 = vmatpush.msrb.mxu0 %v3027_v33 }
 0x2ec   :  { %v2735_v17 = vpop.f32.mrf.mxu0 }
 0x2ed   :  { %v2736_v2 = vadd.f32 %v2735_v17, %v2716_v53 }
 0x2ef   :  { %v2755_v39 = vpop.f32.mrf.mxu1 }
 0x2f0   :  { %v2756_v10 = vadd.f32 %v2755_v39, %v2736_v2  ;;  %v2775_v43 = vpop.f32.mrf.mxu2 }
 0x2f2   :  { %v2776_v7 = vadd.f32 %v2775_v43, %v2756_v10 }
 0x2f3   :  { %v2795_v46 = vpop.f32.mrf.mxu3 }
 0x2f4   :  { %v2796_v62 = vadd.f32 %v2795_v46, %v2776_v7 }
 0x304   :  { %v2815_v61 = vpop.f32.mrf.mxu0 }
 0x305   :  { %v2816_v28 = vadd.f32 %v2815_v61, %v2796_v62 }
 0x307   :  { %v2835_v47 = vpop.f32.mrf.mxu1 }
 0x308   :  { %v2836_v19 = vadd.f32 %v2835_v47, %v2816_v28 }
 0x30a   :  { %v2855_v52 = vpop.f32.mrf.mxu2 }
 0x30b   :  { %v2856_v0 = vadd.f32 %v2855_v52, %v2836_v19 }
 0x30d   :  { %v2875_v56 = vpop.f32.mrf.mxu3 }
 0x30e   :  { %v2876_v58 = vadd.f32 %v2875_v56, %v2856_v0 }
 0x326   :  { %v2895_v6 = vpop.f32.mrf.mxu0 }
 0x327   :  { %v2896_v59 = vadd.f32 %v2895_v6, %v2876_v58 }
 0x329   :  { %v2915_v54 = vpop.f32.mrf.mxu1 }
 0x32a   :  { %v2916_v60 = vadd.f32 %v2915_v54, %v2896_v59 }
 0x32c   :  { %v2935_v27 = vpop.f32.mrf.mxu2 }
 0x32d   :  { %v2936_v4 = vadd.f32 %v2935_v27, %v2916_v60 }
 0x32f   :  { %v2955_v20 = vpop.f32.mrf.mxu3 }
 0x330   :  { %v2956_v24 = vadd.f32 %v2955_v20, %v2936_v4 }
 0x332   :  { %v2962_v30 = vmax.f32 %v2956_v24, 0.0 }
 0x334   :  { %3143 = vmatmul.f32.vlgmr.msrb.gmra.mxu0 %v2962_v30 }
 0x348   :  { %v3064_v48 = vpop.f32.mrf.mxu0  ;;  %v3084_v16 = vpop.f32.mrf.mxu1 }
 0x349   :  { %v3065_v55 = vadd.f32 %v3166_v8, %v3064_v48 }
 0x34b   :  { %v3085_v51 = vadd.f32 %v3084_v16, %v3065_v55 }
 0x34f   :  { %v3104_v50 = vpop.f32.mrf.mxu2  ;;  %v3124_v36 = vpop.f32.mrf.mxu3 }
 0x350   :  { %v3105_v37 = vadd.f32 %v3104_v50, %v3085_v51 }
 0x352   :  { %v3125_v63 = vadd.f32 %v3124_v36, %v3105_v37 }
 0x3b1   :  { %v3144_v45 = vpop.f32.mrf.mxu0 }
 0x3b2   :  { %v3145_v12 = vadd.f32 %v3144_v45, %v3125_v63 }
 0x3b4   :  { %3148 = vst.msk [vmem:[#allocation2] sm:$0x3] %vm3147_vm0, %v3145_v12 }
 0x3b5   :  { %3159 = dma.vmem_to_hbm [thread:$0]  %s3155_s16, 32, %s3157_s0, [#allocation3]  }
 0x3b6   :  { %3224 = dma.done.wait [#allocation3], 32  }
 0x3b7   :  { %3225 = vsyncadd [#allocation3], 4294967264 }
 0x3b8   :  { %3164 = vsyncpa [#allocation3], 1 }

</bundles_post_ra>
